<compile_context>
chip_gen: v7x
topology: tpu7x:2x2x1
jax: 0.10.0
libtpu: 0.0.40
codegen_flags: <defaults>
</compile_context>

<pallas_src>
import jax
import jax.numpy as jnp
from jax import lax
from jax.experimental import pallas as pl
from jax.experimental.pallas import tpu as pltpu


# ----------------------------------------------------------------------------
# Kernel 1: fused conv1 + ReLU + pool + conv2 + ReLU + pool  (B images / step)
# ----------------------------------------------------------------------------
def conv_stack_kernel(p_ref, w1_ref, b1_ref, w2_ref, b2_ref, o_ref, pad_ref):
    # p_ref  : (B, 1024, 32) bf16  im2col patches, col = (dy*3+dx)*3 + cin (27 real + 5 zero)
    # w1_ref : (32, 32)      bf16  conv1 weights (rows 27..31 zero)
    # b1_ref : (1, 32)       f32
    # w2_ref : (9, 32, 64)   bf16  conv2 per-tap weights, k = dy*3+dx
    # b2_ref : (1, 64)       f32
    # o_ref  : (B, 64, 64)   bf16  pooled features [pixel = y*8+x, channel] (NHWC flatten)
    # pad_ref: (B, 18, 48, 32) bf16 scratch: spatially padded pool1, interior at [1:17,16:32)
    B = p_ref.shape[0]

    # ---- conv1: one im2col MXU matmul over all B images, bias + ReLU on the VPU ----
    lhs = p_ref[...].reshape(B * 1024, 32)
    h1 = jnp.dot(lhs, w1_ref[...], preferred_element_type=jnp.float32)     # (B*1024, 32)
    h1 = jnp.maximum(h1 + b1_ref[...], 0.0).astype(jnp.bfloat16)           # early bf16 cast

    # ---- 2x2 max-pool (stride 2): 32x32 -> 16x16 -----------------------------------
    v = h1.reshape(B, 32, 32, 32)                        # (b, y, x, c), c stays on lanes
    a = v.reshape(B, 16, 2, 32, 32)
    r = jnp.maximum(a[:, :, 0], a[:, :, 1])              # pool over y pairs
    bm = r.reshape(B, 16, 16, 2, 32)
    p1 = jnp.maximum(bm[:, :, :, 0, :], bm[:, :, :, 1, :])  # (B, 16, 16, 32) bf16

    # ---- refresh only the zero border strips the taps read (cheap, megacore-safe) ---
    zrow = jnp.zeros((B, 1, 48, 32), jnp.bfloat16)
    pad_ref[:, 0:1, :, :] = zrow                          # y = 0 border row
    pad_ref[:, 17:18, :, :] = zrow                        # y = 17 border row
    zcol = jnp.zeros((B, 18, 1, 32), jnp.bfloat16)
    pad_ref[:, :, 15:16, :] = zcol                        # x = 15 border column
    pad_ref[:, :, 32:33, :] = zcol                        # x = 32 border column
    # interior store is bf16-sublane-tile aligned (x offset 16, width 16)
    pad_ref[:, 1:17, 16:32, :] = p1

    # ---- conv2: 9 taps, each an M=(B*256), K=32, N=64 bf16 MXU dot, f32 accumulate --
    acc = jnp.zeros((B * 256, 64), jnp.float32)
    for dy in range(3):                                   # unrolled at trace time
        for dx in range(3):
            tap = pad_ref[:, dy:dy + 16, 15 + dx:31 + dx, :]       # (B, 16, 16, 32)
            acc = acc + jnp.dot(tap.reshape(B * 256, 32), w2_ref[3 * dy + dx],
                                preferred_element_type=jnp.float32)
    h2 = jnp.maximum(acc + b2_ref[...], 0.0).astype(jnp.bfloat16)  # (B*256, 64)

    # ---- 2x2 max-pool (stride 2): 16x16 -> 8x8 ---------------------------------------
    v2 = h2.reshape(B, 16, 16, 64)
    a2 = v2.reshape(B, 8, 2, 16, 64)
    r2 = jnp.maximum(a2[:, :, 0], a2[:, :, 1])
    b2m = r2.reshape(B, 8, 8, 2, 64)
    p2 = jnp.maximum(b2m[:, :, :, 0, :], b2m[:, :, :, 1, :])       # (B, 8, 8, 64)

    o_ref[...] = p2.reshape(B, 64, 64)                    # NHWC flatten order, bf16


def _pick_image_block(n):
    """Largest B in {16,8,4,2,1} dividing n while keeping grid >= 2 (when n >= 2)."""
    for b in (16, 8, 4, 2, 1):
        if n % b == 0 and n // b >= min(2, n):
            return b
    return 1


def conv_stack(patches, w1f, b1, w2f, b2):
    """patches: (N,1024,32) bf16 -> pooled features (N,64,64) bf16 (pixel-major, NHWC)."""
    N = patches.shape[0]
    B = _pick_image_block(N)
    return pl.pallas_call(
        conv_stack_kernel,
        out_shape=jax.ShapeDtypeStruct((N, 64, 64), jnp.bfloat16),
        grid=(N // B,),
        in_specs=[
            pl.BlockSpec((B, 1024, 32), lambda n: (n, 0, 0)),
            pl.BlockSpec((32, 32), lambda n: (0, 0)),       # constant: resident in VMEM
            pl.BlockSpec((1, 32), lambda n: (0, 0)),
            pl.BlockSpec((9, 32, 64), lambda n: (0, 0, 0)),
            pl.BlockSpec((1, 64), lambda n: (0, 0)),
        ],
        out_specs=pl.BlockSpec((B, 64, 64), lambda n: (n, 0, 0)),
        scratch_shapes=[pltpu.VMEM((B, 18, 48, 32), jnp.bfloat16)],
        compiler_params=pltpu.CompilerParams(dimension_semantics=("parallel",)),
    )(patches, w1f, b1, w2f, b2)


# ----------------------------------------------------------------------------
# Kernel 2: MLP head  relu(x @ W1 + b1) @ W2 + b2   (batched, bf16 MXU dots)
# ----------------------------------------------------------------------------
def mlp_kernel(x_ref, w1_ref, b1_ref, w2_ref, b2_ref, o_ref):
    h = jnp.dot(x_ref[...], w1_ref[...], preferred_element_type=jnp.float32)
    h = jnp.maximum(h + b1_ref[...], 0.0)
    o = jnp.dot(h.astype(jnp.bfloat16), w2_ref[...],
                preferred_element_type=jnp.float32) + b2_ref[...]
    o_ref[...] = o


def mlp_head(x, w1, b1, w2, b2):
    """x: (N,4096) bf16; w1: (4096,128) bf16; w2: (128,10) bf16 -> (N,10) f32."""
    N, K = x.shape
    F1, F2 = w1.shape[1], w2.shape[1]
    bm = N if N <= 256 else 256                        # larger batch tile (review item)
    return pl.pallas_call(
        mlp_kernel,
        out_shape=jax.ShapeDtypeStruct((N, F2), jnp.float32),
        grid=(pl.cdiv(N, bm),),
        in_specs=[
            pl.BlockSpec((bm, K), lambda i: (i, 0)),
            pl.BlockSpec((K, F1), lambda i: (0, 0)),
            pl.BlockSpec((1, F1), lambda i: (0, 0)),
            pl.BlockSpec((F1, F2), lambda i: (0, 0)),
            pl.BlockSpec((1, F2), lambda i: (0, 0)),
        ],
        out_specs=pl.BlockSpec((bm, F2), lambda i: (i, 0)),
        compiler_params=pltpu.CompilerParams(dimension_semantics=("parallel",)),
    )(x, w1, b1, w2, b2)


# ----------------------------------------------------------------------------
# Full forward pass
# ----------------------------------------------------------------------------
def simple_model_forward(x_nchw, params):
    """x_nchw: (N,3,32,32) f32 -> logits (N,10) f32."""
    (cw1, cb1, cw2, cb2, lw1, lb1, lw2, lb2) = params  # PyTorch-convention shapes
    N = x_nchw.shape[0]

    # ---- trace-time parameter prep (constant-folded under jit) -----------------------
    w1f = jnp.transpose(cw1, (2, 3, 1, 0)).reshape(27, 32)
    w1f = jnp.pad(w1f, ((0, 5), (0, 0))).astype(jnp.bfloat16)           # K padded 27 -> 32
    w2f = jnp.transpose(cw2, (2, 3, 1, 0)).reshape(9, 32, 64).astype(jnp.bfloat16)
    b1r = cb1.reshape(1, 32).astype(jnp.float32)
    b2r = cb2.reshape(1, 64).astype(jnp.float32)
    # Permute Linear(4096,128) rows from NCHW-flatten to NHWC-flatten order so the
    # activations need no runtime transpose.
    w1p = (lw1.reshape(128, 64, 8, 8).transpose(0, 2, 3, 1)
              .reshape(128, 4096).T).astype(jnp.bfloat16)                # (4096, 128)
    w2p = lw2.T.astype(jnp.bfloat16)                                     # (128, 10)
    b1l = lb1.reshape(1, 128).astype(jnp.float32)
    b2l = lb2.reshape(1, 10).astype(jnp.float32)

    # ---- conv1 im2col patches built once from the raw input (tiny, read-once) --------
    xp = jnp.pad(x_nchw, ((0, 0), (0, 0), (1, 1), (1, 1)))               # (N,3,34,34)
    taps = [xp[:, :, dy:dy + 32, dx:dx + 32] for dy in range(3) for dx in range(3)]
    pat = jnp.stack(taps, axis=1)                                        # (N,9,3,32,32)
    pat = pat.transpose(0, 3, 4, 1, 2).reshape(N, 1024, 27)
    pat = jnp.pad(pat, ((0, 0), (0, 0), (0, 5))).astype(jnp.bfloat16)    # (N,1024,32)

    feats = conv_stack(pat, w1f, b1r, w2f, b2r)                          # (N,64,64) bf16
    feats = feats.reshape(N, 4096)                      # free metadata reshape in HBM

    return mlp_head(feats, w1p, b1l, w2p, b2l)                           # (N,10)


# ----------------------------------------------------------------------------
# Pure-JAX reference (for correctness check)
# ----------------------------------------------------------------------------
def reference_forward(x_nchw, params):
    (cw1, cb1, cw2, cb2, lw1, lb1, lw2, lb2) = params

    def conv_block(x, w, b):
        y = lax.conv_general_dilated(
            x, w, window_strides=(1, 1), padding="SAME",
            dimension_numbers=("NCHW", "OIHW", "NCHW"))
        y = jax.nn.relu(y + b[None, :, None, None])
        return lax.reduce_window(y, -jnp.inf, lax.max,
                                 (1, 1, 2, 2), (1, 1, 2, 2), "VALID")

    y = conv_block(x_nchw, cw1, cb1)
    y = conv_block(y, cw2, cb2)
    y = y.reshape(y.shape[0], -1)
    y = jax.nn.relu(y @ lw1.T + lb1)
    return y @ lw2.T + lb2


def init_params(key):
    ks = jax.random.split(key, 8)
    cw1 = jax.random.normal(ks[0], (32, 3, 3, 3), jnp.float32) * 0.27
    cb1 = jax.random.normal(ks[1], (32,), jnp.float32) * 0.01
    cw2 = jax.random.normal(ks[2], (64, 32, 3, 3), jnp.float32) * 0.083
    cb2 = jax.random.normal(ks[3], (64,), jnp.float32) * 0.01
    lw1 = jax.random.normal(ks[4], (128, 4096), jnp.float32) * 0.022
    lb1 = jax.random.normal(ks[5], (128,), jnp.float32) * 0.01
    lw2 = jax.random.normal(ks[6], (10, 128), jnp.float32) * 0.125
    lb2 = jax.random.normal(ks[7], (10,), jnp.float32) * 0.01
    return (cw1, cb1, cw2, cb2, lw1, lb1, lw2, lb2)


if __name__ == "__main__":
    key = jax.random.PRNGKey(0)
    pkey, xkey = jax.random.split(key)
    params = init_params(pkey)

    # Linear(4096,128) after two 2x pools with 64 channels forces a 32x32x3 input.
    x = jax.random.normal(xkey, (2, 3, 32, 32), jnp.float32)

    out = jax.block_until_ready(jax.jit(simple_model_forward)(x, params))
    ref = jax.block_until_ready(reference_forward(x, params))

    assert out.shape == (2, 10), out.shape
    max_err = float(jnp.max(jnp.abs(out - ref)))
    scale = max(1.0, float(jnp.max(jnp.abs(ref))))
    # bf16 MXU operands with f32 accumulation vs. an f32 reference: tightened tolerance
    # (a layout/indexing bug would be orders of magnitude larger).
    assert max_err < 0.03 * scale, f"mismatch vs reference: {max_err} (scale {scale})"

    print("KERNEL_OK")
</pallas_src>

<mosaic_0001>
module attributes {stable_mosaic.version = 11 : i64} {
  func.func @conv_stack_kernel(%arg0: i32, %arg1: memref<1x1024x32xbf16, #tpu.memory_space<vmem>>, %arg2: memref<32x32xbf16, #tpu.memory_space<vmem>>, %arg3: memref<1x32xf32, #tpu.memory_space<vmem>>, %arg4: memref<9x32x64xbf16, #tpu.memory_space<vmem>>, %arg5: memref<1x64xf32, #tpu.memory_space<vmem>>, %arg6: memref<1x64x64xbf16, #tpu.memory_space<vmem>>, %arg7: memref<1x18x48x32xbf16, #tpu.memory_space<vmem>>) attributes {dimension_semantics = [#tpu.dimension_semantics<parallel>], iteration_bounds = array<i64: 2>, scalar_prefetch = 0 : i64, scratch_operands = 1 : i64, tpu.core_type = #tpu.core_type<tc>, window_params = [{transform_indices = @transform_0, window_bounds = array<i64: 1, 1024, 32>}, {pipeline_mode = #tpu.pipeline_mode<synchronous>, transform_indices = @transform_1, window_bounds = array<i64: 32, 32>}, {pipeline_mode = #tpu.pipeline_mode<synchronous>, transform_indices = @transform_2, window_bounds = array<i64: 1, 32>}, {pipeline_mode = #tpu.pipeline_mode<synchronous>, transform_indices = @transform_3, window_bounds = array<i64: 9, 32, 64>}, {pipeline_mode = #tpu.pipeline_mode<synchronous>, transform_indices = @transform_4, window_bounds = array<i64: 1, 64>}, {transform_indices = @transform_5, window_bounds = array<i64: 1, 64, 64>}]} {
    %c0 = arith.constant 0 : index
    %c0_0 = arith.constant 0 : index
    %c0_1 = arith.constant 0 : index
    %0 = vector.load %arg1[%c0, %c0_0, %c0_1] : memref<1x1024x32xbf16, #tpu.memory_space<vmem>>, vector<1x1024x32xbf16>
    %1 = vector.shape_cast %0 : vector<1x1024x32xbf16> to vector<1024x32xbf16>
    %c0_2 = arith.constant 0 : index
    %c0_3 = arith.constant 0 : index
    %2 = vector.load %arg2[%c0_2, %c0_3] : memref<32x32xbf16, #tpu.memory_space<vmem>>, vector<32x32xbf16>
    %cst = arith.constant dense<0.000000e+00> : vector<1024x32xf32>
    %3 = tpu.matmul %1, %2, %cst {dimension_numbers = #tpu.dot_dimension_numbers<[1], [0], [0], [1], [0, 0, 1, 1], [], []>} : vector<1024x32xbf16>, vector<32x32xbf16>, vector<1024x32xf32> -> vector<1024x32xf32>
    %c0_4 = arith.constant 0 : index
    %c0_5 = arith.constant 0 : index
    %4 = vector.load %arg3[%c0_4, %c0_5] : memref<1x32xf32, #tpu.memory_space<vmem>>, vector<1x32xf32>
    %5 = vector.broadcast %4 : vector<1x32xf32> to vector<1024x32xf32>
    %6 = arith.addf %3, %5 : vector<1024x32xf32>
    %cst_6 = arith.constant 0.000000e+00 : f32
    %7 = vector.broadcast %cst_6 : f32 to vector<1024x32xf32>
    %8 = arith.maximumf %6, %7 : vector<1024x32xf32>
    %9 = arith.truncf %8 : vector<1024x32xf32> to vector<1024x32xbf16>
    %10 = vector.shape_cast %9 : vector<1024x32xbf16> to vector<1x32x32x32xbf16>
    %11 = vector.shape_cast %10 : vector<1x32x32x32xbf16> to vector<1x16x2x32x32xbf16>
    %12 = vector.extract_strided_slice %11 {offsets = [0, 0, 0, 0, 0], sizes = [1, 16, 1, 32, 32], strides = [1, 1, 1, 1, 1]} : vector<1x16x2x32x32xbf16> to vector<1x16x1x32x32xbf16>
    %13 = vector.shape_cast %12 : vector<1x16x1x32x32xbf16> to vector<1x16x32x32xbf16>
    %14 = vector.extract_strided_slice %11 {offsets = [0, 0, 1, 0, 0], sizes = [1, 16, 1, 32, 32], strides = [1, 1, 1, 1, 1]} : vector<1x16x2x32x32xbf16> to vector<1x16x1x32x32xbf16>
    %15 = vector.shape_cast %14 : vector<1x16x1x32x32xbf16> to vector<1x16x32x32xbf16>
    %16 = arith.maximumf %13, %15 : vector<1x16x32x32xbf16>
    %17 = vector.shape_cast %16 : vector<1x16x32x32xbf16> to vector<1x16x16x2x32xbf16>
    %18 = vector.extract_strided_slice %17 {offsets = [0, 0, 0, 0, 0], sizes = [1, 16, 16, 1, 32], strides = [1, 1, 1, 1, 1]} : vector<1x16x16x2x32xbf16> to vector<1x16x16x1x32xbf16>
    %19 = vector.shape_cast %18 : vector<1x16x16x1x32xbf16> to vector<1x16x16x32xbf16>
    %20 = vector.extract_strided_slice %17 {offsets = [0, 0, 0, 1, 0], sizes = [1, 16, 16, 1, 32], strides = [1, 1, 1, 1, 1]} : vector<1x16x16x2x32xbf16> to vector<1x16x16x1x32xbf16>
    %21 = vector.shape_cast %20 : vector<1x16x16x1x32xbf16> to vector<1x16x16x32xbf16>
    %22 = arith.maximumf %19, %21 : vector<1x16x16x32xbf16>
    %cst_7 = arith.constant 0.000000e+00 : bf16
    %23 = vector.broadcast %cst_7 : bf16 to vector<1x1x48x32xbf16>
    %c0_8 = arith.constant 0 : index
    %c0_9 = arith.constant 0 : index
    %c0_10 = arith.constant 0 : index
    %c0_11 = arith.constant 0 : index
    %24 = vector.load %arg7[%c0_8, %c0_9, %c0_10, %c0_11] : memref<1x18x48x32xbf16, #tpu.memory_space<vmem>>, vector<1x1x48x32xbf16>
    tpu.vector_store %arg7[%c0_8, %c0_9, %c0_10, %c0_11], %23 {strides = array<i32>} : memref<1x18x48x32xbf16, #tpu.memory_space<vmem>>, vector<1x1x48x32xbf16>,
    %c0_12 = arith.constant 0 : index
    %c17 = arith.constant 17 : index
    %c0_13 = arith.constant 0 : index
    %c0_14 = arith.constant 0 : index
    %25 = vector.load %arg7[%c0_12, %c17, %c0_13, %c0_14] : memref<1x18x48x32xbf16, #tpu.memory_space<vmem>>, vector<1x1x48x32xbf16>
    tpu.vector_store %arg7[%c0_12, %c17, %c0_13, %c0_14], %23 {strides = array<i32>} : memref<1x18x48x32xbf16, #tpu.memory_space<vmem>>, vector<1x1x48x32xbf16>,
    %cst_15 = arith.constant 0.000000e+00 : bf16
    %26 = vector.broadcast %cst_15 : bf16 to vector<1x18x1x32xbf16>
    %c0_16 = arith.constant 0 : index
    %c0_17 = arith.constant 0 : index
    %c15 = arith.constant 15 : index
    %c0_18 = arith.constant 0 : index
    %27 = vector.load %arg7[%c0_16, %c0_17, %c15, %c0_18] : memref<1x18x48x32xbf16, #tpu.memory_space<vmem>>, vector<1x18x1x32xbf16>
    tpu.vector_store %arg7[%c0_16, %c0_17, %c15, %c0_18], %26 {strides = array<i32>} : memref<1x18x48x32xbf16, #tpu.memory_space<vmem>>, vector<1x18x1x32xbf16>,
    %c0_19 = arith.constant 0 : index
    %c0_20 = arith.constant 0 : index
    %c32 = arith.constant 32 : index
    %c0_21 = arith.constant 0 : index
    %28 = vector.load %arg7[%c0_19, %c0_20, %c32, %c0_21] : memref<1x18x48x32xbf16, #tpu.memory_space<vmem>>, vector<1x18x1x32xbf16>
    tpu.vector_store %arg7[%c0_19, %c0_20, %c32, %c0_21], %26 {strides = array<i32>} : memref<1x18x48x32xbf16, #tpu.memory_space<vmem>>, vector<1x18x1x32xbf16>,
    %c0_22 = arith.constant 0 : index
    %c1 = arith.constant 1 : index
    %c16 = arith.constant 16 : index
    %c0_23 = arith.constant 0 : index
    %29 = vector.load %arg7[%c0_22, %c1, %c16, %c0_23] : memref<1x18x48x32xbf16, #tpu.memory_space<vmem>>, vector<1x16x16x32xbf16>
    tpu.vector_store %arg7[%c0_22, %c1, %c16, %c0_23], %22 {strides = array<i32>} : memref<1x18x48x32xbf16, #tpu.memory_space<vmem>>, vector<1x16x16x32xbf16>,
    %cst_24 = arith.constant 0.000000e+00 : f32
    %30 = vector.broadcast %cst_24 : f32 to vector<256x64xf32>
    %c0_25 = arith.constant 0 : index
    %c0_26 = arith.constant 0 : index
    %c15_27 = arith.constant 15 : index
    %c0_28 = arith.constant 0 : index
    %31 = vector.load %arg7[%c0_25, %c0_26, %c15_27, %c0_28] : memref<1x18x48x32xbf16, #tpu.memory_space<vmem>>, vector<1x16x16x32xbf16>
    %32 = vector.shape_cast %31 : vector<1x16x16x32xbf16> to vector<256x32xbf16>
    %c0_29 = arith.constant 0 : index
    %c0_30 = arith.constant 0 : index
    %c0_31 = arith.constant 0 : index
    %33 = vector.load %arg4[%c0_29, %c0_30, %c0_31] : memref<9x32x64xbf16, #tpu.memory_space<vmem>>, vector<1x32x64xbf16>
    %34 = vector.shape_cast %33 : vector<1x32x64xbf16> to vector<32x64xbf16>
    %cst_32 = arith.constant dense<0.000000e+00> : vector<256x64xf32>
    %35 = tpu.matmul %32, %34, %cst_32 {dimension_numbers = #tpu.dot_dimension_numbers<[1], [0], [0], [1], [0, 0, 1, 1], [], []>} : vector<256x32xbf16>, vector<32x64xbf16>, vector<256x64xf32> -> vector<256x64xf32>
    %36 = arith.addf %30, %35 : vector<256x64xf32>
    %c0_33 = arith.constant 0 : index
    %c0_34 = arith.constant 0 : index
    %c16_35 = arith.constant 16 : index
    %c0_36 = arith.constant 0 : index
    %37 = vector.load %arg7[%c0_33, %c0_34, %c16_35, %c0_36] : memref<1x18x48x32xbf16, #tpu.memory_space<vmem>>, vector<1x16x16x32xbf16>
    %38 = vector.shape_cast %37 : vector<1x16x16x32xbf16> to vector<256x32xbf16>
    %c1_37 = arith.constant 1 : index
    %c0_38 = arith.constant 0 : index
    %c0_39 = arith.constant 0 : index
    %39 = vector.load %arg4[%c1_37, %c0_38, %c0_39] : memref<9x32x64xbf16, #tpu.memory_space<vmem>>, vector<1x32x64xbf16>
    %40 = vector.shape_cast %39 : vector<1x32x64xbf16> to vector<32x64xbf16>
    %cst_40 = arith.constant dense<0.000000e+00> : vector<256x64xf32>
    %41 = tpu.matmul %38, %40, %cst_40 {dimension_numbers = #tpu.dot_dimension_numbers<[1], [0], [0], [1], [0, 0, 1, 1], [], []>} : vector<256x32xbf16>, vector<32x64xbf16>, vector<256x64xf32> -> vector<256x64xf32>
    %42 = arith.addf %36, %41 : vector<256x64xf32>
    %c0_41 = arith.constant 0 : index
    %c0_42 = arith.constant 0 : index
    %c17_43 = arith.constant 17 : index
    %c0_44 = arith.constant 0 : index
    %43 = vector.load %arg7[%c0_41, %c0_42, %c17_43, %c0_44] : memref<1x18x48x32xbf16, #tpu.memory_space<vmem>>, vector<1x16x16x32xbf16>
    %44 = vector.shape_cast %43 : vector<1x16x16x32xbf16> to vector<256x32xbf16>
    %c2 = arith.constant 2 : index
    %c0_45 = arith.constant 0 : index
    %c0_46 = arith.constant 0 : index
    %45 = vector.load %arg4[%c2, %c0_45, %c0_46] : memref<9x32x64xbf16, #tpu.memory_space<vmem>>, vector<1x32x64xbf16>
    %46 = vector.shape_cast %45 : vector<1x32x64xbf16> to vector<32x64xbf16>
    %cst_47 = arith.constant dense<0.000000e+00> : vector<256x64xf32>
    %47 = tpu.matmul %44, %46, %cst_47 {dimension_numbers = #tpu.dot_dimension_numbers<[1], [0], [0], [1], [0, 0, 1, 1], [], []>} : vector<256x32xbf16>, vector<32x64xbf16>, vector<256x64xf32> -> vector<256x64xf32>
    %48 = arith.addf %42, %47 : vector<256x64xf32>
    %c0_48 = arith.constant 0 : index
    %c1_49 = arith.constant 1 : index
    %c15_50 = arith.constant 15 : index
    %c0_51 = arith.constant 0 : index
    %49 = vector.load %arg7[%c0_48, %c1_49, %c15_50, %c0_51] : memref<1x18x48x32xbf16, #tpu.memory_space<vmem>>, vector<1x16x16x32xbf16>
    %50 = vector.shape_cast %49 : vector<1x16x16x32xbf16> to vector<256x32xbf16>
    %c3 = arith.constant 3 : index
    %c0_52 = arith.constant 0 : index
    %c0_53 = arith.constant 0 : index
    %51 = vector.load %arg4[%c3, %c0_52, %c0_53] : memref<9x32x64xbf16, #tpu.memory_space<vmem>>, vector<1x32x64xbf16>
    %52 = vector.shape_cast %51 : vector<1x32x64xbf16> to vector<32x64xbf16>
    %cst_54 = arith.constant dense<0.000000e+00> : vector<256x64xf32>
    %53 = tpu.matmul %50, %52, %cst_54 {dimension_numbers = #tpu.dot_dimension_numbers<[1], [0], [0], [1], [0, 0, 1, 1], [], []>} : vector<256x32xbf16>, vector<32x64xbf16>, vector<256x64xf32> -> vector<256x64xf32>
    %54 = arith.addf %48, %53 : vector<256x64xf32>
    %c0_55 = arith.constant 0 : index
    %c1_56 = arith.constant 1 : index
    %c16_57 = arith.constant 16 : index
    %c0_58 = arith.constant 0 : index
    %55 = vector.load %arg7[%c0_55, %c1_56, %c16_57, %c0_58] : memref<1x18x48x32xbf16, #tpu.memory_space<vmem>>, vector<1x16x16x32xbf16>
    %56 = vector.shape_cast %55 : vector<1x16x16x32xbf16> to vector<256x32xbf16>
    %c4 = arith.constant 4 : index
    %c0_59 = arith.constant 0 : index
    %c0_60 = arith.constant 0 : index
    %57 = vector.load %arg4[%c4, %c0_59, %c0_60] : memref<9x32x64xbf16, #tpu.memory_space<vmem>>, vector<1x32x64xbf16>
    %58 = vector.shape_cast %57 : vector<1x32x64xbf16> to vector<32x64xbf16>
    %cst_61 = arith.constant dense<0.000000e+00> : vector<256x64xf32>
    %59 = tpu.matmul %56, %58, %cst_61 {dimension_numbers = #tpu.dot_dimension_numbers<[1], [0], [0], [1], [0, 0, 1, 1], [], []>} : vector<256x32xbf16>, vector<32x64xbf16>, vector<256x64xf32> -> vector<256x64xf32>
    %60 = arith.addf %54, %59 : vector<256x64xf32>
    %c0_62 = arith.constant 0 : index
    %c1_63 = arith.constant 1 : index
    %c17_64 = arith.constant 17 : index
    %c0_65 = arith.constant 0 : index
    %61 = vector.load %arg7[%c0_62, %c1_63, %c17_64, %c0_65] : memref<1x18x48x32xbf16, #tpu.memory_space<vmem>>, vector<1x16x16x32xbf16>
    %62 = vector.shape_cast %61 : vector<1x16x16x32xbf16> to vector<256x32xbf16>
    %c5 = arith.constant 5 : index
    %c0_66 = arith.constant 0 : index
    %c0_67 = arith.constant 0 : index
    %63 = vector.load %arg4[%c5, %c0_66, %c0_67] : memref<9x32x64xbf16, #tpu.memory_space<vmem>>, vector<1x32x64xbf16>
    %64 = vector.shape_cast %63 : vector<1x32x64xbf16> to vector<32x64xbf16>
    %cst_68 = arith.constant dense<0.000000e+00> : vector<256x64xf32>
    %65 = tpu.matmul %62, %64, %cst_68 {dimension_numbers = #tpu.dot_dimension_numbers<[1], [0], [0], [1], [0, 0, 1, 1], [], []>} : vector<256x32xbf16>, vector<32x64xbf16>, vector<256x64xf32> -> vector<256x64xf32>
    %66 = arith.addf %60, %65 : vector<256x64xf32>
    %c0_69 = arith.constant 0 : index
    %c2_70 = arith.constant 2 : index
    %c15_71 = arith.constant 15 : index
    %c0_72 = arith.constant 0 : index
    %67 = vector.load %arg7[%c0_69, %c2_70, %c15_71, %c0_72] : memref<1x18x48x32xbf16, #tpu.memory_space<vmem>>, vector<1x16x16x32xbf16>
    %68 = vector.shape_cast %67 : vector<1x16x16x32xbf16> to vector<256x32xbf16>
    %c6 = arith.constant 6 : index
    %c0_73 = arith.constant 0 : index
    %c0_74 = arith.constant 0 : index
    %69 = vector.load %arg4[%c6, %c0_73, %c0_74] : memref<9x32x64xbf16, #tpu.memory_space<vmem>>, vector<1x32x64xbf16>
    %70 = vector.shape_cast %69 : vector<1x32x64xbf16> to vector<32x64xbf16>
    %cst_75 = arith.constant dense<0.000000e+00> : vector<256x64xf32>
    %71 = tpu.matmul %68, %70, %cst_75 {dimension_numbers = #tpu.dot_dimension_numbers<[1], [0], [0], [1], [0, 0, 1, 1], [], []>} : vector<256x32xbf16>, vector<32x64xbf16>, vector<256x64xf32> -> vector<256x64xf32>
    %72 = arith.addf %66, %71 : vector<256x64xf32>
    %c0_76 = arith.constant 0 : index
    %c2_77 = arith.constant 2 : index
    %c16_78 = arith.constant 16 : index
    %c0_79 = arith.constant 0 : index
    %73 = vector.load %arg7[%c0_76, %c2_77, %c16_78, %c0_79] : memref<1x18x48x32xbf16, #tpu.memory_space<vmem>>, vector<1x16x16x32xbf16>
    %74 = vector.shape_cast %73 : vector<1x16x16x32xbf16> to vector<256x32xbf16>
    %c7 = arith.constant 7 : index
    %c0_80 = arith.constant 0 : index
    %c0_81 = arith.constant 0 : index
    %75 = vector.load %arg4[%c7, %c0_80, %c0_81] : memref<9x32x64xbf16, #tpu.memory_space<vmem>>, vector<1x32x64xbf16>
    %76 = vector.shape_cast %75 : vector<1x32x64xbf16> to vector<32x64xbf16>
    %cst_82 = arith.constant dense<0.000000e+00> : vector<256x64xf32>
    %77 = tpu.matmul %74, %76, %cst_82 {dimension_numbers = #tpu.dot_dimension_numbers<[1], [0], [0], [1], [0, 0, 1, 1], [], []>} : vector<256x32xbf16>, vector<32x64xbf16>, vector<256x64xf32> -> vector<256x64xf32>
    %78 = arith.addf %72, %77 : vector<256x64xf32>
    %c0_83 = arith.constant 0 : index
    %c2_84 = arith.constant 2 : index
    %c17_85 = arith.constant 17 : index
    %c0_86 = arith.constant 0 : index
    %79 = vector.load %arg7[%c0_83, %c2_84, %c17_85, %c0_86] : memref<1x18x48x32xbf16, #tpu.memory_space<vmem>>, vector<1x16x16x32xbf16>
    %80 = vector.shape_cast %79 : vector<1x16x16x32xbf16> to vector<256x32xbf16>
    %c8 = arith.constant 8 : index
    %c0_87 = arith.constant 0 : index
    %c0_88 = arith.constant 0 : index
    %81 = vector.load %arg4[%c8, %c0_87, %c0_88] : memref<9x32x64xbf16, #tpu.memory_space<vmem>>, vector<1x32x64xbf16>
    %82 = vector.shape_cast %81 : vector<1x32x64xbf16> to vector<32x64xbf16>
    %cst_89 = arith.constant dense<0.000000e+00> : vector<256x64xf32>
    %83 = tpu.matmul %80, %82, %cst_89 {dimension_numbers = #tpu.dot_dimension_numbers<[1], [0], [0], [1], [0, 0, 1, 1], [], []>} : vector<256x32xbf16>, vector<32x64xbf16>, vector<256x64xf32> -> vector<256x64xf32>
    %84 = arith.addf %78, %83 : vector<256x64xf32>
    %c0_90 = arith.constant 0 : index
    %c0_91 = arith.constant 0 : index
    %85 = vector.load %arg5[%c0_90, %c0_91] : memref<1x64xf32, #tpu.memory_space<vmem>>, vector<1x64xf32>
    %86 = vector.broadcast %85 : vector<1x64xf32> to vector<256x64xf32>
    %87 = arith.addf %84, %86 : vector<256x64xf32>
    %cst_92 = arith.constant 0.000000e+00 : f32
    %88 = vector.broadcast %cst_92 : f32 to vector<256x64xf32>
    %89 = arith.maximumf %87, %88 : vector<256x64xf32>
    %90 = arith.truncf %89 : vector<256x64xf32> to vector<256x64xbf16>
    %91 = vector.shape_cast %90 : vector<256x64xbf16> to vector<1x16x16x64xbf16>
    %92 = vector.shape_cast %91 : vector<1x16x16x64xbf16> to vector<1x8x2x16x64xbf16>
    %93 = vector.extract_strided_slice %92 {offsets = [0, 0, 0, 0, 0], sizes = [1, 8, 1, 16, 64], strides = [1, 1, 1, 1, 1]} : vector<1x8x2x16x64xbf16> to vector<1x8x1x16x64xbf16>
    %94 = vector.shape_cast %93 : vector<1x8x1x16x64xbf16> to vector<1x8x16x64xbf16>
    %95 = vector.extract_strided_slice %92 {offsets = [0, 0, 1, 0, 0], sizes = [1, 8, 1, 16, 64], strides = [1, 1, 1, 1, 1]} : vector<1x8x2x16x64xbf16> to vector<1x8x1x16x64xbf16>
    %96 = vector.shape_cast %95 : vector<1x8x1x16x64xbf16> to vector<1x8x16x64xbf16>
    %97 = arith.maximumf %94, %96 : vector<1x8x16x64xbf16>
    %98 = vector.shape_cast %97 : vector<1x8x16x64xbf16> to vector<1x8x8x2x64xbf16>
    %99 = vector.extract_strided_slice %98 {offsets = [0, 0, 0, 0, 0], sizes = [1, 8, 8, 1, 64], strides = [1, 1, 1, 1, 1]} : vector<1x8x8x2x64xbf16> to vector<1x8x8x1x64xbf16>
    %100 = vector.shape_cast %99 : vector<1x8x8x1x64xbf16> to vector<1x8x8x64xbf16>
    %101 = vector.extract_strided_slice %98 {offsets = [0, 0, 0, 1, 0], sizes = [1, 8, 8, 1, 64], strides = [1, 1, 1, 1, 1]} : vector<1x8x8x2x64xbf16> to vector<1x8x8x1x64xbf16>
    %102 = vector.shape_cast %101 : vector<1x8x8x1x64xbf16> to vector<1x8x8x64xbf16>
    %103 = arith.maximumf %100, %102 : vector<1x8x8x64xbf16>
    %104 = vector.shape_cast %103 : vector<1x8x8x64xbf16> to vector<1x64x64xbf16>
    %c0_93 = arith.constant 0 : index
    %c0_94 = arith.constant 0 : index
    %c0_95 = arith.constant 0 : index
    %105 = vector.load %arg6[%c0_93, %c0_94, %c0_95] : memref<1x64x64xbf16, #tpu.memory_space<vmem>>, vector<1x64x64xbf16>
    tpu.vector_store %arg6[%c0_93, %c0_94, %c0_95], %104 {strides = array<i32>} : memref<1x64x64xbf16, #tpu.memory_space<vmem>>, vector<1x64x64xbf16>,
    return
  }
  func.func @transform_0(%arg0: i32) -> (i32, i32, i32) {
    %c0_i32 = arith.constant 0 : i32
    %c0_i32_0 = arith.constant 0 : i32
    %c0_i32_1 = arith.constant 0 : i32
    return %arg0, %c0_i32, %c0_i32_0 : i32, i32, i32
  }
  func.func @transform_1(%arg0: i32) -> (i32, i32) {
    %c0_i32 = arith.constant 0 : i32
    %c0_i32_0 = arith.constant 0 : i32
    %c0_i32_1 = arith.constant 0 : i32
    return %c0_i32, %c0_i32_0 : i32, i32
  }
  func.func @transform_2(%arg0: i32) -> (i32, i32) {
    %c0_i32 = arith.constant 0 : i32
    %c0_i32_0 = arith.constant 0 : i32
    %c0_i32_1 = arith.constant 0 : i32
    return %c0_i32, %c0_i32_0 : i32, i32
  }
  func.func @transform_3(%arg0: i32) -> (i32, i32, i32) {
    %c0_i32 = arith.constant 0 : i32
    %c0_i32_0 = arith.constant 0 : i32
    %c0_i32_1 = arith.constant 0 : i32
    %c0_i32_2 = arith.constant 0 : i32
    return %c0_i32, %c0_i32_0, %c0_i32_1 : i32, i32, i32
  }
  func.func @transform_4(%arg0: i32) -> (i32, i32) {
    %c0_i32 = arith.constant 0 : i32
    %c0_i32_0 = arith.constant 0 : i32
    %c0_i32_1 = arith.constant 0 : i32
    return %c0_i32, %c0_i32_0 : i32, i32
  }
  func.func @transform_5(%arg0: i32) -> (i32, i32, i32) {
    %c0_i32 = arith.constant 0 : i32
    %c0_i32_0 = arith.constant 0 : i32
    %c0_i32_1 = arith.constant 0 : i32
    return %arg0, %c0_i32, %c0_i32_0 : i32, i32, i32
  }
}

module attributes {stable_mosaic.version = 11 : i64} {
  func.func @mlp_kernel(%arg0: i32, %arg1: memref<2x4096xbf16, #tpu.memory_space<vmem>>, %arg2: memref<4096x128xbf16, #tpu.memory_space<vmem>>, %arg3: memref<1x128xf32, #tpu.memory_space<vmem>>, %arg4: memref<128x10xbf16, #tpu.memory_space<vmem>>, %arg5: memref<1x10xf32, #tpu.memory_space<vmem>>, %arg6: memref<2x10xf32, #tpu.memory_space<vmem>>) attributes {dimension_semantics = [#tpu.dimension_semantics<parallel>], iteration_bounds = array<i64: 1>, scalar_prefetch = 0 : i64, scratch_operands = 0 : i64, tpu.core_type = #tpu.core_type<tc>, window_params = [{transform_indices = @transform_0, window_bounds = array<i64: 2, 4096>}, {pipeline_mode = #tpu.pipeline_mode<synchronous>, transform_indices = @transform_1, window_bounds = array<i64: 4096, 128>}, {pipeline_mode = #tpu.pipeline_mode<synchronous>, transform_indices = @transform_2, window_bounds = array<i64: 1, 128>}, {pipeline_mode = #tpu.pipeline_mode<synchronous>, transform_indices = @transform_3, window_bounds = array<i64: 128, 10>}, {pipeline_mode = #tpu.pipeline_mode<synchronous>, transform_indices = @transform_4, window_bounds = array<i64: 1, 10>}, {transform_indices = @transform_5, window_bounds = array<i64: 2, 10>}]} {
    %c0 = arith.constant 0 : index
    %c0_0 = arith.constant 0 : index
    %0 = vector.load %arg1[%c0, %c0_0] : memref<2x4096xbf16, #tpu.memory_space<vmem>>, vector<2x4096xbf16>
    %c0_1 = arith.constant 0 : index
    %c0_2 = arith.constant 0 : index
    %1 = vector.load %arg2[%c0_1, %c0_2] : memref<4096x128xbf16, #tpu.memory_space<vmem>>, vector<4096x128xbf16>
    %cst = arith.constant dense<0.000000e+00> : vector<2x128xf32>
    %2 = tpu.matmul %0, %1, %cst {dimension_numbers = #tpu.dot_dimension_numbers<[1], [0], [0], [1], [0, 0, 1, 1], [], []>} : vector<2x4096xbf16>, vector<4096x128xbf16>, vector<2x128xf32> -> vector<2x128xf32>
    %c0_3 = arith.constant 0 : index
    %c0_4 = arith.constant 0 : index
    %3 = vector.load %arg3[%c0_3, %c0_4] : memref<1x128xf32, #tpu.memory_space<vmem>>, vector<1x128xf32>
    %4 = vector.broadcast %3 : vector<1x128xf32> to vector<2x128xf32>
    %5 = arith.addf %2, %4 : vector<2x128xf32>
    %cst_5 = arith.constant 0.000000e+00 : f32
    %6 = vector.broadcast %cst_5 : f32 to vector<2x128xf32>
    %7 = arith.maximumf %5, %6 : vector<2x128xf32>
    %8 = arith.truncf %7 : vector<2x128xf32> to vector<2x128xbf16>
    %c0_6 = arith.constant 0 : index
    %c0_7 = arith.constant 0 : index
    %9 = vector.load %arg4[%c0_6, %c0_7] : memref<128x10xbf16, #tpu.memory_space<vmem>>, vector<128x10xbf16>
    %cst_8 = arith.constant dense<0.000000e+00> : vector<2x10xf32>
    %10 = tpu.matmul %8, %9, %cst_8 {dimension_numbers = #tpu.dot_dimension_numbers<[1], [0], [0], [1], [0, 0, 1, 1], [], []>} : vector<2x128xbf16>, vector<128x10xbf16>, vector<2x10xf32> -> vector<2x10xf32>
    %c0_9 = arith.constant 0 : index
    %c0_10 = arith.constant 0 : index
    %11 = vector.load %arg5[%c0_9, %c0_10] : memref<1x10xf32, #tpu.memory_space<vmem>>, vector<1x10xf32>
    %12 = vector.broadcast %11 : vector<1x10xf32> to vector<2x10xf32>
    %13 = arith.addf %10, %12 : vector<2x10xf32>
    %c0_11 = arith.constant 0 : index
    %c0_12 = arith.constant 0 : index
    %14 = vector.load %arg6[%c0_11, %c0_12] : memref<2x10xf32, #tpu.memory_space<vmem>>, vector<2x10xf32>
    tpu.vector_store %arg6[%c0_11, %c0_12], %13 {strides = array<i32>} : memref<2x10xf32, #tpu.memory_space<vmem>>, vector<2x10xf32>,
    return
  }
  func.func @transform_0(%arg0: i32) -> (i32, i32) {
    %c0_i32 = arith.constant 0 : i32
    %c0_i32_0 = arith.constant 0 : i32
    return %arg0, %c0_i32 : i32, i32
  }
  func.func @transform_1(%arg0: i32) -> (i32, i32) {
    %c0_i32 = arith.constant 0 : i32
    %c0_i32_0 = arith.constant 0 : i32
    %c0_i32_1 = arith.constant 0 : i32
    return %c0_i32, %c0_i32_0 : i32, i32
  }
  func.func @transform_2(%arg0: i32) -> (i32, i32) {
    %c0_i32 = arith.constant 0 : i32
    %c0_i32_0 = arith.constant 0 : i32
    %c0_i32_1 = arith.constant 0 : i32
    return %c0_i32, %c0_i32_0 : i32, i32
  }
  func.func @transform_3(%arg0: i32) -> (i32, i32) {
    %c0_i32 = arith.constant 0 : i32
    %c0_i32_0 = arith.constant 0 : i32
    %c0_i32_1 = arith.constant 0 : i32
    return %c0_i32, %c0_i32_0 : i32, i32
  }
  func.func @transform_4(%arg0: i32) -> (i32, i32) {
    %c0_i32 = arith.constant 0 : i32
    %c0_i32_0 = arith.constant 0 : i32
    %c0_i32_1 = arith.constant 0 : i32
    return %c0_i32, %c0_i32_0 : i32, i32
  }
  func.func @transform_5(%arg0: i32) -> (i32, i32) {
    %c0_i32 = arith.constant 0 : i32
    %c0_i32_0 = arith.constant 0 : i32
    return %arg0, %c0_i32 : i32, i32
  }
}

</mosaic_0001>

<bundles_post_ra>
// kernel: simple_model_forward.3
= control target key start
LH: loop header
LB: loop body
LE: loop exit
PB: predicated region body
PF: predicated region fallthrough
CT: control target
= control target key end

     0   :  { %v553_v28 = vlaneseq  ;;  %v4025_v36 = vmov 1966171168   ;;  %s4927_s0 = inlined_call_operand.vmem [shape: bf16[2,4096], index: 0, kind: input, shape index: {}]   ;;  %s4928_s1 = inlined_call_operand.vmem [shape: bf16[4096,128], index: 1, kind: input, shape index: {}]   ;;  %s4929_s2 = inlined_call_operand.vmem [shape: f32[1,128], index: 2, kind: input, shape index: {}]   ;;  %s4930_s3 = inlined_call_operand.vmem [shape: bf16[128,10], index: 3, kind: input, shape index: {}]   ;;  %s4931_s4 = inlined_call_operand.vmem [shape: f32[1,10], index: 4, kind: input, shape index: {}]   ;;  %s4932_s5 = inlined_call_operand.hbm [shape: f32[2,10], index: 5, kind: output, shape index: {}]  }
   0x1   :  { %v3733_v0 = vld [vmem:[%s4928_s1 + $0x40] sm:$0xff]   ;;  %v3737_v4 = vld [vmem:[%s4928_s1 + $0x48] sm:$0xff]   ;;  %v3741_v8 = vld [vmem:[%s4928_s1 + $0x50] sm:$0xff]   ;;  %v551_v37 = vunpack.c.l.s4 %v4025_v36 }
   0x2   :  { %v3734_v1 = vld [vmem:[%s4928_s1 + $0xc0] sm:$0xff]   ;;  %3348 = vmatprep.subr.bf16.mxu0 %v3733_v0  ;;  %v3738_v5 = vld [vmem:[%s4928_s1 + $0xc8] sm:$0xff]   ;;  %v3742_v9 = vld [vmem:[%s4928_s1 + $0xd0] sm:$0xff]   ;;  %v554_v33 = vshrl.u32 %v553_v28, 7 }
   0x3   :  { %v3735_v2 = vld [vmem:[%s4928_s1] sm:$0xff]   ;;  %3370 = vmatprep.subr.bf16.mxu1 %v3734_v1  ;;  %v3739_v6 = vld [vmem:[%s4928_s1 + $0x8] sm:$0xff]   ;;  %v3743_v10 = vld [vmem:[%s4928_s1 + $0x10] sm:$0xff]   ;;  %v552_v40 = vunpack.c.0.s8 %v551_v37 }
   0x4   :  { %v3736_v3 = vld [vmem:[%s4928_s1 + $0x80] sm:$0xff]   ;;  %3349 = vmatpush3.bf16.msra.mxu0 %v3735_v2  ;;  %v3740_v7 = vld [vmem:[%s4928_s1 + $0x88] sm:$0xff]   ;;  %v3744_v11 = vld [vmem:[%s4928_s1 + $0x90] sm:$0xff]  }
   0x5   :  { %3371 = vmatpush3.bf16.msra.mxu1 %v3736_v3  ;;  %3350 = vmatprep.subr.bf16.mxu0 %v3737_v4  ;;  %v3745_v12 = vld [vmem:[%s4928_s1 + $0x58] sm:$0xff]   ;;  %v3749_v16 = vld [vmem:[%s4928_s1 + $0x60] sm:$0xff]   ;;  %v3753_v20 = vld [vmem:[%s4928_s1 + $0x68] sm:$0xff]   ;;  %v4164_v41 = vsub.s32 %v552_v40, %v554_v33 }
   0x6   :  { %3372 = vmatprep.subr.bf16.mxu1 %v3738_v5  ;;  %v3746_v13 = vld [vmem:[%s4928_s1 + $0xd8] sm:$0xff]   ;;  %v3750_v17 = vld [vmem:[%s4928_s1 + $0xe0] sm:$0xff]   ;;  %v3754_v21 = vld [vmem:[%s4928_s1 + $0xe8] sm:$0xff]  }
   0x7   :  { %v3747_v14 = vld [vmem:[%s4928_s1 + $0x18] sm:$0xff]   ;;  %v3751_v18 = vld [vmem:[%s4928_s1 + $0x20] sm:$0xff]   ;;  %v3755_v22 = vld [vmem:[%s4928_s1 + $0x28] sm:$0xff]  }
   0x8   :  { %3351 = vmatpush3.bf16.msra.mxu0 %v3739_v6  ;;  %v3748_v15 = vld [vmem:[%s4928_s1 + $0x98] sm:$0xff]   ;;  %v3752_v19 = vld [vmem:[%s4928_s1 + $0xa0] sm:$0xff]   ;;  %v3756_v23 = vld [vmem:[%s4928_s1 + $0xa8] sm:$0xff]  }
   0x9   :  { %3373 = vmatpush3.bf16.msra.mxu1 %v3740_v7  ;;  %3352 = vmatprep.subr.bf16.mxu0 %v3741_v8  ;;  %v3757_v24 = vld [vmem:[%s4928_s1 + $0x70] sm:$0xff]   ;;  %v3761_v29 = vld [vmem:[%s4928_s1 + $0x78] sm:$0xff]   ;;  %v22_v34 = vld [vmem:[%s4927_s0] sm:$0xff] }
   0xa   :  { %3374 = vmatprep.subr.bf16.mxu1 %v3742_v9  ;;  %v3758_v25 = vld [vmem:[%s4928_s1 + $0xf0] sm:$0xff]   ;;  %v3762_v30 = vld [vmem:[%s4928_s1 + $0xf8] sm:$0xff]   ;;  %v3766_v35 = vld [vmem:[%s4928_s1 + $0x140] sm:$0xff]   ;;  %v549_v39 = vcombine.high %v22_v34, %v22_v34  ;;  %v556_v42 = vrot.slane %v22_v34, %v4164_v41 }
   0xb   :  { %v3759_v26 = vld [vmem:[%s4928_s1 + $0x30] sm:$0xff]   ;;  %v3763_v31 = vld [vmem:[%s4928_s1 + $0x38] sm:$0xff]   ;;  %v3767_v38 = vld [vmem:[%s4928_s1 + $0x1c0] sm:$0xff]  }
   0xc   :  { %3353 = vmatpush3.bf16.msra.mxu0 %v3743_v10  ;;  %v3760_v27 = vld [vmem:[%s4928_s1 + $0xb0] sm:$0xff]   ;;  %v3764_v32 = vld [vmem:[%s4928_s1 + $0xb8] sm:$0xff]   ;;  %v4168_v43 = vrot.slane %v549_v39, %v4164_v41  ;;  %v564_v44 = vcombine.high %v556_v42, %v556_v42  ;;  %v572_v45 = vrot.slane %v556_v42, %v4164_v41  ;;  %v3768_v47 = vld [vmem:[%s4928_s1 + $0x100] sm:$0xff]  }
   0xd   :  { %3375 = vmatpush3.bf16.msra.mxu1 %v3744_v11  ;;  %3354 = vmatprep.subr.bf16.mxu0 %v3745_v12  ;;  %v3769_v49 = vld [vmem:[%s4928_s1 + $0x180] sm:$0xff]   ;;  %v3770_v52 = vld [vmem:[%s4928_s1 + $0x148] sm:$0xff]   ;;  %v3774_v58 = vld [vmem:[%s4928_s1 + $0x150] sm:$0xff]  }
   0xe   :  { %3376 = vmatprep.subr.bf16.mxu1 %v3746_v13  ;;  %v565_v46 = vcombine.high %v4168_v43, %v4168_v43  ;;  %v586_v48 = vrot.slane %v564_v44, %v4164_v41  ;;  %v594_v51 = vcombine.high %v572_v45, %v572_v45  ;;  %v3771_v54 = vld [vmem:[%s4928_s1 + $0x1c8] sm:$0xff]   ;;  %v3775_v59 = vld [vmem:[%s4928_s1 + $0x1d0] sm:$0xff]   ;;  %v3778_v62 = vld [vmem:[%s4928_s1 + $0x158] sm:$0xff]  }
   0xf   :  { %v3772_v55 = vld [vmem:[%s4928_s1 + $0x108] sm:$0xff]   ;;  %v3776_v60 = vld [vmem:[%s4928_s1 + $0x110] sm:$0xff]   ;;  %v3779_v63 = vld [vmem:[%s4928_s1 + $0x1d8] sm:$0xff]  }
  0x10   :  { %3355 = vmatpush3.bf16.msra.mxu0 %v3747_v14  ;;  %v593_v50 = vrot.slane %v565_v46, %v4164_v41  ;;  %2345 = vmatprep.mubr.bf16.mxu0 %v586_v48  ;;  %v596_v53 = vcombine.high %v586_v48, %v586_v48  ;;  %v3773_v57 = vld [vmem:[%s4928_s1 + $0x188] sm:$0xff]   ;;  %v3777_v61 = vld [vmem:[%s4928_s1 + $0x190] sm:$0xff]   ;;  %v3780_v0 = vld [vmem:[%s4928_s1 + $0x118] sm:$0xff]  }
  0x11   :  { %3377 = vmatpush3.bf16.msra.mxu1 %v3748_v15  ;;  %3356 = vmatprep.subr.bf16.mxu0 %v3749_v16  ;;  %v3781_v1 = vld [vmem:[%s4928_s1 + $0x198] sm:$0xff]   ;;  %v3782_v2 = vld [vmem:[%s4928_s1 + $0x160] sm:$0xff]   ;;  %v3786_v6 = vld [vmem:[%s4928_s1 + $0x168] sm:$0xff]  }
  0x12   :  { %3378 = vmatprep.subr.bf16.mxu1 %v3750_v17  ;;  %v597_v56 = vcombine.high %v593_v50, %v593_v50  ;;  %2385 = vmatprep.mubr.bf16.mxu1 %v596_v53  ;;  %v3783_v3 = vld [vmem:[%s4928_s1 + $0x1e0] sm:$0xff]   ;;  %v3787_v7 = vld [vmem:[%s4928_s1 + $0x1e8] sm:$0xff]   ;;  %v3790_v10 = vld [vmem:[%s4928_s1 + $0x170] sm:$0xff]  }
  0x13   :  { %v3784_v4 = vld [vmem:[%s4928_s1 + $0x120] sm:$0xff]   ;;  %v3788_v8 = vld [vmem:[%s4928_s1 + $0x128] sm:$0xff]   ;;  %v3791_v11 = vld [vmem:[%s4928_s1 + $0x1f0] sm:$0xff]  }
  0x14   :  { %3357 = vmatpush3.bf16.msra.mxu0 %v3751_v18  ;;  %v3785_v5 = vld [vmem:[%s4928_s1 + $0x1a0] sm:$0xff]   ;;  %v3789_v9 = vld [vmem:[%s4928_s1 + $0x1a8] sm:$0xff]   ;;  %v3792_v12 = vld [vmem:[%s4928_s1 + $0x130] sm:$0xff]   ;;  %v579_v18 = vrot.slane %v4168_v43, %v4164_v41 }
  0x15   :  { %3379 = vmatpush3.bf16.msra.mxu1 %v3752_v19  ;;  %3358 = vmatprep.subr.bf16.mxu0 %v3753_v20  ;;  %v3793_v13 = vld [vmem:[%s4928_s1 + $0x1b0] sm:$0xff]   ;;  %v3794_v14 = vld [vmem:[%s4928_s1 + $0x178] sm:$0xff]   ;;  %v3798_v19 = vld [vmem:[%s4928_s1 + $0x240] sm:$0xff]  }
  0x16   :  { %3380 = vmatprep.subr.bf16.mxu1 %v3754_v21  ;;  %v3795_v15 = vld [vmem:[%s4928_s1 + $0x1f8] sm:$0xff]   ;;  %v3799_v20 = vld [vmem:[%s4928_s1 + $0x2c0] sm:$0xff]   ;;  %v3806_v28 = vld [vmem:[%s4928_s1 + $0x250] sm:$0xff]  }
  0x17   :  { %v3796_v16 = vld [vmem:[%s4928_s1 + $0x138] sm:$0xff]   ;;  %v3800_v21 = vld [vmem:[%s4928_s1 + $0x200] sm:$0xff]   ;;  %v3818_v40 = vld [vmem:[%s4928_s1 + $0x268] sm:$0xff]  }
  0x18   :  { %3359 = vmatpush3.bf16.msra.mxu0 %v3755_v22  ;;  %v3797_v17 = vld [vmem:[%s4928_s1 + $0x1b8] sm:$0xff]   ;;  %v3801_v22 = vld [vmem:[%s4928_s1 + $0x280] sm:$0xff]   ;;  %v3819_v42 = vld [vmem:[%s4928_s1 + $0x2e8] sm:$0xff]  }
  0x19   :  { %3381 = vmatpush3.bf16.msra.mxu1 %v3756_v23  ;;  %3360 = vmatprep.subr.bf16.mxu0 %v3757_v24  ;;  %v595_v23 = vcombine.high %v579_v18, %v579_v18  ;;  %v3802_v24 = vld [vmem:[%s4928_s1 + $0x248] sm:$0xff]   ;;  %v3811_v33 = vld [vmem:[%s4928_s1 + $0x2d8] sm:$0xff]   ;;  %v3814_v36 = vld [vmem:[%s4928_s1 + $0x260] sm:$0xff]  }
  0x1a   :  { %3382 = vmatprep.subr.bf16.mxu1 %v3758_v25  ;;  %v3803_v25 = vld [vmem:[%s4928_s1 + $0x2c8] sm:$0xff]   ;;  %v3812_v34 = vld [vmem:[%s4928_s1 + $0x218] sm:$0xff]   ;;  %v3815_v37 = vld [vmem:[%s4928_s1 + $0x2e0] sm:$0xff]  }
  0x1b   :  { %v3817_v39 = vld [vmem:[%s4928_s1 + $0x2a0] sm:$0xff]   ;;  %v3820_v43 = vld [vmem:[%s4928_s1 + $0x228] sm:$0xff]  }
  0x1c   :  { %3361 = vmatpush3.bf16.msra.mxu0 %v3759_v26  ;;  %v3804_v26 = vld [vmem:[%s4928_s1 + $0x208] sm:$0xff]  }
  0x1d   :  { %3383 = vmatpush3.bf16.msra.mxu1 %v3760_v27  ;;  %3362 = vmatprep.subr.bf16.mxu0 %v3761_v29  ;;  %v3805_v27 = vld [vmem:[%s4928_s1 + $0x288] sm:$0xff]   ;;  %v3807_v29 = vld [vmem:[%s4928_s1 + $0x2d0] sm:$0xff]  }
  0x1e   :  { %3384 = vmatprep.subr.bf16.mxu1 %v3762_v30  ;;  %v3808_v30 = vld [vmem:[%s4928_s1 + $0x210] sm:$0xff]   ;;  %v3821_v44 = vld [vmem:[%s4928_s1 + $0x2a8] sm:$0xff]  }
  0x1f   :  { %v23_v46 = vld [vmem:[%s4927_s0 + $0x8] sm:$0xff] }
  0x20   :  { %3363 = vmatpush3.bf16.msra.mxu0 %v3763_v31  ;;  %v3809_v31 = vld [vmem:[%s4928_s1 + $0x290] sm:$0xff]   ;;  %v605_v48 = vrot.slane %v23_v46, %v4164_v41 }
  0x21   :  { %3385 = vmatpush3.bf16.msra.mxu1 %v3764_v32  ;;  %3392 = vmatprep.subr.bf16.mxu0 %v3766_v35  ;;  %v3810_v32 = vld [vmem:[%s4928_s1 + $0x258] sm:$0xff]  }
  0x22   :  { %3414 = vmatprep.subr.bf16.mxu1 %v3767_v38  ;;  %v3813_v35 = vld [vmem:[%s4928_s1 + $0x298] sm:$0xff]   ;;  %v3816_v38 = vld [vmem:[%s4928_s1 + $0x220] sm:$0xff]  }
  0x23   :  { %2346 = vmatmul.mubr.bf16.vlgmr.msra.gmra.mrb[0].mxu0 %v572_v45  ;;  %v3822_v45 = vld [vmem:[%s4928_s1 + $0x270] sm:$0xff]  }
  0x24   :  { %3393 = vmatpush3.bf16.msra.mxu0 %v3768_v47  ;;  %2386 = vmatmul.mubr.bf16.vlgmr.msra.gmra.mrb[0].mxu1 %v594_v51  ;;  %v3823_v47 = vld [vmem:[%s4928_s1 + $0x2f0] sm:$0xff]  }
  0x25   :  { %3394 = vmatprep.subr.bf16.mxu0 %v3770_v52  ;;  %3415 = vmatpush3.bf16.msra.mxu1 %v3769_v49  ;;  %v598_v49 = vcombine.high %v23_v46, %v23_v46  ;;  %v3825_v51 = vld [vmem:[%s4928_s1 + $0x2b0] sm:$0xff]   ;;  %v613_v52 = vcombine.high %v605_v48, %v605_v48 }
  0x26   :  { %2425 = vmatprep.mubr.bf16.mxu0 %v593_v50  ;;  %3416 = vmatprep.subr.bf16.mxu1 %v3771_v54  ;;  %v3824_v50 = vld [vmem:[%s4928_s1 + $0x230] sm:$0xff]   ;;  %v3826_v54 = vld [vmem:[%s4928_s1 + $0x278] sm:$0xff]  }
  0x27   :  { %2465 = vmatprep.mubr.bf16.mxu1 %v597_v56  ;;  %v4356_v53 = vrot.slane %v598_v49, %v4164_v41  ;;  %v635_v56 = vrot.slane %v613_v52, %v4164_v41  ;;  %v3873_v46 = vld [vmem:[%s4928_s1 + $0x410] sm:$0xff]   ;;  %v3876_v49 = vld [vmem:[%s4928_s1 + $0x4d8] sm:$0xff]   ;;  %v3879_v52 = vld [vmem:[%s4928_s1 + $0x460] sm:$0xff]  }
  0x28   :  { %3395 = vmatpush3.bf16.msra.mxu0 %v3772_v55  ;;  %v3827_v55 = vld [vmem:[%s4928_s1 + $0x2f8] sm:$0xff]  }
  0x29   :  { %3396 = vmatprep.subr.bf16.mxu0 %v3774_v58  ;;  %3417 = vmatpush3.bf16.msra.mxu1 %v3773_v57  ;;  %v614_v57 = vcombine.high %v4356_v53, %v4356_v53  ;;  %v3828_v58 = vld [vmem:[%s4928_s1 + $0x238] sm:$0xff]  }
  0x2a   :  { %3418 = vmatprep.subr.bf16.mxu1 %v3775_v59  ;;  %v3829_v59 = vld [vmem:[%s4928_s1 + $0x2b8] sm:$0xff]  }
  0x2c   :  { %3397 = vmatpush3.bf16.msra.mxu0 %v3776_v60  ;;  %v645_v60 = vcombine.high %v635_v56, %v635_v56 }
  0x2d   :  { %3398 = vmatprep.subr.bf16.mxu0 %v3778_v62  ;;  %3419 = vmatpush3.bf16.msra.mxu1 %v3777_v61  ;;  %v621_v61 = vrot.slane %v605_v48, %v4164_v41  ;;  %v3830_v62 = vld [vmem:[%s4928_s1 + $0x340] sm:$0xff]   ;;  %v3875_v48 = vld [vmem:[%s4928_s1 + $0x458] sm:$0xff]  }
  0x2e   :  { %3420 = vmatprep.subr.bf16.mxu1 %v3779_v63  ;;  %v3831_v63 = vld [vmem:[%s4928_s1 + $0x3c0] sm:$0xff]  }
  0x30   :  { %3399 = vmatpush3.bf16.msra.mxu0 %v3780_v0  ;;  %v642_v0 = vrot.slane %v614_v57, %v4164_v41  ;;  %v3884_v57 = vld [vmem:[%s4928_s1 + $0x4e8] sm:$0xff]  }
  0x31   :  { %3400 = vmatprep.subr.bf16.mxu0 %v3782_v2  ;;  %3421 = vmatpush3.bf16.msra.mxu1 %v3781_v1  ;;  %v3832_v1 = vld [vmem:[%s4928_s1 + $0x300] sm:$0xff]  }
  0x32   :  { %3422 = vmatprep.subr.bf16.mxu1 %v3783_v3  ;;  %v3833_v2 = vld [vmem:[%s4928_s1 + $0x380] sm:$0xff]   ;;  %v643_v3 = vcombine.high %v621_v61, %v621_v61 }
  0x34   :  { %3401 = vmatpush3.bf16.msra.mxu0 %v3784_v4  ;;  %v3834_v4 = vld [vmem:[%s4928_s1 + $0x348] sm:$0xff]  }
  0x35   :  { %3402 = vmatprep.subr.bf16.mxu0 %v3786_v6  ;;  %3423 = vmatpush3.bf16.msra.mxu1 %v3785_v5  ;;  %v3835_v5 = vld [vmem:[%s4928_s1 + $0x3c8] sm:$0xff]   ;;  %v646_v6 = vcombine.high %v642_v0, %v642_v0 }
  0x36   :  { %3424 = vmatprep.subr.bf16.mxu1 %v3787_v7  ;;  %v3836_v7 = vld [vmem:[%s4928_s1 + $0x308] sm:$0xff]  }
  0x38   :  { %3403 = vmatpush3.bf16.msra.mxu0 %v3788_v8  ;;  %v3837_v8 = vld [vmem:[%s4928_s1 + $0x388] sm:$0xff]  }
  0x39   :  { %3404 = vmatprep.subr.bf16.mxu0 %v3790_v10  ;;  %3425 = vmatpush3.bf16.msra.mxu1 %v3789_v9  ;;  %v3838_v9 = vld [vmem:[%s4928_s1 + $0x350] sm:$0xff]  }
  0x3a   :  { %3426 = vmatprep.subr.bf16.mxu1 %v3791_v11  ;;  %v3839_v10 = vld [vmem:[%s4928_s1 + $0x3d0] sm:$0xff]  }
  0x3b   :  { %v3840_v11 = vld [vmem:[%s4928_s1 + $0x310] sm:$0xff]  }
  0x3c   :  { %3405 = vmatpush3.bf16.msra.mxu0 %v3792_v12  ;;  %v3841_v12 = vld [vmem:[%s4928_s1 + $0x390] sm:$0xff]  }
  0x3d   :  { %3406 = vmatprep.subr.bf16.mxu0 %v3794_v14  ;;  %3427 = vmatpush3.bf16.msra.mxu1 %v3793_v13  ;;  %v3842_v13 = vld [vmem:[%s4928_s1 + $0x358] sm:$0xff]  }
  0x3e   :  { %3428 = vmatprep.subr.bf16.mxu1 %v3795_v15  ;;  %v3843_v14 = vld [vmem:[%s4928_s1 + $0x3d8] sm:$0xff]  }
  0x3f   :  { %v3844_v15 = vld [vmem:[%s4928_s1 + $0x318] sm:$0xff]  }
  0x40   :  { %3407 = vmatpush3.bf16.msra.mxu0 %v3796_v16  ;;  %v3845_v16 = vld [vmem:[%s4928_s1 + $0x398] sm:$0xff]  }
  0x41   :  { %3436 = vmatprep.subr.bf16.mxu0 %v3798_v19  ;;  %3429 = vmatpush3.bf16.msra.mxu1 %v3797_v17  ;;  %v3846_v17 = vld [vmem:[%s4928_s1 + $0x360] sm:$0xff]  }
  0x42   :  { %3458 = vmatprep.subr.bf16.mxu1 %v3799_v20  ;;  %v3848_v19 = vld [vmem:[%s4928_s1 + $0x320] sm:$0xff]  }
  0x43   :  { %2426 = vmatmul.mubr.bf16.vlgmr.msra.gmra.mrb[4].mxu0 %v579_v18  ;;  %v3847_v18 = vld [vmem:[%s4928_s1 + $0x3e0] sm:$0xff]  }
  0x44   :  { %3437 = vmatpush3.bf16.msra.mxu0 %v3800_v21  ;;  %2466 = vmatmul.mubr.bf16.vlgmr.msra.gmra.mrb[4].mxu1 %v595_v23  ;;  %v3849_v20 = vld [vmem:[%s4928_s1 + $0x3a0] sm:$0xff]   ;;  %v3850_v21 = vld [vmem:[%s4928_s1 + $0x368] sm:$0xff]  }
  0x45   :  { %3438 = vmatprep.subr.bf16.mxu0 %v3802_v24  ;;  %3459 = vmatpush3.bf16.msra.mxu1 %v3801_v22  ;;  %v3851_v22 = vld [vmem:[%s4928_s1 + $0x3e8] sm:$0xff]  }
  0x46   :  { %3460 = vmatprep.subr.bf16.mxu1 %v3803_v25  ;;  %2505 = vmatprep.mubr.bf16.mxu0 %v635_v56  ;;  %v3852_v23 = vld [vmem:[%s4928_s1 + $0x328] sm:$0xff]   ;;  %v3854_v25 = vld [vmem:[%s4928_s1 + $0x370] sm:$0xff]  }
  0x47   :  { %2545 = vmatprep.mubr.bf16.mxu1 %v645_v60  ;;  %v3853_v24 = vld [vmem:[%s4928_s1 + $0x3a8] sm:$0xff]   ;;  %v3887_v60 = vld [vmem:[%s4928_s1 + $0x470] sm:$0xff]  }
  0x48   :  { %3439 = vmatpush3.bf16.msra.mxu0 %v3804_v26  ;;  %v3855_v26 = vld [vmem:[%s4928_s1 + $0x3f0] sm:$0xff]   ;;  %v3883_v56 = vld [vmem:[%s4928_s1 + $0x468] sm:$0xff]  }
  0x49   :  { %3440 = vmatprep.subr.bf16.mxu0 %v3806_v28  ;;  %3461 = vmatpush3.bf16.msra.mxu1 %v3805_v27  ;;  %v3856_v27 = vld [vmem:[%s4928_s1 + $0x330] sm:$0xff]  }
  0x4a   :  { %3462 = vmatprep.subr.bf16.mxu1 %v3807_v29  ;;  %v3857_v28 = vld [vmem:[%s4928_s1 + $0x3b0] sm:$0xff]   ;;  %v3858_v29 = vld [vmem:[%s4928_s1 + $0x378] sm:$0xff]  }
  0x4c   :  { %3441 = vmatpush3.bf16.msra.mxu0 %v3808_v30  ;;  %v3859_v30 = vld [vmem:[%s4928_s1 + $0x3f8] sm:$0xff]  }
  0x4d   :  { %3442 = vmatprep.subr.bf16.mxu0 %v3810_v32  ;;  %3463 = vmatpush3.bf16.msra.mxu1 %v3809_v31  ;;  %v3860_v31 = vld [vmem:[%s4928_s1 + $0x338] sm:$0xff]  }
  0x4e   :  { %3464 = vmatprep.subr.bf16.mxu1 %v3811_v33  ;;  %v3861_v32 = vld [vmem:[%s4928_s1 + $0x3b8] sm:$0xff]   ;;  %v628_v33 = vrot.slane %v4356_v53, %v4164_v41  ;;  %v3880_v53 = vld [vmem:[%s4928_s1 + $0x4e0] sm:$0xff]  }
  0x50   :  { %3443 = vmatpush3.bf16.msra.mxu0 %v3812_v34  ;;  %v3863_v34 = vld [vmem:[%s4928_s1 + $0x440] sm:$0xff]  }
  0x51   :  { %3444 = vmatprep.subr.bf16.mxu0 %v3814_v36  ;;  %3465 = vmatpush3.bf16.msra.mxu1 %v3813_v35  ;;  %v3864_v35 = vld [vmem:[%s4928_s1 + $0x4c0] sm:$0xff]  }
  0x52   :  { %3466 = vmatprep.subr.bf16.mxu1 %v3815_v37  ;;  %v3865_v36 = vld [vmem:[%s4928_s1 + $0x400] sm:$0xff]  }
  0x53   :  { %v3866_v37 = vld [vmem:[%s4928_s1 + $0x480] sm:$0xff]  }
  0x54   :  { %3445 = vmatpush3.bf16.msra.mxu0 %v3816_v38  ;;  %v644_v38 = vcombine.high %v628_v33, %v628_v33 }
  0x55   :  { %3446 = vmatprep.subr.bf16.mxu0 %v3818_v40  ;;  %3467 = vmatpush3.bf16.msra.mxu1 %v3817_v39  ;;  %v3867_v39 = vld [vmem:[%s4928_s1 + $0x448] sm:$0xff]  }
  0x56   :  { %3468 = vmatprep.subr.bf16.mxu1 %v3819_v42  ;;  %v3868_v40 = vld [vmem:[%s4928_s1 + $0x4c8] sm:$0xff]  }
  0x57   :  { %v3869_v42 = vld [vmem:[%s4928_s1 + $0x408] sm:$0xff]  }
  0x58   :  { %3447 = vmatpush3.bf16.msra.mxu0 %v3820_v43  ;;  %v3870_v43 = vld [vmem:[%s4928_s1 + $0x488] sm:$0xff]  }
  0x59   :  { %3448 = vmatprep.subr.bf16.mxu0 %v3822_v45  ;;  %3469 = vmatpush3.bf16.msra.mxu1 %v3821_v44  ;;  %v3871_v44 = vld [vmem:[%s4928_s1 + $0x450] sm:$0xff]  }
  0x5a   :  { %3470 = vmatprep.subr.bf16.mxu1 %v3823_v47  ;;  %v3872_v45 = vld [vmem:[%s4928_s1 + $0x4d0] sm:$0xff]  }
  0x5b   :  { %v3874_v47 = vld [vmem:[%s4928_s1 + $0x490] sm:$0xff]  }
  0x5c   :  { %3449 = vmatpush3.bf16.msra.mxu0 %v3824_v50  ;;  %v3877_v50 = vld [vmem:[%s4928_s1 + $0x418] sm:$0xff]  }
  0x5d   :  { %3450 = vmatprep.subr.bf16.mxu0 %v3826_v54  ;;  %3471 = vmatpush3.bf16.msra.mxu1 %v3825_v51  ;;  %v3878_v51 = vld [vmem:[%s4928_s1 + $0x498] sm:$0xff]   ;;  %v3881_v54 = vld [vmem:[%s4928_s1 + $0x420] sm:$0xff]  }
  0x5e   :  { %3472 = vmatprep.subr.bf16.mxu1 %v3827_v55  ;;  %v3882_v55 = vld [vmem:[%s4928_s1 + $0x4a0] sm:$0xff]  }
  0x60   :  { %3451 = vmatpush3.bf16.msra.mxu0 %v3828_v58  ;;  %v3885_v58 = vld [vmem:[%s4928_s1 + $0x428] sm:$0xff]  }
  0x61   :  { %3480 = vmatprep.subr.bf16.mxu0 %v3830_v62  ;;  %3473 = vmatpush3.bf16.msra.mxu1 %v3829_v59  ;;  %v3886_v59 = vld [vmem:[%s4928_s1 + $0x4a8] sm:$0xff]   ;;  %v3888_v62 = vld [vmem:[%s4928_s1 + $0x4f0] sm:$0xff]  }
  0x62   :  { %3502 = vmatprep.subr.bf16.mxu1 %v3831_v63 }
  0x63   :  { %2506 = vmatmul.mubr.bf16.vlgmr.msra.gmra.mrb[8].mxu0 %v621_v61  ;;  %v24_v61 = vld [vmem:[%s4927_s0 + $0x10] sm:$0xff] }
  0x64   :  { %3481 = vmatpush3.bf16.msra.mxu0 %v3832_v1  ;;  %2585 = vmatprep.mubr.bf16.mxu0 %v642_v0  ;;  %v654_v63 = vrot.slane %v24_v61, %v4164_v41  ;;  %v647_v0 = vcombine.high %v24_v61, %v24_v61  ;;  %v3889_v1 = vld [vmem:[%s4928_s1 + $0x430] sm:$0xff]  }
  0x65   :  { %2546 = vmatmul.mubr.bf16.vlgmr.msra.gmra.mrb[8].mxu1 %v643_v3  ;;  %3482 = vmatprep.subr.bf16.mxu0 %v3834_v4  ;;  %v3938_v61 = vld [vmem:[%s4928_s1 + $0x610] sm:$0xff]  }
  0x66   :  { %3503 = vmatpush3.bf16.msra.mxu1 %v3833_v2  ;;  %2625 = vmatprep.mubr.bf16.mxu1 %v646_v6  ;;  %v3890_v2 = vld [vmem:[%s4928_s1 + $0x4b0] sm:$0xff]   ;;  %v662_v3 = vcombine.high %v654_v63, %v654_v63  ;;  %v4562_v4 = vrot.slane %v647_v0, %v4164_v41  ;;  %v3892_v6 = vld [vmem:[%s4928_s1 + $0x4f8] sm:$0xff]  }
  0x67   :  { %3504 = vmatprep.subr.bf16.mxu1 %v3835_v5  ;;  %v3891_v5 = vld [vmem:[%s4928_s1 + $0x478] sm:$0xff]  }
  0x68   :  { %3483 = vmatpush3.bf16.msra.mxu0 %v3836_v7  ;;  %v684_v7 = vrot.slane %v662_v3, %v4164_v41  ;;  %v3941_v0 = vld [vmem:[%s4928_s1 + $0x6d8] sm:$0xff]   ;;  %v3944_v3 = vld [vmem:[%s4928_s1 + $0x660] sm:$0xff]  }
  0x69   :  { %3484 = vmatprep.subr.bf16.mxu0 %v3838_v9  ;;  %v3893_v9 = vld [vmem:[%s4928_s1 + $0x438] sm:$0xff]  }
  0x6a   :  { %3505 = vmatpush3.bf16.msra.mxu1 %v3837_v8  ;;  %v663_v8 = vcombine.high %v4562_v4, %v4562_v4 }
  0x6b   :  { %3506 = vmatprep.subr.bf16.mxu1 %v3839_v10  ;;  %v3894_v10 = vld [vmem:[%s4928_s1 + $0x4b8] sm:$0xff]  }
  0x6c   :  { %3485 = vmatpush3.bf16.msra.mxu0 %v3840_v11  ;;  %v694_v11 = vcombine.high %v684_v7, %v684_v7 }
  0x6d   :  { %3486 = vmatprep.subr.bf16.mxu0 %v3842_v13  ;;  %v3895_v13 = vld [vmem:[%s4928_s1 + $0x540] sm:$0xff]  }
  0x6e   :  { %3507 = vmatpush3.bf16.msra.mxu1 %v3841_v12  ;;  %v670_v12 = vrot.slane %v654_v63, %v4164_v41  ;;  %v3940_v63 = vld [vmem:[%s4928_s1 + $0x658] sm:$0xff]  }
  0x6f   :  { %3508 = vmatprep.subr.bf16.mxu1 %v3843_v14  ;;  %v3896_v14 = vld [vmem:[%s4928_s1 + $0x5c0] sm:$0xff]  }
  0x70   :  { %3487 = vmatpush3.bf16.msra.mxu0 %v3844_v15  ;;  %v691_v15 = vrot.slane %v663_v8, %v4164_v41  ;;  %v3949_v8 = vld [vmem:[%s4928_s1 + $0x6e8] sm:$0xff]  }
  0x71   :  { %3488 = vmatprep.subr.bf16.mxu0 %v3846_v17  ;;  %v3898_v17 = vld [vmem:[%s4928_s1 + $0x580] sm:$0xff]  }
  0x72   :  { %3509 = vmatpush3.bf16.msra.mxu1 %v3845_v16  ;;  %v3897_v16 = vld [vmem:[%s4928_s1 + $0x500] sm:$0xff]  }
  0x73   :  { %3510 = vmatprep.subr.bf16.mxu1 %v3847_v18  ;;  %v692_v18 = vcombine.high %v670_v12, %v670_v12 }
  0x74   :  { %3489 = vmatpush3.bf16.msra.mxu0 %v3848_v19  ;;  %v3899_v19 = vld [vmem:[%s4928_s1 + $0x548] sm:$0xff]  }
  0x75   :  { %3490 = vmatprep.subr.bf16.mxu0 %v3850_v21  ;;  %v695_v21 = vcombine.high %v691_v15, %v691_v15 }
  0x76   :  { %3511 = vmatpush3.bf16.msra.mxu1 %v3849_v20  ;;  %v3900_v20 = vld [vmem:[%s4928_s1 + $0x5c8] sm:$0xff]  }
  0x77   :  { %3512 = vmatprep.subr.bf16.mxu1 %v3851_v22  ;;  %v3901_v22 = vld [vmem:[%s4928_s1 + $0x508] sm:$0xff]  }
  0x78   :  { %3491 = vmatpush3.bf16.msra.mxu0 %v3852_v23  ;;  %v3902_v23 = vld [vmem:[%s4928_s1 + $0x588] sm:$0xff]  }
  0x79   :  { %3492 = vmatprep.subr.bf16.mxu0 %v3854_v25  ;;  %v3904_v25 = vld [vmem:[%s4928_s1 + $0x5d0] sm:$0xff]  }
  0x7a   :  { %3513 = vmatpush3.bf16.msra.mxu1 %v3853_v24  ;;  %v3903_v24 = vld [vmem:[%s4928_s1 + $0x550] sm:$0xff]  }
  0x7b   :  { %3514 = vmatprep.subr.bf16.mxu1 %v3855_v26  ;;  %v3905_v26 = vld [vmem:[%s4928_s1 + $0x510] sm:$0xff]  }
  0x7c   :  { %3493 = vmatpush3.bf16.msra.mxu0 %v3856_v27  ;;  %v3906_v27 = vld [vmem:[%s4928_s1 + $0x590] sm:$0xff]  }
  0x7d   :  { %3494 = vmatprep.subr.bf16.mxu0 %v3858_v29  ;;  %v3908_v29 = vld [vmem:[%s4928_s1 + $0x5d8] sm:$0xff]  }
  0x7e   :  { %3515 = vmatpush3.bf16.msra.mxu1 %v3857_v28  ;;  %v3907_v28 = vld [vmem:[%s4928_s1 + $0x558] sm:$0xff]  }
  0x7f   :  { %3516 = vmatprep.subr.bf16.mxu1 %v3859_v30  ;;  %v3909_v30 = vld [vmem:[%s4928_s1 + $0x518] sm:$0xff]  }
  0x80   :  { %3495 = vmatpush3.bf16.msra.mxu0 %v3860_v31  ;;  %v3910_v31 = vld [vmem:[%s4928_s1 + $0x598] sm:$0xff]  }
  0x81   :  { %3524 = vmatprep.subr.bf16.mxu0 %v3863_v34  ;;  %v3913_v34 = vld [vmem:[%s4928_s1 + $0x520] sm:$0xff]  }
  0x82   :  { %3517 = vmatpush3.bf16.msra.mxu1 %v3861_v32  ;;  %v3911_v32 = vld [vmem:[%s4928_s1 + $0x560] sm:$0xff]  }
  0x83   :  { %2586 = vmatmul.mubr.bf16.vlgmr.msra.gmra.mrb[12].mxu0 %v628_v33  ;;  %3546 = vmatprep.subr.bf16.mxu1 %v3864_v35  ;;  %v3912_v33 = vld [vmem:[%s4928_s1 + $0x5e0] sm:$0xff]  }
  0x84   :  { %3525 = vmatpush3.bf16.msra.mxu0 %v3865_v36  ;;  %2665 = vmatprep.mubr.bf16.mxu0 %v684_v7  ;;  %v3914_v35 = vld [vmem:[%s4928_s1 + $0x5a0] sm:$0xff]   ;;  %v3915_v36 = vld [vmem:[%s4928_s1 + $0x568] sm:$0xff]  }
  0x85   :  { %2626 = vmatmul.mubr.bf16.vlgmr.msra.gmra.mrb[12].mxu1 %v644_v38  ;;  %3526 = vmatprep.subr.bf16.mxu0 %v3867_v39  ;;  %v3917_v38 = vld [vmem:[%s4928_s1 + $0x528] sm:$0xff]  }
  0x86   :  { %3547 = vmatpush3.bf16.msra.mxu1 %v3866_v37  ;;  %2705 = vmatprep.mubr.bf16.mxu1 %v694_v11  ;;  %v3916_v37 = vld [vmem:[%s4928_s1 + $0x5e8] sm:$0xff]   ;;  %v3952_v11 = vld [vmem:[%s4928_s1 + $0x670] sm:$0xff]  }
  0x87   :  { %3548 = vmatprep.subr.bf16.mxu1 %v3868_v40  ;;  %v3918_v39 = vld [vmem:[%s4928_s1 + $0x5a8] sm:$0xff]   ;;  %v3919_v40 = vld [vmem:[%s4928_s1 + $0x570] sm:$0xff]  }
  0x88   :  { %3527 = vmatpush3.bf16.msra.mxu0 %v3869_v42  ;;  %v3920_v42 = vld [vmem:[%s4928_s1 + $0x5f0] sm:$0xff]   ;;  %v3948_v7 = vld [vmem:[%s4928_s1 + $0x668] sm:$0xff]  }
  0x89   :  { %3528 = vmatprep.subr.bf16.mxu0 %v3871_v44  ;;  %v3922_v44 = vld [vmem:[%s4928_s1 + $0x5b0] sm:$0xff]  }
  0x8a   :  { %3549 = vmatpush3.bf16.msra.mxu1 %v3870_v43  ;;  %v3921_v43 = vld [vmem:[%s4928_s1 + $0x530] sm:$0xff]  }
  0x8b   :  { %3550 = vmatprep.subr.bf16.mxu1 %v3872_v45  ;;  %v3923_v45 = vld [vmem:[%s4928_s1 + $0x578] sm:$0xff]  }
  0x8c   :  { %3529 = vmatpush3.bf16.msra.mxu0 %v3873_v46  ;;  %v3924_v46 = vld [vmem:[%s4928_s1 + $0x5f8] sm:$0xff]  }
  0x8d   :  { %3530 = vmatprep.subr.bf16.mxu0 %v3875_v48  ;;  %v3926_v48 = vld [vmem:[%s4928_s1 + $0x5b8] sm:$0xff]  }
  0x8e   :  { %3551 = vmatpush3.bf16.msra.mxu1 %v3874_v47  ;;  %v3925_v47 = vld [vmem:[%s4928_s1 + $0x538] sm:$0xff]  }
  0x8f   :  { %3552 = vmatprep.subr.bf16.mxu1 %v3876_v49  ;;  %v677_v49 = vrot.slane %v4562_v4, %v4164_v41  ;;  %v3945_v4 = vld [vmem:[%s4928_s1 + $0x6e0] sm:$0xff]  }
  0x90   :  { %3531 = vmatpush3.bf16.msra.mxu0 %v3877_v50  ;;  %v3928_v50 = vld [vmem:[%s4928_s1 + $0x640] sm:$0xff]  }
  0x91   :  { %3532 = vmatprep.subr.bf16.mxu0 %v3879_v52  ;;  %v3930_v52 = vld [vmem:[%s4928_s1 + $0x600] sm:$0xff]  }
  0x92   :  { %3553 = vmatpush3.bf16.msra.mxu1 %v3878_v51  ;;  %v3929_v51 = vld [vmem:[%s4928_s1 + $0x6c0] sm:$0xff]  }
  0x93   :  { %3554 = vmatprep.subr.bf16.mxu1 %v3880_v53  ;;  %v3931_v53 = vld [vmem:[%s4928_s1 + $0x680] sm:$0xff]  }
  0x94   :  { %3533 = vmatpush3.bf16.msra.mxu0 %v3881_v54  ;;  %v693_v54 = vcombine.high %v677_v49, %v677_v49 }
  0x95   :  { %3534 = vmatprep.subr.bf16.mxu0 %v3883_v56  ;;  %v3933_v56 = vld [vmem:[%s4928_s1 + $0x6c8] sm:$0xff]  }
  0x96   :  { %3555 = vmatpush3.bf16.msra.mxu1 %v3882_v55  ;;  %v3932_v55 = vld [vmem:[%s4928_s1 + $0x648] sm:$0xff]  }
  0x97   :  { %3556 = vmatprep.subr.bf16.mxu1 %v3884_v57  ;;  %v3934_v57 = vld [vmem:[%s4928_s1 + $0x608] sm:$0xff]  }
  0x98   :  { %3535 = vmatpush3.bf16.msra.mxu0 %v3885_v58  ;;  %v3935_v58 = vld [vmem:[%s4928_s1 + $0x688] sm:$0xff]  }
  0x99   :  { %3536 = vmatprep.subr.bf16.mxu0 %v3887_v60  ;;  %v3937_v60 = vld [vmem:[%s4928_s1 + $0x6d0] sm:$0xff]  }
  0x9a   :  { %3557 = vmatpush3.bf16.msra.mxu1 %v3886_v59  ;;  %v3936_v59 = vld [vmem:[%s4928_s1 + $0x650] sm:$0xff]  }
  0x9b   :  { %3558 = vmatprep.subr.bf16.mxu1 %v3888_v62  ;;  %v3939_v62 = vld [vmem:[%s4928_s1 + $0x690] sm:$0xff]  }
  0x9c   :  { %3537 = vmatpush3.bf16.msra.mxu0 %v3889_v1  ;;  %v3942_v1 = vld [vmem:[%s4928_s1 + $0x618] sm:$0xff]  }
  0x9d   :  { %3538 = vmatprep.subr.bf16.mxu0 %v3891_v5  ;;  %v3946_v5 = vld [vmem:[%s4928_s1 + $0x620] sm:$0xff]  }
  0x9e   :  { %3559 = vmatpush3.bf16.msra.mxu1 %v3890_v2  ;;  %v3943_v2 = vld [vmem:[%s4928_s1 + $0x698] sm:$0xff]  }
  0x9f   :  { %3560 = vmatprep.subr.bf16.mxu1 %v3892_v6  ;;  %v3947_v6 = vld [vmem:[%s4928_s1 + $0x6a0] sm:$0xff]  }
  0xa0   :  { %3539 = vmatpush3.bf16.msra.mxu0 %v3893_v9  ;;  %v3950_v9 = vld [vmem:[%s4928_s1 + $0x628] sm:$0xff]  }
  0xa1   :  { %3568 = vmatprep.subr.bf16.mxu0 %v3895_v13  ;;  %v3953_v13 = vld [vmem:[%s4928_s1 + $0x6f0] sm:$0xff]  }
  0xa2   :  { %3561 = vmatpush3.bf16.msra.mxu1 %v3894_v10  ;;  %v3951_v10 = vld [vmem:[%s4928_s1 + $0x6a8] sm:$0xff]  }
  0xa3   :  { %2666 = vmatmul.mubr.bf16.vlgmr.msra.gmra.mrb[16].mxu0 %v670_v12  ;;  %3590 = vmatprep.subr.bf16.mxu1 %v3896_v14  ;;  %v25_v12 = vld [vmem:[%s4927_s0 + $0x18] sm:$0xff] }
  0xa4   :  { %3569 = vmatpush3.bf16.msra.mxu0 %v3897_v16  ;;  %2745 = vmatprep.mubr.bf16.mxu0 %v691_v15  ;;  %v703_v14 = vrot.slane %v25_v12, %v4164_v41  ;;  %v696_v15 = vcombine.high %v25_v12, %v25_v12  ;;  %v3954_v16 = vld [vmem:[%s4928_s1 + $0x630] sm:$0xff]  }
  0xa5   :  { %2706 = vmatmul.mubr.bf16.vlgmr.msra.gmra.mrb[16].mxu1 %v692_v18  ;;  %3570 = vmatprep.subr.bf16.mxu0 %v3899_v19 }
  0xa6   :  { %3591 = vmatpush3.bf16.msra.mxu1 %v3898_v17  ;;  %2785 = vmatprep.mubr.bf16.mxu1 %v695_v21  ;;  %v3956_v17 = vld [vmem:[%s4928_s1 + $0x678] sm:$0xff]   ;;  %v711_v18 = vcombine.high %v703_v14, %v703_v14  ;;  %v4768_v19 = vrot.slane %v696_v15, %v4164_v41 }
  0xa7   :  { %3592 = vmatprep.subr.bf16.mxu1 %v3900_v20  ;;  %v3955_v20 = vld [vmem:[%s4928_s1 + $0x6b0] sm:$0xff]   ;;  %v3957_v21 = vld [vmem:[%s4928_s1 + $0x6f8] sm:$0xff]  }
  0xa8   :  { %3571 = vmatpush3.bf16.msra.mxu0 %v3901_v22  ;;  %v733_v22 = vrot.slane %v711_v18, %v4164_v41  ;;  %v726_v12 = vrot.slane %v4768_v19, %v4164_v41 }
  0xa9   :  { %3572 = vmatprep.subr.bf16.mxu0 %v3903_v24  ;;  %v3958_v24 = vld [vmem:[%s4928_s1 + $0x638] sm:$0xff]  }
  0xaa   :  { %3593 = vmatpush3.bf16.msra.mxu1 %v3902_v23  ;;  %v712_v23 = vcombine.high %v4768_v19, %v4768_v19 }
  0xab   :  { %3594 = vmatprep.subr.bf16.mxu1 %v3904_v25  ;;  %v743_v25 = vcombine.high %v733_v22, %v733_v22 }
  0xac   :  { %3573 = vmatpush3.bf16.msra.mxu0 %v3905_v26  ;;  %v719_v26 = vrot.slane %v703_v14, %v4164_v41 }
  0xad   :  { %3574 = vmatprep.subr.bf16.mxu0 %v3907_v28  ;;  %v3959_v28 = vld [vmem:[%s4928_s1 + $0x6b8] sm:$0xff]  }
  0xae   :  { %3595 = vmatpush3.bf16.msra.mxu1 %v3906_v27  ;;  %v3960_v27 = vld [vmem:[%s4928_s1 + $0x740] sm:$0xff]  }
  0xaf   :  { %3596 = vmatprep.subr.bf16.mxu1 %v3908_v29  ;;  %v740_v29 = vrot.slane %v712_v23, %v4164_v41 }
  0xb0   :  { %3575 = vmatpush3.bf16.msra.mxu0 %v3909_v30  ;;  %v3961_v30 = vld [vmem:[%s4928_s1 + $0x7c0] sm:$0xff]  }
  0xb1   :  { %3576 = vmatprep.subr.bf16.mxu0 %v3911_v32  ;;  %v741_v32 = vcombine.high %v719_v26, %v719_v26 }
  0xb2   :  { %3597 = vmatpush3.bf16.msra.mxu1 %v3910_v31  ;;  %v3962_v31 = vld [vmem:[%s4928_s1 + $0x700] sm:$0xff]  }
  0xb3   :  { %3598 = vmatprep.subr.bf16.mxu1 %v3912_v33  ;;  %v3964_v33 = vld [vmem:[%s4928_s1 + $0x748] sm:$0xff]  }
  0xb4   :  { %3577 = vmatpush3.bf16.msra.mxu0 %v3913_v34  ;;  %v3963_v34 = vld [vmem:[%s4928_s1 + $0x780] sm:$0xff]  }
  0xb5   :  { %3578 = vmatprep.subr.bf16.mxu0 %v3915_v36  ;;  %v3965_v36 = vld [vmem:[%s4928_s1 + $0x7c8] sm:$0xff]  }
  0xb6   :  { %3599 = vmatpush3.bf16.msra.mxu1 %v3914_v35  ;;  %v744_v35 = vcombine.high %v740_v29, %v740_v29 }
  0xb7   :  { %3600 = vmatprep.subr.bf16.mxu1 %v3916_v37  ;;  %v3966_v37 = vld [vmem:[%s4928_s1 + $0x708] sm:$0xff]  }
  0xb8   :  { %3579 = vmatpush3.bf16.msra.mxu0 %v3917_v38  ;;  %v3968_v38 = vld [vmem:[%s4928_s1 + $0x750] sm:$0xff]  }
  0xb9   :  { %3580 = vmatprep.subr.bf16.mxu0 %v3919_v40  ;;  %v3969_v40 = vld [vmem:[%s4928_s1 + $0x7d0] sm:$0xff]  }
  0xba   :  { %3601 = vmatpush3.bf16.msra.mxu1 %v3918_v39  ;;  %v3967_v39 = vld [vmem:[%s4928_s1 + $0x788] sm:$0xff]  }
  0xbb   :  { %3602 = vmatprep.subr.bf16.mxu1 %v3920_v42  ;;  %v3970_v42 = vld [vmem:[%s4928_s1 + $0x710] sm:$0xff]  }
  0xbc   :  { %3581 = vmatpush3.bf16.msra.mxu0 %v3921_v43  ;;  %v3972_v43 = vld [vmem:[%s4928_s1 + $0x758] sm:$0xff]  }
  0xbd   :  { %3582 = vmatprep.subr.bf16.mxu0 %v3923_v45  ;;  %v3973_v45 = vld [vmem:[%s4928_s1 + $0x7d8] sm:$0xff]  }
  0xbe   :  { %3603 = vmatpush3.bf16.msra.mxu1 %v3922_v44  ;;  %v3971_v44 = vld [vmem:[%s4928_s1 + $0x790] sm:$0xff]  }
  0xbf   :  { %3604 = vmatprep.subr.bf16.mxu1 %v3924_v46  ;;  %v3974_v46 = vld [vmem:[%s4928_s1 + $0x718] sm:$0xff]  }
  0xc0   :  { %3583 = vmatpush3.bf16.msra.mxu0 %v3925_v47  ;;  %v3975_v47 = vld [vmem:[%s4928_s1 + $0x798] sm:$0xff]  }
  0xc1   :  { %3612 = vmatprep.subr.bf16.mxu0 %v3928_v50  ;;  %v3978_v50 = vld [vmem:[%s4928_s1 + $0x720] sm:$0xff]  }
  0xc2   :  { %3605 = vmatpush3.bf16.msra.mxu1 %v3926_v48  ;;  %v3976_v48 = vld [vmem:[%s4928_s1 + $0x760] sm:$0xff]  }
  0xc3   :  { %2746 = vmatmul.mubr.bf16.vlgmr.msra.gmra.mrb[20].mxu0 %v677_v49  ;;  %3634 = vmatprep.subr.bf16.mxu1 %v3929_v51  ;;  %v3977_v49 = vld [vmem:[%s4928_s1 + $0x7e0] sm:$0xff]  }
  0xc4   :  { %3613 = vmatpush3.bf16.msra.mxu0 %v3930_v52  ;;  %2825 = vmatprep.mubr.bf16.mxu0 %v733_v22  ;;  %v3979_v51 = vld [vmem:[%s4928_s1 + $0x7a0] sm:$0xff]   ;;  %v3980_v52 = vld [vmem:[%s4928_s1 + $0x768] sm:$0xff]  }
  0xc5   :  { %2786 = vmatmul.mubr.bf16.vlgmr.msra.gmra.mrb[20].mxu1 %v693_v54  ;;  %3614 = vmatprep.subr.bf16.mxu0 %v3932_v55  ;;  %v3982_v54 = vld [vmem:[%s4928_s1 + $0x728] sm:$0xff]  }
  0xc6   :  { %3635 = vmatpush3.bf16.msra.mxu1 %v3931_v53  ;;  %2865 = vmatprep.mubr.bf16.mxu1 %v743_v25  ;;  %v3981_v53 = vld [vmem:[%s4928_s1 + $0x7e8] sm:$0xff]  }
  0xc7   :  { %3636 = vmatprep.subr.bf16.mxu1 %v3933_v56  ;;  %v3983_v55 = vld [vmem:[%s4928_s1 + $0x7a8] sm:$0xff]   ;;  %v3984_v56 = vld [vmem:[%s4928_s1 + $0x770] sm:$0xff]  }
  0xc8   :  { %3615 = vmatpush3.bf16.msra.mxu0 %v3934_v57  ;;  %v3082_v57 = vld [vmem:[%s4929_s2] ss:$0 sm:$0xff] }
  0xc9   :  { %3616 = vmatprep.subr.bf16.mxu0 %v3936_v59 }
  0xca   :  { %3637 = vmatpush3.bf16.msra.mxu1 %v3935_v58  ;;  %v3985_v58 = vld [vmem:[%s4928_s1 + $0x7f0] sm:$0xff]  }
  0xcb   :  { %3638 = vmatprep.subr.bf16.mxu1 %v3937_v60  ;;  %v3986_v60 = vld [vmem:[%s4928_s1 + $0x730] sm:$0xff]  }
  0xcc   :  { %3617 = vmatpush3.bf16.msra.mxu0 %v3938_v61 }
  0xcd   :  { %3618 = vmatprep.subr.bf16.mxu0 %v3940_v63 }
  0xce   :  { %3639 = vmatpush3.bf16.msra.mxu1 %v3939_v62  ;;  %v3988_v62 = vld [vmem:[%s4928_s1 + $0x778] sm:$0xff]  }
  0xcf   :  { %3640 = vmatprep.subr.bf16.mxu1 %v3941_v0 }
  0xd0   :  { %3619 = vmatpush3.bf16.msra.mxu0 %v3942_v1 }
  0xd1   :  { %3620 = vmatprep.subr.bf16.mxu0 %v3944_v3 }
  0xd2   :  { %3641 = vmatpush3.bf16.msra.mxu1 %v3943_v2  ;;  %v3987_v2 = vld [vmem:[%s4928_s1 + $0x7b0] sm:$0xff]  }
  0xd3   :  { %3642 = vmatprep.subr.bf16.mxu1 %v3945_v4 }
  0xd4   :  { %3621 = vmatpush3.bf16.msra.mxu0 %v3946_v5 }
  0xd5   :  { %3622 = vmatprep.subr.bf16.mxu0 %v3948_v7 }
  0xd6   :  { %3643 = vmatpush3.bf16.msra.mxu1 %v3947_v6 }
  0xd7   :  { %3644 = vmatprep.subr.bf16.mxu1 %v3949_v8  ;;  %v3989_v8 = vld [vmem:[%s4928_s1 + $0x7f8] sm:$0xff]  }
  0xd8   :  { %3623 = vmatpush3.bf16.msra.mxu0 %v3950_v9 }
  0xd9   :  { %3624 = vmatprep.subr.bf16.mxu0 %v3952_v11 }
  0xda   :  { %3645 = vmatpush3.bf16.msra.mxu1 %v3951_v10  ;;  %v3990_v10 = vld [vmem:[%s4928_s1 + $0x738] sm:$0xff]  }
  0xdb   :  { %3646 = vmatprep.subr.bf16.mxu1 %v3953_v13 }
  0xdc   :  { %3625 = vmatpush3.bf16.msra.mxu0 %v3954_v16 }
  0xdd   :  { %3626 = vmatprep.subr.bf16.mxu0 %v3956_v17 }
  0xde   :  { %3647 = vmatpush3.bf16.msra.mxu1 %v3955_v20 }
  0xdf   :  { %3648 = vmatprep.subr.bf16.mxu1 %v3957_v21 }
  0xe0   :  { %3627 = vmatpush3.bf16.msra.mxu0 %v3958_v24 }
  0xe1   :  { %3656 = vmatprep.subr.bf16.mxu0 %v3960_v27 }
  0xe2   :  { %3649 = vmatpush3.bf16.msra.mxu1 %v3959_v28 }
  0xe3   :  { %2826 = vmatmul.mubr.bf16.vlgmr.msra.gmra.mrb[24].mxu0 %v719_v26  ;;  %3678 = vmatprep.subr.bf16.mxu1 %v3961_v30 }
  0xe4   :  { %3657 = vmatpush3.bf16.msra.mxu0 %v3962_v31  ;;  %2905 = vmatprep.mubr.bf16.mxu0 %v740_v29 }
  0xe5   :  { %2866 = vmatmul.mubr.bf16.vlgmr.msra.gmra.mrb[24].mxu1 %v741_v32  ;;  %3658 = vmatprep.subr.bf16.mxu0 %v3964_v33 }
  0xe6   :  { %3679 = vmatpush3.bf16.msra.mxu1 %v3963_v34  ;;  %2945 = vmatprep.mubr.bf16.mxu1 %v744_v35 }
  0xe7   :  { %3680 = vmatprep.subr.bf16.mxu1 %v3965_v36 }
  0xe8   :  { %3659 = vmatpush3.bf16.msra.mxu0 %v3966_v37 }
  0xe9   :  { %3660 = vmatprep.subr.bf16.mxu0 %v3968_v38 }
  0xea   :  { %3681 = vmatpush3.bf16.msra.mxu1 %v3967_v39 }
  0xeb   :  { %3682 = vmatprep.subr.bf16.mxu1 %v3969_v40 }
  0xec   :  { %3661 = vmatpush3.bf16.msra.mxu0 %v3970_v42 }
  0xed   :  { %3662 = vmatprep.subr.bf16.mxu0 %v3972_v43 }
  0xee   :  { %3683 = vmatpush3.bf16.msra.mxu1 %v3971_v44 }
  0xef   :  { %3684 = vmatprep.subr.bf16.mxu1 %v3973_v45 }
  0xf0   :  { %3663 = vmatpush3.bf16.msra.mxu0 %v3974_v46 }
  0xf1   :  { %3664 = vmatprep.subr.bf16.mxu0 %v3976_v48 }
  0xf2   :  { %3685 = vmatpush3.bf16.msra.mxu1 %v3975_v47 }
  0xf3   :  { %3686 = vmatprep.subr.bf16.mxu1 %v3977_v49 }
  0xf4   :  { %3665 = vmatpush3.bf16.msra.mxu0 %v3978_v50 }
  0xf5   :  { %3666 = vmatprep.subr.bf16.mxu0 %v3980_v52 }
  0xf6   :  { %3687 = vmatpush3.bf16.msra.mxu1 %v3979_v51  ;;  %v3364_v59 = vpop.f32.mrb[0].mxu0 }
  0xf7   :  { %v3365_v61 = vpop.f32.mrb[1].mxu0  ;;  %3688 = vmatprep.subr.bf16.mxu1 %v3981_v53  ;;  %v3386_v63 = vpop.f32.mrb[0].mxu1 }
  0xf8   :  { %v3366_v0 = vadd.f32 %v3365_v61, %v3364_v59  ;;  %v3367_v1 = vpop.f32.mrb[2].mxu0  ;;  %3667 = vmatpush3.bf16.msra.mxu0 %v3982_v54  ;;  %v3387_v3 = vpop.f32.mrb[1].mxu1 }
  0xf9   :  { %v3368_v4 = vpop.f32.mrb[3].mxu0  ;;  %3668 = vmatprep.subr.bf16.mxu0 %v3984_v56  ;;  %v3388_v6 = vadd.f32 %v3387_v3, %v3386_v63  ;;  %v3389_v7 = vpop.f32.mrb[2].mxu1 }
  0xfa   :  { %v2348_v5 = vadd.f32 %v3366_v0, %v3082_v57  ;;  %3689 = vmatpush3.bf16.msra.mxu1 %v3983_v55  ;;  %v3390_v9 = vpop.f32.mrb[3].mxu1 }
  0xfb   :  { %3690 = vmatprep.subr.bf16.mxu1 %v3985_v58 }
  0xfc   :  { %v2388_v11 = vadd.f32 %v3388_v6, %v2348_v5  ;;  %3669 = vmatpush3.bf16.msra.mxu0 %v3986_v60 }
  0xfd   :  { %3670 = vmatprep.subr.bf16.mxu0 %v3988_v62 }
  0xfe   :  { %10 = vsyncpa [#allocation3], 0  ;;  %3691 = vmatpush3.bf16.msra.mxu1 %v3987_v2  ;;  %v3991_v13 = vld [vmem:[%s4928_s1 + $0x7b8] sm:$0xff]   ;;  %v742_v14 = vcombine.high %v726_v12, %v726_v12  ;;  %v3993_v38 = vld [vmem:[%s4930_s3] sm:$0xff]   ;;  %v4026_v39 = vmov 0.0   ;;  %vm4027_vm0 = vmmov 0  }
  0xff   :  { %3692 = vmatprep.subr.bf16.mxu1 %v3989_v8  ;;  %v3994_v40 = vld [vmem:[%s4930_s3 + $0x8] sm:$0xff]   ;;  %v3995_v42 = vld [vmem:[%s4930_s3 + $0x10] sm:$0xff]   ;;  %v3996_v43 = vld [vmem:[%s4930_s3 + $0x18] sm:$0xff]   ;;  %s4028_s26 = smov [#allocation2]   ;;  %vm3066_vm1 = vcmask 74752  }
 0x100   :  { %3671 = vmatpush3.bf16.msra.mxu0 %v3990_v10  ;;  %v3997_v44 = vld [vmem:[%s4930_s3 + $0x20] sm:$0xff]   ;;  %v3998_v47 = vld [vmem:[%s4930_s3 + $0x28] sm:$0xff]   ;;  %v3999_v57 = vld [vmem:[%s4930_s3 + $0x30] sm:$0xff]   ;;  %s3074_s27 = sshll.u32 %s4028_s26, 4  ;;  %s3075_s27 = int_to_ptr.vmem [resolvable:$true] %s3074_s27 }
 0x101   :  { %3709 = vmatprep.subr.bf16.mxu0 %v4026_v39  ;;  %v4000_v59 = vld [vmem:[%s4930_s3 + $0x38] sm:$0xff]   ;;  %s4001_s28 = scalar_lea.vmem %s3075_s27, 32  ;;  %p4006_p1 = scmp.lt.s32.totalorder %s3075_s27, %s3075_s27 }
 0x102   :  { %3693 = vmatpush3.bf16.msra.mxu1 %v3991_v13  ;;  %p4002_p0 = scmp.ne.s32.totalorder %s3075_s27, %s4001_s28  ;;  %p4007_p2 = scmp.lt.s32.totalorder %s4001_s28, %s4001_s28 }
 0x103   :  { %2906 = vmatmul.mubr.bf16.vlgmr.msra.gmra.mrb[28].mxu0 %v726_v12 }
 0x104   :  { %3710 = vmatpush3.bf16.msra.mxu0 %v3993_v38  ;;  %3725 = vmatprep.mubr.msk.bf16.mxu0 %vm4027_vm0, %v4026_v39  ;;  %p4008_p3 = por %p4007_p2, %p4006_p1 }
 0x105   :  { %2946 = vmatmul.mubr.bf16.vlgmr.msra.gmra.mrb[28].mxu1 %v742_v14  ;;  %3711 = vmatprep.subr.bf16.mxu0 %v4026_v39 }
 0x106   :  { %p4009_p4 = pnand %p4008_p3, %p4002_p0 }
 0x108   :  { %3712 = vmatpush3.bf16.msra.mxu0 %v3994_v40 }
 0x109   :  { %3713 = vmatprep.subr.bf16.mxu0 %v4026_v39 }
 0x10c   :  { %3714 = vmatpush3.bf16.msra.mxu0 %v3995_v42 }
 0x10d   :  { %3715 = vmatprep.subr.bf16.mxu0 %v4026_v39 }
 0x110   :  { %3716 = vmatpush3.bf16.msra.mxu0 %v3996_v43 }
 0x111   :  { %3717 = vmatprep.subr.bf16.mxu0 %v4026_v39 }
 0x114   :  { %3718 = vmatpush3.bf16.msra.mxu0 %v3997_v44 }
 0x115   :  { %3719 = vmatprep.subr.bf16.mxu0 %v4026_v39 }
 0x116   :  { %v3408_v15 = vpop.f32.mrb[4].mxu0 }
 0x117   :  { %v3409_v16 = vpop.f32.mrb[5].mxu0  ;;  %v3430_v17 = vpop.f32.mrb[4].mxu1 }
 0x118   :  { %v3410_v18 = vadd.f32 %v3409_v16, %v3408_v15  ;;  %v3411_v20 = vpop.f32.mrb[6].mxu0  ;;  %v3431_v21 = vpop.f32.mrb[5].mxu1  ;;  %3720 = vmatpush3.bf16.msra.mxu0 %v3998_v47 }
 0x119   :  { %v3412_v22 = vpop.f32.mrb[7].mxu0  ;;  %v3432_v19 = vadd.f32 %v3431_v21, %v3430_v17  ;;  %v3433_v23 = vpop.f32.mrb[6].mxu1  ;;  %3721 = vmatprep.subr.bf16.mxu0 %v4026_v39 }
 0x11a   :  { %v2428_v41 = vadd.f32 %v3410_v18, %v2388_v11  ;;  %v3434_v24 = vpop.f32.mrb[7].mxu1 }
 0x11c   :  { %v2468_v25 = vadd.f32 %v3432_v19, %v2428_v41  ;;  %3722 = vmatpush3.bf16.msra.mxu0 %v3999_v57 }
 0x11d   :  { %3723 = vmatprep.subr.bf16.mxu0 %v4026_v39 }
 0x120   :  { %3724 = vmatpush3.bf16.msra.mxu0 %v4000_v59 }
 0x136   :  { %v3452_v26 = vpop.f32.mrb[8].mxu0 }
 0x137   :  { %v3453_v27 = vpop.f32.mrb[9].mxu0 }
 0x138   :  { %v3474_v28 = vpop.f32.mrb[8].mxu1  ;;  %v3454_v29 = vadd.f32 %v3453_v27, %v3452_v26  ;;  %v3455_v30 = vpop.f32.mrb[10].mxu0 }
 0x139   :  { %v3475_v31 = vpop.f32.mrb[9].mxu1  ;;  %v3456_v32 = vpop.f32.mrb[11].mxu0 }
 0x13a   :  { %v2508_v33 = vadd.f32 %v3454_v29, %v2468_v25  ;;  %v3476_v34 = vadd.f32 %v3475_v31, %v3474_v28  ;;  %v3477_v35 = vpop.f32.mrb[10].mxu1 }
 0x13b   :  { %v3478_v36 = vpop.f32.mrb[11].mxu1 }
 0x13c   :  { %v2548_v37 = vadd.f32 %v3476_v34, %v2508_v33 }
 0x156   :  { %v3496_v45 = vpop.f32.mrb[12].mxu0 }
 0x157   :  { %v3497_v46 = vpop.f32.mrb[13].mxu0 }
 0x158   :  { %v3518_v48 = vpop.f32.mrb[12].mxu1  ;;  %v3498_v49 = vadd.f32 %v3497_v46, %v3496_v45  ;;  %v3499_v50 = vpop.f32.mrb[14].mxu0  ;;  %v3339_v46 = vld [vmem:[%s4931_s4] ss:$0 sm:$0xff] }
 0x159   :  { %v3519_v51 = vpop.f32.mrb[13].mxu1  ;;  %v3500_v52 = vpop.f32.mrb[15].mxu0 }
 0x15a   :  { %v2588_v53 = vadd.f32 %v3498_v49, %v2548_v37  ;;  %v3520_v54 = vadd.f32 %v3519_v51, %v3518_v48  ;;  %v3521_v55 = vpop.f32.mrb[14].mxu1 }
 0x15b   :  { %v3522_v56 = vpop.f32.mrb[15].mxu1 }
 0x15c   :  { %v2628_v58 = vadd.f32 %v3520_v54, %v2588_v53 }
 0x176   :  { %v3540_v60 = vpop.f32.mrb[16].mxu0 }
 0x177   :  { %v3541_v61 = vpop.f32.mrb[17].mxu0 }
 0x178   :  { %v3562_v62 = vpop.f32.mrb[16].mxu1  ;;  %v3542_v63 = vadd.f32 %v3541_v61, %v3540_v60  ;;  %v3543_v0 = vpop.f32.mrb[18].mxu0 }
 0x179   :  { %v3563_v1 = vpop.f32.mrb[17].mxu1  ;;  %v3544_v2 = vpop.f32.mrb[19].mxu0 }
 0x17a   :  { %v2668_v3 = vadd.f32 %v3542_v63, %v2628_v58  ;;  %v3564_v4 = vadd.f32 %v3563_v1, %v3562_v62  ;;  %v3565_v5 = vpop.f32.mrb[18].mxu1 }
 0x17b   :  { %v3566_v6 = vpop.f32.mrb[19].mxu1 }
 0x17c   :  { %v2708_v7 = vadd.f32 %v3564_v4, %v2668_v3 }
 0x196   :  { %v3584_v8 = vpop.f32.mrb[20].mxu0 }
 0x197   :  { %v3585_v9 = vpop.f32.mrb[21].mxu0 }
 0x198   :  { %v3606_v10 = vpop.f32.mrb[20].mxu1  ;;  %v3586_v11 = vadd.f32 %v3585_v9, %v3584_v8  ;;  %v3587_v12 = vpop.f32.mrb[22].mxu0 }
 0x199   :  { %v3607_v13 = vpop.f32.mrb[21].mxu1  ;;  %v3588_v14 = vpop.f32.mrb[23].mxu0 }
 0x19a   :  { %v2748_v15 = vadd.f32 %v3586_v11, %v2708_v7  ;;  %v3608_v16 = vadd.f32 %v3607_v13, %v3606_v10  ;;  %v3609_v17 = vpop.f32.mrb[22].mxu1 }
 0x19b   :  { %v3610_v18 = vpop.f32.mrb[23].mxu1 }
 0x19c   :  { %v2788_v20 = vadd.f32 %v3608_v16, %v2748_v15 }
 0x1b6   :  { %v3628_v21 = vpop.f32.mrb[24].mxu0 }
 0x1b7   :  { %v3629_v22 = vpop.f32.mrb[25].mxu0 }
 0x1b8   :  { %v3650_v41 = vpop.f32.mrb[24].mxu1  ;;  %v3630_v19 = vadd.f32 %v3629_v22, %v3628_v21  ;;  %v3631_v23 = vpop.f32.mrb[26].mxu0 }
 0x1b9   :  { %v3651_v24 = vpop.f32.mrb[25].mxu1  ;;  %v3632_v25 = vpop.f32.mrb[27].mxu0 }
 0x1ba   :  { %v2828_v26 = vadd.f32 %v3630_v19, %v2788_v20  ;;  %v3652_v27 = vadd.f32 %v3651_v24, %v3650_v41  ;;  %v3653_v28 = vpop.f32.mrb[26].mxu1 }
 0x1bb   :  { %v3654_v29 = vpop.f32.mrb[27].mxu1 }
 0x1bc   :  { %v2868_v30 = vadd.f32 %v3652_v27, %v2828_v26 }
 0x1d6   :  { %v3672_v31 = vpop.f32.mrb[28].mxu0 }
 0x1d7   :  { %v3673_v32 = vpop.f32.mrb[29].mxu0 }
 0x1d8   :  { %v3694_v33 = vpop.f32.mrb[28].mxu1  ;;  %v3674_v34 = vadd.f32 %v3673_v32, %v3672_v31  ;;  %v3675_v35 = vpop.f32.mrb[30].mxu0 }
 0x1d9   :  { %v3695_v36 = vpop.f32.mrb[29].mxu1  ;;  %v3676_v37 = vpop.f32.mrb[31].mxu0 }
 0x1da   :  { %v2908_v38 = vadd.f32 %v3674_v34, %v2868_v30  ;;  %v3696_v39 = vadd.f32 %v3695_v36, %v3694_v33  ;;  %v3697_v40 = vpop.f32.mrb[30].mxu1 }
 0x1db   :  { %v3698_v42 = vpop.f32.mrb[31].mxu1 }
 0x1dc   :  { %v2948_v43 = vadd.f32 %v3696_v39, %v2908_v38 }
 0x1de   :  { %v2953_v44 = vmax.f32 %v2948_v43, 0.0 }
 0x1e0   :  { %v2954_v45 = vpack.c.bf16 %v2953_v44, %v2953_v44 }
 0x1e2   :  { %3726 = vmatmul.mubr.bf16.vlgmr.msra.gmra.mrb[32].mxu0 %v2954_v45 }
 0x2b5   :  { %v3060_v47 = vpop.f32.mrb[32].mxu0 }
 0x2b6   :  { %v3061_v48 = vadd.f32 %v3339_v46, %v3060_v47  ;;  %v3727_v49 = vpop.f32.mrb[33].mxu0 }
 0x2b7   :  { %v3063_v50 = vpop.f32.mrb[34].mxu0 }
 0x2b8   :  { %v3728_v51 = vpop.f32.mrb[35].mxu0  ;;  %3067 = vst.msk [vmem:[#allocation2] sm:$0x3] %vm3066_vm1, %v3061_v48 }
 0x2b9   :  { %4012 = shalt.err (!%p4009_p4)
}
 0x2ba   :  { %s4013_s4 = scalar_lea.hbm %s4932_s5, 32 }
 0x2bb   :  { %p4014_p5 = scmp.ne.s32.totalorder %s4932_s5, %s4013_s4  ;;  %p4017_p6 = scmp.lt.u32.totalorder %s4013_s4, %s4932_s5 }
 0x2bd   :  { %p4019_p7 = pnand %p4017_p6, %p4014_p5 }
 0x2bf   :  { %4022 = shalt.err (!%p4019_p7)
}
 0x2c0   :  { %3077 = dma.vmem_to_hbm [thread:$0]  %s3075_s27, 32, %s4932_s5, [#allocation3]  }
 0x2c1   :  { %4023 = dma.done.wait [#allocation3], 32  }
 0x2c2   :  { %4024 = vsyncadd [#allocation3], 4294967264 }
 0x2c3   :  { %3081 = vsyncpa [#allocation3], 1 }

// kernel: simple_model_forward.2
= control target key start
LH: loop header
LB: loop body
LE: loop exit
PB: predicated region body
PF: predicated region fallthrough
CT: control target
= control target key end

     0   :  { %s17572_s18 = smov 0   ;;  %s21225_s0 = inlined_call_operand.vmem [shape: bf16[2,1024,32], index: 0, kind: input, shape index: {}]   ;;  %s21226_s1 = inlined_call_operand.vmem [shape: bf16[32,32], index: 1, kind: input, shape index: {}]   ;;  %s21227_s2 = inlined_call_operand.vmem [shape: f32[1,32], index: 2, kind: input, shape index: {}]   ;;  %s21228_s3 = inlined_call_operand.vmem [shape: bf16[9,32,64], index: 3, kind: input, shape index: {}]   ;;  %s21229_s4 = inlined_call_operand.vmem [shape: f32[1,64], index: 4, kind: input, shape index: {}]   ;;  %s21230_s5 = inlined_call_operand.vmem [shape: bf16[2,64,64], index: 5, kind: output, shape index: {}]  }
   0x1 LB: > { %s15806_s19 = sadd.s32 4294967295, %s17537_s18   ;;  %p15810_p0 = scmp.ge.s32.totalorder %s17537_s18, 1  ;;  %s17537_s18 = sphi %s17572_s18, %s15_s18  }
   0x2   : > { %p187_p1 = scmp.lt.s32.totalorder %s17537_s18, 3 }
   0x4   : > { %p188_p2 = pnand %p15810_p0, %p187_p1 }
   0x6   : > { %191 = sbr.rel (%p188_p2) target bundleno = 1647 (0x66f), region = 40 }
   0xd   : > { %v17420_v0 = vld [vmem:[%s21226_s1] sm:$0xff]   ;;  %p215_p3 = scmp.lt.s32.totalorder %s15806_s19, 1  ;;  %v17421_v1 = vld [vmem:[%s21226_s1 + $0x8] sm:$0xff]   ;;  %vm697_vm0 = vcmask 261120   ;;  %v17486_v53 = vld [vmem:[%s21228_s3 + $0x10] sm:$0xff]   ;;  %v17539_v56 = vmov 0  }
   0xe   : > { %16693 = vmatprep.subr.bf16.mxu0 %v17420_v0  ;;  %5308 = vst.msk [vmem:[#allocation2 + $0x8] sm:$0xff] %vm697_vm0, %v17539_v56  ;;  %5307 = vst.msk [vmem:[#allocation2] sm:$0xff] %vm697_vm0, %v17539_v56  ;;  %v17487_v58 = vld [vmem:[%s21228_s3 + $0x18] sm:$0xff]   ;;  %v17718_v60 = vld [vmem:[%s21227_s2] ss:$0 sm:$0xff]  ;;  %vm9525_vm1 = vcmask 1041409  }
   0xf   : > { %s21318_s19 = smov (!%p215_p3, %s15806_s19), 1  ;;  %16694 = vmatpush3.bf16.msra.mxu0 %v17420_v0  ;;  %5309 = vst.msk [vmem:[#allocation2 + $0x10] sm:$0xff] %vm697_vm0, %v17539_v56  ;;  %5311 = vst.msk [vmem:[#allocation2 + $0x198] sm:$0xff] %vm697_vm0, %v17539_v56  ;;  %vm9528_vm2 = vcmask 1042434   ;;  %vm9531_vm3 = vcmask 1043459   ;;  %vm9534_vm4 = vcmask 1044484  }
  0x10   : > { %16695 = vmatprep.subr.bf16.mxu0 %v17421_v1  ;;  %s16463_s24 = sshll.u32 %s21318_s19, 9  ;;  %5312 = vst.msk [vmem:[#allocation2 + $0x1a0] sm:$0xff] %vm697_vm0, %v17539_v56  ;;  %5313 = vst.msk [vmem:[#allocation2 + $0x1a8] sm:$0xff] %vm697_vm0, %v17539_v56  ;;  %vm9537_vm5 = vcmask 1045509   ;;  %vm9540_vm6 = vcmask 1046534   ;;  %vm9543_vm7 = vcmask 1047559  }
  0x11   : > { %s17592_s27 = scalar_lea.vmem %s21225_s0, %s16463_s24  ;;  %vm5371_vm8 = vcmask 253952   ;;  %vm5372_vm9 = vsmask.f32 256  ;;  %vm10719_vm11 = vsmask.f32 7424  ;;  %vm5314_vm12 = vcmask 261127  }
  0x12   : > { %v17422_v2 = vld [vmem:[%s17592_s27] sm:$0xff]   ;;  %v17423_v3 = vld [vmem:[%s17592_s27 + $0x8] sm:$0xff]   ;;  %v17424_v4 = vld [vmem:[%s17592_s27 + $0x10] sm:$0xff]   ;;  %vm5315_vm13 = vsmask.f32 7966  ;;  %vm15742_vm15 = vcmask 519168  }
  0x13   : > { %16696 = vmatpush3.bf16.msra.mxu0 %v17421_v1  ;;  %16697 = vmatprep.mubr.msk.bf16.mxu0 %vm697_vm0, %v17422_v2  ;;  %v17425_v5 = vld [vmem:[%s17592_s27 + $0x18] sm:$0xff]   ;;  %v17426_v6 = vld [vmem:[%s17592_s27 + $0x20] sm:$0xff]   ;;  %v17427_v7 = vld [vmem:[%s17592_s27 + $0x28] sm:$0xff]   ;;  %s16464_s15 = sshll.u32 %s21318_s19, 5 }
  0x14   : > { %v17428_v8 = vld [vmem:[%s17592_s27 + $0x30] sm:$0xff]   ;;  %v17429_v9 = vld [vmem:[%s17592_s27 + $0x38] sm:$0xff]   ;;  %v17430_v10 = vld [vmem:[%s17592_s27 + $0x40] sm:$0xff]   ;;  %16825 = vmatprep.subr.bf16.mxu0 %v17486_v53  ;;  %s20872_s19 = scalar_lea.vmem %s21230_s5, %s16464_s15 }
  0x15   : > { %v17431_v11 = vld [vmem:[%s17592_s27 + $0x48] sm:$0xff]   ;;  %v17432_v12 = vld [vmem:[%s17592_s27 + $0x50] sm:$0xff]   ;;  %v17433_v13 = vld [vmem:[%s17592_s27 + $0x58] sm:$0xff]  }
  0x16   : > { %16698 = vmatmul.mubr.msk.bf16.vlgmr.msra.gmra.mrb[0].mxu0 %vm697_vm0, %v17423_v3  ;;  %v17434_v14 = vld [vmem:[%s17592_s27 + $0x60] sm:$0xff]   ;;  %v17435_v15 = vld [vmem:[%s17592_s27 + $0x68] sm:$0xff]   ;;  %v17436_v16 = vld [vmem:[%s17592_s27 + $0x70] sm:$0xff]  }
  0x17   : > { %16701 = vmatprep.mubr.msk.bf16.mxu0 %vm697_vm0, %v17424_v4  ;;  %v17437_v17 = vld [vmem:[%s17592_s27 + $0x78] sm:$0xff]   ;;  %v17438_v18 = vld [vmem:[%s17592_s27 + $0x80] sm:$0xff]   ;;  %v17439_v19 = vld [vmem:[%s17592_s27 + $0x88] sm:$0xff]   ;;  %16826 = vmatpush3.bf16.msra.mxu0 %v17486_v53 }
  0x18   : > { %v17440_v20 = vld [vmem:[%s17592_s27 + $0x90] sm:$0xff]   ;;  %v17441_v21 = vld [vmem:[%s17592_s27 + $0x98] sm:$0xff]   ;;  %v17442_v22 = vld [vmem:[%s17592_s27 + $0xa0] sm:$0xff]   ;;  %16827 = vmatprep.subr.bf16.mxu0 %v17487_v58 }
  0x19   : > { %v17443_v23 = vld [vmem:[%s17592_s27 + $0xa8] sm:$0xff]   ;;  %v17444_v24 = vld [vmem:[%s17592_s27 + $0xb0] sm:$0xff]   ;;  %v17445_v25 = vld [vmem:[%s17592_s27 + $0xb8] sm:$0xff]  }
  0x1a   : > { %v17446_v26 = vld [vmem:[%s17592_s27 + $0xc0] sm:$0xff]   ;;  %v17447_v27 = vld [vmem:[%s17592_s27 + $0xc8] sm:$0xff]   ;;  %v17448_v28 = vld [vmem:[%s17592_s27 + $0xd0] sm:$0xff]  }
  0x1b   : > { %v17449_v29 = vld [vmem:[%s17592_s27 + $0xd8] sm:$0xff]   ;;  %v17450_v30 = vld [vmem:[%s17592_s27 + $0xe0] sm:$0xff]   ;;  %v17451_v31 = vld [vmem:[%s17592_s27 + $0xe8] sm:$0xff]   ;;  %16828 = vmatpush3.bf16.msra.mxu0 %v17487_v58 }
  0x1c   : > { %v17452_v32 = vld [vmem:[%s17592_s27 + $0xf0] sm:$0xff]   ;;  %v17453_v33 = vld [vmem:[%s17592_s27 + $0xf8] sm:$0xff]   ;;  %v17454_v34 = vld [vmem:[%s17592_s27 + $0x100] sm:$0xff]  }
  0x1d   : > { %v17455_v35 = vld [vmem:[%s17592_s27 + $0x108] sm:$0xff]   ;;  %v17456_v36 = vld [vmem:[%s17592_s27 + $0x110] sm:$0xff]   ;;  %v17457_v37 = vld [vmem:[%s17592_s27 + $0x118] sm:$0xff]  }
  0x1e   : > { %16702 = vmatmul.mubr.msk.bf16.gmra.mrb[4].mxu0 %vm697_vm0, %v17425_v5  ;;  %v17458_v38 = vld [vmem:[%s17592_s27 + $0x120] sm:$0xff]   ;;  %v17459_v39 = vld [vmem:[%s17592_s27 + $0x128] sm:$0xff]   ;;  %v17460_v40 = vld [vmem:[%s17592_s27 + $0x130] sm:$0xff]  }
  0x1f   : > { %16705 = vmatprep.mubr.msk.bf16.mxu0 %vm697_vm0, %v17426_v6  ;;  %v17461_v41 = vld [vmem:[%s17592_s27 + $0x138] sm:$0xff]   ;;  %v17462_v42 = vld [vmem:[%s17592_s27 + $0x140] sm:$0xff]   ;;  %v17463_v43 = vld [vmem:[%s17592_s27 + $0x148] sm:$0xff]  }
  0x20   : > { %v17464_v44 = vld [vmem:[%s17592_s27 + $0x150] sm:$0xff]   ;;  %v17465_v45 = vld [vmem:[%s17592_s27 + $0x158] sm:$0xff]   ;;  %v17466_v46 = vld [vmem:[%s17592_s27 + $0x160] sm:$0xff]  }
  0x21   : > { %v17467_v47 = vld [vmem:[%s17592_s27 + $0x168] sm:$0xff]   ;;  %v17468_v48 = vld [vmem:[%s17592_s27 + $0x170] sm:$0xff]   ;;  %v17469_v49 = vld [vmem:[%s17592_s27 + $0x178] sm:$0xff]  }
  0x22   : > { %v17470_v50 = vld [vmem:[%s17592_s27 + $0x180] sm:$0xff]   ;;  %v17471_v51 = vld [vmem:[%s17592_s27 + $0x188] sm:$0xff]   ;;  %v17472_v52 = vld [vmem:[%s17592_s27 + $0x190] sm:$0xff]  }
  0x23   : > { %v17473_v54 = vld [vmem:[%s17592_s27 + $0x198] sm:$0xff]   ;;  %v17474_v55 = vld [vmem:[%s17592_s27 + $0x1a0] sm:$0xff]   ;;  %v17475_v57 = vld [vmem:[%s17592_s27 + $0x1a8] sm:$0xff]  }
  0x24   : > { %v17476_v59 = vld [vmem:[%s17592_s27 + $0x1b0] sm:$0xff]   ;;  %v17477_v0 = vld [vmem:[%s17592_s27 + $0x1b8] sm:$0xff]   ;;  %v17478_v3 = vld [vmem:[%s17592_s27 + $0x1c0] sm:$0xff]  }
  0x25   : > { %vm19037_vm10 = vmand %vm5371_vm8, %vm5372_vm9 }
  0x26   : > { %16706 = vmatmul.mubr.msk.bf16.gmra.mrb[8].mxu0 %vm697_vm0, %v17427_v7  ;;  %vm19835_vm14 = vmand %vm5314_vm12, %vm5315_vm13 }
  0x27   : > { %16709 = vmatprep.mubr.msk.bf16.mxu0 %vm697_vm0, %v17428_v8 }
  0x2e   : > { %16710 = vmatmul.mubr.msk.bf16.gmra.mrb[12].mxu0 %vm697_vm0, %v17429_v9 }
  0x2f   : > { %16713 = vmatprep.mubr.msk.bf16.mxu0 %vm697_vm0, %v17430_v10 }
  0x36   : > { %16714 = vmatmul.mubr.msk.bf16.gmra.mrb[16].mxu0 %vm697_vm0, %v17431_v11 }
  0x37   : > { %16717 = vmatprep.mubr.msk.bf16.mxu0 %vm697_vm0, %v17432_v12  ;;  %v17540_v12 = vmov 1966171168  }
  0x3e   : > { %16718 = vmatmul.mubr.msk.bf16.gmra.mrb[20].mxu0 %vm697_vm0, %v17433_v13  ;;  %v1693_v13 = vunpack.c.l.s4 %v17540_v12 }
  0x3f   : > { %16721 = vmatprep.mubr.msk.bf16.mxu0 %vm697_vm0, %v17434_v14  ;;  %v1695_v14 = vlaneseq }
  0x46   : > { %16722 = vmatmul.mubr.msk.bf16.gmra.mrb[24].mxu0 %vm697_vm0, %v17435_v15 }
  0x47   : > { %16725 = vmatprep.mubr.msk.bf16.mxu0 %vm697_vm0, %v17436_v16 }
  0x4e   : > { %16726 = vmatmul.mubr.msk.bf16.gmra.mrb[28].mxu0 %vm697_vm0, %v17437_v17 }
  0x4f   : > { %16729 = vmatprep.mubr.msk.bf16.mxu0 %vm697_vm0, %v17438_v18 }
  0x56   : > { %16730 = vmatmul.mubr.msk.bf16.gmra.mrb[32].mxu0 %vm697_vm0, %v17439_v19  ;;  %v17479_v19 = vld [vmem:[%s17592_s27 + $0x1c8] sm:$0xff]  }
  0x57   : > { %16733 = vmatprep.mubr.msk.bf16.mxu0 %vm697_vm0, %v17440_v20 }
  0x5e   : > { %16734 = vmatmul.mubr.msk.bf16.gmra.mrb[36].mxu0 %vm697_vm0, %v17441_v21 }
  0x5f   : > { %16737 = vmatprep.mubr.msk.bf16.mxu0 %vm697_vm0, %v17442_v22  ;;  %v17480_v22 = vld [vmem:[%s17592_s27 + $0x1d0] sm:$0xff]  }
  0x66   : > { %16738 = vmatmul.mubr.msk.bf16.gmra.mrb[40].mxu0 %vm697_vm0, %v17443_v23 }
  0x67   : > { %16741 = vmatprep.mubr.msk.bf16.mxu0 %vm697_vm0, %v17444_v24  ;;  %v1694_v24 = vunpack.c.0.s8 %v1693_v13 }
  0x6e   : > { %16742 = vmatmul.mubr.msk.bf16.gmra.mrb[44].mxu0 %vm697_vm0, %v17445_v25  ;;  %v17734_v25 = vshrl.u32 %v1695_v14, 7 }
  0x6f   : > { %16745 = vmatprep.mubr.msk.bf16.mxu0 %vm697_vm0, %v17446_v26 }
  0x70   : > { %21248 = vst [vmem:[#allocation3_spill] sm:$0xff] %v17734_v25 }
  0x76   : > { %16746 = vmatmul.mubr.msk.bf16.gmra.mrb[48].mxu0 %vm697_vm0, %v17447_v27 }
  0x77   : > { %16749 = vmatprep.mubr.msk.bf16.mxu0 %vm697_vm0, %v17448_v28 }
  0x7e   : > { %16750 = vmatmul.mubr.msk.bf16.gmra.mrb[52].mxu0 %vm697_vm0, %v17449_v29 }
  0x7f   : > { %16753 = vmatprep.mubr.msk.bf16.mxu0 %vm697_vm0, %v17450_v30 }
  0x86   : > { %16754 = vmatmul.mubr.msk.bf16.gmra.mrb[56].mxu0 %vm697_vm0, %v17451_v31 }
  0x87   : > { %16757 = vmatprep.mubr.msk.bf16.mxu0 %vm697_vm0, %v17452_v32 }
  0x8e   : > { %16758 = vmatmul.mubr.msk.bf16.gmra.mrb[60].mxu0 %vm697_vm0, %v17453_v33  ;;  %v17740_v33 = vsub.s32 %v1694_v24, %v17734_v25 }
  0x8f   : > { %16761 = vmatprep.mubr.msk.bf16.mxu0 %vm697_vm0, %v17454_v34 }
  0x96   : > { %16762 = vmatmul.mubr.msk.bf16.gmra.mrb[64].mxu0 %vm697_vm0, %v17455_v35 }
  0x97   : > { %16765 = vmatprep.mubr.msk.bf16.mxu0 %vm697_vm0, %v17456_v36 }
  0x9e   : > { %16766 = vmatmul.mubr.msk.bf16.gmra.mrb[68].mxu0 %vm697_vm0, %v17457_v37 }
  0x9f   : > { %16769 = vmatprep.mubr.msk.bf16.mxu0 %vm697_vm0, %v17458_v38 }
  0xa6   : > { %16770 = vmatmul.mubr.msk.bf16.gmra.mrb[72].mxu0 %vm697_vm0, %v17459_v39  ;;  %v17481_v39 = vld [vmem:[%s17592_s27 + $0x1d8] sm:$0xff]  }
  0xa7   : > { %16773 = vmatprep.mubr.msk.bf16.mxu0 %vm697_vm0, %v17460_v40 }
  0xae   : > { %16774 = vmatmul.mubr.msk.bf16.gmra.mrb[76].mxu0 %vm697_vm0, %v17461_v41 }
  0xaf   : > { %16777 = vmatprep.mubr.msk.bf16.mxu0 %vm697_vm0, %v17462_v42 }
  0xb6   : > { %16778 = vmatmul.mubr.msk.bf16.gmra.mrb[80].mxu0 %vm697_vm0, %v17463_v43  ;;  %v17482_v43 = vld [vmem:[%s17592_s27 + $0x1e0] sm:$0xff]  }
  0xb7   : > { %16781 = vmatprep.mubr.msk.bf16.mxu0 %vm697_vm0, %v17464_v44 }
  0xbe   : > { %16782 = vmatmul.mubr.msk.bf16.gmra.mrb[84].mxu0 %vm697_vm0, %v17465_v45 }
  0xbf   : > { %16785 = vmatprep.mubr.msk.bf16.mxu0 %vm697_vm0, %v17466_v46 }
  0xc6   : > { %16786 = vmatmul.mubr.msk.bf16.gmra.mrb[88].mxu0 %vm697_vm0, %v17467_v47 }
  0xc7   : > { %16789 = vmatprep.mubr.msk.bf16.mxu0 %vm697_vm0, %v17468_v48 }
  0xce   : > { %16790 = vmatmul.mubr.msk.bf16.gmra.mrb[92].mxu0 %vm697_vm0, %v17469_v49 }
  0xcf   : > { %16793 = vmatprep.mubr.msk.bf16.mxu0 %vm697_vm0, %v17470_v50 }
  0xd6   : > { %16794 = vmatmul.mubr.msk.bf16.gmra.mrb[96].mxu0 %vm697_vm0, %v17471_v51 }
  0xd7   : > { %16797 = vmatprep.mubr.msk.bf16.mxu0 %vm697_vm0, %v17472_v52 }
  0xde   : > { %16798 = vmatmul.mubr.msk.bf16.gmra.mrb[100].mxu0 %vm697_vm0, %v17473_v54 }
  0xdf   : > { %16801 = vmatprep.mubr.msk.bf16.mxu0 %vm697_vm0, %v17474_v55 }
  0xe6   : > { %16802 = vmatmul.mubr.msk.bf16.gmra.mrb[104].mxu0 %vm697_vm0, %v17475_v57 }
  0xe7   : > { %16805 = vmatprep.mubr.msk.bf16.mxu0 %vm697_vm0, %v17476_v59 }
  0xe9   : > { %v16699_v61 = vpop.f32.mrb[0].mxu0 }
  0xea   : > { %v933_v62 = vadd.f32 %v16699_v61, %v17718_v60  ;;  %v924_v63 = vpop.f32.mrb[1].mxu0 }
  0xeb   : > { %v925_v1 = vadd.f32 %v17718_v60, %v924_v63  ;;  %v16700_v2 = vpop.f32.mrb[2].mxu0 }
  0xec   : > { %v936_v4 = vadd.f32 %v16700_v2, %v17718_v60  ;;  %v927_v5 = vpop.f32.mrb[3].mxu0  ;;  %v1437_v7 = vmax.f32 %v933_v62, 0.0 }
  0xed   : > { %v928_v6 = vadd.f32 %v17718_v60, %v927_v5  ;;  %v1435_v9 = vmax.f32 %v925_v1, 0.0 }
  0xee   : > { %v1438_v8 = vmax.f32 %v936_v4, 0.0  ;;  %16806 = vmatmul.mubr.msk.bf16.gmra.mrb[108].mxu0 %vm697_vm0, %v17477_v0 }
  0xef   : > { %v1436_v10 = vmax.f32 %v928_v6, 0.0  ;;  %16809 = vmatprep.mubr.msk.bf16.mxu0 %vm697_vm0, %v17478_v3 }
  0xf0   : > { %v1564_v11 = vpack.c.bf16 %v1438_v8, %v1437_v7 }
  0xf1   : > { %v1563_v15 = vpack.c.bf16 %v1436_v10, %v1435_v9  ;;  %v16703_v16 = vpop.f32.mrb[4].mxu0 }
  0xf2   : > { %v949_v17 = vadd.f32 %v16703_v16, %v17718_v60  ;;  %v940_v18 = vpop.f32.mrb[5].mxu0 }
  0xf3   : > { %v941_v20 = vadd.f32 %v17718_v60, %v940_v18  ;;  %v16704_v21 = vpop.f32.mrb[6].mxu0 }
  0xf4   : > { %v952_v23 = vadd.f32 %v16704_v21, %v17718_v60  ;;  %v943_v26 = vpop.f32.mrb[7].mxu0  ;;  %v1441_v28 = vmax.f32 %v949_v17, 0.0  ;;  %v17484_v17 = vld [vmem:[%s17592_s27 + $0x1f0] sm:$0xff]  }
  0xf5   : > { %v944_v27 = vadd.f32 %v17718_v60, %v943_v26  ;;  %v1439_v30 = vmax.f32 %v941_v20, 0.0 }
  0xf6   : > { %v1442_v29 = vmax.f32 %v952_v23, 0.0  ;;  %16810 = vmatmul.mubr.msk.bf16.gmra.mrb[112].mxu0 %vm697_vm0, %v17479_v19 }
  0xf7   : > { %v1440_v31 = vmax.f32 %v944_v27, 0.0  ;;  %16813 = vmatprep.mubr.msk.bf16.mxu0 %vm697_vm0, %v17480_v22 }
  0xf8   : > { %v1566_v32 = vpack.c.bf16 %v1442_v29, %v1441_v28 }
  0xf9   : > { %v1565_v34 = vpack.c.bf16 %v1440_v31, %v1439_v30  ;;  %v16707_v35 = vpop.f32.mrb[8].mxu0 }
  0xfa   : > { %v1628_v36 = vmax.bf16 %v1566_v32, %v1564_v11  ;;  %v17743_v37 = vadd.f32 %v16707_v35, %v17718_v60  ;;  %v956_v38 = vpop.f32.mrb[9].mxu0  ;;  %v17483_v11 = vld [vmem:[%s17592_s27 + $0x1e8] sm:$0xff]  }
  0xfb   : > { %v1627_v40 = vmax.bf16 %v1565_v34, %v1563_v15  ;;  %v17747_v41 = vadd.f32 %v17718_v60, %v956_v38  ;;  %v16708_v42 = vpop.f32.mrb[10].mxu0 }
  0xfc   : > { %v1740_v44 = vcombine.high %v1628_v36, %v1628_v36  ;;  %v1747_v45 = vrot.slane %v1628_v36, %v17740_v33  ;;  %v17752_v46 = vadd.f32 %v16708_v42, %v17718_v60  ;;  %v959_v47 = vpop.f32.mrb[11].mxu0  ;;  %v1445_v50 = vmax.f32 %v17743_v37, 0.0 }
  0xfd   : > { %v1691_v48 = vcombine.high %v1627_v40, %v1627_v40  ;;  %v1698_v49 = vrot.slane %v1627_v40, %v17740_v33  ;;  %v17757_v51 = vadd.f32 %v17718_v60, %v959_v47  ;;  %v1443_v55 = vmax.f32 %v17747_v41, 0.0 }
  0xfe   : > { %v1754_v52 = vrot.slane %v1740_v44, %v17740_v33  ;;  %v1755_v53 = vcombine.high %v1747_v45, %v1747_v45  ;;  %v1763_v54 = vrot.slane %v1747_v45, %v17740_v33  ;;  %16814 = vmatmul.mubr.msk.bf16.gmra.mrb[116].mxu0 %vm697_vm0, %v17481_v39  ;;  %v1446_v59 = vmax.f32 %v17752_v46, 0.0 }
  0xff   : > { %v1705_v56 = vrot.slane %v1691_v48, %v17740_v33  ;;  %v1706_v57 = vcombine.high %v1698_v49, %v1698_v49  ;;  %v17765_v58 = vrot.slane %v1698_v49, %v17740_v33  ;;  %16817 = vmatprep.mubr.msk.bf16.mxu0 %vm697_vm0, %v17482_v43  ;;  %v1444_v4 = vmax.f32 %v17757_v51, 0.0 }
 0x100   : > { %v1756_v61 = vcombine.high %v1754_v52, %v1754_v52  ;;  %v1770_v62 = vrot.slane %v1754_v52, %v17740_v33  ;;  %v1777_v63 = vrot.slane %v1755_v53, %v17740_v33  ;;  %v1785_v0 = vcombine.high %v1763_v54, %v1763_v54 }
 0x101   : > { %v3556_v1 = vshrl.u32 %v1763_v54, 16  ;;  %v1707_v2 = vcombine.high %v1705_v56, %v1705_v56  ;;  %v17772_v3 = vrot.slane %v1705_v56, %v17740_v33  ;;  %v17775_v5 = vpop.f32.mrb[12].mxu0  ;;  %v17782_v15 = vrot.slane %v1706_v57, %v17740_v33  ;;  %v17485_v57 = vld [vmem:[%s17592_s27 + $0x1f8] sm:$0xff]  }
 0x102   : > { %v1784_v6 = vrot.slane %v1756_v61, %v17740_v33  ;;  %v1786_v7 = vcombine.high %v1770_v62, %v1770_v62  ;;  %v1787_v8 = vcombine.high %v1777_v63, %v1777_v63  ;;  %v3561_v9 = vshrl.u32 %v1777_v63, 16  ;;  %v17778_v10 = vpop.f32.mrb[13].mxu0 }
 0x103   : > { %v3566_v12 = vshrl.u32 %v1785_v0, 16  ;;  %v3576_v13 = vshrl.u32 %v1770_v62, 16  ;;  %v5059_v14 = vmax.bf16 %v3556_v1, %v1763_v54  ;;  %v17784_v16 = vpop.f32.mrb[14].mxu0  ;;  %v17795_v36 = vrot.slane %v1707_v2, %v17740_v33 }
 0x104   : > { %v1788_v18 = vcombine.high %v1784_v6, %v1784_v6  ;;  %v3571_v19 = vshrl.u32 %v1787_v8, 16  ;;  %v3581_v20 = vshrl.u32 %v1784_v6, 16  ;;  %v3586_v21 = vshrl.u32 %v1786_v7, 16  ;;  %v17787_v22 = vpop.f32.mrb[15].mxu0 }
 0x105   : > { %v5060_v23 = vmax.bf16 %v3561_v9, %v1777_v63  ;;  %v5061_v24 = vmax.bf16 %v3566_v12, %v1785_v0  ;;  %v5063_v26 = vmax.bf16 %v3576_v13, %v1770_v62  ;;  %v5802_v27 = vrot.slane %v5059_v14, %v17740_v33 }
 0x106   : > { %v3591_v28 = vshrl.u32 %v1788_v18, 16  ;;  %v5062_v29 = vmax.bf16 %v3571_v19, %v1787_v8  ;;  %v5064_v30 = vmax.bf16 %v3581_v20, %v1784_v6  ;;  %v5065_v31 = vmax.bf16 %v3586_v21, %v1786_v7  ;;  %16818 = vmatmul.mubr.msk.bf16.gmra.mrb[120].mxu0 %vm697_vm0, %v17483_v11  ;;  %v10029_v11 = vld [vmem:[#allocation2 + $0x8] sm:$0xff] }
 0x107   : > { %v5816_v32 = vrot.slane %v5060_v23, %v17740_v33  ;;  %v5830_v34 = vrot.slane %v5061_v24, %v17740_v33  ;;  %v5858_v35 = vrot.slane %v5063_v26, %v17740_v33  ;;  %16821 = vmatprep.mubr.msk.bf16.mxu0 %vm697_vm0, %v17484_v17  ;;  %v5809_v43 = vrot.slane %v5802_v27, %v17740_v33 }
 0x108   : > { %v5066_v38 = vmax.bf16 %v3591_v28, %v1788_v18  ;;  %v5844_v39 = vrot.slane %v5062_v29, %v17740_v33  ;;  %v5872_v40 = vrot.slane %v5064_v30, %v17740_v33  ;;  %v5886_v42 = vrot.slane %v5065_v31, %v17740_v33 }
 0x109   : > { %v5823_v44 = vrot.slane %v5816_v32, %v17740_v33  ;;  %v5837_v45 = vrot.slane %v5830_v34, %v17740_v33  ;;  %v5865_v47 = vrot.slane %v5858_v35, %v17740_v33  ;;  %v17805_v48 = vpop.f32.mrb[16].mxu0  ;;  %v1736_v0 = vcombine.high %v17765_v58, %v17765_v58 }
 0x10a   : > { %v5851_v49 = vrot.slane %v5844_v39, %v17740_v33  ;;  %v5879_v52 = vrot.slane %v5872_v40, %v17740_v33  ;;  %v5893_v53 = vrot.slane %v5886_v42, %v17740_v33  ;;  %v5900_v54 = vrot.slane %v5066_v38, %v17740_v33  ;;  %v17811_v56 = vpop.f32.mrb[17].mxu0 }
 0x10b   : > { %v9277_v61 = vunpack.c.l.b16 %v5823_v44  ;;  %v9278_v62 = vunpack.c.l.b16 %v5837_v45  ;;  %v9280_v63 = vunpack.c.l.b16 %v5865_v47  ;;  %v17816_v1 = vpop.f32.mrb[18].mxu0  ;;  %v9276_v12 = vunpack.c.l.b16 %v5809_v43 }
 0x10c   : > { %v5907_v2 = vrot.slane %v5900_v54, %v17740_v33  ;;  %v9279_v6 = vunpack.c.l.b16 %v5851_v49  ;;  %v9281_v7 = vunpack.c.l.b16 %v5879_v52  ;;  %v9282_v8 = vunpack.c.l.b16 %v5893_v53  ;;  %v17819_v9 = vpop.f32.mrb[19].mxu0 }
 0x10d   : > { %v9545_v13 = vrot.slane %v9277_v61, 7  ;;  %v9547_v14 = vrot.slane %v9278_v62, 6  ;;  %v9551_v17 = vrot.slane %v9280_v63, 4  ;;  %v1737_v21 = vcombine.high %v17772_v3, %v17772_v3 }
 0x10e   : > { %v9283_v18 = vunpack.c.l.b16 %v5907_v2  ;;  %v9549_v19 = vrot.slane %v9279_v6, 5  ;;  %v9553_v20 = vrot.slane %v9281_v7, 3  ;;  %16822 = vmatmul.mubr.msk.bf16.gmra.mrb[124].mxu0 %vm697_vm0, %v17485_v57  ;;  %v1738_v24 = vcombine.high %v17782_v15, %v17782_v15 }
 0x10f   : > { %v9546_v23 = vsel %vm9525_vm1, %v9545_v13, %v9276_v12  ;;  %v1739_v26 = vcombine.high %v17795_v36, %v17795_v36  ;;  %v3516_v27 = vshrl.u32 %v17765_v58, 16  ;;  %16829 = vmatprep.mubr.msk.bf16.mxu0 %vm697_vm0, %v10029_v11  ;;  %v9555_v29 = vrot.slane %v9282_v8, 2 }
 0x110   : > { %v9548_v28 = vsel %vm9528_vm2, %v9547_v14, %v9546_v23  ;;  %v3521_v30 = vshrl.u32 %v17782_v15, 16  ;;  %v3526_v31 = vshrl.u32 %v1736_v0, 16  ;;  %v3531_v34 = vshrl.u32 %v1738_v24, 16 }
 0x111   : > { %v9550_v32 = vsel %vm9531_vm3, %v9549_v19, %v9548_v28  ;;  %v3536_v35 = vshrl.u32 %v17772_v3, 16  ;;  %v3541_v38 = vshrl.u32 %v17795_v36, 16  ;;  %v17836_v39 = vpop.f32.mrb[20].mxu0  ;;  %v3546_v42 = vshrl.u32 %v1737_v21, 16 }
 0x112   : > { %v9552_v40 = vsel %vm9534_vm4, %v9551_v17, %v9550_v32  ;;  %v3551_v43 = vshrl.u32 %v1739_v26, 16  ;;  %v5051_v44 = vmax.bf16 %v3516_v27, %v17765_v58  ;;  %v17840_v45 = vpop.f32.mrb[21].mxu0  ;;  %v5052_v49 = vmax.bf16 %v3521_v30, %v17782_v15 }
 0x113   : > { %v9554_v47 = vsel %vm9537_vm5, %v9553_v20, %v9552_v40  ;;  %v5053_v52 = vmax.bf16 %v3526_v31, %v1736_v0  ;;  %v5054_v53 = vmax.bf16 %v3531_v34, %v1738_v24  ;;  %v17844_v54 = vpop.f32.mrb[22].mxu0  ;;  %v9557_v57 = vrot.slane %v9283_v18, 1 }
 0x114   : > { %v5055_v61 = vmax.bf16 %v3536_v35, %v17772_v3  ;;  %v5056_v62 = vmax.bf16 %v3541_v38, %v17795_v36  ;;  %v5057_v63 = vmax.bf16 %v3546_v42, %v1737_v21  ;;  %v17848_v2 = vpop.f32.mrb[23].mxu0  ;;  %v9556_v58 = vsel %vm9540_vm6, %v9555_v29, %v9554_v47 }
 0x115   : > { %v5058_v6 = vmax.bf16 %v3551_v43, %v1739_v26  ;;  %v5690_v7 = vrot.slane %v5051_v44, %v17740_v33  ;;  %v5704_v8 = vrot.slane %v5052_v49, %v17740_v33  ;;  %v5718_v15 = vrot.slane %v5053_v52, %v17740_v33 }
 0x116   : > { %v5732_v0 = vrot.slane %v5054_v53, %v17740_v33  ;;  %v5746_v11 = vrot.slane %v5055_v61, %v17740_v33  ;;  %v5760_v3 = vrot.slane %v5056_v62, %v17740_v33  ;;  %v5774_v13 = vrot.slane %v5057_v63, %v17740_v33 }
 0x117   : > { %v5697_v36 = vrot.slane %v5690_v7, %v17740_v33  ;;  %v5711_v12 = vrot.slane %v5704_v8, %v17740_v33  ;;  %v5788_v14 = vrot.slane %v5058_v6, %v17740_v33  ;;  %v5725_v17 = vrot.slane %v5718_v15, %v17740_v33 }
 0x118   : > { %v5739_v18 = vrot.slane %v5732_v0, %v17740_v33  ;;  %v5753_v19 = vrot.slane %v5746_v11, %v17740_v33  ;;  %v5767_v20 = vrot.slane %v5760_v3, %v17740_v33  ;;  %v9558_v21 = vsel %vm9543_vm7, %v9557_v57, %v9556_v58 }
 0x119   : > { %v5781_v23 = vrot.slane %v5774_v13, %v17740_v33  ;;  %v5795_v24 = vrot.slane %v5788_v14, %v17740_v33  ;;  %v9269_v26 = vunpack.c.l.b16 %v5711_v12  ;;  %v17868_v27 = vpop.f32.mrb[24].mxu0  ;;  %v9270_v28 = vunpack.c.l.b16 %v5725_v17 }
 0x11a   : > { %v9271_v29 = vunpack.c.l.b16 %v5739_v18  ;;  %v9272_v30 = vunpack.c.l.b16 %v5753_v19  ;;  %v9273_v31 = vunpack.c.l.b16 %v5767_v20  ;;  %v17870_v32 = vpop.f32.mrb[25].mxu0  ;;  %v9268_v34 = vunpack.c.l.b16 %v5697_v36 }
 0x11b   : > { %v9274_v35 = vunpack.c.l.b16 %v5781_v23  ;;  %v9524_v38 = vrot.slane %v9269_v26, 7  ;;  %v1568_v40 = vpack.c.bf16 %v1446_v59, %v1445_v50  ;;  %v17876_v42 = vpop.f32.mrb[26].mxu0  ;;  %v9275_v43 = vunpack.c.l.b16 %v5795_v24 }
 0x11c   : > { %v9527_v44 = vrot.slane %v9270_v28, 6  ;;  %v9530_v47 = vrot.slane %v9271_v29, 5  ;;  %v9533_v49 = vrot.slane %v9272_v30, 4  ;;  %v17878_v52 = vpop.f32.mrb[27].mxu0  ;;  %v9536_v57 = vrot.slane %v9273_v31, 3 }
 0x11d   : > { %v9526_v53 = vsel %vm9525_vm1, %v9524_v38, %v9268_v34  ;;  %v9539_v61 = vrot.slane %v9274_v35, 2  ;;  %v1567_v37 = vpack.c.bf16 %v1444_v4, %v1443_v55  ;;  %v981_v50 = vadd.f32 %v17775_v5, %v17718_v60 }
 0x11e   : > { %v9529_v46 = vsel %vm9528_vm2, %v9527_v44, %v9526_v53  ;;  %v973_v59 = vadd.f32 %v17718_v60, %v17778_v10  ;;  %v984_v62 = vadd.f32 %v17784_v16, %v17718_v60  ;;  %v976_v58 = vadd.f32 %v17718_v60, %v17787_v22 }
 0x11f   : > { %v9532_v63 = vsel %vm9531_vm3, %v9530_v47, %v9529_v46  ;;  %v997_v41 = vadd.f32 %v17805_v48, %v17718_v60  ;;  %v989_v51 = vadd.f32 %v17718_v60, %v17811_v56  ;;  %v9542_v4 = vrot.slane %v9275_v43, 1 }
 0x120   : > { %v9535_v55 = vsel %vm9534_vm4, %v9533_v49, %v9532_v63  ;;  %v1449_v5 = vmax.f32 %v981_v50, 0.0  ;;  %v1450_v6 = vmax.f32 %v984_v62, 0.0  ;;  %v1447_v7 = vmax.f32 %v973_v59, 0.0 }
 0x121   : > { %v9538_v10 = vsel %vm9537_vm5, %v9536_v57, %v9535_v55  ;;  %v1448_v16 = vmax.f32 %v976_v58, 0.0  ;;  %v1453_v8 = vmax.f32 %v997_v41, 0.0  ;;  %v17901_v15 = vpop.f32.mrb[28].mxu0  ;;  %v1000_v48 = vadd.f32 %v17816_v1, %v17718_v60 }
 0x122   : > { %v9541_v22 = vsel %vm9540_vm6, %v9539_v61, %v9538_v10  ;;  %v1570_v0 = vpack.c.bf16 %v1450_v6, %v1449_v5  ;;  %v992_v56 = vadd.f32 %v17718_v60, %v17819_v9  ;;  %v17908_v11 = vpop.f32.mrb[29].mxu0  ;;  %v1451_v12 = vmax.f32 %v989_v51, 0.0 }
 0x123   : > { %v9544_v3 = vsel %vm9543_vm7, %v9542_v4, %v9541_v22  ;;  %v1569_v36 = vpack.c.bf16 %v1448_v16, %v1447_v7  ;;  %v1013_v13 = vadd.f32 %v17836_v39, %v17718_v60  ;;  %v17913_v14 = vpop.f32.mrb[30].mxu0  ;;  %v1454_v19 = vmax.f32 %v1000_v48, 0.0 }
 0x124   : > { %v9979_v17 = vpack.c.b16 %v9558_v21, %v9544_v3  ;;  %v1630_v18 = vmax.bf16 %v1570_v0, %v1568_v40  ;;  %v1452_v20 = vmax.f32 %v992_v56, 0.0  ;;  %v17915_v23 = vpop.f32.mrb[31].mxu0  ;;  %v17919_v9 = vadd.f32 %v17718_v60, %v17840_v45 }
 0x125   : > { %v1629_v1 = vmax.bf16 %v1569_v36, %v1567_v37  ;;  %v1016_v24 = vadd.f32 %v17844_v54, %v17718_v60  ;;  %v17925_v28 = vpack.c.bf16 %v1454_v19, %v1453_v8  ;;  %v1457_v31 = vmax.f32 %v1013_v13, 0.0 }
 0x126   : > { %10012 = vst.msk [vmem:[#allocation2 + $0x20] sm:$0xff] %vm697_vm0, %v9979_v17  ;;  %v1838_v26 = vcombine.high %v1630_v18, %v1630_v18  ;;  %v1845_v39 = vrot.slane %v1630_v18, %v17740_v33  ;;  %v17927_v21 = vpack.c.bf16 %v1452_v20, %v1451_v12  ;;  %v17934_v54 = vadd.f32 %v17718_v60, %v17848_v2 }
 0x127   : > { %v1789_v29 = vcombine.high %v1629_v1, %v1629_v1  ;;  %v1796_v30 = vrot.slane %v1629_v1, %v17740_v33  ;;  %v1458_v34 = vmax.f32 %v1016_v24, 0.0  ;;  %v17941_v47 = vadd.f32 %v17868_v27, %v17718_v60 }
 0x128   : > { %v1852_v45 = vrot.slane %v1838_v26, %v17740_v33  ;;  %v1853_v35 = vcombine.high %v1845_v39, %v1845_v39  ;;  %v1861_v38 = vrot.slane %v1845_v39, %v17740_v33 }
 0x129   : > { %v1803_v40 = vrot.slane %v1789_v29, %v17740_v33  ;;  %v1804_v43 = vcombine.high %v1796_v30, %v1796_v30  ;;  %v17937_v44 = vpack.c.bf16 %v1458_v34, %v1457_v31  ;;  %v17943_v49 = vpop.f32.mrb[32].mxu0  ;;  %v17950_v59 = vrot.slane %v1796_v30, %v17740_v33 }
 0x12a   : > { %v1854_v53 = vcombine.high %v1852_v45, %v1852_v45  ;;  %v1868_v57 = vrot.slane %v1852_v45, %v17740_v33  ;;  %v1875_v61 = vrot.slane %v1853_v35, %v17740_v33  ;;  %v1883_v37 = vcombine.high %v1861_v38, %v1861_v38  ;;  %v17947_v46 = vpop.f32.mrb[33].mxu0 }
 0x12b   : > { %v3636_v2 = vshrl.u32 %v1861_v38, 16  ;;  %v1805_v50 = vcombine.high %v1803_v40, %v1803_v40  ;;  %v17953_v62 = vrot.slane %v1803_v40, %v17740_v33  ;;  %v17955_v27 = vpop.f32.mrb[34].mxu0  ;;  %v17961_v10 = vrot.slane %v1804_v43, %v17740_v33 }
 0x12c   : > { %v1882_v63 = vrot.slane %v1854_v53, %v17740_v33  ;;  %v1884_v58 = vcombine.high %v1868_v57, %v1868_v57  ;;  %v1885_v41 = vcombine.high %v1875_v61, %v1875_v61  ;;  %v3641_v51 = vshrl.u32 %v1875_v61, 16  ;;  %v17958_v55 = vpop.f32.mrb[35].mxu0 }
 0x12d   : > { %v3646_v4 = vshrl.u32 %v1883_v37, 16  ;;  %v3656_v5 = vshrl.u32 %v1868_v57, 16  ;;  %v5075_v6 = vmax.bf16 %v3636_v2, %v1861_v38  ;;  %v10031_v7 = vld [vmem:[#allocation2 + $0x20] sm:$0xff]  ;;  %v1833_v24 = vrot.slane %v1805_v50, %v17740_v33 }
 0x12e   : > { %v1886_v16 = vcombine.high %v1882_v63, %v1882_v63  ;;  %v3651_v8 = vshrl.u32 %v1885_v41, 16  ;;  %v3661_v22 = vshrl.u32 %v1882_v63, 16  ;;  %v3666_v0 = vshrl.u32 %v1884_v58, 16  ;;  %16830 = vmatmul.mubr.msk.bf16.vlgmr.msra.gmra.mrb[128].mxu0 %vm697_vm0, %v10031_v7 }
 0x12f   : > { %v5076_v48 = vmax.bf16 %v3641_v51, %v1875_v61  ;;  %v5077_v56 = vmax.bf16 %v3646_v4, %v1883_v37  ;;  %v5079_v3 = vmax.bf16 %v3656_v5, %v1868_v57  ;;  %v6026_v36 = vrot.slane %v5075_v6, %v17740_v33 }
 0x130   : > { %v3671_v12 = vshrl.u32 %v1886_v16, 16  ;;  %v5078_v13 = vmax.bf16 %v3651_v8, %v1885_v41  ;;  %v5080_v17 = vmax.bf16 %v3661_v22, %v1882_v63  ;;  %v5081_v18 = vmax.bf16 %v3666_v0, %v1884_v58 }
 0x131   : > { %v6040_v19 = vrot.slane %v5076_v48, %v17740_v33  ;;  %v6054_v20 = vrot.slane %v5077_v56, %v17740_v33  ;;  %v6082_v1 = vrot.slane %v5079_v3, %v17740_v33  ;;  %v17969_v26 = vpop.f32.mrb[36].mxu0  ;;  %v6033_v45 = vrot.slane %v6026_v36, %v17740_v33 }
 0x132   : > { %v5082_v39 = vmax.bf16 %v3671_v12, %v1886_v16  ;;  %v6068_v29 = vrot.slane %v5078_v13, %v17740_v33  ;;  %v6096_v30 = vrot.slane %v5080_v17, %v17740_v33  ;;  %v6110_v31 = vrot.slane %v5081_v18, %v17740_v33  ;;  %v17974_v34 = vpop.f32.mrb[37].mxu0 }
 0x133   : > { %v6047_v35 = vrot.slane %v6040_v19, %v17740_v33  ;;  %v6061_v38 = vrot.slane %v6054_v20, %v17740_v33  ;;  %v6089_v40 = vrot.slane %v6082_v1, %v17740_v33  ;;  %v17980_v43 = vpop.f32.mrb[38].mxu0  ;;  %v1834_v41 = vcombine.high %v17950_v59, %v17950_v59 }
 0x134   : > { %v6075_v53 = vrot.slane %v6068_v29, %v17740_v33  ;;  %v6103_v57 = vrot.slane %v6096_v30, %v17740_v33  ;;  %v6117_v61 = vrot.slane %v6110_v31, %v17740_v33  ;;  %v6124_v37 = vrot.slane %v5082_v39, %v17740_v33  ;;  %v17986_v2 = vpop.f32.mrb[39].mxu0 }
 0x135   : > { %v9293_v50 = vunpack.c.l.b16 %v6047_v35  ;;  %v9294_v63 = vunpack.c.l.b16 %v6061_v38  ;;  %v9296_v58 = vunpack.c.l.b16 %v6089_v40  ;;  %v9292_v7 = vunpack.c.l.b16 %v6033_v45 }
 0x136   : > { %v6131_v51 = vrot.slane %v6124_v37, %v17740_v33  ;;  %v9295_v4 = vunpack.c.l.b16 %v6075_v53  ;;  %v9297_v5 = vunpack.c.l.b16 %v6103_v57  ;;  %v9298_v6 = vunpack.c.l.b16 %v6117_v61 }
 0x137   : > { %v9573_v16 = vrot.slane %v9293_v50, 7  ;;  %v9575_v8 = vrot.slane %v9294_v63, 6  ;;  %v9579_v22 = vrot.slane %v9296_v58, 4  ;;  %v1835_v3 = vcombine.high %v17953_v62, %v17953_v62 }
 0x138   : > { %v9299_v0 = vunpack.c.l.b16 %v6131_v51  ;;  %v9577_v48 = vrot.slane %v9295_v4, 5  ;;  %v9581_v56 = vrot.slane %v9297_v5, 3  ;;  %v1836_v12 = vcombine.high %v17961_v10, %v17961_v10 }
 0x139   : > { %v9574_v36 = vsel %vm9525_vm1, %v9573_v16, %v9292_v7  ;;  %v1837_v13 = vcombine.high %v1833_v24, %v1833_v24  ;;  %v3596_v17 = vshrl.u32 %v17950_v59, 16  ;;  %v17997_v18 = vpop.f32.mrb[40].mxu0  ;;  %v9583_v20 = vrot.slane %v9298_v6, 2 }
 0x13a   : > { %v9576_v19 = vsel %vm9528_vm2, %v9575_v8, %v9574_v36  ;;  %v3601_v1 = vshrl.u32 %v17961_v10, 16  ;;  %v3606_v39 = vshrl.u32 %v1834_v41, 16  ;;  %v18001_v29 = vpop.f32.mrb[41].mxu0  ;;  %v3611_v31 = vshrl.u32 %v1836_v12, 16 }
 0x13b   : > { %v9578_v30 = vsel %vm9531_vm3, %v9577_v48, %v9576_v19  ;;  %v3616_v45 = vshrl.u32 %v17953_v62, 16  ;;  %v3621_v35 = vshrl.u32 %v1833_v24, 16  ;;  %v18005_v38 = vpop.f32.mrb[42].mxu0  ;;  %v3626_v53 = vshrl.u32 %v1835_v3, 16 }
 0x13c   : > { %v9580_v40 = vsel %vm9534_vm4, %v9579_v22, %v9578_v30  ;;  %v3631_v57 = vshrl.u32 %v1837_v13, 16  ;;  %v5067_v61 = vmax.bf16 %v3596_v17, %v17950_v59  ;;  %v18009_v37 = vpop.f32.mrb[43].mxu0  ;;  %v5068_v63 = vmax.bf16 %v3601_v1, %v17961_v10 }
 0x13d   : > { %v9582_v50 = vsel %vm9537_vm5, %v9581_v56, %v9580_v40  ;;  %v5069_v58 = vmax.bf16 %v3606_v39, %v1834_v41  ;;  %v5070_v51 = vmax.bf16 %v3611_v31, %v1836_v12  ;;  %v9585_v4 = vrot.slane %v9299_v0, 1 }
 0x13e   : > { %v5071_v5 = vmax.bf16 %v3616_v45, %v17953_v62  ;;  %v5072_v6 = vmax.bf16 %v3621_v35, %v1833_v24  ;;  %v5073_v7 = vmax.bf16 %v3626_v53, %v1835_v3  ;;  %v9584_v16 = vsel %vm9540_vm6, %v9583_v20, %v9582_v50 }
 0x13f   : > { %v5074_v8 = vmax.bf16 %v3631_v57, %v1837_v13  ;;  %v5914_v22 = vrot.slane %v5067_v61, %v17740_v33  ;;  %v5928_v59 = vrot.slane %v5068_v63, %v17740_v33  ;;  %v5942_v48 = vrot.slane %v5069_v58, %v17740_v33 }
 0x140   : > { %v5956_v56 = vrot.slane %v5070_v51, %v17740_v33  ;;  %v5970_v10 = vrot.slane %v5071_v5, %v17740_v33  ;;  %v5984_v41 = vrot.slane %v5072_v6, %v17740_v33  ;;  %v5998_v24 = vrot.slane %v5073_v7, %v17740_v33 }
 0x141   : > { %v5921_v0 = vrot.slane %v5914_v22, %v17740_v33  ;;  %v5935_v62 = vrot.slane %v5928_v59, %v17740_v33  ;;  %v6012_v3 = vrot.slane %v5074_v8, %v17740_v33  ;;  %v18025_v36 = vpop.f32.mrb[44].mxu0  ;;  %v5949_v12 = vrot.slane %v5942_v48, %v17740_v33 }
 0x142   : > { %v5963_v13 = vrot.slane %v5956_v56, %v17740_v33  ;;  %v5977_v17 = vrot.slane %v5970_v10, %v17740_v33  ;;  %v5991_v19 = vrot.slane %v5984_v41, %v17740_v33  ;;  %v18031_v20 = vpop.f32.mrb[45].mxu0  ;;  %v6005_v1 = vrot.slane %v5998_v24, %v17740_v33 }
 0x143   : > { %v6019_v39 = vrot.slane %v6012_v3, %v17740_v33  ;;  %v9284_v30 = vunpack.c.l.b16 %v5921_v0  ;;  %v9285_v31 = vunpack.c.l.b16 %v5935_v62  ;;  %v18035_v45 = vpop.f32.mrb[46].mxu0  ;;  %v9286_v35 = vunpack.c.l.b16 %v5949_v12 }
 0x144   : > { %v9287_v40 = vunpack.c.l.b16 %v5963_v13  ;;  %v9288_v53 = vunpack.c.l.b16 %v5977_v17  ;;  %v9289_v57 = vunpack.c.l.b16 %v5991_v19  ;;  %v18037_v61 = vpop.f32.mrb[47].mxu0  ;;  %v9290_v50 = vunpack.c.l.b16 %v6005_v1 }
 0x145   : > { %v9291_v63 = vunpack.c.l.b16 %v6019_v39  ;;  %v9559_v58 = vrot.slane %v9285_v31, 7  ;;  %v1632_v51 = vmax.bf16 %v17937_v44, %v17925_v28  ;;  %v9586_v5 = vsel %vm9543_vm7, %v9585_v4, %v9584_v16 }
 0x146   : > { %v9561_v6 = vrot.slane %v9286_v35, 6  ;;  %v9563_v7 = vrot.slane %v9287_v40, 5  ;;  %v1455_v8 = vmax.f32 %v17919_v9, 0.0  ;;  %v9565_v59 = vrot.slane %v9288_v53, 4 }
 0x147   : > { %v9560_v22 = vsel %vm9525_vm1, %v9559_v58, %v9284_v30  ;;  %v9567_v48 = vrot.slane %v9289_v57, 3  ;;  %v1936_v56 = vcombine.high %v1632_v51, %v1632_v51  ;;  %v9569_v41 = vrot.slane %v9290_v50, 2 }
 0x148   : > { %v9562_v10 = vsel %vm9528_vm2, %v9561_v6, %v9560_v22  ;;  %v1943_v0 = vrot.slane %v1632_v51, %v17740_v33  ;;  %v1456_v62 = vmax.f32 %v17934_v54, 0.0  ;;  %v9571_v44 = vrot.slane %v9291_v63, 1 }
 0x149   : > { %v9564_v28 = vsel %vm9531_vm3, %v9563_v7, %v9562_v10  ;;  %v1950_v4 = vrot.slane %v1936_v56, %v17740_v33  ;;  %v1461_v16 = vmax.f32 %v17941_v47, 0.0  ;;  %v18056_v54 = vadd.f32 %v17718_v60, %v17870_v32 }
 0x14a   : > { %v9566_v9 = vsel %vm9534_vm4, %v9565_v59, %v9564_v28  ;;  %v1951_v24 = vcombine.high %v1943_v0, %v1943_v0  ;;  %v1959_v3 = vrot.slane %v1943_v0, %v17740_v33  ;;  %v1573_v12 = vpack.c.bf16 %v1456_v62, %v1455_v8 }
 0x14b   : > { %v9568_v13 = vsel %vm9537_vm5, %v9567_v48, %v9566_v9  ;;  %v1952_v17 = vcombine.high %v1950_v4, %v1950_v4  ;;  %v1966_v19 = vrot.slane %v1950_v4, %v17740_v33 }
 0x14c   : > { %v9570_v1 = vsel %vm9540_vm6, %v9569_v41, %v9568_v13  ;;  %v1973_v39 = vrot.slane %v1951_v24, %v17740_v33  ;;  %v1981_v30 = vcombine.high %v1959_v3, %v1959_v3  ;;  %v3716_v31 = vshrl.u32 %v1959_v3, 16 }
 0x14d   : > { %v9572_v35 = vsel %vm9543_vm7, %v9571_v44, %v9570_v1  ;;  %v1980_v40 = vrot.slane %v1952_v17, %v17740_v33  ;;  %v1982_v53 = vcombine.high %v1966_v19, %v1966_v19  ;;  %v3736_v57 = vshrl.u32 %v1966_v19, 16  ;;  %v18070_v17 = vpop.f32.mrb[48].mxu0 }
 0x14e   : > { %v9980_v50 = vpack.c.b16 %v9586_v5, %v9572_v35  ;;  %v1983_v63 = vcombine.high %v1973_v39, %v1973_v39  ;;  %v3721_v58 = vshrl.u32 %v1973_v39, 16  ;;  %v3726_v51 = vshrl.u32 %v1981_v30, 16 }
 0x14f   : > { %v1984_v6 = vcombine.high %v1980_v40, %v1980_v40  ;;  %v3741_v7 = vshrl.u32 %v1980_v40, 16  ;;  %v3746_v32 = vshrl.u32 %v1982_v53, 16  ;;  %v5091_v8 = vmax.bf16 %v3716_v31, %v1959_v3  ;;  %v18076_v31 = vpop.f32.mrb[49].mxu0 }
 0x150   : > { %10013 = vst.msk [vmem:[#allocation2 + $0x38] sm:$0xff] %vm697_vm0, %v9980_v50  ;;  %v3731_v22 = vshrl.u32 %v1983_v63, 16  ;;  %v5092_v59 = vmax.bf16 %v3721_v58, %v1973_v39  ;;  %v5093_v48 = vmax.bf16 %v3726_v51, %v1981_v30  ;;  %v5095_v56 = vmax.bf16 %v3736_v57, %v1966_v19  ;;  %v18083_v50 = vpop.f32.mrb[50].mxu0 }
 0x151   : > { %v3751_v10 = vshrl.u32 %v1984_v6, 16  ;;  %v5096_v41 = vmax.bf16 %v3741_v7, %v1980_v40  ;;  %v5097_v0 = vmax.bf16 %v3746_v32, %v1982_v53  ;;  %v6250_v62 = vrot.slane %v5091_v8, %v17740_v33  ;;  %v18086_v7 = vpop.f32.mrb[51].mxu0 }
 0x152   : > { %v5094_v28 = vmax.bf16 %v3731_v22, %v1983_v63  ;;  %v6264_v5 = vrot.slane %v5092_v59, %v17740_v33  ;;  %v6278_v44 = vrot.slane %v5093_v48, %v17740_v33  ;;  %v6306_v4 = vrot.slane %v5095_v56, %v17740_v33 }
 0x153   : > { %v5098_v9 = vmax.bf16 %v3751_v10, %v1984_v6  ;;  %v6257_v24 = vrot.slane %v6250_v62, %v17740_v33  ;;  %v6320_v3 = vrot.slane %v5096_v41, %v17740_v33  ;;  %v6334_v13 = vrot.slane %v5097_v0, %v17740_v33 }
 0x154   : > { %v6271_v19 = vrot.slane %v6264_v5, %v17740_v33  ;;  %v6285_v1 = vrot.slane %v6278_v44, %v17740_v33  ;;  %v6292_v39 = vrot.slane %v5094_v28, %v17740_v33  ;;  %v6313_v30 = vrot.slane %v6306_v4, %v17740_v33 }
 0x155   : > { %v6327_v35 = vrot.slane %v6320_v3, %v17740_v33  ;;  %v6341_v40 = vrot.slane %v6334_v13, %v17740_v33  ;;  %v6348_v53 = vrot.slane %v5098_v9, %v17740_v33  ;;  %v1032_v57 = vadd.f32 %v17876_v42, %v17718_v60 }
 0x156   : > { %v6299_v63 = vrot.slane %v6292_v39, %v17740_v33  ;;  %v9309_v58 = vunpack.c.l.b16 %v6271_v19  ;;  %v9310_v51 = vunpack.c.l.b16 %v6285_v1  ;;  %v9312_v6 = vunpack.c.l.b16 %v6313_v30  ;;  %v18098_v19 = vpop.f32.mrb[52].mxu0 }
 0x157   : > { %v6355_v32 = vrot.slane %v6348_v53, %v17740_v33  ;;  %v9313_v8 = vunpack.c.l.b16 %v6327_v35  ;;  %v1631_v22 = vmax.bf16 %v1573_v12, %v17927_v21  ;;  %v10033_v48 = vld [vmem:[#allocation2 + $0x38] sm:$0xff]  ;;  %v9308_v56 = vunpack.c.l.b16 %v6257_v24 }
 0x158   : > { %v9311_v10 = vunpack.c.l.b16 %v6299_v63  ;;  %v9601_v42 = vrot.slane %v9309_v58, 7  ;;  %v9603_v41 = vrot.slane %v9310_v51, 6  ;;  %16833 = vmatprep.mubr.msk.bf16.mxu0 %vm697_vm0, %v10033_v48  ;;  %v9314_v0 = vunpack.c.l.b16 %v6341_v40  ;;  %v18106_v40 = vpop.f32.mrb[53].mxu0 }
 0x159   : > { %v9315_v62 = vunpack.c.l.b16 %v6355_v32  ;;  %v9607_v28 = vrot.slane %v9312_v6, 4  ;;  %v1887_v5 = vcombine.high %v1631_v22, %v1631_v22  ;;  %v1894_v9 = vrot.slane %v1631_v22, %v17740_v33 }
 0x15a   : > { %v9602_v44 = vsel %vm9525_vm1, %v9601_v42, %v9308_v56  ;;  %v9605_v4 = vrot.slane %v9311_v10, 5  ;;  %v1462_v3 = vmax.f32 %v1032_v57, 0.0  ;;  %v9609_v12 = vrot.slane %v9313_v8, 3 }
 0x15b   : > { %v9604_v21 = vsel %vm9528_vm2, %v9603_v41, %v9602_v44  ;;  %v1901_v24 = vrot.slane %v1887_v5, %v17740_v33  ;;  %v1024_v13 = vadd.f32 %v17718_v60, %v17878_v52  ;;  %v1902_v39 = vcombine.high %v1894_v9, %v1894_v9  ;;  %v18110_v60 = vpop.f32.mrb[54].mxu0 }
 0x15c   : > { %v9606_v1 = vsel %vm9531_vm3, %v9605_v4, %v9604_v21  ;;  %v1910_v30 = vrot.slane %v1894_v9, %v17740_v33  ;;  %v18104_v35 = vpack.c.bf16 %v1462_v3, %v1461_v16  ;;  %v9611_v57 = vrot.slane %v9314_v0, 2 }
 0x15d   : > { %v9608_v53 = vsel %vm9534_vm4, %v9607_v28, %v9606_v1  ;;  %v1903_v63 = vcombine.high %v1901_v24, %v1901_v24  ;;  %v1917_v58 = vrot.slane %v1901_v24, %v17740_v33  ;;  %v9613_v52 = vrot.slane %v9315_v62, 1 }
 0x15e   : > { %v1924_v51 = vrot.slane %v1902_v39, %v17740_v33  ;;  %v1932_v6 = vcombine.high %v1910_v30, %v1910_v30  ;;  %v3676_v32 = vshrl.u32 %v1910_v30, 16  ;;  %v1460_v22 = vmax.f32 %v1024_v13, 0.0 }
 0x15f   : > { %v1931_v8 = vrot.slane %v1903_v63, %v17740_v33  ;;  %v1933_v47 = vcombine.high %v1917_v58, %v1917_v58  ;;  %v3696_v16 = vshrl.u32 %v1917_v58, 16  ;;  %v9610_v48 = vsel %vm9537_vm5, %v9609_v12, %v9608_v53  ;;  %v18119_v63 = vpop.f32.mrb[55].mxu0 }
 0x160   : > { %v1934_v56 = vcombine.high %v1924_v51, %v1924_v51  ;;  %v3681_v10 = vshrl.u32 %v1924_v51, 16  ;;  %v3686_v42 = vshrl.u32 %v1932_v6, 16  ;;  %v5083_v5 = vmax.bf16 %v3676_v32, %v1910_v30 }
 0x161   : > { %v1935_v41 = vcombine.high %v1931_v8, %v1931_v8  ;;  %v3701_v0 = vshrl.u32 %v1931_v8, 16  ;;  %v3706_v28 = vshrl.u32 %v1933_v47, 16  ;;  %v5087_v9 = vmax.bf16 %v3696_v16, %v1917_v58 }
 0x162   : > { %v3691_v44 = vshrl.u32 %v1934_v56, 16  ;;  %v5084_v62 = vmax.bf16 %v3681_v10, %v1924_v51  ;;  %v5085_v4 = vmax.bf16 %v3686_v42, %v1932_v6  ;;  %v6138_v1 = vrot.slane %v5083_v5, %v17740_v33 }
 0x163   : > { %v3711_v3 = vshrl.u32 %v1935_v41, 16  ;;  %v5088_v21 = vmax.bf16 %v3701_v0, %v1931_v8  ;;  %v5089_v24 = vmax.bf16 %v3706_v28, %v1933_v47  ;;  %v6194_v53 = vrot.slane %v5087_v9, %v17740_v33 }
 0x164   : > { %v5086_v39 = vmax.bf16 %v3691_v44, %v1934_v56  ;;  %v6152_v13 = vrot.slane %v5084_v62, %v17740_v33  ;;  %v6166_v12 = vrot.slane %v5085_v4, %v17740_v33  ;;  %v6145_v30 = vrot.slane %v6138_v1, %v17740_v33 }
 0x165   : > { %v5090_v59 = vmax.bf16 %v3711_v3, %v1935_v41  ;;  %v6208_v51 = vrot.slane %v5088_v21, %v17740_v33  ;;  %v6222_v58 = vrot.slane %v5089_v24, %v17740_v33  ;;  %v6201_v47 = vrot.slane %v6194_v53, %v17740_v33  ;;  %v18141_v53 = vld [vmem:[%s21227_s2] ss:$0 sm:$0xff] }
 0x166   : > { %v6159_v6 = vrot.slane %v6152_v13, %v17740_v33  ;;  %v6173_v32 = vrot.slane %v6166_v12, %v17740_v33  ;;  %v6180_v8 = vrot.slane %v5086_v39, %v17740_v33  ;;  %v9612_v16 = vsel %vm9540_vm6, %v9611_v57, %v9610_v48 }
 0x167   : > { %v6215_v56 = vrot.slane %v6208_v51, %v17740_v33  ;;  %v6229_v10 = vrot.slane %v6222_v58, %v17740_v33  ;;  %v6236_v42 = vrot.slane %v5090_v59, %v17740_v33  ;;  %v9304_v5 = vunpack.c.l.b16 %v6201_v47 }
 0x168   : > { %v6187_v41 = vrot.slane %v6180_v8, %v17740_v33  ;;  %v9301_v0 = vunpack.c.l.b16 %v6159_v6  ;;  %v9302_v28 = vunpack.c.l.b16 %v6173_v32  ;;  %v21249_v9 = vmax.f32 %v18056_v54, 0.0 }
 0x169   : > { %v6243_v44 = vrot.slane %v6236_v42, %v17740_v33  ;;  %v9305_v62 = vunpack.c.l.b16 %v6215_v56  ;;  %v9306_v4 = vunpack.c.l.b16 %v6229_v10  ;;  %v9300_v21 = vunpack.c.l.b16 %v6145_v30 }
 0x16a   : > { %v1575_v3 = vpack.c.bf16 %v1460_v22, %v21249_v9  ;;  %v9303_v57 = vunpack.c.l.b16 %v6187_v41  ;;  %v9587_v48 = vrot.slane %v9301_v0, 7  ;;  %v9589_v24 = vrot.slane %v9302_v28, 6 }
 0x16b   : > { %v9614_v1 = vsel %vm9543_vm7, %v9613_v52, %v9612_v16  ;;  %v9307_v39 = vunpack.c.l.b16 %v6243_v44  ;;  %v9593_v12 = vrot.slane %v9304_v5, 4  ;;  %v1045_v54 = vadd.f32 %v18141_v53, %v17901_v15 }
 0x16c   : > { %v9588_v59 = vsel %vm9525_vm1, %v9587_v48, %v9300_v21  ;;  %v9591_v13 = vrot.slane %v9303_v57, 5  ;;  %v9595_v30 = vrot.slane %v9305_v62, 3  ;;  %v9597_v51 = vrot.slane %v9306_v4, 2 }
 0x16d   : > { %v9590_v22 = vsel %vm9528_vm2, %v9589_v24, %v9588_v59  ;;  %v1037_v52 = vadd.f32 %v18141_v53, %v17908_v11  ;;  %v9599_v6 = vrot.slane %v9307_v39, 1  ;;  %v1048_v32 = vadd.f32 %v18141_v53, %v17913_v14 }
 0x16e   : > { %v9592_v58 = vsel %vm9531_vm3, %v9591_v13, %v9590_v22  ;;  %v1040_v8 = vadd.f32 %v18141_v53, %v17915_v23  ;;  %v1465_v16 = vmax.f32 %v1045_v54, 0.0  ;;  %v1061_v56 = vadd.f32 %v18141_v53, %v17943_v49 }
 0x16f   : > { %v9594_v47 = vsel %vm9534_vm4, %v9593_v12, %v9592_v58  ;;  %v1463_v15 = vmax.f32 %v1037_v52, 0.0  ;;  %v1466_v42 = vmax.f32 %v1048_v32, 0.0  ;;  %v1053_v41 = vadd.f32 %v18141_v53, %v17947_v46  ;;  %v18195_v32 = vpop.f32.mrb[56].mxu0 }
 0x170   : > { %v9596_v10 = vsel %vm9537_vm5, %v9595_v30, %v9594_v47  ;;  %v1464_v11 = vmax.f32 %v1040_v8, 0.0  ;;  %v1064_v14 = vadd.f32 %v18141_v53, %v17955_v27  ;;  %v1056_v23 = vadd.f32 %v18141_v53, %v17958_v55 }
 0x171   : > { %v9598_v0 = vsel %vm9540_vm6, %v9597_v51, %v9596_v10  ;;  %v1578_v5 = vpack.c.bf16 %v1466_v42, %v1465_v16  ;;  %v1469_v49 = vmax.f32 %v1061_v56, 0.0  ;;  %v1467_v4 = vmax.f32 %v1053_v41, 0.0  ;;  %v18202_v56 = vpop.f32.mrb[57].mxu0 }
 0x172   : > { %v9600_v28 = vsel %vm9543_vm7, %v9599_v6, %v9598_v0  ;;  %v1577_v44 = vpack.c.bf16 %v1464_v11, %v1463_v15  ;;  %v1470_v9 = vmax.f32 %v1064_v14, 0.0  ;;  %v1468_v21 = vmax.f32 %v1056_v23, 0.0  ;;  %v18205_v14 = vpop.f32.mrb[58].mxu0 }
 0x173   : > { %v9981_v62 = vpack.c.b16 %v9614_v1, %v9600_v28  ;;  %v1634_v57 = vmax.bf16 %v1578_v5, %v18104_v35  ;;  %v18173_v55 = vadd.f32 %v18141_v53, %v17969_v26  ;;  %v18177_v24 = vadd.f32 %v18141_v53, %v17974_v34 }
 0x174   : > { %v1633_v46 = vmax.bf16 %v1577_v44, %v1575_v3  ;;  %v18167_v48 = vpack.c.bf16 %v1470_v9, %v1469_v49  ;;  %v18169_v27 = vpack.c.bf16 %v1468_v21, %v1467_v4  ;;  %v18183_v3 = vadd.f32 %v18141_v53, %v17980_v43 }
 0x175   : > { %10014 = vst.msk [vmem:[#allocation2 + $0x50] sm:$0xff] %vm697_vm0, %v9981_v62  ;;  %v2034_v1 = vcombine.high %v1634_v57, %v1634_v57  ;;  %v2041_v39 = vrot.slane %v1634_v57, %v17740_v33  ;;  %v18200_v15 = vadd.f32 %v18141_v53, %v17986_v2  ;;  %v18211_v2 = vpop.f32.mrb[59].mxu0 }
 0x176   : > { %v1985_v59 = vcombine.high %v1633_v46, %v1633_v46  ;;  %v1992_v35 = vrot.slane %v1633_v46, %v17740_v33 }
 0x177   : > { %v2048_v13 = vrot.slane %v2034_v1, %v17740_v33  ;;  %v2049_v12 = vcombine.high %v2041_v39, %v2041_v39  ;;  %v2057_v26 = vrot.slane %v2041_v39, %v17740_v33 }
 0x178   : > { %v1999_v54 = vrot.slane %v1985_v59, %v17740_v33  ;;  %v2000_v22 = vcombine.high %v1992_v35, %v1992_v35  ;;  %v18189_v34 = vrot.slane %v1992_v35, %v17740_v33 }
 0x179   : > { %v2050_v52 = vcombine.high %v2048_v13, %v2048_v13  ;;  %v2064_v58 = vrot.slane %v2048_v13, %v17740_v33  ;;  %v2071_v43 = vrot.slane %v2049_v12, %v17740_v33  ;;  %v2079_v6 = vcombine.high %v2057_v26, %v2057_v26 }
 0x17a   : > { %v3796_v8 = vshrl.u32 %v2057_v26, 16  ;;  %v2001_v47 = vcombine.high %v1999_v54, %v1999_v54  ;;  %v18208_v44 = vrot.slane %v1999_v54, %v17740_v33 }
 0x17b   : > { %v2078_v10 = vrot.slane %v2050_v52, %v17740_v33  ;;  %v2080_v42 = vcombine.high %v2064_v58, %v2064_v58  ;;  %v2081_v11 = vcombine.high %v2071_v43, %v2071_v43  ;;  %v3801_v41 = vshrl.u32 %v2071_v43, 16 }
 0x17c   : > { %v10035_v0 = vld [vmem:[#allocation2 + $0x50] sm:$0xff]  ;;  %v3806_v23 = vshrl.u32 %v2079_v6, 16  ;;  %v3816_v28 = vshrl.u32 %v2064_v58, 16  ;;  %v5107_v5 = vmax.bf16 %v3796_v8, %v2057_v26  ;;  %v2022_v52 = vrot.slane %v2000_v22, %v17740_v33 }
 0x17d   : > { %16834 = vmatmul.mubr.msk.bf16.gmra.mrb[132].mxu0 %vm697_vm0, %v10035_v0  ;;  %v2082_v49 = vcombine.high %v2078_v10, %v2078_v10  ;;  %v3811_v62 = vshrl.u32 %v2081_v11, 16  ;;  %v3821_v4 = vshrl.u32 %v2078_v10, 16  ;;  %v3826_v9 = vshrl.u32 %v2080_v42, 16 }
 0x17e   : > { %v5108_v21 = vmax.bf16 %v3801_v41, %v2071_v43  ;;  %v5109_v57 = vmax.bf16 %v3806_v23, %v2079_v6  ;;  %v5111_v46 = vmax.bf16 %v3816_v28, %v2064_v58  ;;  %v6474_v1 = vrot.slane %v5107_v5, %v17740_v33 }
 0x17f   : > { %v3831_v39 = vshrl.u32 %v2082_v49, 16  ;;  %v5110_v59 = vmax.bf16 %v3811_v62, %v2081_v11  ;;  %v5112_v35 = vmax.bf16 %v3821_v4, %v2078_v10  ;;  %v5113_v13 = vmax.bf16 %v3826_v9, %v2080_v42 }
 0x180   : > { %v6488_v12 = vrot.slane %v5108_v21, %v17740_v33  ;;  %v6502_v26 = vrot.slane %v5109_v57, %v17740_v33  ;;  %v6530_v54 = vrot.slane %v5111_v46, %v17740_v33  ;;  %v6481_v6 = vrot.slane %v6474_v1, %v17740_v33 }
 0x181   : > { %v5114_v8 = vmax.bf16 %v3831_v39, %v2082_v49  ;;  %v6516_v0 = vrot.slane %v5110_v59, %v17740_v33  ;;  %v6544_v43 = vrot.slane %v5112_v35, %v17740_v33  ;;  %v6558_v58 = vrot.slane %v5113_v13, %v17740_v33 }
 0x182   : > { %v6495_v10 = vrot.slane %v6488_v12, %v17740_v33  ;;  %v6509_v42 = vrot.slane %v6502_v26, %v17740_v33  ;;  %v6537_v11 = vrot.slane %v6530_v54, %v17740_v33  ;;  %v2029_v4 = vrot.slane %v2001_v47, %v17740_v33 }
 0x183   : > { %v6523_v41 = vrot.slane %v6516_v0, %v17740_v33  ;;  %v6551_v23 = vrot.slane %v6544_v43, %v17740_v33  ;;  %v6565_v22 = vrot.slane %v6558_v58, %v17740_v33  ;;  %v6572_v28 = vrot.slane %v5114_v8, %v17740_v33  ;;  %v18237_v58 = vpop.f32.mrb[60].mxu0 }
 0x184   : > { %v9325_v5 = vunpack.c.l.b16 %v6495_v10  ;;  %v9326_v49 = vunpack.c.l.b16 %v6509_v42  ;;  %v9328_v62 = vunpack.c.l.b16 %v6537_v11  ;;  %v2030_v46 = vcombine.high %v18189_v34, %v18189_v34 }
 0x185   : > { %v6579_v9 = vrot.slane %v6572_v28, %v17740_v33  ;;  %v9327_v21 = vunpack.c.l.b16 %v6523_v41  ;;  %v9329_v57 = vunpack.c.l.b16 %v6551_v23  ;;  %v9324_v1 = vunpack.c.l.b16 %v6481_v6 }
 0x186   : > { %v9330_v39 = vunpack.c.l.b16 %v6565_v22  ;;  %v9629_v59 = vrot.slane %v9325_v5, 7  ;;  %v9631_v35 = vrot.slane %v9326_v49, 6  ;;  %v9635_v26 = vrot.slane %v9328_v62, 4 }
 0x187   : > { %v9331_v13 = vunpack.c.l.b16 %v6579_v9  ;;  %v9633_v12 = vrot.slane %v9327_v21, 5  ;;  %v2031_v54 = vcombine.high %v18208_v44, %v18208_v44  ;;  %v2032_v47 = vcombine.high %v2022_v52, %v2022_v52 }
 0x188   : > { %v9630_v8 = vsel %vm9525_vm1, %v9629_v59, %v9324_v1  ;;  %v2033_v0 = vcombine.high %v2029_v4, %v2029_v4  ;;  %v3756_v43 = vshrl.u32 %v18189_v34, 16  ;;  %v9637_v6 = vrot.slane %v9329_v57, 3 }
 0x189   : > { %v9632_v10 = vsel %vm9528_vm2, %v9631_v35, %v9630_v8  ;;  %v3761_v42 = vshrl.u32 %v2022_v52, 16  ;;  %v3766_v11 = vshrl.u32 %v2030_v46, 16  ;;  %v3771_v23 = vshrl.u32 %v2032_v47, 16 }
 0x18a   : > { %v9634_v41 = vsel %vm9531_vm3, %v9633_v12, %v9632_v10  ;;  %v3776_v22 = vshrl.u32 %v18208_v44, 16  ;;  %v3781_v28 = vshrl.u32 %v2029_v4, 16  ;;  %v3786_v49 = vshrl.u32 %v2031_v54, 16  ;;  %v18245_v12 = vpop.f32.mrb[61].mxu0 }
 0x18b   : > { %v9636_v5 = vsel %vm9534_vm4, %v9635_v26, %v9634_v41  ;;  %v3791_v62 = vshrl.u32 %v2033_v0, 16  ;;  %v5099_v9 = vmax.bf16 %v3756_v43, %v18189_v34  ;;  %v9639_v21 = vrot.slane %v9330_v39, 2  ;;  %v18250_v25 = vpop.f32.mrb[62].mxu0 }
 0x18c   : > { %v5100_v1 = vmax.bf16 %v3761_v42, %v2022_v52  ;;  %v5101_v59 = vmax.bf16 %v3766_v11, %v2030_v46  ;;  %v5102_v51 = vmax.bf16 %v3771_v23, %v2032_v47  ;;  %v9641_v35 = vrot.slane %v9331_v13, 1 }
 0x18d   : > { %v5103_v57 = vmax.bf16 %v3776_v22, %v18208_v44  ;;  %v5104_v8 = vmax.bf16 %v3781_v28, %v2029_v4  ;;  %v5105_v16 = vmax.bf16 %v3786_v49, %v2031_v54  ;;  %v9638_v10 = vsel %vm9537_vm5, %v9637_v6, %v9636_v5  ;;  %v18256_v4 = vpop.f32.mrb[63].mxu0 }
 0x18e   : > { %v5106_v30 = vmax.bf16 %v3791_v62, %v2033_v0  ;;  %v6362_v26 = vrot.slane %v5099_v9, %v17740_v33  ;;  %v6376_v41 = vrot.slane %v5100_v1, %v17740_v33  ;;  %v6390_v34 = vrot.slane %v5101_v59, %v17740_v33 }
 0x18f   : > { %v6404_v52 = vrot.slane %v5102_v51, %v17740_v33  ;;  %v6418_v46 = vrot.slane %v5103_v57, %v17740_v33  ;;  %v6432_v44 = vrot.slane %v5104_v8, %v17740_v33  ;;  %v6446_v54 = vrot.slane %v5105_v16, %v17740_v33 }
 0x190   : > { %v6369_v39 = vrot.slane %v6362_v26, %v17740_v33  ;;  %v6383_v13 = vrot.slane %v6376_v41, %v17740_v33  ;;  %v6460_v47 = vrot.slane %v5106_v30, %v17740_v33  ;;  %v6397_v0 = vrot.slane %v6390_v34, %v17740_v33 }
 0x191   : > { %v6411_v43 = vrot.slane %v6404_v52, %v17740_v33  ;;  %v6425_v51 = vrot.slane %v6418_v46, %v17740_v33  ;;  %v6439_v6 = vrot.slane %v6432_v44, %v17740_v33  ;;  %v9640_v42 = vsel %vm9540_vm6, %v9639_v21, %v9638_v10 }
 0x192   : > { %v6453_v11 = vrot.slane %v6446_v54, %v17740_v33  ;;  %v6467_v23 = vrot.slane %v6460_v47, %v17740_v33  ;;  %v9317_v22 = vunpack.c.l.b16 %v6383_v13  ;;  %v9318_v28 = vunpack.c.l.b16 %v6397_v0 }
 0x193   : > { %v9319_v5 = vunpack.c.l.b16 %v6411_v43  ;;  %v9320_v16 = vunpack.c.l.b16 %v6425_v51  ;;  %v9321_v49 = vunpack.c.l.b16 %v6439_v6  ;;  %v9316_v30 = vunpack.c.l.b16 %v6369_v39 }
 0x194   : > { %v9322_v62 = vunpack.c.l.b16 %v6453_v11  ;;  %v9615_v9 = vrot.slane %v9317_v22, 7  ;;  %v21250_v1 = vmax.f32 %v18173_v55, 0.0  ;;  %v21251_v59 = vmax.f32 %v18183_v3, 0.0 }
 0x195   : > { %v9642_v8 = vsel %vm9543_vm7, %v9641_v35, %v9640_v42  ;;  %v9323_v21 = vunpack.c.l.b16 %v6467_v23  ;;  %v9617_v10 = vrot.slane %v9318_v28, 6  ;;  %v9619_v26 = vrot.slane %v9319_v5, 5 }
 0x196   : > { %v1582_v57 = vpack.c.bf16 %v21251_v59, %v21250_v1  ;;  %v9616_v41 = vsel %vm9525_vm1, %v9615_v9, %v9316_v30  ;;  %v9621_v34 = vrot.slane %v9320_v16, 4  ;;  %v9623_v52 = vrot.slane %v9321_v49, 3 }
 0x197   : > { %v9618_v44 = vsel %vm9528_vm2, %v9617_v10, %v9616_v41  ;;  %v1472_v39 = vmax.f32 %v18200_v15, 0.0  ;;  %v18280_v55 = vadd.f32 %v18141_v53, %v17997_v18  ;;  %v18284_v3 = vadd.f32 %v18141_v53, %v18001_v29 }
 0x198   : > { %v1636_v46 = vmax.bf16 %v1582_v57, %v18167_v48  ;;  %v9620_v35 = vsel %vm9531_vm3, %v9619_v26, %v9618_v44  ;;  %v9625_v13 = vrot.slane %v9322_v62, 2  ;;  %v9627_v0 = vrot.slane %v9323_v21, 1 }
 0x199   : > { %v9622_v48 = vsel %vm9534_vm4, %v9621_v34, %v9620_v35  ;;  %v21252_v43 = vmax.f32 %v18177_v24, 0.0  ;;  %v18293_v18 = vadd.f32 %v18141_v53, %v18005_v38  ;;  %v1477_v22 = vmax.f32 %v18280_v55, 0.0 }
 0x19a   : > { %v2132_v54 = vcombine.high %v1636_v46, %v1636_v46  ;;  %v2139_v47 = vrot.slane %v1636_v46, %v17740_v33  ;;  %v9624_v51 = vsel %vm9537_vm5, %v9623_v52, %v9622_v48 }
 0x19b   : > { %v1581_v15 = vpack.c.bf16 %v1472_v39, %v21252_v43  ;;  %v9626_v11 = vsel %vm9540_vm6, %v9625_v13, %v9624_v51  ;;  %v1478_v9 = vmax.f32 %v18293_v18, 0.0 }
 0x19c   : > { %v2146_v29 = vrot.slane %v2132_v54, %v17740_v33  ;;  %v2147_v6 = vcombine.high %v2139_v47, %v2139_v47  ;;  %v2155_v42 = vrot.slane %v2139_v47, %v17740_v33  ;;  %v9628_v28 = vsel %vm9543_vm7, %v9627_v0, %v9626_v11 }
 0x19d   : > { %v1635_v23 = vmax.bf16 %v1581_v15, %v18169_v27  ;;  %v9982_v49 = vpack.c.b16 %v9642_v8, %v9628_v28 }
 0x19e   : > { %v2148_v5 = vcombine.high %v2146_v29, %v2146_v29  ;;  %v2162_v38 = vrot.slane %v2146_v29, %v17740_v33  ;;  %v2169_v16 = vrot.slane %v2147_v6, %v17740_v33  ;;  %v2177_v30 = vcombine.high %v2155_v42, %v2155_v42  ;;  %v18313_v6 = vpop.f32.mrb[64].mxu0 }
 0x19f   : > { %v3876_v62 = vshrl.u32 %v2155_v42, 16  ;;  %10015 = vst.msk [vmem:[#allocation2 + $0x68] sm:$0xff] %vm697_vm0, %v9982_v49  ;;  %v2083_v41 = vcombine.high %v1635_v23, %v1635_v23  ;;  %v2090_v29 = vrot.slane %v1635_v23, %v17740_v33 }
 0x1a0   : > { %v2176_v1 = vrot.slane %v2148_v5, %v17740_v33  ;;  %v2178_v59 = vcombine.high %v2162_v38, %v2162_v38  ;;  %v2179_v27 = vcombine.high %v2169_v16, %v2169_v16  ;;  %v3881_v57 = vshrl.u32 %v2169_v16, 16 }
 0x1a1   : > { %v3886_v21 = vshrl.u32 %v2177_v30, 16  ;;  %v3896_v10 = vshrl.u32 %v2162_v38, 16  ;;  %v5123_v26 = vmax.bf16 %v3876_v62, %v2155_v42 }
 0x1a2   : > { %v2180_v34 = vcombine.high %v2176_v1, %v2176_v1  ;;  %v3891_v52 = vshrl.u32 %v2179_v27, 16  ;;  %v3901_v46 = vshrl.u32 %v2176_v1, 16  ;;  %v3906_v44 = vshrl.u32 %v2178_v59, 16 }
 0x1a3   : > { %v5124_v8 = vmax.bf16 %v3881_v57, %v2169_v16  ;;  %v5125_v39 = vmax.bf16 %v3886_v21, %v2177_v30  ;;  %v5127_v35 = vmax.bf16 %v3896_v10, %v2162_v38  ;;  %v6698_v13 = vrot.slane %v5123_v26, %v17740_v33  ;;  %v18318_v38 = vpop.f32.mrb[65].mxu0 }
 0x1a4   : > { %v3911_v54 = vshrl.u32 %v2180_v34, 16  ;;  %v5126_v47 = vmax.bf16 %v3891_v52, %v2179_v27  ;;  %v5128_v48 = vmax.bf16 %v3901_v46, %v2176_v1  ;;  %v5129_v0 = vmax.bf16 %v3906_v44, %v2178_v59  ;;  %v18324_v23 = vpop.f32.mrb[66].mxu0 }
 0x1a5   : > { %v6712_v43 = vrot.slane %v5124_v8, %v17740_v33  ;;  %v6726_v15 = vrot.slane %v5125_v39, %v17740_v33  ;;  %v6754_v51 = vrot.slane %v5127_v35, %v17740_v33  ;;  %v6705_v16 = vrot.slane %v6698_v13, %v17740_v33  ;;  %v18330_v10 = vpop.f32.mrb[67].mxu0 }
 0x1a6   : > { %v5130_v42 = vmax.bf16 %v3911_v54, %v2180_v34  ;;  %v6740_v11 = vrot.slane %v5126_v47, %v17740_v33  ;;  %v6768_v28 = vrot.slane %v5128_v48, %v17740_v33  ;;  %v6782_v5 = vrot.slane %v5129_v0, %v17740_v33  ;;  %v10037_v21 = vld [vmem:[#allocation2 + $0x68] sm:$0xff] }
 0x1a7   : > { %v6719_v49 = vrot.slane %v6712_v43, %v17740_v33  ;;  %v6733_v30 = vrot.slane %v6726_v15, %v17740_v33  ;;  %v6761_v62 = vrot.slane %v6754_v51, %v17740_v33  ;;  %v2097_v46 = vrot.slane %v2083_v41, %v17740_v33  ;;  %16837 = vmatprep.mubr.msk.bf16.mxu0 %vm697_vm0, %v10037_v21 }
 0x1a8   : > { %v6747_v1 = vrot.slane %v6740_v11, %v17740_v33  ;;  %v6775_v59 = vrot.slane %v6768_v28, %v17740_v33  ;;  %v6789_v27 = vrot.slane %v6782_v5, %v17740_v33  ;;  %v6796_v57 = vrot.slane %v5130_v42, %v17740_v33  ;;  %v18342_v5 = vpop.f32.mrb[68].mxu0 }
 0x1a9   : > { %v9341_v26 = vunpack.c.l.b16 %v6719_v49  ;;  %v9342_v34 = vunpack.c.l.b16 %v6733_v30  ;;  %v9344_v52 = vunpack.c.l.b16 %v6761_v62  ;;  %v18337_v35 = vadd.f32 %v18141_v53, %v18009_v37  ;;  %v18352_v62 = vpop.f32.mrb[69].mxu0 }
 0x1aa   : > { %v6803_v44 = vrot.slane %v6796_v57, %v17740_v33  ;;  %v9343_v8 = vunpack.c.l.b16 %v6747_v1  ;;  %v9345_v39 = vunpack.c.l.b16 %v6775_v59  ;;  %v9340_v13 = vunpack.c.l.b16 %v6705_v16  ;;  %21253 = vst [vmem:[#allocation4_spill] sm:$0xff] %v18352_v62  ;;  %v18356_v57 = vpop.f32.mrb[70].mxu0 }
 0x1ab   : > { %v9657_v54 = vrot.slane %v9341_v26, 7  ;;  %v9659_v47 = vrot.slane %v9342_v34, 6  ;;  %v2098_v48 = vcombine.high %v2090_v29, %v2090_v29  ;;  %v9346_v0 = vunpack.c.l.b16 %v6789_v27  ;;  %21254 = vst [vmem:[#allocation5_spill] sm:$0xff] %v18356_v57 }
 0x1ac   : > { %v9347_v43 = vunpack.c.l.b16 %v6803_v44  ;;  %v9661_v15 = vrot.slane %v9343_v8, 5  ;;  %v9663_v51 = vrot.slane %v9344_v52, 4  ;;  %v2099_v42 = vcombine.high %v2097_v46, %v2097_v46 }
 0x1ad   : > { %v9658_v41 = vsel %vm9525_vm1, %v9657_v54, %v9340_v13  ;;  %v2106_v11 = vrot.slane %v2090_v29, %v17740_v33  ;;  %v2113_v28 = vrot.slane %v2097_v46, %v17740_v33  ;;  %v9665_v49 = vrot.slane %v9345_v39, 3 }
 0x1ae   : > { %v9660_v37 = vsel %vm9528_vm2, %v9659_v47, %v9658_v41  ;;  %v2120_v16 = vrot.slane %v2098_v48, %v17740_v33  ;;  %v18350_v30 = vpack.c.bf16 %v1478_v9, %v1477_v22  ;;  %v2127_v29 = vrot.slane %v2099_v42, %v17740_v33 }
 0x1af   : > { %v9662_v1 = vsel %vm9531_vm3, %v9661_v15, %v9660_v37  ;;  %v2128_v59 = vcombine.high %v2106_v11, %v2106_v11  ;;  %v2129_v27 = vcombine.high %v2113_v28, %v2113_v28  ;;  %v3836_v34 = vshrl.u32 %v2106_v11, 16  ;;  %v18360_v37 = vpop.f32.mrb[71].mxu0 }
 0x1b0   : > { %v9664_v21 = vsel %vm9534_vm4, %v9663_v51, %v9662_v1  ;;  %v2130_v26 = vcombine.high %v2120_v16, %v2120_v16  ;;  %v3841_v52 = vshrl.u32 %v2120_v16, 16  ;;  %v9667_v55 = vrot.slane %v9346_v0, 2 }
 0x1b1   : > { %v2131_v46 = vcombine.high %v2127_v29, %v2127_v29  ;;  %v3846_v18 = vshrl.u32 %v2128_v59, 16  ;;  %v3856_v22 = vshrl.u32 %v2113_v28, 16  ;;  %v9669_v9 = vrot.slane %v9347_v43, 1 }
 0x1b2   : > { %v3851_v44 = vshrl.u32 %v2130_v26, 16  ;;  %v3861_v8 = vshrl.u32 %v2127_v29, 16  ;;  %v3866_v39 = vshrl.u32 %v2129_v27, 16  ;;  %v9666_v13 = vsel %vm9537_vm5, %v9665_v49, %v9664_v21 }
 0x1b3   : > { %v3871_v54 = vshrl.u32 %v2131_v46, 16  ;;  %v5115_v47 = vmax.bf16 %v3836_v34, %v2106_v11  ;;  %v5116_v48 = vmax.bf16 %v3841_v52, %v2120_v16  ;;  %v5117_v15 = vmax.bf16 %v3846_v18, %v2128_v59 }
 0x1b4   : > { %v5118_v41 = vmax.bf16 %v3851_v44, %v2130_v26  ;;  %v5119_v42 = vmax.bf16 %v3856_v22, %v2113_v28  ;;  %v5120_v51 = vmax.bf16 %v3861_v8, %v2127_v29  ;;  %v5121_v1 = vmax.bf16 %v3866_v39, %v2129_v27 }
 0x1b5   : > { %v5122_v0 = vmax.bf16 %v3871_v54, %v2131_v46  ;;  %v6586_v24 = vrot.slane %v5115_v47, %v17740_v33  ;;  %v6600_v43 = vrot.slane %v5116_v48, %v17740_v33  ;;  %v6614_v57 = vrot.slane %v5117_v15, %v17740_v33 }
 0x1b6   : > { %v6628_v62 = vrot.slane %v5118_v41, %v17740_v33  ;;  %v6642_v49 = vrot.slane %v5119_v42, %v17740_v33  ;;  %v6656_v11 = vrot.slane %v5120_v51, %v17740_v33  ;;  %v6670_v29 = vrot.slane %v5121_v1, %v17740_v33 }
 0x1b7   : > { %v6593_v16 = vrot.slane %v6586_v24, %v17740_v33  ;;  %v6607_v28 = vrot.slane %v6600_v43, %v17740_v33  ;;  %v6684_v59 = vrot.slane %v5122_v0, %v17740_v33  ;;  %v6621_v27 = vrot.slane %v6614_v57, %v17740_v33 }
 0x1b8   : > { %v6635_v21 = vrot.slane %v6628_v62, %v17740_v33  ;;  %v6649_v26 = vrot.slane %v6642_v49, %v17740_v33  ;;  %v6663_v34 = vrot.slane %v6656_v11, %v17740_v33  ;;  %v9668_v52 = vsel %vm9540_vm6, %v9667_v55, %v9666_v13 }
 0x1b9   : > { %v6677_v46 = vrot.slane %v6670_v29, %v17740_v33  ;;  %v6691_v24 = vrot.slane %v6684_v59, %v17740_v33  ;;  %v9333_v18 = vunpack.c.l.b16 %v6607_v28  ;;  %v9334_v22 = vunpack.c.l.b16 %v6621_v27 }
 0x1ba   : > { %v9335_v44 = vunpack.c.l.b16 %v6635_v21  ;;  %v9336_v8 = vunpack.c.l.b16 %v6649_v26  ;;  %v9337_v39 = vunpack.c.l.b16 %v6663_v34  ;;  %v9332_v54 = vunpack.c.l.b16 %v6593_v16 }
 0x1bb   : > { %v9338_v47 = vunpack.c.l.b16 %v6677_v46  ;;  %v9643_v57 = vrot.slane %v9333_v18, 7  ;;  %v1476_v62 = vmax.f32 %v18337_v35, 0.0  ;;  %v9339_v48 = vunpack.c.l.b16 %v6691_v24 }
 0x1bc   : > { %v9645_v15 = vrot.slane %v9334_v22, 6  ;;  %v9647_v41 = vrot.slane %v9335_v44, 5  ;;  %v9670_v42 = vsel %vm9543_vm7, %v9669_v9, %v9668_v52  ;;  %v9649_v13 = vrot.slane %v9336_v8, 4 }
 0x1bd   : > { %v9644_v55 = vsel %vm9525_vm1, %v9643_v57, %v9332_v54  ;;  %v21255_v51 = vmax.f32 %v18284_v3, 0.0  ;;  %v9651_v43 = vrot.slane %v9337_v39, 3  ;;  %v9653_v49 = vrot.slane %v9338_v47, 2 }
 0x1be   : > { %v9646_v0 = vsel %vm9528_vm2, %v9645_v15, %v9644_v55  ;;  %v1109_v11 = vadd.f32 %v18141_v53, %v18025_v36  ;;  %v1101_v16 = vadd.f32 %v18141_v53, %v18031_v20  ;;  %v1112_v9 = vadd.f32 %v18141_v53, %v18035_v45 }
 0x1bf   : > { %v1583_v1 = vpack.c.bf16 %v1476_v62, %v21255_v51  ;;  %v9648_v35 = vsel %vm9531_vm3, %v9647_v41, %v9646_v0  ;;  %v1104_v28 = vadd.f32 %v18141_v53, %v18037_v61  ;;  %v9655_v29 = vrot.slane %v9339_v48, 1  ;;  %v18430_v0 = vpop.f32.mrb[72].mxu0 }
 0x1c0   : > { %v9650_v3 = vsel %vm9534_vm4, %v9649_v13, %v9648_v35  ;;  %v1481_v59 = vmax.f32 %v1109_v11, 0.0  ;;  %v1125_v27 = vadd.f32 %v18141_v53, %v18070_v17  ;;  %v1479_v21 = vmax.f32 %v1101_v16, 0.0  ;;  %v18434_v16 = vpop.f32.mrb[73].mxu0 }
 0x1c1   : > { %v9652_v36 = vsel %vm9537_vm5, %v9651_v43, %v9650_v3  ;;  %v1482_v26 = vmax.f32 %v1112_v9, 0.0  ;;  %v1480_v34 = vmax.f32 %v1104_v28, 0.0  ;;  %v1117_v45 = vadd.f32 %v18141_v53, %v18076_v31 }
 0x1c2   : > { %v9654_v20 = vsel %vm9540_vm6, %v9653_v49, %v9652_v36  ;;  %v1128_v24 = vadd.f32 %v18141_v53, %v18083_v50  ;;  %v1120_v17 = vadd.f32 %v18141_v53, %v18086_v7  ;;  %v1485_v8 = vmax.f32 %v1125_v27, 0.0 }
 0x1c3   : > { %v9656_v52 = vsel %vm9543_vm7, %v9655_v29, %v9654_v20  ;;  %v1586_v61 = vpack.c.bf16 %v1482_v26, %v1481_v59  ;;  %v1585_v46 = vpack.c.bf16 %v1480_v34, %v1479_v21  ;;  %v1483_v54 = vmax.f32 %v1117_v45, 0.0  ;;  %v18443_v59 = vpop.f32.mrb[74].mxu0 }
 0x1c4   : > { %v9983_v18 = vpack.c.b16 %v9670_v42, %v9656_v52  ;;  %v1486_v39 = vmax.f32 %v1128_v24, 0.0  ;;  %v1484_v31 = vmax.f32 %v1120_v17, 0.0  ;;  %v18410_v47 = vadd.f32 %v18141_v53, %v18098_v19  ;;  %v18446_v20 = vpop.f32.mrb[75].mxu0 }
 0x1c5   : > { %v1638_v22 = vmax.bf16 %v1586_v61, %v18350_v30  ;;  %v1637_v44 = vmax.bf16 %v1585_v46, %v1583_v1  ;;  %v18414_v50 = vadd.f32 %v18141_v53, %v18106_v40  ;;  %v18441_v29 = vadd.f32 %v18141_v53, %v18110_v60 }
 0x1c6   : > { %10016 = vst.msk [vmem:[#allocation2 + $0x80] sm:$0xff] %vm697_vm0, %v9983_v18  ;;  %v18418_v48 = vpack.c.bf16 %v1486_v39, %v1485_v8  ;;  %v18420_v15 = vpack.c.bf16 %v1484_v31, %v1483_v54  ;;  %v1489_v51 = vmax.f32 %v18410_v47, 0.0 }
 0x1c7   : > { %v2230_v57 = vcombine.high %v1638_v22, %v1638_v22  ;;  %v2237_v7 = vrot.slane %v1638_v22, %v17740_v33  ;;  %v2181_v62 = vcombine.high %v1637_v44, %v1637_v44  ;;  %v2188_v30 = vrot.slane %v1637_v44, %v17740_v33 }
 0x1c8   : > { %v1487_v1 = vmax.f32 %v18414_v50, 0.0 }
 0x1c9   : > { %v2244_v41 = vrot.slane %v2230_v57, %v17740_v33  ;;  %v2245_v42 = vcombine.high %v2237_v7, %v2237_v7  ;;  %v2253_v19 = vrot.slane %v2237_v7, %v17740_v33  ;;  %v2195_v55 = vrot.slane %v2181_v62, %v17740_v33 }
 0x1ca   : > { %v2196_v13 = vcombine.high %v2188_v30, %v2188_v30  ;;  %v18426_v40 = vrot.slane %v2188_v30, %v17740_v33 }
 0x1cb   : > { %v2246_v43 = vcombine.high %v2244_v41, %v2244_v41  ;;  %v2260_v49 = vrot.slane %v2244_v41, %v17740_v33  ;;  %v2267_v11 = vrot.slane %v2245_v42, %v17740_v33  ;;  %v2275_v35 = vcombine.high %v2253_v19, %v2253_v19 }
 0x1cc   : > { %v3956_v9 = vshrl.u32 %v2253_v19, 16  ;;  %v2197_v28 = vcombine.high %v2195_v55, %v2195_v55  ;;  %v18437_v3 = vrot.slane %v2195_v55, %v17740_v33  ;;  %v18449_v46 = vrot.slane %v2196_v13, %v17740_v33 }
 0x1cd   : > { %v2274_v27 = vrot.slane %v2246_v43, %v17740_v33  ;;  %v2276_v36 = vcombine.high %v2260_v49, %v2260_v49  ;;  %v2277_v21 = vcombine.high %v2267_v11, %v2267_v11  ;;  %v3961_v26 = vshrl.u32 %v2267_v11, 16  ;;  %v10039_v34 = vld [vmem:[#allocation2 + $0x80] sm:$0xff] }
 0x1ce   : > { %v3966_v45 = vshrl.u32 %v2275_v35, 16  ;;  %v3976_v52 = vshrl.u32 %v2260_v49, 16  ;;  %v5139_v61 = vmax.bf16 %v3956_v9, %v2253_v19  ;;  %16838 = vmatmul.mubr.msk.bf16.gmra.mrb[136].mxu0 %vm697_vm0, %v10039_v34  ;;  %v2225_v41 = vrot.slane %v2197_v28, %v17740_v33 }
 0x1cf   : > { %v2278_v60 = vcombine.high %v2274_v27, %v2274_v27  ;;  %v3971_v53 = vshrl.u32 %v2277_v21, 16  ;;  %v3981_v24 = vshrl.u32 %v2274_v27, 16  ;;  %v3986_v18 = vshrl.u32 %v2276_v36, 16 }
 0x1d0   : > { %v5140_v17 = vmax.bf16 %v3961_v26, %v2267_v11  ;;  %v5141_v22 = vmax.bf16 %v3966_v45, %v2275_v35  ;;  %v5143_v44 = vmax.bf16 %v3976_v52, %v2260_v49  ;;  %v6922_v8 = vrot.slane %v5139_v61, %v17740_v33 }
 0x1d1   : > { %v3991_v39 = vshrl.u32 %v2278_v60, 16  ;;  %v5142_v54 = vmax.bf16 %v3971_v53, %v2277_v21  ;;  %v5144_v31 = vmax.bf16 %v3981_v24, %v2274_v27  ;;  %v5145_v57 = vmax.bf16 %v3986_v18, %v2276_v36 }
 0x1d2   : > { %v6936_v7 = vrot.slane %v5140_v17, %v17740_v33  ;;  %v6950_v62 = vrot.slane %v5141_v22, %v17740_v33  ;;  %v6978_v30 = vrot.slane %v5143_v44, %v17740_v33  ;;  %v6929_v43 = vrot.slane %v6922_v8, %v17740_v33 }
 0x1d3   : > { %v5146_v42 = vmax.bf16 %v3991_v39, %v2278_v60  ;;  %v6964_v19 = vrot.slane %v5142_v54, %v17740_v33  ;;  %v6992_v55 = vrot.slane %v5144_v31, %v17740_v33  ;;  %v7006_v13 = vrot.slane %v5145_v57, %v17740_v33 }
 0x1d4   : > { %v6943_v49 = vrot.slane %v6936_v7, %v17740_v33  ;;  %v6957_v11 = vrot.slane %v6950_v62, %v17740_v33  ;;  %v6985_v35 = vrot.slane %v6978_v30, %v17740_v33  ;;  %v2226_v45 = vcombine.high %v18426_v40, %v18426_v40 }
 0x1d5   : > { %v6971_v9 = vrot.slane %v6964_v19, %v17740_v33  ;;  %v6999_v27 = vrot.slane %v6992_v55, %v17740_v33  ;;  %v7013_v28 = vrot.slane %v7006_v13, %v17740_v33  ;;  %v7020_v36 = vrot.slane %v5146_v42, %v17740_v33 }
 0x1d6   : > { %v9357_v21 = vunpack.c.l.b16 %v6943_v49  ;;  %v9358_v26 = vunpack.c.l.b16 %v6957_v11  ;;  %v9360_v34 = vunpack.c.l.b16 %v6985_v35  ;;  %v9356_v24 = vunpack.c.l.b16 %v6929_v43 }
 0x1d7   : > { %v7027_v52 = vrot.slane %v7020_v36, %v17740_v33  ;;  %v9359_v61 = vunpack.c.l.b16 %v6971_v9  ;;  %v9361_v60 = vunpack.c.l.b16 %v6999_v27  ;;  %v9362_v53 = vunpack.c.l.b16 %v7013_v28 }
 0x1d8   : > { %v9685_v18 = vrot.slane %v9357_v21, 7  ;;  %v9687_v17 = vrot.slane %v9358_v26, 6  ;;  %v9691_v22 = vrot.slane %v9360_v34, 4  ;;  %v2227_v54 = vcombine.high %v18437_v3, %v18437_v3 }
 0x1d9   : > { %v9363_v44 = vunpack.c.l.b16 %v7027_v52  ;;  %v9689_v8 = vrot.slane %v9359_v61, 5  ;;  %v9693_v39 = vrot.slane %v9361_v60, 3  ;;  %v2228_v57 = vcombine.high %v18449_v46, %v18449_v46 }
 0x1da   : > { %v9686_v31 = vsel %vm9525_vm1, %v9685_v18, %v9356_v24  ;;  %v2229_v7 = vcombine.high %v2225_v41, %v2225_v41  ;;  %v3916_v62 = vshrl.u32 %v18426_v40, 16  ;;  %v9695_v42 = vrot.slane %v9362_v53, 2 }
 0x1db   : > { %v9688_v30 = vsel %vm9528_vm2, %v9687_v17, %v9686_v31  ;;  %v3921_v19 = vshrl.u32 %v18449_v46, 16  ;;  %v3926_v55 = vshrl.u32 %v2226_v45, 16  ;;  %v3931_v43 = vshrl.u32 %v2228_v57, 16 }
 0x1dc   : > { %v9690_v13 = vsel %vm9531_vm3, %v9689_v8, %v9688_v30  ;;  %v3936_v49 = vshrl.u32 %v18437_v3, 16  ;;  %v3941_v11 = vshrl.u32 %v2225_v41, 16  ;;  %v3946_v9 = vshrl.u32 %v2227_v54, 16  ;;  %v18489_v8 = vpop.f32.mrb[76].mxu0 }
 0x1dd   : > { %v9692_v35 = vsel %vm9534_vm4, %v9691_v22, %v9690_v13  ;;  %v3951_v27 = vshrl.u32 %v2229_v7, 16  ;;  %v5131_v28 = vmax.bf16 %v3916_v62, %v18426_v40  ;;  %v5132_v21 = vmax.bf16 %v3921_v19, %v18449_v46 }
 0x1de   : > { %v9694_v36 = vsel %vm9537_vm5, %v9693_v39, %v9692_v35  ;;  %v5133_v26 = vmax.bf16 %v3926_v55, %v2226_v45  ;;  %v5134_v34 = vmax.bf16 %v3931_v43, %v2228_v57  ;;  %v9697_v52 = vrot.slane %v9363_v44, 1 }
 0x1df   : > { %v5135_v61 = vmax.bf16 %v3936_v49, %v18437_v3  ;;  %v5136_v60 = vmax.bf16 %v3941_v11, %v2225_v41  ;;  %v5137_v53 = vmax.bf16 %v3946_v9, %v2227_v54  ;;  %v9696_v24 = vsel %vm9540_vm6, %v9695_v42, %v9694_v36  ;;  %v18495_v3 = vpop.f32.mrb[77].mxu0 }
 0x1e0   : > { %v5138_v18 = vmax.bf16 %v3951_v27, %v2229_v7  ;;  %v6810_v17 = vrot.slane %v5131_v28, %v17740_v33  ;;  %v6824_v22 = vrot.slane %v5132_v21, %v17740_v33  ;;  %v6838_v40 = vrot.slane %v5133_v26, %v17740_v33  ;;  %v18501_v57 = vpop.f32.mrb[78].mxu0 }
 0x1e1   : > { %v6852_v46 = vrot.slane %v5134_v34, %v17740_v33  ;;  %v6866_v45 = vrot.slane %v5135_v61, %v17740_v33  ;;  %v6880_v44 = vrot.slane %v5136_v60, %v17740_v33  ;;  %v6894_v54 = vrot.slane %v5137_v53, %v17740_v33  ;;  %v18507_v19 = vpop.f32.mrb[79].mxu0 }
 0x1e2   : > { %v6817_v41 = vrot.slane %v6810_v17, %v17740_v33  ;;  %v6831_v39 = vrot.slane %v6824_v22, %v17740_v33  ;;  %v6908_v31 = vrot.slane %v5138_v18, %v17740_v33  ;;  %v6845_v7 = vrot.slane %v6838_v40, %v17740_v33  ;;  %v18520_v40 = vld [vmem:[%s21227_s2] ss:$0 sm:$0xff] }
 0x1e3   : > { %v6859_v62 = vrot.slane %v6852_v46, %v17740_v33  ;;  %v6873_v30 = vrot.slane %v6866_v45, %v17740_v33  ;;  %v6887_v42 = vrot.slane %v6880_v44, %v17740_v33  ;;  %v9698_v55 = vsel %vm9543_vm7, %v9697_v52, %v9696_v24 }
 0x1e4   : > { %v6901_v13 = vrot.slane %v6894_v54, %v17740_v33  ;;  %v6915_v43 = vrot.slane %v6908_v31, %v17740_v33  ;;  %v9349_v49 = vunpack.c.l.b16 %v6831_v39  ;;  %v9350_v11 = vunpack.c.l.b16 %v6845_v7 }
 0x1e5   : > { %v9351_v35 = vunpack.c.l.b16 %v6859_v62  ;;  %v9352_v9 = vunpack.c.l.b16 %v6873_v30  ;;  %v9353_v27 = vunpack.c.l.b16 %v6887_v42  ;;  %v9348_v28 = vunpack.c.l.b16 %v6817_v41 }
 0x1e6   : > { %v9354_v36 = vunpack.c.l.b16 %v6901_v13  ;;  %v9671_v21 = vrot.slane %v9349_v49, 7  ;;  %v1490_v26 = vmax.f32 %v18441_v29, 0.0  ;;  %v9355_v34 = vunpack.c.l.b16 %v6915_v43 }
 0x1e7   : > { %v9673_v61 = vrot.slane %v9350_v11, 6  ;;  %v9675_v60 = vrot.slane %v9351_v35, 5  ;;  %v9677_v53 = vrot.slane %v9352_v9, 4  ;;  %v9679_v24 = vrot.slane %v9353_v27, 3 }
 0x1e8   : > { %v9672_v52 = vsel %vm9525_vm1, %v9671_v21, %v9348_v28  ;;  %v9681_v18 = vrot.slane %v9354_v36, 2  ;;  %v1590_v17 = vpack.c.bf16 %v1490_v26, %v1489_v51  ;;  %v1136_v29 = vadd.f32 %v18520_v40, %v18119_v63  ;;  %v18550_v21 = vld [vmem:[#allocation2 + $0x8] sm:$0xff] }
 0x1e9   : > { %v9674_v22 = vsel %vm9528_vm2, %v9673_v61, %v9672_v52  ;;  %v1157_v46 = vadd.f32 %v18520_v40, %v18195_v32  ;;  %v1149_v45 = vadd.f32 %v18520_v40, %v18202_v56  ;;  %v1160_v51 = vadd.f32 %v18520_v40, %v18205_v14 }
 0x1ea   : > { %v9676_v44 = vsel %vm9531_vm3, %v9675_v60, %v9674_v22  ;;  %v1640_v47 = vmax.bf16 %v1590_v17, %v18418_v48  ;;  %v1152_v41 = vadd.f32 %v18520_v40, %v18211_v2  ;;  %v9683_v54 = vrot.slane %v9355_v34, 1 }
 0x1eb   : > { %v9678_v39 = vsel %vm9534_vm4, %v9677_v53, %v9676_v44  ;;  %v1488_v63 = vmax.f32 %v1136_v29, 0.0  ;;  %v1493_v31 = vmax.f32 %v1157_v46, 0.0  ;;  %v1494_v62 = vmax.f32 %v1160_v51, 0.0 }
 0x1ec   : > { %v9680_v32 = vsel %vm9537_vm5, %v9679_v24, %v9678_v39  ;;  %v2328_v7 = vcombine.high %v1640_v47, %v1640_v47  ;;  %v2335_v56 = vrot.slane %v1640_v47, %v17740_v33  ;;  %v1491_v14 = vmax.f32 %v1149_v45, 0.0  ;;  %v18557_v39 = vpop.f32.mrb[80].mxu0 }
 0x1ed   : > { %v9682_v30 = vsel %vm9540_vm6, %v9681_v18, %v9680_v32  ;;  %v1589_v48 = vpack.c.bf16 %v1488_v63, %v1487_v1  ;;  %v1492_v42 = vmax.f32 %v1152_v41, 0.0  ;;  %v18544_v9 = vpack.c.bf16 %v1494_v62, %v1493_v31 }
 0x1ee   : > { %v9684_v2 = vsel %vm9543_vm7, %v9683_v54, %v9682_v30  ;;  %v2342_v13 = vrot.slane %v2328_v7, %v17740_v33  ;;  %v2343_v43 = vcombine.high %v2335_v56, %v2335_v56  ;;  %v2351_v49 = vrot.slane %v2335_v56, %v17740_v33  ;;  %v18559_v7 = vpop.f32.mrb[81].mxu0 }
 0x1ef   : > { %v9984_v11 = vpack.c.b16 %v9698_v55, %v9684_v2  ;;  %v1639_v35 = vmax.bf16 %v1589_v48, %v18420_v15  ;;  %v18546_v27 = vpack.c.bf16 %v1492_v42, %v1491_v14  ;;  %v10065_v26 = vshrl.u32 %v18550_v21, 16  ;;  %v18565_v14 = vpop.f32.mrb[82].mxu0 }
 0x1f0   : > { %v2344_v28 = vcombine.high %v2342_v13, %v2342_v13  ;;  %v2358_v50 = vrot.slane %v2342_v13, %v17740_v33  ;;  %v2365_v1 = vrot.slane %v2343_v43, %v17740_v33  ;;  %v2373_v36 = vcombine.high %v2351_v49, %v2351_v49 }
 0x1f1   : > { %10017 = vst.msk [vmem:[#allocation2 + $0x98] sm:$0xff] %vm697_vm0, %v9984_v11  ;;  %v4036_v34 = vshrl.u32 %v2351_v49, 16  ;;  %v2279_v55 = vcombine.high %v1639_v35, %v1639_v35  ;;  %v2286_v17 = vrot.slane %v1639_v35, %v17740_v33  ;;  %v18570_v11 = vpop.f32.mrb[83].mxu0 }
 0x1f2   : > { %v2372_v15 = vrot.slane %v2344_v28, %v17740_v33  ;;  %v2374_v61 = vcombine.high %v2358_v50, %v2358_v50  ;;  %v2375_v60 = vcombine.high %v2365_v1, %v2365_v1  ;;  %v4041_v53 = vshrl.u32 %v2365_v1, 16 }
 0x1f3   : > { %v4046_v52 = vshrl.u32 %v2373_v36, 16  ;;  %v4056_v24 = vshrl.u32 %v2358_v50, 16  ;;  %v5155_v18 = vmax.bf16 %v4036_v34, %v2351_v49  ;;  %v2293_v48 = vrot.slane %v2279_v55, %v17740_v33 }
 0x1f4   : > { %v2376_v22 = vcombine.high %v2372_v15, %v2372_v15  ;;  %v4051_v29 = vshrl.u32 %v2375_v60, 16  ;;  %v4061_v46 = vshrl.u32 %v2372_v15, 16  ;;  %v4066_v45 = vshrl.u32 %v2374_v61, 16 }
 0x1f5   : > { %v5156_v44 = vmax.bf16 %v4041_v53, %v2365_v1  ;;  %v5157_v47 = vmax.bf16 %v4046_v52, %v2373_v36  ;;  %v5159_v51 = vmax.bf16 %v4056_v24, %v2358_v50  ;;  %v7146_v41 = vrot.slane %v5155_v18, %v17740_v33 }
 0x1f6   : > { %v4071_v54 = vshrl.u32 %v2376_v22, 16  ;;  %v5158_v63 = vmax.bf16 %v4051_v29, %v2375_v60  ;;  %v5160_v31 = vmax.bf16 %v4061_v46, %v2372_v15  ;;  %v5161_v32 = vmax.bf16 %v4066_v45, %v2374_v61 }
 0x1f7   : > { %v7160_v56 = vrot.slane %v5156_v44, %v17740_v33  ;;  %v7174_v62 = vrot.slane %v5157_v47, %v17740_v33  ;;  %v7202_v30 = vrot.slane %v5159_v51, %v17740_v33  ;;  %v7153_v35 = vrot.slane %v7146_v41, %v17740_v33  ;;  %v18587_v51 = vpop.f32.mrb[84].mxu0  ;;  %v18589_v41 = vld [vmem:[#allocation2 + $0x20] sm:$0xff] }
 0x1f8   : > { %v5162_v42 = vmax.bf16 %v4071_v54, %v2376_v22  ;;  %v7188_v2 = vrot.slane %v5158_v63, %v17740_v33  ;;  %v7216_v13 = vrot.slane %v5160_v31, %v17740_v33  ;;  %v7230_v43 = vrot.slane %v5161_v32, %v17740_v33  ;;  %v10041_v49 = vld [vmem:[#allocation2 + $0x98] sm:$0xff] }
 0x1f9   : > { %v7167_v28 = vrot.slane %v7160_v56, %v17740_v33  ;;  %v7181_v50 = vrot.slane %v7174_v62, %v17740_v33  ;;  %v7209_v1 = vrot.slane %v7202_v30, %v17740_v33  ;;  %16841 = vmatprep.mubr.msk.bf16.mxu0 %vm697_vm0, %v10041_v49  ;;  %v2294_v52 = vcombine.high %v2286_v17, %v2286_v17 }
 0x1fa   : > { %v7195_v36 = vrot.slane %v7188_v2, %v17740_v33  ;;  %v7223_v34 = vrot.slane %v7216_v13, %v17740_v33  ;;  %v7237_v55 = vrot.slane %v7230_v43, %v17740_v33  ;;  %v7244_v15 = vrot.slane %v5162_v42, %v17740_v33 }
 0x1fb   : > { %v9373_v60 = vunpack.c.l.b16 %v7167_v28  ;;  %v9374_v53 = vunpack.c.l.b16 %v7181_v50  ;;  %v18582_v24 = vrot.slane %v10065_v26, 7  ;;  %v9376_v29 = vunpack.c.l.b16 %v7209_v1  ;;  %v18592_v26 = vpop.f32.mrb[85].mxu0 }
 0x1fc   : > { %v18585_v18 = vrot.slane %v7244_v15, %v17740_v33  ;;  %v9375_v22 = vunpack.c.l.b16 %v7195_v36  ;;  %v9372_v46 = vunpack.c.l.b16 %v7153_v35  ;;  %v2295_v47 = vcombine.high %v2293_v48, %v2293_v48  ;;  %21256 = vst [vmem:[#allocation6_spill] sm:$0xff] %v18592_v26  ;;  %v18598_v2 = vpop.f32.mrb[86].mxu0 }
 0x1fd   : > { %v9713_v45 = vrot.slane %v9373_v60, 7  ;;  %v9715_v44 = vrot.slane %v9374_v53, 6  ;;  %v9377_v63 = vunpack.c.l.b16 %v7223_v34  ;;  %v9378_v31 = vunpack.c.l.b16 %v7237_v55  ;;  %21257 = vst [vmem:[#allocation7_spill] sm:$0xff] %v18598_v2 }
 0x1fe   : > { %v9717_v32 = vrot.slane %v9375_v22, 5  ;;  %v2302_v62 = vrot.slane %v2286_v17, %v17740_v33  ;;  %v2309_v30 = vrot.slane %v2293_v48, %v17740_v33  ;;  %v2316_v42 = vrot.slane %v2294_v52, %v17740_v33 }
 0x1ff   : > { %v9714_v56 = vsel %vm9525_vm1, %v9713_v45, %v9372_v46  ;;  %v9379_v13 = vunpack.c.l.b16 %v18585_v18  ;;  %v9719_v49 = vrot.slane %v9376_v29, 4  ;;  %v2323_v35 = vrot.slane %v2295_v47, %v17740_v33 }
 0x200   : > { %v9716_v43 = vsel %vm9528_vm2, %v9715_v44, %v9714_v56  ;;  %v2324_v50 = vcombine.high %v2302_v62, %v2302_v62  ;;  %v2325_v1 = vcombine.high %v2309_v30, %v2309_v30  ;;  %v2326_v36 = vcombine.high %v2316_v42, %v2316_v42 }
 0x201   : > { %v9718_v28 = vsel %vm9531_vm3, %v9717_v32, %v9716_v43  ;;  %v2327_v34 = vcombine.high %v2323_v35, %v2323_v35  ;;  %v3996_v48 = vshrl.u32 %v2302_v62, 16  ;;  %v4001_v55 = vshrl.u32 %v2316_v42, 16 }
 0x202   : > { %v9720_v17 = vsel %vm9534_vm4, %v9719_v49, %v9718_v28  ;;  %v9721_v15 = vrot.slane %v9377_v63, 3  ;;  %v4006_v60 = vshrl.u32 %v2324_v50, 16  ;;  %v4011_v53 = vshrl.u32 %v2326_v36, 16  ;;  %v18606_v28 = vpop.f32.mrb[87].mxu0 }
 0x203   : > { %v4016_v52 = vshrl.u32 %v2309_v30, 16  ;;  %v9723_v18 = vrot.slane %v9378_v31, 2  ;;  %v4021_v22 = vshrl.u32 %v2323_v35, 16  ;;  %v4026_v46 = vshrl.u32 %v2325_v1, 16 }
 0x204   : > { %v4031_v29 = vshrl.u32 %v2327_v34, 16  ;;  %v9722_v45 = vsel %vm9537_vm5, %v9721_v15, %v9720_v17  ;;  %v5147_v44 = vmax.bf16 %v3996_v48, %v2302_v62  ;;  %v5148_v47 = vmax.bf16 %v4001_v55, %v2316_v42 }
 0x205   : > { %v5149_v32 = vmax.bf16 %v4006_v60, %v2324_v50  ;;  %v5150_v56 = vmax.bf16 %v4011_v53, %v2326_v36  ;;  %v5151_v43 = vmax.bf16 %v4016_v52, %v2309_v30  ;;  %v5152_v54 = vmax.bf16 %v4021_v22, %v2323_v35 }
 0x206   : > { %v5153_v49 = vmax.bf16 %v4026_v46, %v2325_v1  ;;  %v5154_v61 = vmax.bf16 %v4031_v29, %v2327_v34  ;;  %v7034_v63 = vrot.slane %v5147_v44, %v17740_v33  ;;  %v7048_v2 = vrot.slane %v5148_v47, %v17740_v33 }
 0x207   : > { %v7062_v31 = vrot.slane %v5149_v32, %v17740_v33  ;;  %v7076_v26 = vrot.slane %v5150_v56, %v17740_v33  ;;  %v7090_v17 = vrot.slane %v5151_v43, %v17740_v33  ;;  %v7104_v62 = vrot.slane %v5152_v54, %v17740_v33 }
 0x208   : > { %v7118_v42 = vrot.slane %v5153_v49, %v17740_v33  ;;  %v7041_v30 = vrot.slane %v7034_v63, %v17740_v33  ;;  %v7055_v35 = vrot.slane %v7048_v2, %v17740_v33  ;;  %v7132_v1 = vrot.slane %v5154_v61, %v17740_v33 }
 0x209   : > { %v7069_v50 = vrot.slane %v7062_v31, %v17740_v33  ;;  %v7083_v36 = vrot.slane %v7076_v26, %v17740_v33  ;;  %v7097_v34 = vrot.slane %v7090_v17, %v17740_v33  ;;  %v7111_v48 = vrot.slane %v7104_v62, %v17740_v33 }
 0x20a   : > { %v7125_v55 = vrot.slane %v7118_v42, %v17740_v33  ;;  %v9724_v54 = vsel %vm9540_vm6, %v9723_v18, %v9722_v45  ;;  %v7139_v15 = vrot.slane %v7132_v1, %v17740_v33  ;;  %v9365_v60 = vunpack.c.l.b16 %v7055_v35 }
 0x20b   : > { %v9366_v53 = vunpack.c.l.b16 %v7069_v50  ;;  %v9725_v52 = vrot.slane %v9379_v13, 1  ;;  %v9367_v2 = vunpack.c.l.b16 %v7083_v36  ;;  %v9368_v22 = vunpack.c.l.b16 %v7097_v34 }
 0x20c   : > { %v9369_v46 = vunpack.c.l.b16 %v7111_v48  ;;  %v9364_v29 = vunpack.c.l.b16 %v7041_v30  ;;  %v9370_v61 = vunpack.c.l.b16 %v7125_v55  ;;  %v9699_v44 = vrot.slane %v9365_v60, 7 }
 0x20d   : > { %v9701_v26 = vrot.slane %v9366_v53, 6  ;;  %v9726_v47 = vsel %vm9543_vm7, %v9725_v52, %v9724_v54  ;;  %v9371_v32 = vunpack.c.l.b16 %v7139_v15  ;;  %v9703_v56 = vrot.slane %v9367_v2, 5 }
 0x20e   : > { %v9705_v43 = vrot.slane %v9368_v22, 4  ;;  %v9700_v49 = vsel %vm9525_vm1, %v9699_v44, %v9364_v29  ;;  %v9707_v18 = vrot.slane %v9369_v46, 3  ;;  %v1173_v45 = vadd.f32 %v18520_v40, %v18237_v58 }
 0x20f   : > { %v1165_v13 = vadd.f32 %v18520_v40, %v18245_v12  ;;  %v9702_v63 = vsel %vm9528_vm2, %v9701_v26, %v9700_v49  ;;  %v1176_v31 = vadd.f32 %v18520_v40, %v18250_v25  ;;  %v1168_v17 = vadd.f32 %v18520_v40, %v18256_v4  ;;  %v21260_v26 = vld [vmem:[#allocation4_spill] sm:$0xff] }
 0x210   : > { %v1189_v62 = vadd.f32 %v18520_v40, %v18313_v6  ;;  %v9704_v42 = vsel %vm9531_vm3, %v9703_v56, %v9702_v63  ;;  %v9709_v30 = vrot.slane %v9370_v61, 2  ;;  %v1497_v35 = vmax.f32 %v1173_v45, 0.0 }
 0x211   : > { %v1181_v58 = vadd.f32 %v18520_v40, %v18318_v38  ;;  %v9706_v12 = vsel %vm9534_vm4, %v9705_v43, %v9704_v42  ;;  %v1495_v50 = vmax.f32 %v1165_v13, 0.0  ;;  %v1498_v1 = vmax.f32 %v1176_v31, 0.0 }
 0x212   : > { %v1496_v36 = vmax.f32 %v1168_v17, 0.0  ;;  %v9708_v25 = vsel %vm9537_vm5, %v9707_v18, %v9706_v12  ;;  %v9711_v34 = vrot.slane %v9371_v32, 1  ;;  %v1192_v4 = vadd.f32 %v18520_v40, %v18324_v23  ;;  %v21263_v18 = vld [vmem:[#allocation5_spill] sm:$0xff] }
 0x213   : > { %v1184_v6 = vadd.f32 %v18520_v40, %v18330_v10  ;;  %v9710_v48 = vsel %vm9540_vm6, %v9709_v30, %v9708_v25  ;;  %v1594_v55 = vpack.c.bf16 %v1498_v1, %v1497_v35  ;;  %v1501_v15 = vmax.f32 %v1189_v62, 0.0 }
 0x214   : > { %v1593_v54 = vpack.c.bf16 %v1496_v36, %v1495_v50  ;;  %v9712_v38 = vsel %vm9543_vm7, %v9711_v34, %v9710_v48  ;;  %v1499_v60 = vmax.f32 %v1181_v58, 0.0  ;;  %v1502_v53 = vmax.f32 %v1192_v4, 0.0 }
 0x215   : > { %v1500_v52 = vmax.f32 %v1184_v6, 0.0  ;;  %v21258_v2 = vshll.u32 %v18550_v21, 16  ;;  %v9985_v46 = vpack.c.b16 %v9726_v47, %v9712_v38  ;;  %v1642_v23 = vmax.bf16 %v1594_v55, %v18544_v9 }
 0x216   : > { %v1641_v10 = vmax.bf16 %v1593_v54, %v18546_v27  ;;  %v18656_v29 = vpack.c.bf16 %v1502_v53, %v1501_v15  ;;  %v18662_v44 = vadd.f32 %v18520_v40, %v18342_v5  ;;  %v18666_v32 = vadd.f32 %v18520_v40, %v21260_v26  ;;  %v18676_v5 = vld [vmem:[#allocation2 + $0x38] sm:$0xff] }
 0x217   : > { %v18652_v22 = vor.u32 %v21258_v2, %v18582_v24  ;;  %v18658_v61 = vpack.c.bf16 %v1500_v52, %v1499_v60  ;;  %10018 = vst.msk [vmem:[#allocation2 + $0xb0] sm:$0xff] %vm697_vm0, %v9985_v46  ;;  %v2426_v21 = vcombine.high %v1642_v23, %v1642_v23  ;;  %v2433_v24 = vrot.slane %v1642_v23, %v17740_v33 }
 0x218   : > { %v2377_v9 = vcombine.high %v1641_v10, %v1641_v10  ;;  %v2384_v27 = vrot.slane %v1641_v10, %v17740_v33  ;;  %v21261_v47 = vshrl.u32 %v18589_v41, 16  ;;  %21262 = vst [vmem:[#allocation4_spill] sm:$0xff] %v18676_v5  ;;  %v10089_v49 = vshrl.u32 %v18676_v5, 16 }
 0x219   : > { %21259 = vst [vmem:[#allocation8_spill] sm:$0xff] %v18652_v22  ;;  %v18681_v45 = vadd.f32 %v18520_v40, %v21263_v18  ;;  %v2440_v13 = vrot.slane %v2426_v21, %v17740_v33  ;;  %v2441_v63 = vcombine.high %v2433_v24, %v2433_v24  ;;  %v2449_v31 = vrot.slane %v2433_v24, %v17740_v33 }
 0x21a   : > { %v18673_v56 = vrot.slane %v21261_v47, 7  ;;  %v2391_v17 = vrot.slane %v2377_v9, %v17740_v33  ;;  %v2392_v62 = vcombine.high %v2384_v27, %v2384_v27  ;;  %v18687_v42 = vrot.slane %v2384_v27, %v17740_v33 }
 0x21b   : > { %v1505_v30 = vmax.f32 %v18662_v44, 0.0  ;;  %v1503_v35 = vmax.f32 %v18666_v32, 0.0  ;;  %v2442_v58 = vcombine.high %v2440_v13, %v2440_v13  ;;  %v2456_v12 = vrot.slane %v2440_v13, %v17740_v33  ;;  %v17488_v44 = vld [vmem:[%s21228_s3 + $0x20] sm:$0xff]  }
 0x21c   : > { %v2463_v50 = vrot.slane %v2441_v63, %v17740_v33  ;;  %v2471_v1 = vcombine.high %v2449_v31, %v2449_v31  ;;  %v4116_v36 = vshrl.u32 %v2449_v31, 16  ;;  %v2393_v25 = vcombine.high %v2391_v17, %v2391_v17  ;;  %17149 = vmatprep.subr.bf16.mxu1 %v17488_v44 }
 0x21d   : > { %v1506_v34 = vmax.f32 %v18681_v45, 0.0  ;;  %v18696_v4 = vadd.f32 %v18520_v40, %v18360_v37  ;;  %v2470_v6 = vrot.slane %v2442_v58, %v17740_v33  ;;  %v2472_v48 = vcombine.high %v2456_v12, %v2456_v12  ;;  %17151 = vmatpush3.bf16.msra.mxu1 %v17488_v44 }
 0x21e   : > { %v2473_v55 = vcombine.high %v2463_v50, %v2463_v50  ;;  %v4121_v54 = vshrl.u32 %v2463_v50, 16  ;;  %v4126_v15 = vshrl.u32 %v2471_v1, 16  ;;  %v4136_v38 = vshrl.u32 %v2456_v12, 16  ;;  %v10043_v52 = vld [vmem:[#allocation2 + $0xb0] sm:$0xff] }
 0x21f   : > { %v5171_v60 = vmax.bf16 %v4116_v36, %v2449_v31  ;;  %v18700_v53 = vrot.slane %v2391_v17, %v17740_v33  ;;  %v2474_v2 = vcombine.high %v2470_v6, %v2470_v6  ;;  %v4141_v23 = vshrl.u32 %v2470_v6, 16  ;;  %16842 = vmatmul.mubr.msk.bf16.gmra.mrb[140].mxu0 %vm697_vm0, %v10043_v52 }
 0x220   : > { %v4131_v46 = vshrl.u32 %v2473_v55, 16  ;;  %v4146_v10 = vshrl.u32 %v2472_v48, 16  ;;  %v5172_v37 = vmax.bf16 %v4121_v54, %v2463_v50  ;;  %v5173_v26 = vmax.bf16 %v4126_v15, %v2471_v1 }
 0x221   : > { %v5175_v21 = vmax.bf16 %v4136_v38, %v2456_v12  ;;  %v7370_v24 = vrot.slane %v5171_v60, %v17740_v33  ;;  %v4151_v9 = vshrl.u32 %v2474_v2, 16  ;;  %v5176_v47 = vmax.bf16 %v4141_v23, %v2470_v6 }
 0x222   : > { %v5174_v27 = vmax.bf16 %v4131_v46, %v2473_v55  ;;  %v5177_v18 = vmax.bf16 %v4146_v10, %v2472_v48  ;;  %v7384_v13 = vrot.slane %v5172_v37, %v17740_v33  ;;  %v7398_v63 = vrot.slane %v5173_v26, %v17740_v33 }
 0x223   : > { %v7426_v31 = vrot.slane %v5175_v21, %v17740_v33  ;;  %v2414_v17 = vrot.slane %v2392_v62, %v17740_v33  ;;  %v5178_v58 = vmax.bf16 %v4151_v9, %v2474_v2  ;;  %v7440_v50 = vrot.slane %v5176_v47, %v17740_v33 }
 0x224   : > { %v7412_v36 = vrot.slane %v5174_v27, %v17740_v33  ;;  %v7454_v12 = vrot.slane %v5177_v18, %v17740_v33  ;;  %v7377_v1 = vrot.slane %v7370_v24, %v17740_v33  ;;  %v7391_v6 = vrot.slane %v7384_v13, %v17740_v33 }
 0x225   : > { %v7405_v48 = vrot.slane %v7398_v63, %v17740_v33  ;;  %v7433_v55 = vrot.slane %v7426_v31, %v17740_v33  ;;  %v7447_v15 = vrot.slane %v7440_v50, %v17740_v33  ;;  %v7468_v38 = vrot.slane %v5178_v58, %v17740_v33 }
 0x226   : > { %v7419_v54 = vrot.slane %v7412_v36, %v17740_v33  ;;  %v7461_v62 = vrot.slane %v7454_v12, %v17740_v33  ;;  %v9389_v60 = vunpack.c.l.b16 %v7391_v6  ;;  %v2421_v46 = vrot.slane %v2393_v25, %v17740_v33 }
 0x227   : > { %v9390_v52 = vunpack.c.l.b16 %v7405_v48  ;;  %v9392_v2 = vunpack.c.l.b16 %v7433_v55  ;;  %v7475_v23 = vrot.slane %v7468_v38, %v17740_v33  ;;  %v9393_v37 = vunpack.c.l.b16 %v7447_v15 }
 0x228   : > { %v9391_v10 = vunpack.c.l.b16 %v7419_v54  ;;  %v2422_v26 = vcombine.high %v18687_v42, %v18687_v42  ;;  %v9388_v21 = vunpack.c.l.b16 %v7377_v1  ;;  %v9394_v24 = vunpack.c.l.b16 %v7461_v62 }
 0x229   : > { %v9741_v9 = vrot.slane %v9389_v60, 7  ;;  %v9743_v27 = vrot.slane %v9390_v52, 6  ;;  %v9395_v47 = vunpack.c.l.b16 %v7475_v23  ;;  %v9747_v13 = vrot.slane %v9392_v2, 4 }
 0x22a   : > { %v9745_v18 = vrot.slane %v9391_v10, 5  ;;  %v2423_v63 = vcombine.high %v18700_v53, %v18700_v53  ;;  %v2424_v25 = vcombine.high %v2414_v17, %v2414_v17  ;;  %v2425_v58 = vcombine.high %v2421_v46, %v2421_v46 }
 0x22b   : > { %v9742_v31 = vsel %vm9525_vm1, %v9741_v9, %v9388_v21  ;;  %v4076_v36 = vshrl.u32 %v18687_v42, 16  ;;  %v9749_v12 = vrot.slane %v9393_v37, 3  ;;  %v4081_v6 = vshrl.u32 %v2414_v17, 16 }
 0x22c   : > { %v9744_v50 = vsel %vm9528_vm2, %v9743_v27, %v9742_v31  ;;  %v4086_v1 = vshrl.u32 %v2422_v26, 16  ;;  %v4091_v55 = vshrl.u32 %v2424_v25, 16  ;;  %v4096_v54 = vshrl.u32 %v18700_v53, 16 }
 0x22d   : > { %v9746_v48 = vsel %vm9531_vm3, %v9745_v18, %v9744_v50  ;;  %v4101_v15 = vshrl.u32 %v2421_v46, 16  ;;  %v4106_v38 = vshrl.u32 %v2423_v63, 16  ;;  %v4111_v60 = vshrl.u32 %v2425_v58, 16 }
 0x22e   : > { %v9748_v62 = vsel %vm9534_vm4, %v9747_v13, %v9746_v48  ;;  %v5163_v52 = vmax.bf16 %v4076_v36, %v18687_v42  ;;  %v9751_v2 = vrot.slane %v9394_v24, 2  ;;  %v5164_v23 = vmax.bf16 %v4081_v6, %v2414_v17 }
 0x22f   : > { %v5165_v10 = vmax.bf16 %v4086_v1, %v2422_v26  ;;  %v5166_v21 = vmax.bf16 %v4091_v55, %v2424_v25  ;;  %v9753_v9 = vrot.slane %v9395_v47, 1  ;;  %v5167_v37 = vmax.bf16 %v4096_v54, %v18700_v53 }
 0x230   : > { %v5168_v27 = vmax.bf16 %v4101_v15, %v2421_v46  ;;  %v5169_v31 = vmax.bf16 %v4106_v38, %v2423_v63  ;;  %v9750_v18 = vsel %vm9537_vm5, %v9749_v12, %v9748_v62  ;;  %v5170_v50 = vmax.bf16 %v4111_v60, %v2425_v58 }
 0x231   : > { %v7258_v43 = vrot.slane %v5163_v52, %v17740_v33  ;;  %v7272_v13 = vrot.slane %v5164_v23, %v17740_v33  ;;  %v7286_v48 = vrot.slane %v5165_v10, %v17740_v33  ;;  %v7300_v42 = vrot.slane %v5166_v21, %v17740_v33 }
 0x232   : > { %v7314_v17 = vrot.slane %v5167_v37, %v17740_v33  ;;  %v7328_v26 = vrot.slane %v5168_v27, %v17740_v33  ;;  %v7342_v46 = vrot.slane %v5169_v31, %v17740_v33  ;;  %v7356_v47 = vrot.slane %v5170_v50, %v17740_v33 }
 0x233   : > { %v7265_v24 = vrot.slane %v7258_v43, %v17740_v33  ;;  %v7279_v53 = vrot.slane %v7272_v13, %v17740_v33  ;;  %v7293_v63 = vrot.slane %v7286_v48, %v17740_v33  ;;  %v7307_v25 = vrot.slane %v7300_v42, %v17740_v33  ;;  %v18758_v13 = vpop.f32.mrb[88].mxu0 }
 0x234   : > { %v7321_v58 = vrot.slane %v7314_v17, %v17740_v33  ;;  %v7335_v36 = vrot.slane %v7328_v26, %v17740_v33  ;;  %v9752_v12 = vsel %vm9540_vm6, %v9751_v2, %v9750_v18  ;;  %v7349_v6 = vrot.slane %v7342_v46, %v17740_v33  ;;  %v18773_v48 = vpop.f32.mrb[89].mxu0 }
 0x235   : > { %v7363_v43 = vrot.slane %v7356_v47, %v17740_v33  ;;  %v9381_v1 = vunpack.c.l.b16 %v7279_v53  ;;  %v9382_v55 = vunpack.c.l.b16 %v7293_v63  ;;  %v9383_v54 = vunpack.c.l.b16 %v7307_v25 }
 0x236   : > { %v9384_v15 = vunpack.c.l.b16 %v7321_v58  ;;  %v9385_v62 = vunpack.c.l.b16 %v7335_v36  ;;  %v9380_v38 = vunpack.c.l.b16 %v7265_v24  ;;  %v9386_v60 = vunpack.c.l.b16 %v7349_v6  ;;  %v18777_v24 = vpop.f32.mrb[90].mxu0 }
 0x237   : > { %v9727_v52 = vrot.slane %v9381_v1, 7  ;;  %v1598_v23 = vpack.c.bf16 %v1506_v34, %v1505_v30  ;;  %v9754_v10 = vsel %vm9543_vm7, %v9753_v9, %v9752_v12  ;;  %v9387_v2 = vunpack.c.l.b16 %v7363_v43  ;;  %v18786_v46 = vpop.f32.mrb[91].mxu0 }
 0x238   : > { %v9729_v21 = vrot.slane %v9382_v55, 6  ;;  %v9731_v37 = vrot.slane %v9383_v54, 5  ;;  %v9733_v31 = vrot.slane %v9384_v15, 4  ;;  %v9735_v18 = vrot.slane %v9385_v62, 3  ;;  %v18791_v36 = vpop.f32.mrb[92].mxu0 }
 0x239   : > { %v9728_v27 = vsel %vm9525_vm1, %v9727_v52, %v9380_v38  ;;  %v1644_v50 = vmax.bf16 %v1598_v23, %v18656_v29  ;;  %v1504_v30 = vmax.f32 %v18696_v4, 0.0  ;;  %v18767_v34 = vadd.f32 %v18520_v40, %v18430_v0  ;;  %v18797_v6 = vpop.f32.mrb[93].mxu0 }
 0x23a   : > { %v9730_v45 = vsel %vm9528_vm2, %v9729_v21, %v9728_v27  ;;  %v18771_v9 = vadd.f32 %v18520_v40, %v18434_v16  ;;  %v9737_v42 = vrot.slane %v9386_v60, 2  ;;  %v9739_v53 = vrot.slane %v9387_v2, 1  ;;  %v18802_v15 = vpop.f32.mrb[94].mxu0 }
 0x23b   : > { %v9732_v29 = vsel %vm9531_vm3, %v9731_v37, %v9730_v45  ;;  %v2524_v17 = vcombine.high %v1644_v50, %v1644_v50  ;;  %v2531_v26 = vrot.slane %v1644_v50, %v17740_v33  ;;  %v1597_v0 = vpack.c.bf16 %v1504_v30, %v1503_v35 }
 0x23c   : > { %v9734_v4 = vsel %vm9534_vm4, %v9733_v31, %v9732_v29  ;;  %v18784_v16 = vadd.f32 %v18520_v40, %v18443_v59  ;;  %v1509_v35 = vmax.f32 %v18767_v34, 0.0  ;;  %v1507_v59 = vmax.f32 %v18771_v9, 0.0 }
 0x23d   : > { %v9736_v47 = vsel %vm9537_vm5, %v9735_v18, %v9734_v4  ;;  %v2538_v63 = vrot.slane %v2524_v17, %v17740_v33  ;;  %v2539_v25 = vcombine.high %v2531_v26, %v2531_v26  ;;  %v2547_v58 = vrot.slane %v2531_v26, %v17740_v33 }
 0x23e   : > { %v9738_v12 = vsel %vm9540_vm6, %v9737_v42, %v9736_v47  ;;  %v1643_v32 = vmax.bf16 %v1597_v0, %v18658_v61  ;;  %v1510_v61 = vmax.f32 %v18784_v16, 0.0 }
 0x23f   : > { %v9740_v43 = vsel %vm9543_vm7, %v9739_v53, %v9738_v12  ;;  %v2540_v1 = vcombine.high %v2538_v63, %v2538_v63  ;;  %v2554_v55 = vrot.slane %v2538_v63, %v17740_v33  ;;  %v2561_v54 = vrot.slane %v2539_v25, %v17740_v33 }
 0x240   : > { %v9986_v62 = vpack.c.b16 %v9754_v10, %v9740_v43  ;;  %v2569_v38 = vcombine.high %v2547_v58, %v2547_v58  ;;  %v4196_v60 = vshrl.u32 %v2547_v58, 16  ;;  %v2475_v18 = vcombine.high %v1643_v32, %v1643_v32 }
 0x241   : > { %v2568_v52 = vrot.slane %v2540_v1, %v17740_v33  ;;  %v2570_v23 = vcombine.high %v2554_v55, %v2554_v55  ;;  %v2571_v2 = vcombine.high %v2561_v54, %v2561_v54  ;;  %v4201_v21 = vshrl.u32 %v2561_v54, 16 }
 0x242   : > { %10019 = vst.msk [vmem:[#allocation2 + $0xc8] sm:$0xff] %vm697_vm0, %v9986_v62  ;;  %v4206_v37 = vshrl.u32 %v2569_v38, 16  ;;  %v4216_v27 = vshrl.u32 %v2554_v55, 16  ;;  %v5187_v31 = vmax.bf16 %v4196_v60, %v2547_v58  ;;  %v2482_v58 = vrot.slane %v1643_v32, %v17740_v33 }
 0x243   : > { %v2572_v50 = vcombine.high %v2568_v52, %v2568_v52  ;;  %v4211_v44 = vshrl.u32 %v2571_v2, 16  ;;  %v4221_v45 = vshrl.u32 %v2568_v52, 16  ;;  %v4226_v30 = vshrl.u32 %v2570_v23, 16 }
 0x244   : > { %v5188_v10 = vmax.bf16 %v4201_v21, %v2561_v54  ;;  %v5189_v29 = vmax.bf16 %v4206_v37, %v2569_v38  ;;  %v5191_v42 = vmax.bf16 %v4216_v27, %v2554_v55  ;;  %v7594_v17 = vrot.slane %v5187_v31, %v17740_v33 }
 0x245   : > { %v4231_v26 = vshrl.u32 %v2572_v50, 16  ;;  %v5190_v4 = vmax.bf16 %v4211_v44, %v2571_v2  ;;  %v5192_v53 = vmax.bf16 %v4221_v45, %v2568_v52  ;;  %v5193_v0 = vmax.bf16 %v4226_v30, %v2570_v23 }
 0x246   : > { %v7608_v47 = vrot.slane %v5188_v10, %v17740_v33  ;;  %v7622_v63 = vrot.slane %v5189_v29, %v17740_v33  ;;  %v7650_v25 = vrot.slane %v5191_v42, %v17740_v33  ;;  %v7601_v54 = vrot.slane %v7594_v17, %v17740_v33 }
 0x247   : > { %v5194_v12 = vmax.bf16 %v4231_v26, %v2572_v50  ;;  %v7636_v43 = vrot.slane %v5190_v4, %v17740_v33  ;;  %v7664_v1 = vrot.slane %v5192_v53, %v17740_v33  ;;  %v7678_v55 = vrot.slane %v5193_v0, %v17740_v33 }
 0x248   : > { %v7615_v62 = vrot.slane %v7608_v47, %v17740_v33  ;;  %v7629_v38 = vrot.slane %v7622_v63, %v17740_v33  ;;  %v7657_v60 = vrot.slane %v7650_v25, %v17740_v33  ;;  %v2489_v50 = vrot.slane %v2475_v18, %v17740_v33 }
 0x249   : > { %v7643_v52 = vrot.slane %v7636_v43, %v17740_v33  ;;  %v7671_v23 = vrot.slane %v7664_v1, %v17740_v33  ;;  %v7685_v32 = vrot.slane %v7678_v55, %v17740_v33  ;;  %v7692_v2 = vrot.slane %v5194_v12, %v17740_v33  ;;  %v18823_v21 = vld [vmem:[#allocation2 + $0xc8] sm:$0xff] }
 0x24a   : > { %v9405_v37 = vunpack.c.l.b16 %v7615_v62  ;;  %v9406_v27 = vunpack.c.l.b16 %v7629_v38  ;;  %v9408_v31 = vunpack.c.l.b16 %v7657_v60  ;;  %16845 = vmatprep.mubr.msk.bf16.mxu0 %vm697_vm0, %v18823_v21  ;;  %v18831_v10 = vadd.f32 %v18520_v40, %v18446_v20 }
 0x24b   : > { %v7699_v44 = vrot.slane %v7692_v2, %v17740_v33  ;;  %v9407_v45 = vunpack.c.l.b16 %v7643_v52  ;;  %v9409_v30 = vunpack.c.l.b16 %v7671_v23  ;;  %v9404_v29 = vunpack.c.l.b16 %v7601_v54 }
 0x24c   : > { %v9769_v42 = vrot.slane %v9405_v37, 7  ;;  %v9771_v17 = vrot.slane %v9406_v27, 6  ;;  %v2490_v26 = vcombine.high %v2482_v58, %v2482_v58  ;;  %v9410_v4 = vunpack.c.l.b16 %v7685_v32 }
 0x24d   : > { %v9411_v53 = vunpack.c.l.b16 %v7699_v44  ;;  %v9773_v0 = vrot.slane %v9407_v45, 5  ;;  %v9775_v47 = vrot.slane %v9408_v31, 4  ;;  %v2491_v63 = vcombine.high %v2489_v50, %v2489_v50  ;;  %v18850_v44 = vpop.f32.mrb[95].mxu0 }
 0x24e   : > { %v9770_v18 = vsel %vm9525_vm1, %v9769_v42, %v9404_v29  ;;  %v2498_v25 = vrot.slane %v2482_v58, %v17740_v33  ;;  %v2505_v12 = vrot.slane %v2489_v50, %v17740_v33  ;;  %v9777_v1 = vrot.slane %v9409_v30, 3 }
 0x24f   : > { %v9772_v43 = vsel %vm9528_vm2, %v9771_v17, %v9770_v18  ;;  %v2512_v20 = vrot.slane %v2490_v26, %v17740_v33  ;;  %v18842_v55 = vpack.c.bf16 %v1510_v61, %v1509_v35  ;;  %v2519_v62 = vrot.slane %v2491_v63, %v17740_v33  ;;  %v17489_v61 = vld [vmem:[%s21228_s3 + $0x28] sm:$0xff]  }
 0x250   : > { %v9774_v54 = vsel %vm9531_vm3, %v9773_v0, %v9772_v43  ;;  %v2520_v38 = vcombine.high %v2498_v25, %v2498_v25  ;;  %v2521_v60 = vcombine.high %v2505_v12, %v2505_v12  ;;  %v4156_v23 = vshrl.u32 %v2498_v25, 16  ;;  %17150 = vmatprep.subr.bf16.mxu1 %v17489_v61 }
 0x251   : > { %v9776_v58 = vsel %vm9534_vm4, %v9775_v47, %v9774_v54  ;;  %v2522_v52 = vcombine.high %v2512_v20, %v2512_v20  ;;  %v4161_v32 = vshrl.u32 %v2512_v20, 16  ;;  %v9779_v2 = vrot.slane %v9410_v4, 2  ;;  %17152 = vmatpush3.bf16.msra.mxu1 %v17489_v61 }
 0x252   : > { %v2523_v37 = vcombine.high %v2519_v62, %v2519_v62  ;;  %v4166_v27 = vshrl.u32 %v2520_v38, 16  ;;  %v4176_v31 = vshrl.u32 %v2505_v12, 16  ;;  %v9781_v34 = vrot.slane %v9411_v53, 1 }
 0x253   : > { %v4171_v50 = vshrl.u32 %v2522_v52, 16  ;;  %v4181_v16 = vshrl.u32 %v2519_v62, 16  ;;  %v4186_v35 = vshrl.u32 %v2521_v60, 16  ;;  %v9778_v45 = vsel %vm9537_vm5, %v9777_v1, %v9776_v58 }
 0x254   : > { %v4191_v30 = vshrl.u32 %v2523_v37, 16  ;;  %v5179_v29 = vmax.bf16 %v4156_v23, %v2498_v25  ;;  %v5180_v42 = vmax.bf16 %v4161_v32, %v2512_v20  ;;  %v5181_v17 = vmax.bf16 %v4166_v27, %v2520_v38 }
 0x255   : > { %v5182_v26 = vmax.bf16 %v4171_v50, %v2522_v52  ;;  %v5183_v4 = vmax.bf16 %v4176_v31, %v2505_v12  ;;  %v5184_v0 = vmax.bf16 %v4181_v16, %v2519_v62  ;;  %v5185_v53 = vmax.bf16 %v4186_v35, %v2521_v60 }
 0x256   : > { %v5186_v47 = vmax.bf16 %v4191_v30, %v2523_v37  ;;  %v7482_v18 = vrot.slane %v5179_v29, %v17740_v33  ;;  %v7496_v63 = vrot.slane %v5180_v42, %v17740_v33  ;;  %v7510_v43 = vrot.slane %v5181_v17, %v17740_v33 }
 0x257   : > { %v7524_v54 = vrot.slane %v5182_v26, %v17740_v33  ;;  %v7538_v1 = vrot.slane %v5183_v4, %v17740_v33  ;;  %v7552_v25 = vrot.slane %v5184_v0, %v17740_v33  ;;  %v7566_v62 = vrot.slane %v5185_v53, %v17740_v33 }
 0x258   : > { %v7489_v20 = vrot.slane %v7482_v18, %v17740_v33  ;;  %v7503_v12 = vrot.slane %v7496_v63, %v17740_v33  ;;  %v7580_v38 = vrot.slane %v5186_v47, %v17740_v33  ;;  %v7517_v60 = vrot.slane %v7510_v43, %v17740_v33 }
 0x259   : > { %v7531_v58 = vrot.slane %v7524_v54, %v17740_v33  ;;  %v7545_v52 = vrot.slane %v7538_v1, %v17740_v33  ;;  %v7559_v23 = vrot.slane %v7552_v25, %v17740_v33  ;;  %v9780_v32 = vsel %vm9540_vm6, %v9779_v2, %v9778_v45 }
 0x25a   : > { %v7573_v37 = vrot.slane %v7566_v62, %v17740_v33  ;;  %v7587_v27 = vrot.slane %v7580_v38, %v17740_v33  ;;  %v9397_v31 = vunpack.c.l.b16 %v7503_v12  ;;  %v9398_v50 = vunpack.c.l.b16 %v7517_v60  ;;  %v18890_v62 = vld [vmem:[%s21227_s2] ss:$0 sm:$0xff] }
 0x25b   : > { %v9399_v16 = vunpack.c.l.b16 %v7531_v58  ;;  %v9400_v35 = vunpack.c.l.b16 %v7545_v52  ;;  %v9401_v61 = vunpack.c.l.b16 %v7559_v23  ;;  %v9396_v30 = vunpack.c.l.b16 %v7489_v20 }
 0x25c   : > { %v9402_v29 = vunpack.c.l.b16 %v7573_v37  ;;  %v9755_v42 = vrot.slane %v9397_v31, 7  ;;  %v1508_v17 = vmax.f32 %v18831_v10, 0.0  ;;  %v9403_v4 = vunpack.c.l.b16 %v7587_v27  ;;  %v18905_v27 = vpop.f32.mrb[96].mxu0 }
 0x25d   : > { %v9757_v0 = vrot.slane %v9398_v50, 6  ;;  %v9759_v53 = vrot.slane %v9399_v16, 5  ;;  %v9782_v2 = vsel %vm9543_vm7, %v9781_v34, %v9780_v32  ;;  %v9761_v47 = vrot.slane %v9400_v35, 4  ;;  %v18910_v35 = vpop.f32.mrb[97].mxu0 }
 0x25e   : > { %v9756_v45 = vsel %vm9525_vm1, %v9755_v42, %v9396_v30  ;;  %v1599_v18 = vpack.c.bf16 %v1508_v17, %v1507_v59  ;;  %v9763_v43 = vrot.slane %v9401_v61, 3  ;;  %v9765_v54 = vrot.slane %v9402_v29, 2  ;;  %v18914_v42 = vpop.f32.mrb[98].mxu0 }
 0x25f   : > { %v9758_v63 = vsel %vm9528_vm2, %v9757_v0, %v9756_v45  ;;  %v1237_v10 = vadd.f32 %v18520_v40, %v18489_v8  ;;  %v1229_v25 = vadd.f32 %v18520_v40, %v18495_v3  ;;  %v1240_v34 = vadd.f32 %v18520_v40, %v18501_v57 }
 0x260   : > { %v9760_v1 = vsel %vm9531_vm3, %v9759_v53, %v9758_v63  ;;  %v1232_v20 = vadd.f32 %v18520_v40, %v18507_v19  ;;  %v9767_v59 = vrot.slane %v9403_v4, 1  ;;  %v1253_v8 = vadd.f32 %v18890_v62, %v18557_v39  ;;  %v21265_v4 = vld [vmem:[#allocation6_spill] sm:$0xff]  ;;  %v18933_v63 = vld [vmem:[#allocation2 + $0x50] sm:$0xff] }
 0x261   : > { %v9762_v9 = vsel %vm9534_vm4, %v9761_v47, %v9760_v1  ;;  %v1513_v12 = vmax.f32 %v1237_v10, 0.0  ;;  %v1511_v38 = vmax.f32 %v1229_v25, 0.0  ;;  %v1514_v60 = vmax.f32 %v1240_v34, 0.0 }
 0x262   : > { %v9764_v3 = vsel %vm9537_vm5, %v9763_v43, %v9762_v9  ;;  %v1512_v57 = vmax.f32 %v1232_v20, 0.0  ;;  %v18897_v19 = vrot.slane %v10089_v49, 7  ;;  %v1517_v58 = vmax.f32 %v1253_v8, 0.0 }
 0x263   : > { %v9766_v40 = vsel %vm9540_vm6, %v9765_v54, %v9764_v3  ;;  %v1245_v52 = vadd.f32 %v18890_v62, %v18559_v7  ;;  %v1602_v32 = vpack.c.bf16 %v1514_v60, %v1513_v12  ;;  %v1256_v39 = vadd.f32 %v18890_v62, %v18565_v14 }
 0x264   : > { %21264 = vst [vmem:[#allocation5_spill] sm:$0xff] %v18897_v19  ;;  %v9768_v23 = vsel %vm9543_vm7, %v9767_v59, %v9766_v40  ;;  %v1601_v37 = vpack.c.bf16 %v1512_v57, %v1511_v38  ;;  %v1248_v49 = vadd.f32 %v18890_v62, %v18570_v11  ;;  %v21232_v16 = vshrl.u32 %v18823_v21, 16 }
 0x265   : > { %v9987_v31 = vpack.c.b16 %v9782_v2, %v9768_v23  ;;  %v1515_v50 = vmax.f32 %v1245_v52, 0.0  ;;  %v1646_v7 = vmax.bf16 %v1602_v32, %v18842_v55  ;;  %v1518_v30 = vmax.f32 %v1256_v39, 0.0  ;;  %v18927_v55 = vpop.f32.mrb[99].mxu0 }
 0x266   : > { %v1645_v61 = vmax.bf16 %v1601_v37, %v1599_v18  ;;  %v21233_v29 = vshll.u32 %v18823_v21, 16  ;;  %v1516_v14 = vmax.f32 %v1248_v49, 0.0  ;;  %v10163_v17 = vrot.slane %v21232_v16, 7  ;;  %v18931_v18 = vpop.f32.mrb[100].mxu0  ;;  %v21267_v37 = vld [vmem:[#allocation7_spill] sm:$0xff] }
 0x267   : > { %10020 = vst.msk [vmem:[#allocation2 + $0xe0] sm:$0xff] %vm697_vm0, %v9987_v31  ;;  %v18921_v11 = vadd.f32 %v18890_v62, %v18587_v51  ;;  %v18925_v0 = vadd.f32 %v18890_v62, %v21265_v4  ;;  %v2622_v53 = vcombine.high %v1646_v7, %v1646_v7  ;;  %v2629_v2 = vrot.slane %v1646_v7, %v17740_v33  ;;  %v18944_v1 = vpop.f32.mrb[101].mxu0 }
 0x268   : > { %v2573_v45 = vcombine.high %v1645_v61, %v1645_v61  ;;  %v2580_v47 = vrot.slane %v1645_v61, %v17740_v33  ;;  %v18936_v51 = vpack.c.bf16 %v1518_v30, %v1517_v58  ;;  %v18938_v54 = vpack.c.bf16 %v1516_v14, %v1515_v50  ;;  %v18949_v59 = vpop.f32.mrb[102].mxu0 }
 0x269   : > { %v18942_v10 = vor.u32 %v21233_v29, %v10163_v17  ;;  %v2636_v25 = vrot.slane %v2622_v53, %v17740_v33  ;;  %v2637_v34 = vcombine.high %v2629_v2, %v2629_v2  ;;  %v2645_v20 = vrot.slane %v2629_v2, %v17740_v33 }
 0x26a   : > { %v2587_v9 = vrot.slane %v2573_v45, %v17740_v33  ;;  %v2588_v12 = vcombine.high %v2580_v47, %v2580_v47  ;;  %v18952_v8 = vrot.slane %v2580_v47, %v17740_v33  ;;  %v18963_v39 = vadd.f32 %v18890_v62, %v21267_v37 }
 0x26b   : > { %21266 = vst [vmem:[#allocation6_spill] sm:$0xff] %v18942_v10  ;;  %v2638_v60 = vcombine.high %v2636_v25, %v2636_v25  ;;  %v2652_v57 = vrot.slane %v2636_v25, %v17740_v33  ;;  %v2659_v40 = vrot.slane %v2637_v34, %v17740_v33  ;;  %v2667_v58 = vcombine.high %v2645_v20, %v2645_v20 }
 0x26c   : > { %v4276_v52 = vshrl.u32 %v2645_v20, 16  ;;  %v2589_v23 = vcombine.high %v2587_v9, %v2587_v9  ;;  %v18959_v32 = vrot.slane %v2587_v9, %v17740_v33  ;;  %v18969_v4 = vrot.slane %v2588_v12, %v17740_v33 }
 0x26d   : > { %v2666_v31 = vrot.slane %v2638_v60, %v17740_v33  ;;  %v2668_v50 = vcombine.high %v2652_v57, %v2652_v57  ;;  %v2669_v49 = vcombine.high %v2659_v40, %v2659_v40  ;;  %v4281_v7 = vshrl.u32 %v2659_v40, 16 }
 0x26e   : > { %v18966_v61 = vld [vmem:[#allocation2 + $0xe0] sm:$0xff]  ;;  %v4286_v30 = vshrl.u32 %v2667_v58, 16  ;;  %v4296_v14 = vshrl.u32 %v2652_v57, 16  ;;  %v5203_v17 = vmax.bf16 %v4276_v52, %v2645_v20  ;;  %v2617_v16 = vrot.slane %v2589_v23, %v17740_v33 }
 0x26f   : > { %16846 = vmatmul.mubr.msk.bf16.gmra.mrb[144].mxu0 %vm697_vm0, %v18966_v61  ;;  %v2670_v53 = vcombine.high %v2666_v31, %v2666_v31  ;;  %v4291_v2 = vshrl.u32 %v2669_v49, 16  ;;  %v4301_v45 = vshrl.u32 %v2666_v31, 16  ;;  %v4306_v47 = vshrl.u32 %v2668_v50, 16 }
 0x270   : > { %v5204_v25 = vmax.bf16 %v4281_v7, %v2659_v40  ;;  %v5205_v34 = vmax.bf16 %v4286_v30, %v2667_v58  ;;  %v5207_v9 = vmax.bf16 %v4296_v14, %v2652_v57  ;;  %v7818_v60 = vrot.slane %v5203_v17, %v17740_v33 }
 0x271   : > { %v4311_v37 = vshrl.u32 %v2670_v53, 16  ;;  %v5206_v26 = vmax.bf16 %v4291_v2, %v2669_v49  ;;  %v5208_v43 = vmax.bf16 %v4301_v45, %v2666_v31  ;;  %v5209_v38 = vmax.bf16 %v4306_v47, %v2668_v50 }
 0x272   : > { %v7832_v20 = vrot.slane %v5204_v25, %v17740_v33  ;;  %v7846_v12 = vrot.slane %v5205_v34, %v17740_v33  ;;  %v7874_v52 = vrot.slane %v5207_v9, %v17740_v33  ;;  %v7825_v58 = vrot.slane %v7818_v60, %v17740_v33 }
 0x273   : > { %v5210_v29 = vmax.bf16 %v4311_v37, %v2670_v53  ;;  %v7860_v3 = vrot.slane %v5206_v26, %v17740_v33  ;;  %v7888_v40 = vrot.slane %v5208_v43, %v17740_v33  ;;  %v7902_v57 = vrot.slane %v5209_v38, %v17740_v33 }
 0x274   : > { %v7839_v31 = vrot.slane %v7832_v20, %v17740_v33  ;;  %v7853_v50 = vrot.slane %v7846_v12, %v17740_v33  ;;  %v7881_v49 = vrot.slane %v7874_v52, %v17740_v33  ;;  %v2618_v38 = vcombine.high %v18952_v8, %v18952_v8 }
 0x275   : > { %v7867_v7 = vrot.slane %v7860_v3, %v17740_v33  ;;  %v7895_v30 = vrot.slane %v7888_v40, %v17740_v33  ;;  %v7909_v23 = vrot.slane %v7902_v57, %v17740_v33  ;;  %v7916_v26 = vrot.slane %v5210_v29, %v17740_v33 }
 0x276   : > { %v9421_v14 = vunpack.c.l.b16 %v7839_v31  ;;  %v9422_v43 = vunpack.c.l.b16 %v7853_v50  ;;  %v9424_v17 = vunpack.c.l.b16 %v7881_v49  ;;  %v9420_v25 = vunpack.c.l.b16 %v7825_v58 }
 0x277   : > { %v7923_v53 = vrot.slane %v7916_v26, %v17740_v33  ;;  %v9423_v2 = vunpack.c.l.b16 %v7867_v7  ;;  %v9425_v45 = vunpack.c.l.b16 %v7895_v30  ;;  %v9426_v47 = vunpack.c.l.b16 %v7909_v23 }
 0x278   : > { %v9797_v34 = vrot.slane %v9421_v14, 7  ;;  %v9799_v3 = vrot.slane %v9422_v43, 6  ;;  %v9803_v9 = vrot.slane %v9424_v17, 4  ;;  %v2619_v29 = vcombine.high %v18959_v32, %v18959_v32 }
 0x279   : > { %v9427_v60 = vunpack.c.l.b16 %v7923_v53  ;;  %v9801_v37 = vrot.slane %v9423_v2, 5  ;;  %v9805_v20 = vrot.slane %v9425_v45, 3  ;;  %v2620_v52 = vcombine.high %v18969_v4, %v18969_v4  ;;  %v19004_v2 = vpop.f32.mrb[103].mxu0 }
 0x27a   : > { %v9798_v12 = vsel %vm9525_vm1, %v9797_v34, %v9420_v25  ;;  %v2621_v40 = vcombine.high %v2617_v16, %v2617_v16  ;;  %v4236_v57 = vshrl.u32 %v18952_v8, 16  ;;  %v9807_v58 = vrot.slane %v9426_v47, 2 }
 0x27b   : > { %v9800_v31 = vsel %vm9528_vm2, %v9799_v3, %v9798_v12  ;;  %v4241_v50 = vshrl.u32 %v18969_v4, 16  ;;  %v4246_v49 = vshrl.u32 %v2618_v38, 16  ;;  %v4251_v30 = vshrl.u32 %v2620_v52, 16 }
 0x27c   : > { %v9802_v7 = vsel %vm9531_vm3, %v9801_v37, %v9800_v31  ;;  %v4256_v23 = vshrl.u32 %v18959_v32, 16  ;;  %v4261_v26 = vshrl.u32 %v2617_v16, 16  ;;  %v4266_v43 = vshrl.u32 %v2619_v29, 16 }
 0x27d   : > { %v9804_v14 = vsel %vm9534_vm4, %v9803_v9, %v9802_v7  ;;  %v4271_v17 = vshrl.u32 %v2621_v40, 16  ;;  %v5195_v53 = vmax.bf16 %v4236_v57, %v18952_v8  ;;  %v5196_v47 = vmax.bf16 %v4241_v50, %v18969_v4 }
 0x27e   : > { %v9806_v45 = vsel %vm9537_vm5, %v9805_v20, %v9804_v14  ;;  %v5197_v25 = vmax.bf16 %v4246_v49, %v2618_v38  ;;  %v5198_v34 = vmax.bf16 %v4251_v30, %v2620_v52  ;;  %v9809_v3 = vrot.slane %v9427_v60, 1 }
 0x27f   : > { %v5199_v37 = vmax.bf16 %v4256_v23, %v18959_v32  ;;  %v5200_v12 = vmax.bf16 %v4261_v26, %v2617_v16  ;;  %v5201_v31 = vmax.bf16 %v4266_v43, %v2619_v29  ;;  %v9808_v10 = vsel %vm9540_vm6, %v9807_v58, %v9806_v45 }
 0x280   : > { %v5202_v9 = vmax.bf16 %v4271_v17, %v2621_v40  ;;  %v7706_v7 = vrot.slane %v5195_v53, %v17740_v33  ;;  %v7720_v8 = vrot.slane %v5196_v47, %v17740_v33  ;;  %v7734_v57 = vrot.slane %v5197_v25, %v17740_v33 }
 0x281   : > { %v7748_v20 = vrot.slane %v5198_v34, %v17740_v33  ;;  %v7762_v4 = vrot.slane %v5199_v37, %v17740_v33  ;;  %v7776_v38 = vrot.slane %v5200_v12, %v17740_v33  ;;  %v7790_v32 = vrot.slane %v5201_v31, %v17740_v33 }
 0x282   : > { %v7713_v60 = vrot.slane %v7706_v7, %v17740_v33  ;;  %v7727_v16 = vrot.slane %v7720_v8, %v17740_v33  ;;  %v7804_v29 = vrot.slane %v5202_v9, %v17740_v33  ;;  %v7741_v52 = vrot.slane %v7734_v57, %v17740_v33 }
 0x283   : > { %v7755_v40 = vrot.slane %v7748_v20, %v17740_v33  ;;  %v7769_v58 = vrot.slane %v7762_v4, %v17740_v33  ;;  %v7783_v50 = vrot.slane %v7776_v38, %v17740_v33  ;;  %v7797_v49 = vrot.slane %v7790_v32, %v17740_v33  ;;  %v5398_v38 = vld [vmem:[#allocation2 + $0xd0] sm:$0x1] }
 0x284   : > { %v7811_v30 = vrot.slane %v7804_v29, %v17740_v33  ;;  %v9412_v23 = vunpack.c.l.b16 %v7713_v60  ;;  %v9413_v26 = vunpack.c.l.b16 %v7727_v16  ;;  %v9414_v14 = vunpack.c.l.b16 %v7741_v52 }
 0x285   : > { %v9415_v43 = vunpack.c.l.b16 %v7755_v40  ;;  %v9416_v17 = vunpack.c.l.b16 %v7769_v58  ;;  %v9417_v53 = vunpack.c.l.b16 %v7783_v50  ;;  %v9418_v45 = vunpack.c.l.b16 %v7797_v49 }
 0x286   : > { %v9419_v47 = vunpack.c.l.b16 %v7811_v30  ;;  %v9783_v25 = vrot.slane %v9413_v26, 7  ;;  %v1522_v34 = vmax.f32 %v18963_v39, 0.0  ;;  %v9810_v37 = vsel %vm9543_vm7, %v9809_v3, %v9808_v10 }
 0x287   : > { %v9785_v12 = vrot.slane %v9414_v14, 6  ;;  %v9787_v31 = vrot.slane %v9415_v43, 5  ;;  %v9789_v9 = vrot.slane %v9416_v17, 4  ;;  %v9791_v8 = vrot.slane %v9417_v53, 3 }
 0x288   : > { %v9784_v7 = vsel %vm9525_vm1, %v9783_v25, %v9412_v23  ;;  %v9793_v57 = vrot.slane %v9418_v45, 2  ;;  %v21268_v20 = vmax.f32 %v18921_v11, 0.0  ;;  %v1264_v16 = vadd.f32 %v18890_v62, %v18606_v28  ;;  %v19067_v25 = vpop.f32.mrb[104].mxu0 }
 0x289   : > { %v9786_v60 = vsel %vm9528_vm2, %v9785_v12, %v9784_v7  ;;  %v9795_v39 = vrot.slane %v9419_v47, 1  ;;  %v21271_v11 = vshll.u32 %v18823_v21, 16  ;;  %v5399_v28 = vsel %vm19037_vm10, 0, %v5398_v38 }
 0x28a   : > { %v1606_v4 = vpack.c.bf16 %v1522_v34, %v21268_v20  ;;  %v9788_v10 = vsel %vm9531_vm3, %v9787_v31, %v9786_v60  ;;  %v1520_v40 = vmax.f32 %v1264_v16, 0.0  ;;  %v19048_v58 = vadd.f32 %v18890_v62, %v18758_v13  ;;  %5400 = vst [vmem:[#allocation2 + $0xd0] sm:$0x1] %v5399_v28 }
 0x28b   : > { %v10821_v29 = vrot.slane %v21271_v11, 1  ;;  %v9790_v52 = vsel %vm9534_vm4, %v9789_v9, %v9788_v10  ;;  %v21272_v30 = vshrl.u32 %v18823_v21, 16  ;;  %v21273_v14 = vmax.f32 %v18925_v0, 0.0 }
 0x28c   : > { %v1648_v3 = vmax.bf16 %v1606_v4, %v18936_v51  ;;  %v9792_v51 = vsel %vm9537_vm5, %v9791_v8, %v9790_v52  ;;  %v19062_v13 = vadd.f32 %v18890_v62, %v18773_v48  ;;  %v19073_v31 = vadd.f32 %v18890_v62, %v18777_v24  ;;  %v19075_v48 = vpop.f32.mrb[105].mxu0 }
 0x28d   : > { %v19054_v23 = vor.u32 %v10821_v29, %v21272_v30  ;;  %v9794_v26 = vsel %vm9540_vm6, %v9793_v57, %v9792_v51  ;;  %v1605_v43 = vpack.c.bf16 %v1520_v40, %v21273_v14  ;;  %v19079_v20 = vpop.f32.mrb[106].mxu0 }
 0x28e   : > { %v2720_v50 = vcombine.high %v1648_v3, %v1648_v3  ;;  %v2727_v49 = vrot.slane %v1648_v3, %v17740_v33  ;;  %v9796_v53 = vsel %vm9543_vm7, %v9795_v39, %v9794_v26  ;;  %v19086_v38 = vpop.f32.mrb[107].mxu0 }
 0x28f   : > { %v9988_v34 = vpack.c.b16 %v9810_v37, %v9796_v53  ;;  %v1647_v12 = vmax.bf16 %v1605_v43, %v18938_v54  ;;  %v19089_v3 = vpop.f32.mrb[108].mxu0 }
 0x290   : > { %v2734_v45 = vrot.slane %v2720_v50, %v17740_v33  ;;  %v2735_v47 = vcombine.high %v2727_v49, %v2727_v49  ;;  %v2743_v21 = vrot.slane %v2727_v49, %v17740_v33  ;;  %v19092_v28 = vpop.f32.mrb[109].mxu0 }
 0x291   : > { %10021 = vst.msk [vmem:[#allocation2 + $0xf8] sm:$0xff] %vm697_vm0, %v9988_v34  ;;  %v2671_v54 = vcombine.high %v1647_v12, %v1647_v12  ;;  %v19083_v4 = vrot.slane %v1647_v12, %v17740_v33  ;;  %v19094_v26 = vpop.f32.mrb[110].mxu0 }
 0x292   : > { %v2736_v9 = vcombine.high %v2734_v45, %v2734_v45  ;;  %v2750_v7 = vrot.slane %v2734_v45, %v17740_v33  ;;  %v2757_v8 = vrot.slane %v2735_v47, %v17740_v33  ;;  %v2765_v57 = vcombine.high %v2743_v21, %v2743_v21 }
 0x293   : > { %v4356_v37 = vshrl.u32 %v2743_v21, 16  ;;  %v2685_v40 = vrot.slane %v2671_v54, %v17740_v33 }
 0x294   : > { %v2764_v60 = vrot.slane %v2736_v9, %v17740_v33  ;;  %v2766_v16 = vcombine.high %v2750_v7, %v2750_v7  ;;  %v2767_v10 = vcombine.high %v2757_v8, %v2757_v8  ;;  %v4361_v39 = vshrl.u32 %v2757_v8, 16 }
 0x295   : > { %v4366_v11 = vshrl.u32 %v2765_v57, 16  ;;  %v4376_v29 = vshrl.u32 %v2750_v7, 16  ;;  %v5219_v52 = vmax.bf16 %v4356_v37, %v2743_v21 }
 0x296   : > { %v2768_v51 = vcombine.high %v2764_v60, %v2764_v60  ;;  %v4371_v50 = vshrl.u32 %v2767_v10, 16  ;;  %v4381_v49 = vshrl.u32 %v2764_v60, 16  ;;  %v4386_v30 = vshrl.u32 %v2766_v16, 16 }
 0x297   : > { %v5220_v14 = vmax.bf16 %v4361_v39, %v2757_v8  ;;  %v5221_v43 = vmax.bf16 %v4366_v11, %v2765_v57  ;;  %v5223_v53 = vmax.bf16 %v4376_v29, %v2750_v7  ;;  %v8042_v45 = vrot.slane %v5219_v52, %v17740_v33 }
 0x298   : > { %v4391_v47 = vshrl.u32 %v2768_v51, 16  ;;  %v5222_v34 = vmax.bf16 %v4371_v50, %v2767_v10  ;;  %v5224_v12 = vmax.bf16 %v4381_v49, %v2764_v60  ;;  %v5225_v9 = vmax.bf16 %v4386_v30, %v2766_v16  ;;  %v19104_v57 = vld [vmem:[#allocation2 + $0xf8] sm:$0xff] }
 0x299   : > { %v8049_v21 = vrot.slane %v8042_v45, %v17740_v33  ;;  %v8056_v37 = vrot.slane %v5220_v14, %v17740_v33  ;;  %v8070_v54 = vrot.slane %v5221_v43, %v17740_v33  ;;  %v8098_v0 = vrot.slane %v5223_v53, %v17740_v33  ;;  %16849 = vmatprep.mubr.msk.bf16.mxu0 %vm697_vm0, %v19104_v57 }
 0x29a   : > { %v5226_v24 = vmax.bf16 %v4391_v47, %v2768_v51  ;;  %v8084_v17 = vrot.slane %v5222_v34, %v17740_v33  ;;  %v8112_v8 = vrot.slane %v5224_v12, %v17740_v33  ;;  %v8126_v7 = vrot.slane %v5225_v9, %v17740_v33  ;;  %v19118_v9 = vld [vmem:[#allocation2 + $0xd0] sm:$0x1] }
 0x29b   : > { %v8063_v60 = vrot.slane %v8056_v37, %v17740_v33  ;;  %v8077_v16 = vrot.slane %v8070_v54, %v17740_v33  ;;  %v8105_v10 = vrot.slane %v8098_v0, %v17740_v33  ;;  %v9436_v39 = vunpack.c.l.b16 %v8049_v21 }
 0x29c   : > { %v8091_v11 = vrot.slane %v8084_v17, %v17740_v33  ;;  %v8119_v29 = vrot.slane %v8112_v8, %v17740_v33  ;;  %v8133_v52 = vrot.slane %v8126_v7, %v17740_v33  ;;  %v8140_v51 = vrot.slane %v5226_v24, %v17740_v33 }
 0x29d   : > { %v9437_v50 = vunpack.c.l.b16 %v8063_v60  ;;  %v9438_v49 = vunpack.c.l.b16 %v8077_v16  ;;  %v9440_v30 = vunpack.c.l.b16 %v8105_v10  ;;  %v2686_v14 = vcombine.high %v19083_v4, %v19083_v4 }
 0x29e   : > { %v8147_v0 = vrot.slane %v8140_v51, %v17740_v33  ;;  %v9439_v43 = vunpack.c.l.b16 %v8091_v11  ;;  %v9441_v53 = vunpack.c.l.b16 %v8119_v29  ;;  %v9442_v45 = vunpack.c.l.b16 %v8133_v52 }
 0x29f   : > { %v9825_v47 = vrot.slane %v9437_v50, 7  ;;  %v9827_v34 = vrot.slane %v9438_v49, 6  ;;  %v9831_v17 = vrot.slane %v9440_v30, 4  ;;  %v2687_v12 = vcombine.high %v2685_v40, %v2685_v40 }
 0x2a0   : > { %v9443_v21 = vunpack.c.l.b16 %v8147_v0  ;;  %v9829_v37 = vrot.slane %v9439_v43, 5  ;;  %v9833_v24 = vrot.slane %v9441_v53, 3  ;;  %v9835_v54 = vrot.slane %v9442_v45, 2 }
 0x2a1   : > { %v9826_v8 = vsel %vm9525_vm1, %v9825_v47, %v9436_v39  ;;  %v2694_v7 = vrot.slane %v19083_v4, %v17740_v33  ;;  %v2701_v60 = vrot.slane %v2685_v40, %v17740_v33  ;;  %v2708_v16 = vrot.slane %v2686_v14, %v17740_v33 }
 0x2a2   : > { %v9828_v10 = vsel %vm9528_vm2, %v9827_v34, %v9826_v8  ;;  %v9837_v11 = vrot.slane %v9443_v21, 1  ;;  %v2715_v29 = vrot.slane %v2687_v12, %v17740_v33  ;;  %v10824_v52 = vshll.u32 %v19118_v9, 16 }
 0x2a3   : > { %v9830_v51 = vsel %vm9531_vm3, %v9829_v37, %v9828_v10  ;;  %v2716_v50 = vcombine.high %v2694_v7, %v2694_v7  ;;  %v2717_v49 = vcombine.high %v2701_v60, %v2701_v60  ;;  %v2718_v30 = vcombine.high %v2708_v16, %v2708_v16 }
 0x2a4   : > { %v9832_v39 = vsel %vm9534_vm4, %v9831_v17, %v9830_v51  ;;  %v2719_v0 = vcombine.high %v2715_v29, %v2715_v29  ;;  %v4316_v4 = vshrl.u32 %v2694_v7, 16  ;;  %v4321_v43 = vshrl.u32 %v2708_v16, 16 }
 0x2a5   : > { %v9834_v40 = vsel %vm9537_vm5, %v9833_v24, %v9832_v39  ;;  %v4326_v14 = vshrl.u32 %v2716_v50, 16  ;;  %v4331_v53 = vshrl.u32 %v2718_v30, 16  ;;  %v4336_v45 = vshrl.u32 %v2701_v60, 16 }
 0x2a6   : > { %v9836_v47 = vsel %vm9540_vm6, %v9835_v54, %v9834_v40  ;;  %v4341_v34 = vshrl.u32 %v2715_v29, 16  ;;  %v4346_v12 = vshrl.u32 %v2717_v49, 16  ;;  %v4351_v9 = vshrl.u32 %v2719_v0, 16  ;;  %v19138_v40 = vpop.f32.mrb[111].mxu0 }
 0x2a7   : > { %v19133_v21 = vsel %vm9543_vm7, %v9837_v11, %v9836_v47  ;;  %v5211_v37 = vmax.bf16 %v4316_v4, %v2694_v7  ;;  %v5212_v8 = vmax.bf16 %v4321_v43, %v2708_v16  ;;  %v5213_v10 = vmax.bf16 %v4326_v14, %v2716_v50 }
 0x2a8   : > { %v5214_v17 = vmax.bf16 %v4331_v53, %v2718_v30  ;;  %v5215_v51 = vmax.bf16 %v4336_v45, %v2701_v60  ;;  %v5216_v22 = vmax.bf16 %v4341_v34, %v2715_v29  ;;  %v5217_v5 = vmax.bf16 %v4346_v12, %v2717_v49 }
 0x2a9   : > { %v5218_v24 = vmax.bf16 %v4351_v9, %v2719_v0  ;;  %v7930_v39 = vrot.slane %v5211_v37, %v17740_v33  ;;  %v7944_v19 = vrot.slane %v5212_v8, %v17740_v33  ;;  %v7958_v54 = vrot.slane %v5213_v10, %v17740_v33 }
 0x2aa   : > { %v7972_v11 = vrot.slane %v5214_v17, %v17740_v33  ;;  %v7986_v7 = vrot.slane %v5215_v51, %v17740_v33  ;;  %v8000_v16 = vrot.slane %v5216_v22, %v17740_v33  ;;  %v8014_v60 = vrot.slane %v5217_v5, %v17740_v33 }
 0x2ab   : > { %v7937_v29 = vrot.slane %v7930_v39, %v17740_v33  ;;  %v7951_v50 = vrot.slane %v7944_v19, %v17740_v33  ;;  %v7965_v49 = vrot.slane %v7958_v54, %v17740_v33  ;;  %v8028_v30 = vrot.slane %v5218_v24, %v17740_v33 }
 0x2ac   : > { %v7979_v0 = vrot.slane %v7972_v11, %v17740_v33  ;;  %v7993_v4 = vrot.slane %v7986_v7, %v17740_v33  ;;  %v8007_v43 = vrot.slane %v8000_v16, %v17740_v33  ;;  %v8021_v14 = vrot.slane %v8014_v60, %v17740_v33 }
 0x2ad   : > { %v8035_v22 = vrot.slane %v8028_v30, %v17740_v33  ;;  %v9428_v53 = vunpack.c.l.b16 %v7937_v29  ;;  %v9429_v5 = vunpack.c.l.b16 %v7951_v50  ;;  %v9430_v45 = vunpack.c.l.b16 %v7965_v49 }
 0x2ae   : > { %v9431_v47 = vunpack.c.l.b16 %v7979_v0  ;;  %v9432_v34 = vunpack.c.l.b16 %v7993_v4  ;;  %v9433_v19 = vunpack.c.l.b16 %v8007_v43  ;;  %v9434_v12 = vunpack.c.l.b16 %v8021_v14 }
 0x2af   : > { %v9435_v9 = vunpack.c.l.b16 %v8035_v22  ;;  %v9811_v37 = vrot.slane %v9429_v5, 7  ;;  %v9813_v8 = vrot.slane %v9430_v45, 6  ;;  %v10826_v10 = vrot.slane %v10824_v52, 1  ;;  %v5401_v22 = vld [vmem:[#allocation2 + $0xe8] sm:$0x1] }
 0x2b0   : > { %v9815_v17 = vrot.slane %v9431_v47, 5  ;;  %v9817_v51 = vrot.slane %v9432_v34, 4  ;;  %v9819_v24 = vrot.slane %v9433_v19, 3  ;;  %v9821_v39 = vrot.slane %v9434_v12, 2 }
 0x2b1   : > { %v9812_v54 = vsel %vm9525_vm1, %v9811_v37, %v9428_v53  ;;  %v9823_v11 = vrot.slane %v9435_v9, 1  ;;  %v10827_v7 = vsel %vm10719_vm11, %v19054_v23, %v10826_v10  ;;  %v21274_v16 = vmax.f32 %v19048_v58, 0.0 }
 0x2b2   : > { %v21275_v60 = vmax.f32 %v19073_v31, 0.0  ;;  %v9814_v50 = vsel %vm9528_vm2, %v9813_v8, %v9812_v54  ;;  %16917 = vmatprep.mubr.msk.bf16.mxu1 %vm697_vm0, %v10827_v7  ;;  %v1280_v52 = vadd.f32 %v18890_v62, %v18786_v46  ;;  %v10173_v49 = vshrl.u32 %v18966_v61, 16 }
 0x2b3   : > { %v10176_v30 = vshll.u32 %v18966_v61, 16  ;;  %v9816_v0 = vsel %vm9531_vm3, %v9815_v17, %v9814_v50  ;;  %v1301_v23 = vadd.f32 %v18890_v62, %v18791_v36  ;;  %v1293_v58 = vadd.f32 %v18890_v62, %v18797_v6 }
 0x2b4   : > { %v1608_v29 = vpack.c.bf16 %v21275_v60, %v21274_v16  ;;  %v1304_v31 = vadd.f32 %v18890_v62, %v18802_v15  ;;  %v9818_v4 = vsel %vm9534_vm4, %v9817_v51, %v9816_v0  ;;  %v1524_v43 = vmax.f32 %v1280_v52, 0.0 }
 0x2b5   : > { %v10175_v14 = vrot.slane %v10173_v49, 7  ;;  %v1296_v46 = vadd.f32 %v18890_v62, %v18850_v44  ;;  %v9820_v61 = vsel %vm9537_vm5, %v9819_v24, %v9818_v4  ;;  %v1529_v53 = vmax.f32 %v1301_v23, 0.0 }
 0x2b6   : > { %v1527_v5 = vmax.f32 %v1293_v58, 0.0  ;;  %v1530_v45 = vmax.f32 %v1304_v31, 0.0  ;;  %v9822_v36 = vsel %vm9540_vm6, %v9821_v39, %v9820_v61  ;;  %v21276_v6 = vmax.f32 %v19062_v13, 0.0 }
 0x2b7   : > { %v19180_v34 = vor.u32 %v10176_v30, %v10175_v14  ;;  %v1528_v15 = vmax.f32 %v1296_v46, 0.0  ;;  %v9824_v19 = vsel %vm9543_vm7, %v9823_v11, %v9822_v36  ;;  %v5402_v44 = vsel %vm19037_vm10, 0, %v5401_v22 }
 0x2b8   : > { %v1607_v47 = vpack.c.bf16 %v1524_v43, %v21276_v6  ;;  %v1610_v12 = vpack.c.bf16 %v1530_v45, %v1529_v53  ;;  %v10833_v9 = vrot.slane %v10176_v30, 1  ;;  %v9989_v37 = vpack.c.b16 %v19133_v21, %v9824_v19  ;;  %5403 = vst [vmem:[#allocation2 + $0xe8] sm:$0x1] %v5402_v44 }
 0x2b9   : > { %21277 = vst [vmem:[#allocation7_spill] sm:$0xff] %v19180_v34  ;;  %v1609_v8 = vpack.c.bf16 %v1528_v15, %v1527_v5  ;;  %v1317_v10 = vadd.f32 %v18890_v62, %v18905_v27  ;;  %v1309_v13 = vadd.f32 %v18890_v62, %v18910_v35  ;;  %v1320_v24 = vadd.f32 %v18890_v62, %v18914_v42  ;;  %v19198_v27 = vpop.f32.mrb[112].mxu0 }
 0x2ba   : > { %v1650_v17 = vmax.bf16 %v1610_v12, %v1608_v29  ;;  %v19190_v51 = vor.u32 %v10833_v9, %v10173_v49  ;;  %v1312_v39 = vadd.f32 %v18890_v62, %v18927_v55  ;;  %10022 = vst.msk [vmem:[#allocation2 + $0x110] sm:$0xff] %vm697_vm0, %v9989_v37  ;;  %v21235_v7 = vshrl.u32 %v19104_v57, 16  ;;  %v19201_v50 = vpop.f32.mrb[113].mxu0 }
 0x2bb   : > { %v1649_v21 = vmax.bf16 %v1609_v8, %v1607_v47  ;;  %v1533_v54 = vmax.f32 %v1317_v10, 0.0  ;;  %v1531_v11 = vmax.f32 %v1309_v13, 0.0  ;;  %v1534_v60 = vmax.f32 %v1320_v24, 0.0  ;;  %v19209_v49 = vpop.f32.mrb[114].mxu0 }
 0x2bc   : > { %v2818_v16 = vcombine.high %v1650_v17, %v1650_v17  ;;  %v2825_v35 = vrot.slane %v1650_v17, %v17740_v33  ;;  %v1532_v29 = vmax.f32 %v1312_v39, 0.0  ;;  %v19206_v62 = vrot.slane %v21235_v7, 7  ;;  %v19215_v31 = vpop.f32.mrb[115].mxu0 }
 0x2bd   : > { %v2769_v42 = vcombine.high %v1649_v21, %v1649_v21  ;;  %v2776_v52 = vrot.slane %v1649_v21, %v17740_v33  ;;  %v19213_v58 = vpack.c.bf16 %v1534_v60, %v1533_v54  ;;  %v19223_v22 = vpop.f32.mrb[116].mxu0 }
 0x2be   : > { %v2832_v30 = vrot.slane %v2818_v16, %v17740_v33  ;;  %v2833_v0 = vcombine.high %v2825_v35, %v2825_v35  ;;  %v2841_v23 = vrot.slane %v2825_v35, %v17740_v33  ;;  %v19221_v46 = vpack.c.bf16 %v1532_v29, %v1531_v11  ;;  %v19227_v36 = vpop.f32.mrb[117].mxu0 }
 0x2bf   : > { %v2783_v4 = vrot.slane %v2769_v42, %v17740_v33  ;;  %v2784_v43 = vcombine.high %v2776_v52, %v2776_v52  ;;  %v19219_v14 = vrot.slane %v2776_v52, %v17740_v33  ;;  %v19235_v12 = vpop.f32.mrb[118].mxu0 }
 0x2c0   : > { %v2834_v61 = vcombine.high %v2832_v30, %v2832_v30  ;;  %v2848_v53 = vrot.slane %v2832_v30, %v17740_v33  ;;  %v2855_v5 = vrot.slane %v2833_v0, %v17740_v33  ;;  %v2863_v45 = vcombine.high %v2841_v23, %v2841_v23 }
 0x2c1   : > { %v4436_v6 = vshrl.u32 %v2841_v23, 16  ;;  %v2785_v47 = vcombine.high %v2783_v4, %v2783_v4  ;;  %v19230_v15 = vrot.slane %v2783_v4, %v17740_v33  ;;  %v19233_v19 = vrot.slane %v2784_v43, %v17740_v33  ;;  %v19238_v10 = vld [vmem:[#allocation2 + $0x110] sm:$0xff] }
 0x2c2   : > { %v2862_v44 = vrot.slane %v2834_v61, %v17740_v33  ;;  %v2864_v9 = vcombine.high %v2848_v53, %v2848_v53  ;;  %v2865_v37 = vcombine.high %v2855_v5, %v2855_v5  ;;  %v4441_v8 = vshrl.u32 %v2855_v5, 16  ;;  %16850 = vmatmul.mubr.msk.bf16.gmra.mrb[148].mxu0 %vm697_vm0, %v19238_v10 }
 0x2c3   : > { %v4446_v13 = vshrl.u32 %v2863_v45, 16  ;;  %v4456_v17 = vshrl.u32 %v2848_v53, 16  ;;  %v5235_v24 = vmax.bf16 %v4436_v6, %v2841_v23  ;;  %v19241_v39 = vrot.slane %v2785_v47, %v17740_v33 }
 0x2c4   : > { %v2866_v21 = vcombine.high %v2862_v44, %v2862_v44  ;;  %v4451_v54 = vshrl.u32 %v2865_v37, 16  ;;  %v4461_v11 = vshrl.u32 %v2862_v44, 16  ;;  %v4466_v16 = vshrl.u32 %v2864_v9, 16 }
 0x2c5   : > { %v5236_v35 = vmax.bf16 %v4441_v8, %v2855_v5  ;;  %v5237_v60 = vmax.bf16 %v4446_v13, %v2863_v45  ;;  %v5239_v29 = vmax.bf16 %v4456_v17, %v2848_v53  ;;  %v8266_v42 = vrot.slane %v5235_v24, %v17740_v33  ;;  %v19256_v8 = vpop.f32.mrb[119].mxu0 }
 0x2c6   : > { %v4471_v52 = vshrl.u32 %v2866_v21, 16  ;;  %v5238_v30 = vmax.bf16 %v4451_v54, %v2865_v37  ;;  %v5240_v0 = vmax.bf16 %v4461_v11, %v2862_v44  ;;  %v5241_v4 = vmax.bf16 %v4466_v16, %v2864_v9 }
 0x2c7   : > { %v8273_v23 = vrot.slane %v8266_v42, %v17740_v33  ;;  %v8280_v43 = vrot.slane %v5236_v35, %v17740_v33  ;;  %v8294_v61 = vrot.slane %v5237_v60, %v17740_v33  ;;  %v8322_v6 = vrot.slane %v5239_v29, %v17740_v33 }
 0x2c8   : > { %v5242_v47 = vmax.bf16 %v4471_v52, %v2866_v21  ;;  %v8308_v7 = vrot.slane %v5238_v30, %v17740_v33  ;;  %v8336_v5 = vrot.slane %v5240_v0, %v17740_v33  ;;  %v8350_v53 = vrot.slane %v5241_v4, %v17740_v33 }
 0x2c9   : > { %v8287_v45 = vrot.slane %v8280_v43, %v17740_v33  ;;  %v8301_v44 = vrot.slane %v8294_v61, %v17740_v33  ;;  %v8329_v9 = vrot.slane %v8322_v6, %v17740_v33  ;;  %v9452_v37 = vunpack.c.l.b16 %v8273_v23 }
 0x2ca   : > { %v8315_v13 = vrot.slane %v8308_v7, %v17740_v33  ;;  %v8343_v17 = vrot.slane %v8336_v5, %v17740_v33  ;;  %v8357_v24 = vrot.slane %v8350_v53, %v17740_v33  ;;  %v8364_v21 = vrot.slane %v5242_v47, %v17740_v33 }
 0x2cb   : > { %v9453_v54 = vunpack.c.l.b16 %v8287_v45  ;;  %v9454_v11 = vunpack.c.l.b16 %v8301_v44  ;;  %v9456_v16 = vunpack.c.l.b16 %v8329_v9  ;;  %v2814_v35 = vcombine.high %v19219_v14, %v19219_v14 }
 0x2cc   : > { %v8371_v60 = vrot.slane %v8364_v21, %v17740_v33  ;;  %v9455_v29 = vunpack.c.l.b16 %v8315_v13  ;;  %v9457_v42 = vunpack.c.l.b16 %v8343_v17  ;;  %v9458_v52 = vunpack.c.l.b16 %v8357_v24 }
 0x2cd   : > { %v9853_v30 = vrot.slane %v9453_v54, 7  ;;  %v9855_v0 = vrot.slane %v9454_v11, 6  ;;  %v9859_v7 = vrot.slane %v9456_v16, 4  ;;  %v2815_v4 = vcombine.high %v19230_v15, %v19230_v15 }
 0x2ce   : > { %v9459_v23 = vunpack.c.l.b16 %v8371_v60  ;;  %v9857_v43 = vrot.slane %v9455_v29, 5  ;;  %v9861_v61 = vrot.slane %v9457_v42, 3  ;;  %v9863_v6 = vrot.slane %v9458_v52, 2 }
 0x2cf   : > { %v9854_v47 = vsel %vm9525_vm1, %v9853_v30, %v9452_v37  ;;  %v2816_v5 = vcombine.high %v19233_v19, %v19233_v19  ;;  %v2817_v53 = vcombine.high %v19241_v39, %v19241_v39  ;;  %v4396_v45 = vshrl.u32 %v19219_v14, 16 }
 0x2d0   : > { %v9856_v44 = vsel %vm9528_vm2, %v9855_v0, %v9854_v47  ;;  %v9865_v9 = vrot.slane %v9459_v23, 1  ;;  %v4401_v13 = vshrl.u32 %v19233_v19, 16  ;;  %v4406_v17 = vshrl.u32 %v2814_v35, 16 }
 0x2d1   : > { %v9858_v24 = vsel %vm9531_vm3, %v9857_v43, %v9856_v44  ;;  %v4411_v21 = vshrl.u32 %v2816_v5, 16  ;;  %v4416_v54 = vshrl.u32 %v19230_v15, 16  ;;  %v4421_v37 = vshrl.u32 %v19241_v39, 16 }
 0x2d2   : > { %v9860_v11 = vsel %vm9534_vm4, %v9859_v7, %v9858_v24  ;;  %v4426_v16 = vshrl.u32 %v2815_v4, 16  ;;  %v4431_v60 = vshrl.u32 %v2817_v53, 16  ;;  %v5227_v29 = vmax.bf16 %v4396_v45, %v19219_v14 }
 0x2d3   : > { %v9862_v42 = vsel %vm9537_vm5, %v9861_v61, %v9860_v11  ;;  %v5228_v52 = vmax.bf16 %v4401_v13, %v19233_v19  ;;  %v5229_v30 = vmax.bf16 %v4406_v17, %v2814_v35  ;;  %v5230_v0 = vmax.bf16 %v4411_v21, %v2816_v5  ;;  %v10706_v17 = vld [vmem:[#allocation2 + $0xe8] sm:$0x1] }
 0x2d4   : > { %v9864_v23 = vsel %vm9540_vm6, %v9863_v6, %v9862_v42  ;;  %v5231_v43 = vmax.bf16 %v4416_v54, %v19230_v15  ;;  %v5232_v47 = vmax.bf16 %v4421_v37, %v19241_v39  ;;  %v5233_v44 = vmax.bf16 %v4426_v16, %v2815_v4 }
 0x2d5   : > { %v19286_v55 = vsel %vm9543_vm7, %v9865_v9, %v9864_v23  ;;  %v5234_v7 = vmax.bf16 %v4431_v60, %v2817_v53  ;;  %v8154_v24 = vrot.slane %v5227_v29, %v17740_v33  ;;  %v8168_v14 = vrot.slane %v5228_v52, %v17740_v33 }
 0x2d6   : > { %v8182_v61 = vrot.slane %v5229_v30, %v17740_v33  ;;  %v8196_v19 = vrot.slane %v5230_v0, %v17740_v33  ;;  %v8210_v35 = vrot.slane %v5231_v43, %v17740_v33  ;;  %v8224_v6 = vrot.slane %v5232_v47, %v17740_v33 }
 0x2d7   : > { %v8161_v15 = vrot.slane %v8154_v24, %v17740_v33  ;;  %v8175_v39 = vrot.slane %v8168_v14, %v17740_v33  ;;  %v8238_v4 = vrot.slane %v5233_v44, %v17740_v33  ;;  %v8252_v5 = vrot.slane %v5234_v7, %v17740_v33 }
 0x2d8   : > { %v8189_v53 = vrot.slane %v8182_v61, %v17740_v33  ;;  %v8203_v45 = vrot.slane %v8196_v19, %v17740_v33  ;;  %v8217_v9 = vrot.slane %v8210_v35, %v17740_v33  ;;  %v8231_v13 = vrot.slane %v8224_v6, %v17740_v33  ;;  %v5404_v35 = vld [vmem:[#allocation2 + $0x100] sm:$0x1] }
 0x2d9   : > { %v8245_v21 = vrot.slane %v8238_v4, %v17740_v33  ;;  %v8259_v54 = vrot.slane %v8252_v5, %v17740_v33  ;;  %v9444_v37 = vunpack.c.l.b16 %v8161_v15  ;;  %v9445_v11 = vunpack.c.l.b16 %v8175_v39  ;;  %v19314_v4 = vld [vmem:[%s21227_s2] ss:$0 sm:$0xff] }
 0x2da   : > { %v9446_v16 = vunpack.c.l.b16 %v8189_v53  ;;  %v9447_v60 = vunpack.c.l.b16 %v8203_v45  ;;  %v9448_v29 = vunpack.c.l.b16 %v8217_v9  ;;  %v9449_v42 = vunpack.c.l.b16 %v8231_v13 }
 0x2db   : > { %v9450_v52 = vunpack.c.l.b16 %v8245_v21  ;;  %v9451_v30 = vunpack.c.l.b16 %v8259_v54  ;;  %v9839_v0 = vrot.slane %v9445_v11, 7  ;;  %v10836_v23 = vshll.u32 %v10706_v17, 16 }
 0x2dc   : > { %v9841_v43 = vrot.slane %v9446_v16, 6  ;;  %v9843_v47 = vrot.slane %v9447_v60, 5  ;;  %v9845_v44 = vrot.slane %v9448_v29, 4  ;;  %v9847_v7 = vrot.slane %v9449_v42, 3 }
 0x2dd   : > { %v9840_v24 = vsel %vm9525_vm1, %v9839_v0, %v9444_v37  ;;  %v9849_v14 = vrot.slane %v9450_v52, 2  ;;  %v9851_v61 = vrot.slane %v9451_v30, 1  ;;  %v10838_v19 = vrot.slane %v10836_v23, 1 }
 0x2de   : > { %v9842_v6 = vsel %vm9528_vm2, %v9841_v43, %v9840_v24  ;;  %v21278_v15 = vshll.u32 %v19104_v57, 16  ;;  %v1333_v5 = vadd.f32 %v19314_v4, %v18931_v18  ;;  %v1325_v53 = vadd.f32 %v19314_v4, %v18944_v1 }
 0x2df   : > { %v9844_v45 = vsel %vm9531_vm3, %v9843_v47, %v9842_v6  ;;  %v10839_v9 = vsel %vm10719_vm11, %v19190_v51, %v10838_v19  ;;  %v1328_v13 = vadd.f32 %v19314_v4, %v19004_v2  ;;  %v5405_v1 = vsel %vm19037_vm10, 0, %v5404_v35 }
 0x2e0   : > { %v19309_v39 = vor.u32 %v21278_v15, %v19206_v62  ;;  %v1336_v62 = vadd.f32 %v19314_v4, %v18949_v59  ;;  %v9846_v17 = vsel %vm9534_vm4, %v9845_v44, %v9844_v45  ;;  %16918 = vmatmul.mubr.msk.bf16.vlgmr.msra.gmra.mrb[0].mxu1 %vm697_vm0, %v10839_v9  ;;  %v1537_v21 = vmax.f32 %v1333_v5, 0.0  ;;  %5406 = vst [vmem:[#allocation2 + $0x100] sm:$0x1] %v5405_v1 }
 0x2e1   : > { %v1535_v18 = vmax.f32 %v1325_v53, 0.0  ;;  %v9848_v54 = vsel %vm9537_vm5, %v9847_v7, %v9846_v17  ;;  %v1536_v11 = vmax.f32 %v1328_v13, 0.0  ;;  %v21280_v51 = vmov %v21278_v15 }
 0x2e2   : > { %21279 = vst [vmem:[#allocation9_spill] sm:$0xff] %v19309_v39  ;;  %v1538_v37 = vmax.f32 %v1336_v62, 0.0  ;;  %v10845_v59 = vrot.slane %v21280_v51, 1  ;;  %v9850_v16 = vsel %vm9540_vm6, %v9849_v14, %v9848_v54  ;;  %v1349_v2 = vadd.f32 %v19314_v4, %v19067_v25  ;;  %v19355_v14 = vpop.f32.mrb[120].mxu0 }
 0x2e3   : > { %v1341_v60 = vadd.f32 %v19314_v4, %v19075_v48  ;;  %v1352_v29 = vadd.f32 %v19314_v4, %v19079_v20  ;;  %v9852_v42 = vsel %vm9543_vm7, %v9851_v61, %v9850_v16  ;;  %v1613_v30 = vpack.c.bf16 %v1536_v11, %v1535_v18  ;;  %v19372_v19 = vpop.f32.mrb[121].mxu0 }
 0x2e4   : > { %v1614_v52 = vpack.c.bf16 %v1538_v37, %v1537_v21  ;;  %v21281_v0 = vshrl.u32 %v19104_v57, 16  ;;  %v9990_v43 = vpack.c.b16 %v19286_v55, %v9852_v42  ;;  %v1541_v47 = vmax.f32 %v1349_v2, 0.0  ;;  %v17490_v57 = vld [vmem:[%s21228_s3 + $0x30] sm:$0xff]   ;;  %v17491_v55 = vld [vmem:[%s21228_s3 + $0x38] sm:$0xff]   ;;  %v19376_v53 = vpop.f32.mrb[122].mxu0 }
 0x2e5   : > { %v1539_v44 = vmax.f32 %v1341_v60, 0.0  ;;  %v1542_v7 = vmax.f32 %v1352_v29, 0.0  ;;  %v1651_v48 = vmax.bf16 %v1613_v30, %v19221_v46  ;;  %v1344_v20 = vadd.f32 %v19314_v4, %v19086_v38  ;;  %16933 = vmatprep.subr.bf16.mxu1 %v17490_v57  ;;  %v19389_v1 = vpop.f32.mrb[123].mxu0 }
 0x2e6   : > { %v19344_v23 = vor.u32 %v10845_v59, %v21281_v0  ;;  %v1652_v25 = vmax.bf16 %v1614_v52, %v19213_v58  ;;  %v21236_v24 = vshrl.u32 %v19238_v10, 16  ;;  %10023 = vst.msk [vmem:[#allocation2 + $0x128] sm:$0xff] %vm697_vm0, %v9990_v43  ;;  %v19366_v38 = vadd.f32 %v19314_v4, %v19089_v3  ;;  %16934 = vmatpush3.bf16.msra.mxu1 %v17490_v57  ;;  %v19397_v59 = vpop.f32.mrb[124].mxu0 }
 0x2e7   : > { %v19361_v58 = vpack.c.bf16 %v1542_v7, %v1541_v47  ;;  %v19370_v61 = vadd.f32 %v19314_v4, %v19092_v28  ;;  %v2867_v15 = vcombine.high %v1651_v48, %v1651_v48  ;;  %v2874_v5 = vrot.slane %v1651_v48, %v17740_v33  ;;  %v19378_v45 = vld [vmem:[#allocation2 + $0x100] sm:$0x1]  ;;  %16935 = vmatprep.subr.bf16.mxu1 %v17491_v55  ;;  %v19401_v42 = vpop.f32.mrb[125].mxu0 }
 0x2e8   : > { %v2916_v35 = vcombine.high %v1652_v25, %v1652_v25  ;;  %v2923_v6 = vrot.slane %v1652_v25, %v17740_v33  ;;  %v1540_v9 = vmax.f32 %v1344_v20, 0.0  ;;  %v19382_v3 = vrot.slane %v21236_v24, 7  ;;  %v19409_v47 = vpop.f32.mrb[126].mxu0 }
 0x2e9   : > { %v2881_v18 = vrot.slane %v2867_v15, %v17740_v33  ;;  %v2882_v54 = vcombine.high %v2874_v5, %v2874_v5  ;;  %v19392_v37 = vrot.slane %v2874_v5, %v17740_v33 }
 0x2ea   : > { %v2930_v13 = vrot.slane %v2916_v35, %v17740_v33  ;;  %v2931_v17 = vcombine.high %v2923_v6, %v2923_v6  ;;  %v2939_v21 = vrot.slane %v2923_v6, %v17740_v33  ;;  %v19395_v51 = vpack.c.bf16 %v1540_v9, %v1539_v44  ;;  %16936 = vmatpush3.bf16.msra.mxu1 %v17491_v55 }
 0x2eb   : > { %v2883_v30 = vcombine.high %v2881_v18, %v2881_v18  ;;  %v19404_v0 = vrot.slane %v2881_v18, %v17740_v33  ;;  %v19407_v43 = vrot.slane %v2882_v54, %v17740_v33 }
 0x2ec   : > { %v2932_v16 = vcombine.high %v2930_v13, %v2930_v13  ;;  %v2946_v2 = vrot.slane %v2930_v13, %v17740_v33  ;;  %v2953_v60 = vrot.slane %v2931_v17, %v17740_v33  ;;  %v2961_v29 = vcombine.high %v2939_v21, %v2939_v21 }
 0x2ed   : > { %v4516_v52 = vshrl.u32 %v2939_v21, 16  ;;  %v19412_v20 = vld [vmem:[#allocation2 + $0x128] sm:$0xff]  ;;  %v19415_v15 = vrot.slane %v2883_v30, %v17740_v33 }
 0x2ee   : > { %v2960_v44 = vrot.slane %v2932_v16, %v17740_v33  ;;  %v2962_v7 = vcombine.high %v2946_v2, %v2946_v2  ;;  %v2963_v25 = vcombine.high %v2953_v60, %v2953_v60  ;;  %v4521_v48 = vshrl.u32 %v2953_v60, 16  ;;  %16853 = vmatprep.mubr.msk.bf16.mxu0 %vm697_vm0, %v19412_v20 }
 0x2ef   : > { %v4526_v57 = vshrl.u32 %v2961_v29, 16  ;;  %v4536_v35 = vshrl.u32 %v2946_v2, 16  ;;  %v5251_v6 = vmax.bf16 %v4516_v52, %v2939_v21 }
 0x2f0   : > { %v2964_v5 = vcombine.high %v2960_v44, %v2960_v44  ;;  %v4531_v55 = vshrl.u32 %v2963_v25, 16  ;;  %v4541_v9 = vshrl.u32 %v2960_v44, 16  ;;  %v4546_v13 = vshrl.u32 %v2962_v7, 16 }
 0x2f1   : > { %v5252_v17 = vmax.bf16 %v4521_v48, %v2953_v60  ;;  %v5253_v18 = vmax.bf16 %v4526_v57, %v2961_v29  ;;  %v5255_v54 = vmax.bf16 %v4536_v35, %v2946_v2  ;;  %v8490_v16 = vrot.slane %v5251_v6, %v17740_v33 }
 0x2f2   : > { %v4551_v62 = vshrl.u32 %v2964_v5, 16  ;;  %v5254_v28 = vmax.bf16 %v4531_v55, %v2963_v25  ;;  %v5256_v24 = vmax.bf16 %v4541_v9, %v2960_v44  ;;  %v5257_v46 = vmax.bf16 %v4546_v13, %v2962_v7 }
 0x2f3   : > { %v8497_v21 = vrot.slane %v8490_v16, %v17740_v33  ;;  %v8504_v52 = vrot.slane %v5252_v17, %v17740_v33  ;;  %v8518_v30 = vrot.slane %v5253_v18, %v17740_v33  ;;  %v8546_v11 = vrot.slane %v5255_v54, %v17740_v33 }
 0x2f4   : > { %v5258_v39 = vmax.bf16 %v4551_v62, %v2964_v5  ;;  %v8532_v34 = vrot.slane %v5254_v28, %v17740_v33  ;;  %v8560_v60 = vrot.slane %v5256_v24, %v17740_v33  ;;  %v8574_v2 = vrot.slane %v5257_v46, %v17740_v33 }
 0x2f5   : > { %v8511_v29 = vrot.slane %v8504_v52, %v17740_v33  ;;  %v8525_v44 = vrot.slane %v8518_v30, %v17740_v33  ;;  %v8553_v7 = vrot.slane %v8546_v11, %v17740_v33  ;;  %v9468_v25 = vunpack.c.l.b16 %v8497_v21 }
 0x2f6   : > { %v8539_v48 = vrot.slane %v8532_v34, %v17740_v33  ;;  %v8567_v57 = vrot.slane %v8560_v60, %v17740_v33  ;;  %v8581_v35 = vrot.slane %v8574_v2, %v17740_v33  ;;  %v8588_v62 = vrot.slane %v5258_v39, %v17740_v33 }
 0x2f7   : > { %v9469_v28 = vunpack.c.l.b16 %v8511_v29  ;;  %v9470_v6 = vunpack.c.l.b16 %v8525_v44  ;;  %v9472_v24 = vunpack.c.l.b16 %v8553_v7  ;;  %v2912_v46 = vcombine.high %v19392_v37, %v19392_v37 }
 0x2f8   : > { %v8595_v5 = vrot.slane %v8588_v62, %v17740_v33  ;;  %v9471_v55 = vunpack.c.l.b16 %v8539_v48  ;;  %v9473_v9 = vunpack.c.l.b16 %v8567_v57  ;;  %v9474_v11 = vunpack.c.l.b16 %v8581_v35 }
 0x2f9   : > { %v9881_v13 = vrot.slane %v9469_v28, 7  ;;  %v9883_v17 = vrot.slane %v9470_v6, 6  ;;  %v9887_v34 = vrot.slane %v9472_v24, 4  ;;  %v2913_v18 = vcombine.high %v19404_v0, %v19404_v0 }
 0x2fa   : > { %v9475_v54 = vunpack.c.l.b16 %v8595_v5  ;;  %v9885_v16 = vrot.slane %v9471_v55, 5  ;;  %v9889_v39 = vrot.slane %v9473_v9, 3  ;;  %v9891_v21 = vrot.slane %v9474_v11, 2 }
 0x2fb   : > { %v9882_v52 = vsel %vm9525_vm1, %v9881_v13, %v9468_v25  ;;  %v2914_v30 = vcombine.high %v19407_v43, %v19407_v43  ;;  %v2915_v60 = vcombine.high %v19415_v15, %v19415_v15  ;;  %v4476_v2 = vshrl.u32 %v19392_v37, 16 }
 0x2fc   : > { %v9884_v29 = vsel %vm9528_vm2, %v9883_v17, %v9882_v52  ;;  %v9893_v44 = vrot.slane %v9475_v54, 1  ;;  %v4481_v7 = vshrl.u32 %v19407_v43, 16  ;;  %v4486_v48 = vshrl.u32 %v2912_v46, 16 }
 0x2fd   : > { %v9886_v57 = vsel %vm9531_vm3, %v9885_v16, %v9884_v29  ;;  %v4491_v35 = vshrl.u32 %v2914_v30, 16  ;;  %v4496_v62 = vshrl.u32 %v19404_v0, 16  ;;  %v4501_v25 = vshrl.u32 %v19415_v15, 16 }
 0x2fe   : > { %v9888_v28 = vsel %vm9534_vm4, %v9887_v34, %v9886_v57  ;;  %v4506_v6 = vshrl.u32 %v2913_v18, 16  ;;  %v4511_v24 = vshrl.u32 %v2915_v60, 16  ;;  %v5243_v5 = vmax.bf16 %v4476_v2, %v19392_v37 }
 0x2ff   : > { %v9890_v55 = vsel %vm9537_vm5, %v9889_v39, %v9888_v28  ;;  %v5244_v9 = vmax.bf16 %v4481_v7, %v19407_v43  ;;  %v5245_v11 = vmax.bf16 %v4486_v48, %v2912_v46  ;;  %v5246_v13 = vmax.bf16 %v4491_v35, %v2914_v30 }
 0x300   : > { %v9892_v17 = vsel %vm9540_vm6, %v9891_v21, %v9890_v55  ;;  %v5247_v54 = vmax.bf16 %v4496_v62, %v19404_v0  ;;  %v5248_v16 = vmax.bf16 %v4501_v25, %v19415_v15  ;;  %v5249_v52 = vmax.bf16 %v4506_v6, %v2913_v18  ;;  %v17492_v0 = vld [vmem:[%s21228_s3] sm:$0xff]   ;;  %v19469_v15 = vpop.f32.mrb[127].mxu0 }
 0x301   : > { %v19458_v29 = vsel %vm9543_vm7, %v9893_v44, %v9892_v17  ;;  %v5250_v34 = vmax.bf16 %v4511_v24, %v2915_v60  ;;  %v8378_v57 = vrot.slane %v5243_v5, %v17740_v33  ;;  %v8392_v37 = vrot.slane %v5244_v9, %v17740_v33  ;;  %16861 = vmatprep.subr.bf16.mxu0 %v17492_v0 }
 0x302   : > { %v8406_v39 = vrot.slane %v5245_v11, %v17740_v33  ;;  %v8420_v43 = vrot.slane %v5246_v13, %v17740_v33  ;;  %v8434_v46 = vrot.slane %v5247_v54, %v17740_v33  ;;  %v8448_v21 = vrot.slane %v5248_v16, %v17740_v33  ;;  %16862 = vmatpush3.bf16.msra.mxu0 %v17492_v0 }
 0x303   : > { %v8385_v18 = vrot.slane %v8378_v57, %v17740_v33  ;;  %v8399_v30 = vrot.slane %v8392_v37, %v17740_v33  ;;  %v8462_v60 = vrot.slane %v5249_v52, %v17740_v33  ;;  %v8476_v2 = vrot.slane %v5250_v34, %v17740_v33  ;;  %v17493_v52 = vld [vmem:[%s21228_s3 + $0x8] sm:$0xff]  }
 0x304   : > { %v8413_v44 = vrot.slane %v8406_v39, %v17740_v33  ;;  %v8427_v7 = vrot.slane %v8420_v43, %v17740_v33  ;;  %v8441_v48 = vrot.slane %v8434_v46, %v17740_v33  ;;  %v8455_v35 = vrot.slane %v8448_v21, %v17740_v33  ;;  %v5407_v43 = vld [vmem:[#allocation2 + $0x118] sm:$0x1]  ;;  %16863 = vmatprep.subr.bf16.mxu0 %v17493_v52 }
 0x305   : > { %v8469_v62 = vrot.slane %v8462_v60, %v17740_v33  ;;  %v8483_v25 = vrot.slane %v8476_v2, %v17740_v33  ;;  %v9460_v28 = vunpack.c.l.b16 %v8385_v18  ;;  %v9461_v6 = vunpack.c.l.b16 %v8399_v30 }
 0x306   : > { %v9462_v24 = vunpack.c.l.b16 %v8413_v44  ;;  %v9463_v5 = vunpack.c.l.b16 %v8427_v7  ;;  %v9464_v55 = vunpack.c.l.b16 %v8441_v48  ;;  %v9465_v9 = vunpack.c.l.b16 %v8455_v35  ;;  %16864 = vmatpush3.bf16.msra.mxu0 %v17493_v52 }
 0x307   : > { %v9466_v11 = vunpack.c.l.b16 %v8469_v62  ;;  %v9467_v13 = vunpack.c.l.b16 %v8483_v25  ;;  %v9867_v17 = vrot.slane %v9461_v6, 7  ;;  %v21282_v54 = vshll.u32 %v19378_v45, 16 }
 0x308   : > { %v9869_v34 = vrot.slane %v9462_v24, 6  ;;  %v9871_v57 = vrot.slane %v9463_v5, 5  ;;  %v9873_v37 = vrot.slane %v9464_v55, 4  ;;  %v9875_v39 = vrot.slane %v9465_v9, 3 }
 0x309   : > { %v10850_v16 = vrot.slane %v21282_v54, 1  ;;  %v9868_v46 = vsel %vm9525_vm1, %v9867_v17, %v9460_v28  ;;  %v9877_v21 = vrot.slane %v9466_v11, 2  ;;  %v9879_v0 = vrot.slane %v9467_v13, 1 }
 0x30a   : > { %v9870_v45 = vsel %vm9528_vm2, %v9869_v34, %v9868_v46  ;;  %v21283_v30 = vshll.u32 %v19238_v10, 16  ;;  %v1368_v2 = vadd.f32 %v19314_v4, %v19094_v26  ;;  %v1360_v44 = vadd.f32 %v19314_v4, %v19138_v40  ;;  %v17512_v40 = vld [vmem:[%s21228_s3 + $0x20] sm:$0xff]  }
 0x30b   : > { %v10851_v18 = vsel %vm10719_vm11, %v19344_v23, %v10850_v16  ;;  %v9872_v7 = vsel %vm9531_vm3, %v9871_v57, %v9870_v45  ;;  %v5408_v23 = vsel %vm19037_vm10, 0, %v5407_v43  ;;  %v1381_v62 = vadd.f32 %v19314_v4, %v19198_v27  ;;  %16897 = vmatprep.subr.bf16.mxu0 %v17512_v40 }
 0x30c   : > { %16921 = vmatprep.mubr.msk.bf16.mxu1 %vm697_vm0, %v10851_v18  ;;  %v19494_v60 = vor.u32 %v21283_v30, %v19382_v3  ;;  %v21284_v48 = vmov %v21283_v30  ;;  %v9874_v3 = vsel %vm9534_vm4, %v9873_v37, %v9872_v7  ;;  %v1546_v25 = vmax.f32 %v1368_v2, 0.0  ;;  %5409 = vst [vmem:[#allocation2 + $0x118] sm:$0x1] %v5408_v23  ;;  %v17494_v23 = vld [vmem:[%s21228_s3 + $0x40] sm:$0xff]  }
 0x30d   : > { %v10857_v35 = vrot.slane %v21284_v48, 1  ;;  %v1544_v28 = vmax.f32 %v1360_v44, 0.0  ;;  %v1373_v26 = vadd.f32 %v19314_v4, %v19201_v50  ;;  %v9876_v6 = vsel %vm9537_vm5, %v9875_v39, %v9874_v3  ;;  %16969 = vmatprep.subr.bf16.mxu1 %v17494_v23 }
 0x30e   : > { %v21285_v24 = vshrl.u32 %v19238_v10, 16  ;;  %v1549_v27 = vmax.f32 %v1381_v62, 0.0  ;;  %v1384_v55 = vadd.f32 %v19314_v4, %v19209_v49  ;;  %v9878_v9 = vsel %vm9540_vm6, %v9877_v21, %v9876_v6 }
 0x30f   : > { %v21286_v11 = vmax.f32 %v19366_v38, 0.0  ;;  %v21287_v13 = vmax.f32 %v19370_v61, 0.0  ;;  %v1547_v54 = vmax.f32 %v1373_v26, 0.0  ;;  %v9880_v16 = vsel %vm9543_vm7, %v9879_v0, %v9878_v9 }
 0x310   : > { %v19516_v5 = vor.u32 %v10857_v35, %v21285_v24  ;;  %v1550_v52 = vmax.f32 %v1384_v55, 0.0  ;;  %v1376_v10 = vadd.f32 %v19314_v4, %v19215_v31  ;;  %v10209_v34 = vshrl.u32 %v19412_v20, 16 }
 0x311   : > { %v1618_v50 = vpack.c.bf16 %v1546_v25, %v21286_v11  ;;  %v1617_v17 = vpack.c.bf16 %v1544_v28, %v21287_v13  ;;  %v9991_v57 = vpack.c.b16 %v19458_v29, %v9880_v16  ;;  %v10212_v38 = vshll.u32 %v19412_v20, 16 }
 0x312   : > { %v19533_v39 = vpack.c.bf16 %v1550_v52, %v1549_v27  ;;  %v1548_v61 = vmax.f32 %v1376_v10, 0.0  ;;  %v10211_v43 = vrot.slane %v10209_v34, 7  ;;  %v19539_v46 = vadd.f32 %v19314_v4, %v19223_v22 }
 0x313   : > { %v1654_v49 = vmax.bf16 %v1618_v50, %v19361_v58  ;;  %v1653_v37 = vmax.bf16 %v1617_v17, %v19395_v51  ;;  %10024 = vst.msk [vmem:[#allocation2 + $0x140] sm:$0xff] %vm697_vm0, %v9991_v57  ;;  %v19544_v21 = vld [vmem:[#allocation2 + $0x118] sm:$0x1]  ;;  %v19555_v22 = vadd.f32 %v19314_v4, %v19227_v36 }
 0x314   : > { %v19546_v0 = vpack.c.bf16 %v1548_v61, %v1547_v54  ;;  %v19550_v18 = vor.u32 %v10212_v38, %v10211_v43  ;;  %v1553_v45 = vmax.f32 %v19539_v46, 0.0  ;;  %v10860_v62 = vshll.u32 %v19544_v21, 16 }
 0x315   : > { %v3014_v31 = vcombine.high %v1654_v49, %v1654_v49  ;;  %v3021_v29 = vrot.slane %v1654_v49, %v17740_v33  ;;  %v2965_v58 = vcombine.high %v1653_v37, %v1653_v37  ;;  %v2972_v51 = vrot.slane %v1653_v37, %v17740_v33 }
 0x316   : > { %v1551_v36 = vmax.f32 %v19555_v22, 0.0  ;;  %v1400_v21 = vadd.f32 %v19314_v4, %v19235_v12 }
 0x317   : > { %v3028_v30 = vrot.slane %v3014_v31, %v17740_v33  ;;  %v3029_v2 = vcombine.high %v3021_v29, %v3021_v29  ;;  %v3037_v44 = vrot.slane %v3021_v29, %v17740_v33  ;;  %v2979_v7 = vrot.slane %v2965_v58, %v17740_v33 }
 0x318   : > { %v2980_v48 = vcombine.high %v2972_v51, %v2972_v51  ;;  %v19564_v35 = vrot.slane %v2972_v51, %v17740_v33  ;;  %v1554_v12 = vmax.f32 %v1400_v21, 0.0 }
 0x319   : > { %v3030_v3 = vcombine.high %v3028_v30, %v3028_v30  ;;  %v3044_v25 = vrot.slane %v3028_v30, %v17740_v33  ;;  %v3051_v28 = vrot.slane %v3029_v2, %v17740_v33  ;;  %v3059_v26 = vcombine.high %v3037_v44, %v3037_v44 }
 0x31a   : > { %v4596_v40 = vshrl.u32 %v3037_v44, 16  ;;  %v2981_v6 = vcombine.high %v2979_v7, %v2979_v7  ;;  %v19571_v24 = vrot.slane %v2979_v7, %v17740_v33  ;;  %v19574_v27 = vrot.slane %v2980_v48, %v17740_v33  ;;  %v19580_v52 = vld [vmem:[#allocation2 + $0x140] sm:$0xff] }
 0x31b   : > { %v3058_v55 = vrot.slane %v3030_v3, %v17740_v33  ;;  %v3060_v9 = vcombine.high %v3044_v25, %v3044_v25  ;;  %v3061_v11 = vcombine.high %v3051_v28, %v3051_v28  ;;  %v4601_v50 = vshrl.u32 %v3051_v28, 16  ;;  %16854 = vmatmul.mubr.msk.bf16.gmra.mrb[152].mxu0 %vm697_vm0, %v19580_v52 }
 0x31c   : > { %v4606_v13 = vshrl.u32 %v3059_v26, 16  ;;  %v4616_v17 = vshrl.u32 %v3044_v25, 16  ;;  %v5267_v54 = vmax.bf16 %v4596_v40, %v3037_v44  ;;  %v19578_v16 = vrot.slane %v2981_v6, %v17740_v33 }
 0x31d   : > { %v3062_v10 = vcombine.high %v3058_v55, %v3058_v55  ;;  %v4611_v57 = vshrl.u32 %v3061_v11, 16  ;;  %v4621_v49 = vshrl.u32 %v3058_v55, 16  ;;  %v4626_v37 = vshrl.u32 %v3060_v9, 16 }
 0x31e   : > { %v5268_v61 = vmax.bf16 %v4601_v50, %v3051_v28  ;;  %v5269_v43 = vmax.bf16 %v4606_v13, %v3059_v26  ;;  %v5271_v31 = vmax.bf16 %v4616_v17, %v3044_v25  ;;  %v8714_v29 = vrot.slane %v5267_v54, %v17740_v33 }
 0x31f   : > { %v4631_v58 = vshrl.u32 %v3062_v10, 16  ;;  %v5270_v51 = vmax.bf16 %v4611_v57, %v3061_v11  ;;  %v5272_v30 = vmax.bf16 %v4621_v49, %v3058_v55  ;;  %v5273_v2 = vmax.bf16 %v4626_v37, %v3060_v9 }
 0x320   : > { %v8721_v44 = vrot.slane %v8714_v29, %v17740_v33  ;;  %v8728_v7 = vrot.slane %v5268_v61, %v17740_v33  ;;  %v8742_v23 = vrot.slane %v5269_v43, %v17740_v33  ;;  %v8770_v48 = vrot.slane %v5271_v31, %v17740_v33 }
 0x321   : > { %v5274_v3 = vmax.bf16 %v4631_v58, %v3062_v10  ;;  %v8756_v40 = vrot.slane %v5270_v51, %v17740_v33  ;;  %v8784_v28 = vrot.slane %v5272_v30, %v17740_v33  ;;  %v8798_v25 = vrot.slane %v5273_v2, %v17740_v33 }
 0x322   : > { %v8735_v26 = vrot.slane %v8728_v7, %v17740_v33  ;;  %v8749_v6 = vrot.slane %v8742_v23, %v17740_v33  ;;  %v8777_v55 = vrot.slane %v8770_v48, %v17740_v33  ;;  %v9484_v9 = vunpack.c.l.b16 %v8721_v44 }
 0x323   : > { %v8763_v11 = vrot.slane %v8756_v40, %v17740_v33  ;;  %v8791_v50 = vrot.slane %v8784_v28, %v17740_v33  ;;  %v8805_v13 = vrot.slane %v8798_v25, %v17740_v33  ;;  %v8812_v17 = vrot.slane %v5274_v3, %v17740_v33 }
 0x324   : > { %v9485_v54 = vunpack.c.l.b16 %v8735_v26  ;;  %v9486_v10 = vunpack.c.l.b16 %v8749_v6  ;;  %v9488_v57 = vunpack.c.l.b16 %v8777_v55  ;;  %v3010_v49 = vcombine.high %v19564_v35, %v19564_v35 }
 0x325   : > { %v8819_v37 = vrot.slane %v8812_v17, %v17740_v33  ;;  %v9487_v61 = vunpack.c.l.b16 %v8763_v11  ;;  %v9489_v43 = vunpack.c.l.b16 %v8791_v50  ;;  %v9490_v31 = vunpack.c.l.b16 %v8805_v13 }
 0x326   : > { %v9909_v29 = vrot.slane %v9485_v54, 7  ;;  %v9911_v58 = vrot.slane %v9486_v10, 6  ;;  %v9915_v51 = vrot.slane %v9488_v57, 4  ;;  %v3011_v30 = vcombine.high %v19571_v24, %v19571_v24 }
 0x327   : > { %v9491_v2 = vunpack.c.l.b16 %v8819_v37  ;;  %v9913_v44 = vrot.slane %v9487_v61, 5  ;;  %v9917_v7 = vrot.slane %v9489_v43, 3  ;;  %v9919_v23 = vrot.slane %v9490_v31, 2 }
 0x328   : > { %v9910_v48 = vsel %vm9525_vm1, %v9909_v29, %v9484_v9  ;;  %v3012_v3 = vcombine.high %v19574_v27, %v19574_v27  ;;  %v3013_v40 = vcombine.high %v19578_v16, %v19578_v16  ;;  %v4556_v28 = vshrl.u32 %v19564_v35, 16 }
 0x329   : > { %v9912_v25 = vsel %vm9528_vm2, %v9911_v58, %v9910_v48  ;;  %v9921_v26 = vrot.slane %v9491_v2, 1  ;;  %v4561_v6 = vshrl.u32 %v19574_v27, 16  ;;  %v4566_v55 = vshrl.u32 %v3010_v49, 16 }
 0x32a   : > { %v9914_v11 = vsel %vm9531_vm3, %v9913_v44, %v9912_v25  ;;  %v4571_v50 = vshrl.u32 %v3012_v3, 16  ;;  %v4576_v13 = vshrl.u32 %v19571_v24, 16  ;;  %v4581_v9 = vshrl.u32 %v19578_v16, 16 }
 0x32b   : > { %v9916_v17 = vsel %vm9534_vm4, %v9915_v51, %v9914_v11  ;;  %v4586_v54 = vshrl.u32 %v3011_v30, 16  ;;  %v4591_v10 = vshrl.u32 %v3013_v40, 16  ;;  %v5259_v57 = vmax.bf16 %v4556_v28, %v19564_v35 }
 0x32c   : > { %v9918_v37 = vsel %vm9537_vm5, %v9917_v7, %v9916_v17  ;;  %v5260_v61 = vmax.bf16 %v4561_v6, %v19574_v27  ;;  %v5261_v43 = vmax.bf16 %v4566_v55, %v3010_v49  ;;  %v5262_v31 = vmax.bf16 %v4571_v50, %v3012_v3 }
 0x32d   : > { %v9920_v29 = vsel %vm9540_vm6, %v9919_v23, %v9918_v37  ;;  %v5263_v58 = vmax.bf16 %v4576_v13, %v19571_v24  ;;  %v5264_v2 = vmax.bf16 %v4581_v9, %v19578_v16  ;;  %v5265_v44 = vmax.bf16 %v4586_v54, %v3011_v30 }
 0x32e   : > { %v19623_v48 = vsel %vm9543_vm7, %v9921_v26, %v9920_v29  ;;  %v5266_v51 = vmax.bf16 %v4591_v10, %v3013_v40  ;;  %v8602_v25 = vrot.slane %v5259_v57, %v17740_v33  ;;  %v8616_v35 = vrot.slane %v5260_v61, %v17740_v33 }
 0x32f   : > { %v8630_v7 = vrot.slane %v5261_v43, %v17740_v33  ;;  %v8644_v27 = vrot.slane %v5262_v31, %v17740_v33  ;;  %v8658_v49 = vrot.slane %v5263_v58, %v17740_v33  ;;  %v8672_v23 = vrot.slane %v5264_v2, %v17740_v33  ;;  %v5410_v31 = vld [vmem:[#allocation2 + $0x130] sm:$0x1] }
 0x330   : > { %v8609_v24 = vrot.slane %v8602_v25, %v17740_v33  ;;  %v8623_v16 = vrot.slane %v8616_v35, %v17740_v33  ;;  %v8686_v30 = vrot.slane %v5265_v44, %v17740_v33  ;;  %v8700_v3 = vrot.slane %v5266_v51, %v17740_v33 }
 0x331   : > { %v8637_v40 = vrot.slane %v8630_v7, %v17740_v33  ;;  %v8651_v28 = vrot.slane %v8644_v27, %v17740_v33  ;;  %v8665_v26 = vrot.slane %v8658_v49, %v17740_v33  ;;  %v8679_v6 = vrot.slane %v8672_v23, %v17740_v33  ;;  %v5413_v27 = vld [vmem:[#allocation2 + $0x148] sm:$0x1] }
 0x332   : > { %v8693_v55 = vrot.slane %v8686_v30, %v17740_v33  ;;  %v8707_v11 = vrot.slane %v8700_v3, %v17740_v33  ;;  %v9476_v50 = vunpack.c.l.b16 %v8609_v24  ;;  %v9477_v13 = vunpack.c.l.b16 %v8623_v16  ;;  %v5416_v3 = vld [vmem:[#allocation2 + $0x160] sm:$0x1] }
 0x333   : > { %v9478_v9 = vunpack.c.l.b16 %v8637_v40  ;;  %v9479_v17 = vunpack.c.l.b16 %v8651_v28  ;;  %v9480_v54 = vunpack.c.l.b16 %v8665_v26  ;;  %v9481_v10 = vunpack.c.l.b16 %v8679_v6 }
 0x334   : > { %v9482_v57 = vunpack.c.l.b16 %v8693_v55  ;;  %v9483_v37 = vunpack.c.l.b16 %v8707_v11  ;;  %v9895_v61 = vrot.slane %v9477_v13, 7  ;;  %v10862_v43 = vrot.slane %v10860_v62, 1 }
 0x335   : > { %v9897_v29 = vrot.slane %v9478_v9, 6  ;;  %v9899_v58 = vrot.slane %v9479_v17, 5  ;;  %v9901_v2 = vrot.slane %v9480_v54, 4  ;;  %v9903_v44 = vrot.slane %v9481_v10, 3 }
 0x336   : > { %v9896_v51 = vsel %vm9525_vm1, %v9895_v61, %v9476_v50  ;;  %v9905_v25 = vrot.slane %v9482_v57, 2  ;;  %v9907_v35 = vrot.slane %v9483_v37, 1  ;;  %v10863_v7 = vsel %vm10719_vm11, %v19516_v5, %v10862_v43 }
 0x337   : > { %v9898_v49 = vsel %vm9528_vm2, %v9897_v29, %v9896_v51  ;;  %16922 = vmatmul.mubr.msk.bf16.gmra.mrb[4].mxu1 %vm697_vm0, %v10863_v7  ;;  %v1392_v62 = vadd.f32 %v19314_v4, %v19256_v8  ;;  %v5411_v23 = vsel %vm19037_vm10, 0, %v5410_v31  ;;  %v10869_v5 = vrot.slane %v10212_v38, 1 }
 0x338   : > { %v9900_v24 = vsel %vm9531_vm3, %v9899_v58, %v9898_v49  ;;  %5412 = vst [vmem:[#allocation2 + $0x130] sm:$0x1] %v5411_v23  ;;  %v10221_v16 = vshrl.u32 %v19580_v52, 16  ;;  %v10224_v30 = vshll.u32 %v19580_v52, 16  ;;  %v5414_v8 = vsel %vm19037_vm10, 0, %v5413_v27 }
 0x339   : > { %v9902_v40 = vsel %vm9534_vm4, %v9901_v2, %v9900_v24  ;;  %v1552_v28 = vmax.f32 %v1392_v62, 0.0  ;;  %v19665_v6 = vor.u32 %v10869_v5, %v10209_v34  ;;  %5415 = vst [vmem:[#allocation2 + $0x148] sm:$0x1] %v5414_v8  ;;  %v1622_v52 = vpack.c.bf16 %v1554_v12, %v1553_v45 }
 0x33a   : > { %v9904_v26 = vsel %vm9537_vm5, %v9903_v44, %v9902_v40  ;;  %v10223_v55 = vrot.slane %v10221_v16, 7  ;;  %v10881_v38 = vrot.slane %v10224_v30, 1  ;;  %v5417_v13 = vsel %vm19037_vm10, 0, %v5416_v3 }
 0x33b   : > { %v9906_v11 = vsel %vm9540_vm6, %v9905_v25, %v9904_v26  ;;  %v1621_v50 = vpack.c.bf16 %v1552_v28, %v1551_v36  ;;  %5418 = vst [vmem:[#allocation2 + $0x160] sm:$0x1] %v5417_v13  ;;  %v19681_v34 = vadd.f32 %v19314_v4, %v19355_v14  ;;  %v1656_v45 = vmax.bf16 %v1622_v52, %v19533_v39 }
 0x33c   : > { %v9908_v9 = vsel %vm9543_vm7, %v9907_v35, %v9906_v11  ;;  %v19675_v17 = vor.u32 %v10224_v30, %v10223_v55  ;;  %v19677_v20 = vor.u32 %v10881_v38, %v10221_v16  ;;  %v19688_v36 = vadd.f32 %v19314_v4, %v19372_v19 }
 0x33d   : > { %v9992_v46 = vpack.c.b16 %v19623_v48, %v9908_v9  ;;  %v1655_v22 = vmax.bf16 %v1621_v50, %v19546_v0  ;;  %v1557_v54 = vmax.f32 %v19681_v34, 0.0  ;;  %v19693_v10 = vadd.f32 %v19314_v4, %v19376_v53  ;;  %v17513_v34 = vld [vmem:[%s21227_s2] ss:$0 sm:$0xff] }
 0x33e   : > { %v19697_v14 = vadd.f32 %v19314_v4, %v19389_v1  ;;  %v19701_v48 = vadd.f32 %v19314_v4, %v19397_v59  ;;  %v3112_v39 = vcombine.high %v1656_v45, %v1656_v45  ;;  %v3119_v19 = vrot.slane %v1656_v45, %v17740_v33 }
 0x33f   : > { %10025 = vst.msk [vmem:[#allocation2 + $0x158] sm:$0xff] %vm697_vm0, %v9992_v46  ;;  %v3063_v0 = vcombine.high %v1655_v22, %v1655_v22  ;;  %v3070_v57 = vrot.slane %v1655_v22, %v17740_v33  ;;  %v10712_v37 = vld [vmem:[#allocation2 + $0x130] sm:$0x1]  ;;  %v1555_v53 = vmax.f32 %v19688_v36, 0.0  ;;  %v1558_v43 = vmax.f32 %v19693_v10, 0.0 }
 0x340   : > { %v10872_v61 = vshll.u32 %v10712_v37, 16  ;;  %v1556_v1 = vmax.f32 %v19697_v14, 0.0  ;;  %v3126_v31 = vrot.slane %v3112_v39, %v17740_v33  ;;  %v3127_v4 = vcombine.high %v3119_v19, %v3119_v19  ;;  %v19712_v58 = vld [vmem:[#allocation2 + $0x148] sm:$0x1]  ;;  %v5320_v10 = vld [vmem:[#allocation2 + $0x18] sm:$0x80] }
 0x341   : > { %v3135_v59 = vrot.slane %v3119_v19, %v17740_v33  ;;  %v3077_v29 = vrot.slane %v3063_v0, %v17740_v33  ;;  %v3078_v2 = vcombine.high %v3070_v57, %v3070_v57  ;;  %v19715_v44 = vrot.slane %v3070_v57, %v17740_v33 }
 0x342   : > { %v19717_v51 = vrot.slane %v10872_v61, 1  ;;  %v10884_v25 = vshll.u32 %v19712_v58, 16  ;;  %v3128_v35 = vcombine.high %v3126_v31, %v3126_v31  ;;  %v3142_v7 = vrot.slane %v3126_v31, %v17740_v33 }
 0x343   : > { %v3149_v27 = vrot.slane %v3127_v4, %v17740_v33  ;;  %v3157_v49 = vcombine.high %v3135_v59, %v3135_v59  ;;  %v4676_v21 = vshrl.u32 %v3135_v59, 16  ;;  %v3079_v62 = vcombine.high %v3077_v29, %v3077_v29 }
 0x344   : > { %v19723_v23 = vrot.slane %v3077_v29, %v17740_v33  ;;  %v19726_v24 = vrot.slane %v3078_v2, %v17740_v33  ;;  %v3156_v5 = vrot.slane %v3128_v35, %v17740_v33  ;;  %v3158_v16 = vcombine.high %v3142_v7, %v3142_v7 }
 0x345   : > { %v3159_v30 = vcombine.high %v3149_v27, %v3149_v27  ;;  %v4681_v3 = vshrl.u32 %v3149_v27, 16  ;;  %v4686_v40 = vshrl.u32 %v3157_v49, 16  ;;  %v4696_v12 = vshrl.u32 %v3142_v7, 16 }
 0x346   : > { %v5283_v28 = vmax.bf16 %v4676_v21, %v3135_v59  ;;  %v19730_v8 = vrot.slane %v3079_v62, %v17740_v33  ;;  %v19732_v26 = vld [vmem:[#allocation2 + $0x158] sm:$0xff]  ;;  %v3160_v55 = vcombine.high %v3156_v5, %v3156_v5  ;;  %v4701_v11 = vshrl.u32 %v3156_v5, 16 }
 0x347   : > { %v4691_v38 = vshrl.u32 %v3159_v30, 16  ;;  %v4706_v52 = vshrl.u32 %v3158_v16, 16  ;;  %16857 = vmatprep.mubr.msk.bf16.mxu0 %vm697_vm0, %v19732_v26  ;;  %v5284_v50 = vmax.bf16 %v4681_v3, %v3149_v27  ;;  %v5285_v13 = vmax.bf16 %v4686_v40, %v3157_v49 }
 0x348   : > { %v5287_v9 = vmax.bf16 %v4696_v12, %v3142_v7  ;;  %v8938_v46 = vrot.slane %v5283_v28, %v17740_v33  ;;  %v4711_v45 = vshrl.u32 %v3160_v55, 16  ;;  %v5288_v39 = vmax.bf16 %v4701_v11, %v3156_v5 }
 0x349   : > { %v5286_v22 = vmax.bf16 %v4691_v38, %v3159_v30  ;;  %v5289_v19 = vmax.bf16 %v4706_v52, %v3158_v16  ;;  %v8952_v57 = vrot.slane %v5284_v50, %v17740_v33  ;;  %v8966_v37 = vrot.slane %v5285_v13, %v17740_v33 }
 0x34a   : > { %v8945_v0 = vrot.slane %v8938_v46, %v17740_v33  ;;  %v8994_v61 = vrot.slane %v5287_v9, %v17740_v33  ;;  %v5290_v31 = vmax.bf16 %v4711_v45, %v3160_v55  ;;  %v9008_v59 = vrot.slane %v5288_v39, %v17740_v33 }
 0x34b   : > { %v8980_v4 = vrot.slane %v5286_v22, %v17740_v33  ;;  %v9022_v29 = vrot.slane %v5289_v19, %v17740_v33  ;;  %v8959_v2 = vrot.slane %v8952_v57, %v17740_v33  ;;  %v8973_v35 = vrot.slane %v8966_v37, %v17740_v33 }
 0x34c   : > { %v9001_v7 = vrot.slane %v8994_v61, %v17740_v33  ;;  %v9500_v27 = vunpack.c.l.b16 %v8945_v0  ;;  %v9015_v21 = vrot.slane %v9008_v59, %v17740_v33  ;;  %v9036_v5 = vrot.slane %v5290_v31, %v17740_v33 }
 0x34d   : > { %v8987_v49 = vrot.slane %v8980_v4, %v17740_v33  ;;  %v9029_v62 = vrot.slane %v9022_v29, %v17740_v33  ;;  %v9501_v16 = vunpack.c.l.b16 %v8959_v2  ;;  %v9502_v30 = vunpack.c.l.b16 %v8973_v35 }
 0x34e   : > { %v9504_v3 = vunpack.c.l.b16 %v9001_v7  ;;  %v3108_v40 = vcombine.high %v19715_v44, %v19715_v44  ;;  %v9043_v12 = vrot.slane %v9036_v5, %v17740_v33  ;;  %v9505_v55 = vunpack.c.l.b16 %v9015_v21 }
 0x34f   : > { %v9503_v28 = vunpack.c.l.b16 %v8987_v49  ;;  %v9506_v38 = vunpack.c.l.b16 %v9029_v62  ;;  %v9937_v11 = vrot.slane %v9501_v16, 7  ;;  %v9939_v52 = vrot.slane %v9502_v30, 6 }
 0x350   : > { %v9943_v50 = vrot.slane %v9504_v3, 4  ;;  %v3109_v13 = vcombine.high %v19723_v23, %v19723_v23  ;;  %v9507_v9 = vunpack.c.l.b16 %v9043_v12  ;;  %v9945_v45 = vrot.slane %v9505_v55, 3 }
 0x351   : > { %v9941_v46 = vrot.slane %v9503_v28, 5  ;;  %v9947_v22 = vrot.slane %v9506_v38, 2  ;;  %v9938_v39 = vsel %vm9525_vm1, %v9937_v11, %v9500_v27  ;;  %v3110_v19 = vcombine.high %v19726_v24, %v19726_v24 }
 0x352   : > { %v3111_v0 = vcombine.high %v19730_v8, %v19730_v8  ;;  %v4636_v57 = vshrl.u32 %v19715_v44, 16  ;;  %v9940_v37 = vsel %vm9528_vm2, %v9939_v52, %v9938_v39  ;;  %v9949_v61 = vrot.slane %v9507_v9, 1 }
 0x353   : > { %v4641_v31 = vshrl.u32 %v19726_v24, 16  ;;  %v4646_v4 = vshrl.u32 %v3108_v40, 16  ;;  %v9942_v59 = vsel %vm9531_vm3, %v9941_v46, %v9940_v37  ;;  %v4651_v29 = vshrl.u32 %v3110_v19, 16 }
 0x354   : > { %v4656_v2 = vshrl.u32 %v19723_v23, 16  ;;  %v4661_v35 = vshrl.u32 %v19730_v8, 16  ;;  %v9944_v7 = vsel %vm9534_vm4, %v9943_v50, %v9942_v59  ;;  %v4666_v27 = vshrl.u32 %v3109_v13, 16 }
 0x355   : > { %v4671_v49 = vshrl.u32 %v3111_v0, 16  ;;  %v5275_v21 = vmax.bf16 %v4636_v57, %v19715_v44  ;;  %v9946_v62 = vsel %vm9537_vm5, %v9945_v45, %v9944_v7  ;;  %v5276_v5 = vmax.bf16 %v4641_v31, %v19726_v24 }
 0x356   : > { %v5277_v16 = vmax.bf16 %v4646_v4, %v3108_v40  ;;  %v5278_v30 = vmax.bf16 %v4651_v29, %v3110_v19  ;;  %v9948_v3 = vsel %vm9540_vm6, %v9947_v22, %v9946_v62  ;;  %v5279_v12 = vmax.bf16 %v4656_v2, %v19723_v23 }
 0x357   : > { %v5280_v28 = vmax.bf16 %v4661_v35, %v19730_v8  ;;  %v5281_v55 = vmax.bf16 %v4666_v27, %v3109_v13  ;;  %v19775_v38 = vsel %vm9543_vm7, %v9949_v61, %v9948_v3  ;;  %v5282_v11 = vmax.bf16 %v4671_v49, %v3111_v0  ;;  %v10716_v49 = vld [vmem:[#allocation2 + $0x160] sm:$0x1] }
 0x358   : > { %v8826_v52 = vrot.slane %v5275_v21, %v17740_v33  ;;  %v8840_v44 = vrot.slane %v5276_v5, %v17740_v33  ;;  %v8854_v50 = vrot.slane %v5277_v16, %v17740_v33  ;;  %v8868_v24 = vrot.slane %v5278_v30, %v17740_v33 }
 0x359   : > { %v8882_v40 = vrot.slane %v5279_v12, %v17740_v33  ;;  %v8896_v9 = vrot.slane %v5280_v28, %v17740_v33  ;;  %v8910_v13 = vrot.slane %v5281_v55, %v17740_v33  ;;  %v8924_v46 = vrot.slane %v5282_v11, %v17740_v33 }
 0x35a   : > { %v8833_v23 = vrot.slane %v8826_v52, %v17740_v33  ;;  %v8847_v8 = vrot.slane %v8840_v44, %v17740_v33  ;;  %v8861_v45 = vrot.slane %v8854_v50, %v17740_v33  ;;  %v8875_v22 = vrot.slane %v8868_v24, %v17740_v33 }
 0x35b   : > { %v8889_v39 = vrot.slane %v8882_v40, %v17740_v33  ;;  %v8903_v19 = vrot.slane %v8896_v9, %v17740_v33  ;;  %v8917_v0 = vrot.slane %v8910_v13, %v17740_v33  ;;  %v8931_v57 = vrot.slane %v8924_v46, %v17740_v33 }
 0x35c   : > { %v9492_v37 = vunpack.c.l.b16 %v8833_v23  ;;  %v9493_v61 = vunpack.c.l.b16 %v8847_v8  ;;  %v9494_v31 = vunpack.c.l.b16 %v8861_v45  ;;  %v9495_v4 = vunpack.c.l.b16 %v8875_v22  ;;  %v5419_v23 = vld [vmem:[#allocation2 + $0x178] sm:$0x1]  ;;  %v19827_v8 = vld [vmem:[#allocation2 + $0x20] sm:$0xff] }
 0x35d   : > { %v9496_v59 = vunpack.c.l.b16 %v8889_v39  ;;  %v9497_v29 = vunpack.c.l.b16 %v8903_v19  ;;  %v9498_v2 = vunpack.c.l.b16 %v8917_v0  ;;  %v9499_v35 = vunpack.c.l.b16 %v8931_v57 }
 0x35e   : > { %v9923_v7 = vrot.slane %v9493_v61, 7  ;;  %v10875_v27 = vsel %vm10719_vm11, %v19665_v6, %v19717_v51  ;;  %v9925_v21 = vrot.slane %v9494_v31, 6  ;;  %v9927_v62 = vrot.slane %v9495_v4, 5  ;;  %v5326_v31 = vld [vmem:[#allocation2 + $0x48] sm:$0x80] }
 0x35f   : > { %v9929_v5 = vrot.slane %v9496_v59, 4  ;;  %v9931_v16 = vrot.slane %v9497_v29, 3  ;;  %16925 = vmatprep.mubr.msk.bf16.mxu1 %vm697_vm0, %v10875_v27  ;;  %v9933_v3 = vrot.slane %v9498_v2, 2  ;;  %v9935_v12 = vrot.slane %v9499_v35, 1  ;;  %v21293_v27 = vld [vmem:[#allocation4_spill] sm:$0xff] }
 0x360   : > { %v9924_v30 = vsel %vm9525_vm1, %v9923_v7, %v9492_v37  ;;  %v10886_v28 = vrot.slane %v10884_v25, 1  ;;  %v10233_v11 = vshrl.u32 %v19732_v26, 16  ;;  %v10236_v6 = vshll.u32 %v19732_v26, 16  ;;  %v21292_v7 = vld [vmem:[#allocation5_spill] sm:$0xff] }
 0x361   : > { %v9926_v55 = vsel %vm9528_vm2, %v9925_v21, %v9924_v30  ;;  %v10896_v51 = vshll.u32 %v10716_v49, 16  ;;  %v1624_v50 = vpack.c.bf16 %v1558_v43, %v1557_v54  ;;  %v1623_v58 = vpack.c.bf16 %v1556_v1, %v1555_v53  ;;  %v5329_v30 = vld [vmem:[#allocation2 + $0x60] sm:$0x80] }
 0x362   : > { %v9928_v52 = vsel %vm9531_vm3, %v9927_v62, %v9926_v55  ;;  %v10887_v44 = vsel %vm10719_vm11, %v19677_v20, %v10886_v28  ;;  %v10235_v26 = vrot.slane %v10233_v11, 7  ;;  %v10893_v24 = vrot.slane %v10236_v6, 1  ;;  %v17514_v62 = vld [vmem:[#allocation2 + $0x50] sm:$0xff]  ;;  %v19868_v55 = vld [vmem:[#allocation2 + $0x68] sm:$0xff] }
 0x363   : > { %v9930_v25 = vsel %vm9534_vm4, %v9929_v5, %v9928_v52  ;;  %16926 = vmatmul.mubr.msk.bf16.gmra.mrb[8].mxu1 %vm697_vm0, %v10887_v44  ;;  %v10898_v40 = vrot.slane %v10896_v51, 1  ;;  %v1561_v20 = vmax.f32 %v19701_v48, 0.0  ;;  %v1421_v36 = vadd.f32 %v17513_v34, %v19401_v42  ;;  %v5323_v48 = vld [vmem:[#allocation2 + $0x30] sm:$0x80]  ;;  %v5317_v42 = vld [vmem:[#allocation2] sm:$0x80] }
 0x364   : > { %v9932_v9 = vsel %vm9537_vm5, %v9931_v16, %v9930_v25  ;;  %v1432_v54 = vadd.f32 %v17513_v34, %v19409_v47  ;;  %v19824_v53 = vor.u32 %v10236_v6, %v10235_v26  ;;  %v10894_v43 = vor.u32 %v10893_v24, %v10233_v11  ;;  %v19872_v52 = vld [vmem:[#allocation2 + $0x50] sm:$0xff] }
 0x365   : > { %v9934_v14 = vsel %vm9540_vm6, %v9933_v3, %v9932_v9  ;;  %v1424_v1 = vadd.f32 %v17513_v34, %v19469_v15  ;;  %v1559_v46 = vmax.f32 %v1421_v36, 0.0  ;;  %v21288_v19 = vshrl.u32 %v18933_v63, 16 }
 0x366   : > { %v9936_v13 = vsel %vm9543_vm7, %v9935_v12, %v9934_v14  ;;  %v1562_v45 = vmax.f32 %v1432_v54, 0.0  ;;  %v10899_v22 = vsel %vm10719_vm11, %v10894_v43, %v10898_v40  ;;  %v5420_v37 = vsel %vm19037_vm10, 0, %v5419_v23 }
 0x367   : > { %v9993_v47 = vpack.c.b16 %v19775_v38, %v9936_v13  ;;  %v1560_v39 = vmax.f32 %v1424_v1, 0.0  ;;  %v10103_v0 = vrot.slane %v21288_v19, 7  ;;  %16929 = vmatprep.mubr.msk.bf16.mxu1 %vm697_vm0, %v10899_v22  ;;  %v11207_v61 = vshrl.u32 %v19827_v8, 16  ;;  %v19842_v38 = vld [vmem:[#allocation2 + $0x38] sm:$0xff]  ;;  %5421 = vst [vmem:[#allocation2 + $0x178] sm:$0x1] %v5420_v37 }
 0x368   : > { %v1626_v15 = vpack.c.bf16 %v1562_v45, %v1561_v20  ;;  %v5318_v63 = vsel %vm19835_vm14, 0, %v5317_v42  ;;  %v5321_v59 = vsel %vm19835_vm14, 0, %v5320_v10  ;;  %v5324_v29 = vsel %vm19835_vm14, 0, %v5323_v48 }
 0x369   : > { %10026 = vst.msk [vmem:[#allocation2 + $0x170] sm:$0xff] %vm697_vm0, %v9993_v47  ;;  %v1625_v4 = vpack.c.bf16 %v1560_v39, %v1559_v46  ;;  %v21291_v2 = vshll.u32 %v18589_v41, 16  ;;  %v21294_v49 = vshll.u32 %v21293_v27, 16  ;;  %v10104_v5 = vshll.u32 %v17514_v62, 16  ;;  %5319 = vst [vmem:[#allocation2] sm:$0x80] %v5318_v63 }
 0x36a   : > { %v1658_v16 = vmax.bf16 %v1626_v15, %v1624_v50  ;;  %5322 = vst [vmem:[#allocation2 + $0x18] sm:$0x80] %v5321_v59  ;;  %5325 = vst [vmem:[#allocation2 + $0x30] sm:$0x80] %v5324_v29  ;;  %v11209_v12 = vrot.slane %v11207_v61, 7  ;;  %v21241_v41 = vshrl.u32 %v19842_v38, 16 }
 0x36b   : > { %v19854_v35 = vor.u32 %v21291_v2, %v18673_v56  ;;  %v19859_v21 = vor.u32 %v21294_v49, %v21292_v7  ;;  %v1657_v3 = vmax.bf16 %v1625_v4, %v1623_v58  ;;  %v5327_v56 = vsel %vm19835_vm14, 0, %v5326_v31 }
 0x36c   : > { %v19866_v28 = vor.u32 %v10104_v5, %v10103_v0  ;;  %v10113_v11 = vshrl.u32 %v19868_v55, 16  ;;  %v3210_v6 = vcombine.high %v1658_v16, %v1658_v16  ;;  %v3217_v51 = vrot.slane %v1658_v16, %v17740_v33  ;;  %5328 = vst [vmem:[#allocation2 + $0x48] sm:$0x80] %v5327_v56 }
 0x36d   : > { %v3161_v44 = vcombine.high %v1657_v3, %v1657_v3  ;;  %v19875_v50 = vrot.slane %v1657_v3, %v17740_v33  ;;  %v11210_v58 = vshll.u32 %v19827_v8, 16  ;;  %v5330_v25 = vsel %vm19835_vm14, 0, %v5329_v30 }
 0x36e   : > { %v3224_v26 = vrot.slane %v3210_v6, %v17740_v33  ;;  %v3225_v24 = vcombine.high %v3217_v51, %v3217_v51  ;;  %v3233_v40 = vrot.slane %v3217_v51, %v17740_v33  ;;  %v11222_v9 = vshll.u32 %v19842_v38, 16  ;;  %5331 = vst [vmem:[#allocation2 + $0x60] sm:$0x80] %v5330_v25 }
 0x36f   : > { %v19884_v20 = vrot.slane %v3161_v44, %v17740_v33  ;;  %v19888_v34 = vor.u32 %v11210_v58, %v11209_v12  ;;  %v19892_v36 = vrot.slane %v21241_v41, 7  ;;  %v21237_v54 = vshrl.u32 %v19872_v52, 16 }
 0x370   : > { %v3226_v10 = vcombine.high %v3224_v26, %v3224_v26  ;;  %v3240_v14 = vrot.slane %v3224_v26, %v17740_v33  ;;  %v3247_v43 = vrot.slane %v3225_v24, %v17740_v33  ;;  %v3255_v1 = vcombine.high %v3233_v40, %v3233_v40  ;;  %v19897_v23 = vld [vmem:[#allocation2 + $0x170] sm:$0xff] }
 0x371   : > { %v4756_v48 = vshrl.u32 %v3233_v40, 16  ;;  %v10245_v13 = vshrl.u32 %v19897_v23, 16  ;;  %16858 = vmatmul.mubr.msk.bf16.gmra.mrb[156].mxu0 %vm697_vm0, %v19897_v23  ;;  %v3176_v46 = vcombine.high %v19875_v50, %v19875_v50  ;;  %v19906_v45 = vrot.slane %v19875_v50, %v17740_v33 }
 0x372   : > { %v3254_v42 = vrot.slane %v3226_v10, %v17740_v33  ;;  %v3256_v47 = vcombine.high %v3240_v14, %v3240_v14  ;;  %v3257_v22 = vcombine.high %v3247_v43, %v3247_v43  ;;  %v4761_v39 = vshrl.u32 %v3247_v43, 16 }
 0x373   : > { %v4766_v19 = vshrl.u32 %v3255_v1, 16  ;;  %v4776_v0 = vshrl.u32 %v3240_v14, 16  ;;  %v5299_v15 = vmax.bf16 %v4756_v48, %v3233_v40  ;;  %v10248_v37 = vshll.u32 %v19897_v23, 16 }
 0x374   : > { %v3258_v31 = vcombine.high %v3254_v42, %v3254_v42  ;;  %v4771_v4 = vshrl.u32 %v3257_v22, 16  ;;  %v4781_v63 = vshrl.u32 %v3254_v42, 16  ;;  %v4786_v59 = vshrl.u32 %v3256_v47, 16 }
 0x375   : > { %v5300_v29 = vmax.bf16 %v4761_v39, %v3247_v43  ;;  %v5301_v2 = vmax.bf16 %v4766_v19, %v3255_v1  ;;  %v5303_v7 = vmax.bf16 %v4776_v0, %v3240_v14  ;;  %v9162_v27 = vrot.slane %v5299_v15, %v17740_v33 }
 0x376   : > { %v4791_v49 = vshrl.u32 %v3258_v31, 16  ;;  %v5302_v62 = vmax.bf16 %v4771_v4, %v3257_v22  ;;  %v5304_v5 = vmax.bf16 %v4781_v63, %v3254_v42  ;;  %v5305_v16 = vmax.bf16 %v4786_v59, %v3256_v47 }
 0x377   : > { %v9169_v30 = vrot.slane %v9162_v27, %v17740_v33  ;;  %v9176_v3 = vrot.slane %v5300_v29, %v17740_v33  ;;  %v9190_v12 = vrot.slane %v5301_v2, %v17740_v33  ;;  %v9218_v56 = vrot.slane %v5303_v7, %v17740_v33 }
 0x378   : > { %v5306_v6 = vmax.bf16 %v4791_v49, %v3258_v31  ;;  %v9204_v51 = vrot.slane %v5302_v62, %v17740_v33  ;;  %v9232_v44 = vrot.slane %v5304_v5, %v17740_v33  ;;  %v9246_v50 = vrot.slane %v5305_v16, %v17740_v33 }
 0x379   : > { %v9183_v25 = vrot.slane %v9176_v3, %v17740_v33  ;;  %v9197_v26 = vrot.slane %v9190_v12, %v17740_v33  ;;  %v9225_v24 = vrot.slane %v9218_v56, %v17740_v33  ;;  %v3177_v40 = vcombine.high %v19884_v20, %v19884_v20 }
 0x37a   : > { %v9211_v10 = vrot.slane %v9204_v51, %v17740_v33  ;;  %v9239_v14 = vrot.slane %v9232_v44, %v17740_v33  ;;  %v9253_v43 = vrot.slane %v9246_v50, %v17740_v33  ;;  %v9260_v1 = vrot.slane %v5306_v6, %v17740_v33 }
 0x37b   : > { %v9516_v48 = vunpack.c.l.b16 %v9169_v30  ;;  %v9517_v42 = vunpack.c.l.b16 %v9183_v25  ;;  %v9518_v47 = vunpack.c.l.b16 %v9197_v26  ;;  %v9520_v22 = vunpack.c.l.b16 %v9225_v24 }
 0x37c   : > { %v9267_v39 = vrot.slane %v9260_v1, %v17740_v33  ;;  %v9519_v19 = vunpack.c.l.b16 %v9211_v10  ;;  %v9521_v0 = vunpack.c.l.b16 %v9239_v14  ;;  %v9522_v15 = vunpack.c.l.b16 %v9253_v43 }
 0x37d   : > { %v9965_v31 = vrot.slane %v9517_v42, 7  ;;  %v9967_v4 = vrot.slane %v9518_v47, 6  ;;  %v9971_v63 = vrot.slane %v9520_v22, 4  ;;  %v3191_v59 = vrot.slane %v19884_v20, %v17740_v33 }
 0x37e   : > { %v9523_v29 = vunpack.c.l.b16 %v9267_v39  ;;  %v9969_v2 = vrot.slane %v9519_v19, 5  ;;  %v9973_v7 = vrot.slane %v9521_v0, 3  ;;  %v9975_v27 = vrot.slane %v9522_v15, 2 }
 0x37f   : > { %v9966_v49 = vsel %vm9525_vm1, %v9965_v31, %v9516_v48  ;;  %v3198_v62 = vrot.slane %v3176_v46, %v17740_v33  ;;  %v3205_v5 = vrot.slane %v3177_v40, %v17740_v33  ;;  %v3206_v16 = vcombine.high %v19906_v45, %v19906_v45 }
 0x380   : > { %v9968_v30 = vsel %vm9528_vm2, %v9967_v4, %v9966_v49  ;;  %v9977_v3 = vrot.slane %v9523_v29, 1  ;;  %v3207_v12 = vcombine.high %v3191_v59, %v3191_v59  ;;  %v4716_v56 = vshrl.u32 %v19906_v45, 16 }
 0x381   : > { %v9970_v20 = vsel %vm9531_vm3, %v9969_v2, %v9968_v30  ;;  %v3208_v6 = vcombine.high %v3198_v62, %v3198_v62  ;;  %v3209_v51 = vcombine.high %v3205_v5, %v3205_v5  ;;  %v4721_v44 = vshrl.u32 %v3198_v62, 16 }
 0x382   : > { %v9972_v50 = vsel %vm9534_vm4, %v9971_v63, %v9970_v20  ;;  %v4726_v25 = vshrl.u32 %v3206_v16, 16  ;;  %v4736_v46 = vshrl.u32 %v3191_v59, 16  ;;  %v4741_v26 = vshrl.u32 %v3205_v5, 16 }
 0x383   : > { %v9974_v24 = vsel %vm9537_vm5, %v9973_v7, %v9972_v50  ;;  %v4731_v40 = vshrl.u32 %v3208_v6, 16  ;;  %v4746_v10 = vshrl.u32 %v3207_v12, 16  ;;  %v4751_v14 = vshrl.u32 %v3209_v51, 16 }
 0x384   : > { %v9976_v43 = vsel %vm9540_vm6, %v9975_v27, %v9974_v24  ;;  %v5291_v1 = vmax.bf16 %v4716_v56, %v19906_v45  ;;  %v5292_v48 = vmax.bf16 %v4721_v44, %v3198_v62  ;;  %v5293_v42 = vmax.bf16 %v4726_v25, %v3206_v16 }
 0x385   : > { %v19943_v47 = vsel %vm9543_vm7, %v9977_v3, %v9976_v43  ;;  %v5294_v22 = vmax.bf16 %v4731_v40, %v3208_v6  ;;  %v5295_v39 = vmax.bf16 %v4736_v46, %v3191_v59  ;;  %v5296_v19 = vmax.bf16 %v4741_v26, %v3205_v5  ;;  %v10028_v3 = vld [vmem:[#allocation2] sm:$0x80]  ;;  %v10718_v46 = vld [vmem:[#allocation2 + $0x178] sm:$0x1]  ;;  %v11170_v43 = vld [vmem:[#allocation2 + $0x18] sm:$0x80] }
 0x386   : > { %v5297_v0 = vmax.bf16 %v4746_v10, %v3207_v12  ;;  %v5298_v15 = vmax.bf16 %v4751_v14, %v3209_v51  ;;  %v9050_v31 = vrot.slane %v5291_v1, %v17740_v33  ;;  %v9064_v4 = vrot.slane %v5292_v48, %v17740_v33  ;;  %v10030_v14 = vld [vmem:[#allocation2 + $0x18] sm:$0x80] }
 0x387   : > { %v9078_v63 = vrot.slane %v5293_v42, %v17740_v33  ;;  %v9092_v29 = vrot.slane %v5294_v22, %v17740_v33  ;;  %v9106_v45 = vrot.slane %v5295_v39, %v17740_v33  ;;  %v9120_v2 = vrot.slane %v5296_v19, %v17740_v33  ;;  %v10032_v39 = vld [vmem:[#allocation2 + $0x30] sm:$0x80] }
 0x388   : > { %v9057_v7 = vrot.slane %v9050_v31, %v17740_v33  ;;  %v9071_v27 = vrot.slane %v9064_v4, %v17740_v33  ;;  %v9134_v59 = vrot.slane %v5297_v0, %v17740_v33  ;;  %v9148_v49 = vrot.slane %v5298_v15, %v17740_v33 }
 0x389   : > { %v9085_v62 = vrot.slane %v9078_v63, %v17740_v33  ;;  %v9099_v5 = vrot.slane %v9092_v29, %v17740_v33  ;;  %v9113_v16 = vrot.slane %v9106_v45, %v17740_v33  ;;  %v9127_v30 = vrot.slane %v9120_v2, %v17740_v33  ;;  %v11172_v2 = vld [vmem:[#allocation2 + $0x30] sm:$0x80] }
 0x38a   : > { %v9141_v12 = vrot.slane %v9134_v59, %v17740_v33  ;;  %v9155_v56 = vrot.slane %v9148_v49, %v17740_v33  ;;  %v9508_v20 = vunpack.c.l.b16 %v9057_v7  ;;  %v9509_v6 = vunpack.c.l.b16 %v9071_v27  ;;  %v21295_v27 = vld [vmem:[#allocation8_spill] sm:$0xff] }
 0x38b   : > { %v9510_v51 = vunpack.c.l.b16 %v9085_v62  ;;  %v9511_v44 = vunpack.c.l.b16 %v9099_v5  ;;  %v9512_v50 = vunpack.c.l.b16 %v9113_v16  ;;  %v9513_v25 = vunpack.c.l.b16 %v9127_v30  ;;  %v10034_v5 = vld [vmem:[#allocation2 + $0x48] sm:$0x80] }
 0x38c   : > { %v9514_v26 = vunpack.c.l.b16 %v9141_v12  ;;  %v9515_v24 = vunpack.c.l.b16 %v9155_v56  ;;  %v9951_v40 = vrot.slane %v9509_v6, 7  ;;  %v10061_v10 = vshrl.u32 %v10028_v3, 16  ;;  %v11174_v56 = vld [vmem:[#allocation2 + $0x48] sm:$0x80] }
 0x38d   : > { %v9953_v1 = vrot.slane %v9510_v51, 6  ;;  %v9955_v48 = vrot.slane %v9511_v44, 5  ;;  %v9957_v42 = vrot.slane %v9512_v50, 4  ;;  %v9959_v22 = vrot.slane %v9513_v25, 3  ;;  %v10036_v50 = vld [vmem:[#allocation2 + $0x60] sm:$0x80] }
 0x38e   : > { %v9952_v19 = vsel %vm9525_vm1, %v9951_v40, %v9508_v20  ;;  %v9961_v0 = vrot.slane %v9514_v26, 2  ;;  %v9963_v15 = vrot.slane %v9515_v24, 1  ;;  %v10063_v31 = vrot.slane %v10061_v10, 7 }
 0x38f   : > { %v9954_v4 = vsel %vm9528_vm2, %v9953_v1, %v9952_v19  ;;  %v10905_v63 = vrot.slane %v10248_v37, 1  ;;  %v10908_v29 = vshll.u32 %v10718_v46, 16  ;;  %v10073_v45 = vshrl.u32 %v10030_v14, 16  ;;  %v19986_v1 = vld [vmem:[#allocation2 + $0x68] sm:$0xff] }
 0x390   : > { %v9956_v7 = vsel %vm9531_vm3, %v9955_v48, %v9954_v4  ;;  %v10071_v59 = vsel %vm5372_vm9, %v10063_v31, %v21295_v27  ;;  %v11203_v49 = vshrl.u32 %v11170_v43, 16  ;;  %v10085_v62 = vshrl.u32 %v10032_v39, 16  ;;  %v5332_v48 = vld [vmem:[#allocation2 + $0x78] sm:$0x80]  ;;  %v19993_v39 = vld [vmem:[#allocation2 + $0x80] sm:$0xff] }
 0x391   : > { %v9958_v16 = vsel %vm9534_vm4, %v9957_v42, %v9956_v7  ;;  %16865 = vmatprep.mubr.msk.bf16.mxu0 %vm697_vm0, %v10071_v59  ;;  %v10906_v30 = vor.u32 %v10905_v63, %v10245_v13  ;;  %v10910_v3 = vrot.slane %v10908_v29, 1  ;;  %v10075_v12 = vrot.slane %v10073_v45, 7  ;;  %v17517_v31 = vld [vmem:[%s21228_s3 + $0x20] sm:$0xff]  }
 0x392   : > { %v9960_v20 = vsel %vm9537_vm5, %v9959_v22, %v9958_v16  ;;  %v11205_v6 = vrot.slane %v11203_v49, 7  ;;  %v10087_v51 = vrot.slane %v10085_v62, 7  ;;  %v11215_v44 = vshrl.u32 %v11172_v2, 16  ;;  %v5338_v2 = vld [vmem:[#allocation2 + $0xa8] sm:$0x80] }
 0x393   : > { %v9962_v25 = vsel %vm9540_vm6, %v9961_v0, %v9960_v20  ;;  %v10911_v46 = vsel %vm10719_vm11, %v10906_v30, %v10910_v3  ;;  %v10083_v26 = vsel %vm5372_vm9, %v10075_v12, %v19854_v35  ;;  %v10097_v24 = vshrl.u32 %v10034_v5, 16  ;;  %v11176_v59 = vld [vmem:[#allocation2 + $0x60] sm:$0x80]  ;;  %v17519_v5 = vld [vmem:[#allocation2 + $0x98] sm:$0xff] }
 0x394   : > { %v9964_v40 = vsel %vm9543_vm7, %v9963_v15, %v9962_v25  ;;  %16930 = vmatmul.mubr.msk.bf16.gmra.mrb[12].mxu1 %vm697_vm0, %v10911_v46  ;;  %16866 = vmatmul.mubr.msk.bf16.vlgmr.msra.gmra.mrb[128].mxu0 %vm697_vm0, %v10083_v26  ;;  %v11213_v10 = vsel %vm5372_vm9, %v11205_v6, %v19888_v34  ;;  %v10095_v14 = vsel %vm5372_vm9, %v10087_v51, %v19859_v21  ;;  %v11233_v43 = vrot.slane %v21237_v54, 7  ;;  %v19995_v21 = vld [vmem:[#allocation2 + $0x80] sm:$0xff]  ;;  %v5344_v51 = vld [vmem:[#allocation2 + $0xd8] sm:$0x80] }
 0x395   : > { %v10115_v35 = vrot.slane %v10113_v11, 7  ;;  %v9994_v42 = vpack.c.b16 %v19943_v47, %v9964_v40  ;;  %16937 = vmatprep.mubr.msk.bf16.mxu1 %vm697_vm0, %v11213_v10  ;;  %16869 = vmatprep.mubr.msk.bf16.mxu0 %vm697_vm0, %v10095_v14  ;;  %v11227_v22 = vshrl.u32 %v11174_v56, 16  ;;  %v10109_v34 = vshrl.u32 %v10036_v50, 16  ;;  %v5335_v47 = vld [vmem:[#allocation2 + $0x90] sm:$0x80]  ;;  %v20029_v26 = vld [vmem:[#allocation2 + $0x98] sm:$0xff] }
 0x396   : > { %v10125_v19 = vshrl.u32 %v19995_v21, 16  ;;  %v11217_v0 = vrot.slane %v11215_v44, 7  ;;  %v11224_v15 = vor.u32 %v11222_v9, %v19892_v36  ;;  %v21238_v11 = vshll.u32 %v19872_v52, 16  ;;  %16898 = vmatpush3.bf16.msra.mxu0 %v17517_v31  ;;  %v17518_v36 = vld [vmem:[%s21228_s3 + $0x28] sm:$0xff]   ;;  %v5341_v49 = vld [vmem:[#allocation2 + $0xc0] sm:$0x80] }
 0x397   : > { %v10116_v4 = vshll.u32 %v19868_v55, 16  ;;  %10027 = vst.msk [vmem:[#allocation2 + $0x188] sm:$0xff] %vm697_vm0, %v9994_v42  ;;  %v10099_v63 = vrot.slane %v10097_v24, 7  ;;  %v11243_v29 = vshrl.u32 %v19986_v1, 16  ;;  %v5333_v45 = vsel %vm19835_vm14, 0, %v5332_v48  ;;  %16899 = vmatprep.subr.bf16.mxu0 %v17518_v36  ;;  %v17495_v44 = vld [vmem:[%s21228_s3 + $0x48] sm:$0xff]  }
 0x398   : > { %v11229_v7 = vrot.slane %v11227_v22, 7  ;;  %v11236_v27 = vor.u32 %v21238_v11, %v11233_v43  ;;  %5334 = vst [vmem:[#allocation2 + $0x78] sm:$0x80] %v5333_v45  ;;  %v11255_v55 = vshrl.u32 %v19993_v39, 16  ;;  %v10137_v16 = vshrl.u32 %v17519_v5, 16  ;;  %v20033_v14 = vld [vmem:[#allocation2 + $0xb0] sm:$0xff] }
 0x399   : > { %v10118_v62 = vor.u32 %v10116_v4, %v10115_v35  ;;  %v10111_v30 = vrot.slane %v10109_v34, 7  ;;  %v5336_v3 = vsel %vm19835_vm14, 0, %v5335_v47  ;;  %v10127_v12 = vrot.slane %v10125_v19, 7  ;;  %v5347_v40 = vld [vmem:[#allocation2 + $0xf0] sm:$0x80]  ;;  %v17521_v22 = vld [vmem:[%s21228_s3 + $0x40] sm:$0xff]  }
 0x39a   : > { %v10128_v56 = vshll.u32 %v19995_v21, 16  ;;  %v11225_v20 = vsel %vm5372_vm9, %v11217_v0, %v11224_v15  ;;  %5337 = vst [vmem:[#allocation2 + $0x90] sm:$0x80] %v5336_v3  ;;  %v5339_v6 = vsel %vm19835_vm14, 0, %v5338_v2  ;;  %16900 = vmatpush3.bf16.msra.mxu0 %v17518_v36  ;;  %v10107_v50 = vsel %vm5372_vm9, %v10099_v63, %v19866_v28  ;;  %v20041_v35 = vld [vmem:[#allocation2 + $0xb0] sm:$0xff] }
 0x39b   : > { %v11239_v25 = vshrl.u32 %v11176_v59, 16  ;;  %v11245_v46 = vrot.slane %v11243_v29, 7  ;;  %5340 = vst [vmem:[#allocation2 + $0xa8] sm:$0x80] %v5339_v6  ;;  %v5342_v24 = vsel %vm19835_vm14, 0, %v5341_v49  ;;  %v10140_v10 = vshll.u32 %v17519_v5, 16 }
 0x39c   : > { %v10149_v43 = vshrl.u32 %v20033_v14, 16  ;;  %16938 = vmatmul.mubr.msk.bf16.vlgmr.msra.gmra.mrb[16].mxu1 %vm697_vm0, %v11225_v20  ;;  %16870 = vmatmul.mubr.msk.bf16.gmra.mrb[132].mxu0 %vm697_vm0, %v10107_v50  ;;  %v11237_v28 = vsel %vm5372_vm9, %v11229_v7, %v11236_v27  ;;  %v11257_v48 = vrot.slane %v11255_v55, 7  ;;  %5343 = vst [vmem:[#allocation2 + $0xc0] sm:$0x80] %v5342_v24  ;;  %v10139_v42 = vrot.slane %v10137_v16, 7  ;;  %v20059_v4 = vld [vmem:[%s21228_s3 + $0x50] sm:$0xff]  }
 0x39d   : > { %16970 = vmatpush3.bf16.msra.mxu1 %v17521_v22  ;;  %16941 = vmatprep.mubr.msk.bf16.mxu1 %vm697_vm0, %v11237_v28  ;;  %v10119_v34 = vsel %vm5372_vm9, %v10111_v30, %v10118_v62  ;;  %v11246_v21 = vshll.u32 %v19986_v1, 16  ;;  %v5345_v19 = vsel %vm19835_vm14, 0, %v5344_v51  ;;  %v11258_v0 = vshll.u32 %v19993_v39, 16  ;;  %v5350_v31 = vld [vmem:[#allocation2 + $0x108] sm:$0x80]  ;;  %v20079_v22 = vld [vmem:[#allocation2 + $0xe0] sm:$0xff] }
 0x39e   : > { %16873 = vmatprep.mubr.msk.bf16.mxu0 %vm697_vm0, %v10119_v34  ;;  %v11267_v15 = vshrl.u32 %v20029_v26, 16  ;;  %5346 = vst [vmem:[#allocation2 + $0xd8] sm:$0x80] %v5345_v19  ;;  %v5348_v47 = vsel %vm19835_vm14, 0, %v5347_v40  ;;  %16971 = vmatprep.subr.bf16.mxu1 %v17495_v44  ;;  %v10130_v63 = vor.u32 %v10128_v56, %v10127_v12  ;;  %v11241_v45 = vrot.slane %v11239_v25, 7  ;;  %v20066_v20 = vld [vmem:[#allocation2 + $0xc8] sm:$0xff] }
 0x39f   : > { %v11248_v2 = vor.u32 %v11246_v21, %v11245_v46  ;;  %v10038_v36 = vld [vmem:[#allocation2 + $0x78] sm:$0x80]  ;;  %v11279_v27 = vshrl.u32 %v20041_v35, 16  ;;  %5349 = vst [vmem:[#allocation2 + $0xf0] sm:$0x80] %v5348_v47  ;;  %v10151_v59 = vrot.slane %v10149_v43, 7  ;;  %v11260_v5 = vor.u32 %v11258_v0, %v11257_v48 }
 0x3a0   : > { %v11178_v7 = vld [vmem:[#allocation2 + $0x78] sm:$0x80]  ;;  %v10121_v49 = vshrl.u32 %v10038_v36, 16  ;;  %v10142_v16 = vor.u32 %v10140_v10, %v10139_v42  ;;  %v5351_v12 = vsel %vm19835_vm14, 0, %v5350_v31  ;;  %v11269_v50 = vrot.slane %v11267_v15, 7 }
 0x3a1   : > { %v11251_v62 = vshrl.u32 %v11178_v7, 16  ;;  %v10040_v30 = vld [vmem:[#allocation2 + $0x90] sm:$0x80]  ;;  %16972 = vmatpush3.bf16.msra.mxu1 %v17495_v44  ;;  %5352 = vst [vmem:[#allocation2 + $0x108] sm:$0x80] %v5351_v12  ;;  %v11249_v46 = vsel %vm5372_vm9, %v11241_v45, %v11248_v2  ;;  %v11281_v44 = vrot.slane %v11279_v27, 7 }
 0x3a2   : > { %v11180_v3 = vld [vmem:[#allocation2 + $0x90] sm:$0x80]  ;;  %v10123_v56 = vrot.slane %v10121_v49, 7  ;;  %v10133_v51 = vshrl.u32 %v10040_v30, 16  ;;  %v10042_v25 = vld [vmem:[#allocation2 + $0xa8] sm:$0x80]  ;;  %17005 = vmatprep.subr.bf16.mxu1 %v20059_v4 }
 0x3a3   : > { %v11253_v6 = vrot.slane %v11251_v62, 7  ;;  %v11263_v24 = vshrl.u32 %v11180_v3, 16  ;;  %v11182_v40 = vld [vmem:[#allocation2 + $0xa8] sm:$0x80]  ;;  %v10044_v10 = vld [vmem:[#allocation2 + $0xc0] sm:$0x80] }
 0x3a4   : > { %16942 = vmatmul.mubr.msk.bf16.gmra.mrb[20].mxu1 %vm697_vm0, %v11249_v46  ;;  %v10131_v43 = vsel %vm5372_vm9, %v10123_v56, %v10130_v63  ;;  %v10135_v48 = vrot.slane %v10133_v51, 7  ;;  %v10145_v42 = vshrl.u32 %v10042_v25, 16  ;;  %v11270_v34 = vshll.u32 %v20029_v26, 16  ;;  %v5353_v62 = vld [vmem:[#allocation2 + $0x120] sm:$0x80] }
 0x3a5   : > { %v11261_v28 = vsel %vm5372_vm9, %v11253_v6, %v11260_v5  ;;  %16874 = vmatmul.mubr.msk.bf16.gmra.mrb[136].mxu0 %vm697_vm0, %v10131_v43  ;;  %v11275_v19 = vshrl.u32 %v11182_v40, 16  ;;  %v10157_v47 = vshrl.u32 %v10044_v10, 16  ;;  %v10152_v31 = vshll.u32 %v20033_v14, 16  ;;  %v5356_v12 = vld [vmem:[#allocation2 + $0x138] sm:$0x80] }
 0x3a6   : > { %16945 = vmatprep.mubr.msk.bf16.mxu1 %vm697_vm0, %v11261_v28  ;;  %v10143_v45 = vsel %vm5372_vm9, %v10135_v48, %v10142_v16  ;;  %v11282_v63 = vshll.u32 %v20041_v35, 16  ;;  %v11291_v2 = vshrl.u32 %v20066_v20, 16  ;;  %v11265_v36 = vrot.slane %v11263_v24, 7  ;;  %v11184_v16 = vld [vmem:[#allocation2 + $0xc0] sm:$0x80] }
 0x3a7   : > { %16877 = vmatprep.mubr.msk.bf16.mxu0 %vm697_vm0, %v10143_v45  ;;  %v11272_v7 = vor.u32 %v11270_v34, %v11269_v50  ;;  %v11303_v49 = vshrl.u32 %v20079_v22, 16  ;;  %v10154_v5 = vor.u32 %v10152_v31, %v10151_v59  ;;  %v10147_v30 = vrot.slane %v10145_v42, 7  ;;  %v10046_v6 = vld [vmem:[#allocation2 + $0xd8] sm:$0x80]  ;;  %v5359_v25 = vld [vmem:[#allocation2 + $0x150] sm:$0x80] }
 0x3a8   : > { %v11277_v3 = vrot.slane %v11275_v19, 7  ;;  %v11284_v14 = vor.u32 %v11282_v63, %v11281_v44  ;;  %v10159_v56 = vrot.slane %v10157_v47, 7  ;;  %v11186_v51 = vld [vmem:[#allocation2 + $0xd8] sm:$0x80]  ;;  %v11293_v46 = vrot.slane %v11291_v2, 7  ;;  %v20107_v45 = vld [vmem:[#allocation2 + $0x110] sm:$0xff] }
 0x3a9   : > { %v11294_v50 = vshll.u32 %v20066_v20, 16  ;;  %v10048_v24 = vld [vmem:[#allocation2 + $0xf0] sm:$0x80]  ;;  %v5362_v40 = vld [vmem:[#allocation2 + $0x168] sm:$0x80]  ;;  %v11273_v59 = vsel %vm5372_vm9, %v11265_v36, %v11272_v7  ;;  %v11287_v10 = vshrl.u32 %v11184_v16, 16  ;;  %v10155_v42 = vsel %vm5372_vm9, %v10147_v30, %v10154_v5 }
 0x3aa   : > { %v11305_v43 = vrot.slane %v11303_v49, 7  ;;  %v20100_v44 = vld [vmem:[#allocation2 + $0xf8] sm:$0xff]  ;;  %v5354_v28 = vsel %vm19835_vm14, 0, %v5353_v62  ;;  %v5374_v48 = vld [vmem:[#allocation2 + $0x10] sm:$0x1]  ;;  %v11285_v19 = vsel %vm5372_vm9, %v11277_v3, %v11284_v14  ;;  %v10169_v47 = vshrl.u32 %v10046_v6, 16 }
 0x3ab   : > { %v11299_v31 = vshrl.u32 %v11186_v51, 16  ;;  %5355 = vst [vmem:[#allocation2 + $0x120] sm:$0x80] %v5354_v28  ;;  %v5377_v36 = vld [vmem:[#allocation2 + $0x28] sm:$0x1]  ;;  %v11306_v16 = vshll.u32 %v20079_v22, 16 }
 0x3ac   : > { %16946 = vmatmul.mubr.msk.bf16.gmra.mrb[24].mxu1 %vm697_vm0, %v11273_v59  ;;  %v21296_v7 = vld [vmem:[#allocation6_spill] sm:$0xff]  ;;  %v10181_v59 = vshrl.u32 %v10048_v24, 16  ;;  %v5357_v5 = vsel %vm19835_vm14, 0, %v5356_v12  ;;  %v5365_v30 = vld [vmem:[#allocation2 + $0x180] sm:$0x80]  ;;  %v11315_v3 = vshrl.u32 %v20100_v44, 16  ;;  %v11296_v12 = vor.u32 %v11294_v50, %v11293_v46 }
 0x3ad   : > { %16878 = vmatmul.mubr.msk.bf16.gmra.mrb[140].mxu0 %vm697_vm0, %v10155_v42  ;;  %16949 = vmatprep.mubr.msk.bf16.mxu1 %vm697_vm0, %v11285_v19  ;;  %v10167_v62 = vsel %vm5372_vm9, %v10159_v56, %v21296_v7  ;;  %5358 = vst [vmem:[#allocation2 + $0x138] sm:$0x80] %v5357_v5  ;;  %v5360_v14 = vsel %vm19835_vm14, 0, %v5359_v25  ;;  %v5363_v6 = vsel %vm19835_vm14, 0, %v5362_v40  ;;  %v5375_v56 = vsel %vm19037_vm10, 0, %v5374_v48 }
 0x3ae   : > { %16881 = vmatprep.mubr.msk.bf16.mxu0 %vm697_vm0, %v10167_v62  ;;  %v5380_v51 = vld [vmem:[#allocation2 + $0x40] sm:$0x1]  ;;  %v11289_v24 = vrot.slane %v11287_v10, 7  ;;  %v11308_v28 = vor.u32 %v11306_v16, %v11305_v43  ;;  %v21240_v42 = vshrl.u32 %v20107_v45, 16  ;;  %5361 = vst [vmem:[#allocation2 + $0x150] sm:$0x80] %v5360_v14 }
 0x3af   : > { %5364 = vst [vmem:[#allocation2 + $0x168] sm:$0x80] %v5363_v6  ;;  %5376 = vst [vmem:[#allocation2 + $0x10] sm:$0x1] %v5375_v56  ;;  %v5383_v25 = vld [vmem:[#allocation2 + $0x58] sm:$0x1] }
 0x3b0   : > { %v5386_v19 = vld [vmem:[#allocation2 + $0x70] sm:$0x1]  ;;  %v10171_v7 = vrot.slane %v10169_v47, 7  ;;  %v11301_v40 = vrot.slane %v11299_v31, 7  ;;  %v11188_v62 = vld [vmem:[#allocation2 + $0xf0] sm:$0x80] }
 0x3b1   : > { %v5366_v48 = vsel %vm19835_vm14, 0, %v5365_v30  ;;  %v5378_v10 = vsel %vm19037_vm10, 0, %v5377_v36  ;;  %v10183_v46 = vrot.slane %v10181_v59, 7  ;;  %v10050_v5 = vld [vmem:[#allocation2 + $0x108] sm:$0x80]  ;;  %v5381_v43 = vsel %vm19037_vm10, 0, %v5380_v51 }
 0x3b2   : > { %v11190_v54 = vld [vmem:[#allocation2 + $0x108] sm:$0x80]  ;;  %5367 = vst [vmem:[#allocation2 + $0x180] sm:$0x80] %v5366_v48  ;;  %5379 = vst [vmem:[#allocation2 + $0x28] sm:$0x1] %v5378_v10  ;;  %v11297_v30 = vsel %vm5372_vm9, %v11289_v24, %v11296_v12 }
 0x3b3   : > { %5382 = vst [vmem:[#allocation2 + $0x40] sm:$0x1] %v5381_v43  ;;  %v5384_v47 = vsel %vm19037_vm10, 0, %v5383_v25  ;;  %v5387_v31 = vsel %vm19037_vm10, 0, %v5386_v19  ;;  %v5389_v14 = vld [vmem:[#allocation2 + $0x88] sm:$0x1]  ;;  %v11309_v19 = vsel %vm5372_vm9, %v11301_v40, %v11308_v28 }
 0x3b4   : > { %v11311_v6 = vshrl.u32 %v11188_v62, 16  ;;  %v11317_v36 = vrot.slane %v11315_v3, 7  ;;  %v11329_v59 = vrot.slane %v21240_v42, 7  ;;  %v10052_v56 = vld [vmem:[#allocation2 + $0x120] sm:$0x80]  ;;  %16950 = vmatmul.mubr.msk.bf16.gmra.mrb[28].mxu1 %vm697_vm0, %v11297_v30  ;;  %v21297_v51 = vld [vmem:[#allocation7_spill] sm:$0xff] }
 0x3b5   : > { %5385 = vst [vmem:[#allocation2 + $0x58] sm:$0x1] %v5384_v47  ;;  %5388 = vst [vmem:[#allocation2 + $0x70] sm:$0x1] %v5387_v31  ;;  %v10179_v25 = vsel %vm5372_vm9, %v10171_v7, %v21297_v51  ;;  %v10193_v48 = vshrl.u32 %v10050_v5, 16  ;;  %v11323_v10 = vshrl.u32 %v11190_v54, 16  ;;  %16953 = vmatprep.mubr.msk.bf16.mxu1 %vm697_vm0, %v11309_v19 }
 0x3b6   : > { %v20148_v24 = vld [vmem:[#allocation2 + $0x128] sm:$0xff]  ;;  %v5392_v12 = vld [vmem:[#allocation2 + $0xa0] sm:$0x1]  ;;  %16882 = vmatmul.mubr.msk.bf16.gmra.mrb[144].mxu0 %vm697_vm0, %v10179_v25  ;;  %v11318_v47 = vshll.u32 %v20100_v44, 16  ;;  %v10205_v31 = vshrl.u32 %v10052_v56, 16  ;;  %v5390_v7 = vsel %vm19037_vm10, 0, %v5389_v14 }
 0x3b7   : > { %v21298_v62 = vld [vmem:[#allocation9_spill] sm:$0xff]  ;;  %v11330_v54 = vshll.u32 %v20107_v45, 16  ;;  %5391 = vst [vmem:[#allocation2 + $0x88] sm:$0x1] %v5390_v7  ;;  %v11313_v28 = vrot.slane %v11311_v6, 7  ;;  %v21239_v5 = vshrl.u32 %v20148_v24, 16 }
 0x3b8   : > { %v10191_v43 = vsel %vm5372_vm9, %v10183_v46, %v21298_v62  ;;  %v20161_v40 = vor.u32 %v11318_v47, %v11317_v36  ;;  %v5393_v46 = vsel %vm19037_vm10, 0, %v5392_v12  ;;  %v10195_v30 = vrot.slane %v10193_v48, 7  ;;  %v11192_v51 = vld [vmem:[#allocation2 + $0x120] sm:$0x80]  ;;  %v10054_v19 = vld [vmem:[#allocation2 + $0x138] sm:$0x80] }
 0x3b9   : > { %16885 = vmatprep.mubr.msk.bf16.mxu0 %vm697_vm0, %v10191_v43  ;;  %v11325_v56 = vrot.slane %v11323_v10, 7  ;;  %v20168_v14 = vor.u32 %v11330_v54, %v11329_v59  ;;  %5394 = vst [vmem:[#allocation2 + $0xa0] sm:$0x1] %v5393_v46  ;;  %v10207_v25 = vrot.slane %v10205_v31, 7  ;;  %v11194_v6 = vld [vmem:[#allocation2 + $0x138] sm:$0x80] }
 0x3ba   : > { %v10056_v62 = vld [vmem:[#allocation2 + $0x150] sm:$0x80]  ;;  %v11321_v36 = vsel %vm5372_vm9, %v11313_v28, %v20161_v40  ;;  %v11335_v43 = vshrl.u32 %v11192_v51, 16  ;;  %v11341_v7 = vrot.slane %v21239_v5, 7  ;;  %v10687_v12 = vld [vmem:[#allocation2 + $0x8] sm:$0xff]  ;;  %v10203_v59 = vsel %vm5372_vm9, %v10195_v30, %v19494_v60 }
 0x3bb   : > { %v11333_v48 = vsel %vm5372_vm9, %v11325_v56, %v20168_v14  ;;  %v10217_v10 = vshrl.u32 %v10054_v19, 16  ;;  %v11347_v31 = vshrl.u32 %v11194_v6, 16  ;;  %v10215_v28 = vsel %vm5372_vm9, %v10207_v25, %v19550_v18  ;;  %v5395_v11 = vld [vmem:[#allocation2 + $0xb8] sm:$0x1]  ;;  %v11196_v56 = vld [vmem:[#allocation2 + $0x150] sm:$0x80] }
 0x3bc   : > { %16954 = vmatmul.mubr.msk.bf16.gmra.mrb[0].mxu1 %vm697_vm0, %v11321_v36  ;;  %v21242_v46 = vshll.u32 %v20148_v24, 16  ;;  %v10229_v51 = vshrl.u32 %v10056_v62, 16  ;;  %v10723_v36 = vshll.u32 %v10687_v12, 16  ;;  %v11337_v60 = vrot.slane %v11335_v43, 7  ;;  %v10058_v19 = vld [vmem:[#allocation2 + $0x168] sm:$0x80] }
 0x3bd   : > { %16957 = vmatprep.mubr.msk.bf16.mxu1 %vm697_vm0, %v11333_v48  ;;  %v10219_v6 = vrot.slane %v10217_v10, 7  ;;  %v10688_v48 = vld [vmem:[#allocation2 + $0x10] sm:$0x1]  ;;  %v5396_v18 = vsel %vm19037_vm10, 0, %v5395_v11  ;;  %v11198_v5 = vld [vmem:[#allocation2 + $0x168] sm:$0x80] }
 0x3be   : > { %16886 = vmatmul.mubr.msk.bf16.gmra.mrb[148].mxu0 %vm697_vm0, %v10203_v59  ;;  %v20187_v30 = vor.u32 %v21242_v46, %v11341_v7  ;;  %v11349_v59 = vrot.slane %v11347_v31, 7  ;;  %v10231_v25 = vrot.slane %v10229_v51, 7  ;;  %5397 = vst [vmem:[#allocation2 + $0xb8] sm:$0x1] %v5396_v18  ;;  %v10247_v62 = vrot.slane %v10245_v13, 7  ;;  %v20195_v10 = vld [vmem:[#allocation2 + $0x188] sm:$0xff] }
 0x3bf   : > { %16889 = vmatprep.mubr.msk.bf16.mxu0 %vm697_vm0, %v10215_v28  ;;  %v10721_v28 = vshrl.u32 %v10687_v12, 16  ;;  %v10725_v43 = vrot.slane %v10723_v36, 1  ;;  %v11359_v42 = vshrl.u32 %v11196_v56, 16  ;;  %v10241_v41 = vshrl.u32 %v10058_v19, 16  ;;  %v10690_v18 = vld [vmem:[#allocation2 + $0x28] sm:$0x1] }
 0x3c0   : > { %v11345_v7 = vsel %vm5372_vm9, %v11337_v60, %v20187_v30  ;;  %v10728_v46 = vshll.u32 %v10688_v48, 16  ;;  %v10227_v11 = vsel %vm5372_vm9, %v10219_v6, %v19675_v17  ;;  %v11357_v31 = vsel %vm5372_vm9, %v11349_v59, %v19675_v17  ;;  %v11200_v59 = vld [vmem:[#allocation2 + $0x180] sm:$0x80]  ;;  %v10696_v8 = vld [vmem:[#allocation2 + $0x70] sm:$0x1] }
 0x3c1   : > { %v11371_v51 = vshrl.u32 %v11198_v5, 16  ;;  %v10239_v13 = vsel %vm5372_vm9, %v10231_v25, %v19824_v53  ;;  %v10250_v12 = vor.u32 %v10248_v37, %v10247_v62  ;;  %v11387_v36 = vshrl.u32 %v20195_v10, 16 }
 0x3c2   : > { %v11967_v60 = vrot.slane %v11246_v21, 1  ;;  %v11979_v17 = vrot.slane %v11258_v0, 1  ;;  %v11361_v5 = vrot.slane %v11359_v42, 7  ;;  %v10243_v56 = vrot.slane %v10241_v41, 7 }
 0x3c3   : > { %v10726_v19 = vor.u32 %v10725_v43, %v10721_v28  ;;  %v10730_v6 = vrot.slane %v10728_v46, 1  ;;  %v11373_v48 = vrot.slane %v11371_v51, 7  ;;  %v11991_v21 = vrot.slane %v11270_v34, 1  ;;  %v10692_v46 = vld [vmem:[#allocation2 + $0x40] sm:$0x1] }
 0x3c4   : > { %16958 = vmatmul.mubr.msk.bf16.gmra.mrb[4].mxu1 %vm697_vm0, %v11345_v7  ;;  %v20216_v23 = vor.u32 %v11967_v60, %v11243_v29  ;;  %v20220_v37 = vor.u32 %v11979_v17, %v11255_v55  ;;  %v10737_v0 = vrot.slane %v11210_v58, 1  ;;  %v11383_v41 = vshrl.u32 %v11200_v59, 16  ;;  %v5422_v59 = vld [vmem:[#allocation2 + $0x190] sm:$0x1] }
 0x3c5   : > { %16961 = vmatprep.mubr.msk.bf16.mxu1 %vm697_vm0, %v11357_v31  ;;  %v11389_v42 = vrot.slane %v11387_v36, 7  ;;  %v20230_v25 = vor.u32 %v11991_v21, %v11267_v15  ;;  %v12003_v29 = vrot.slane %v11282_v63, 1  ;;  %v11369_v55 = vsel %vm5372_vm9, %v11361_v5, %v19824_v53 }
 0x3c6   : > { %16890 = vmatmul.mubr.msk.bf16.gmra.mrb[152].mxu0 %vm697_vm0, %v10227_v11  ;;  %v10731_v34 = vsel %vm10719_vm11, %v10726_v19, %v10730_v6  ;;  %v10740_v62 = vshll.u32 %v10690_v18, 16  ;;  %v12015_v58 = vrot.slane %v11294_v50, 1  ;;  %v10251_v28 = vsel %vm5372_vm9, %v10243_v56, %v10250_v12  ;;  %v10694_v56 = vld [vmem:[#allocation2 + $0x58] sm:$0x1] }
 0x3c7   : > { %16893 = vmatprep.mubr.msk.bf16.mxu0 %vm697_vm0, %v10239_v13  ;;  %v11381_v43 = vsel %vm5372_vm9, %v11373_v48, %v10250_v12  ;;  %v20244_v15 = vor.u32 %v12003_v29, %v11279_v27  ;;  %v12027_v63 = vrot.slane %v11306_v16, 1  ;;  %v11390_v53 = vshll.u32 %v20195_v10, 16 }
 0x3c8   : > { %v10749_v50 = vrot.slane %v11222_v9, 1  ;;  %v10752_v7 = vshll.u32 %v10692_v46, 16  ;;  %v20255_v11 = vor.u32 %v12015_v58, %v11291_v2  ;;  %v12039_v16 = vrot.slane %v11318_v47, 1 }
 0x3c9   : > { %v20260_v27 = vor.u32 %v12027_v63, %v11303_v49  ;;  %v11385_v31 = vrot.slane %v11383_v41, 7  ;;  %v20264_v51 = vor.u32 %v11390_v53, %v11389_v42  ;;  %v12051_v9 = vrot.slane %v11330_v54, 1  ;;  %v10700_v63 = vld [vmem:[#allocation2 + $0xa0] sm:$0x1] }
 0x3ca   : > { %v20270_v13 = vor.u32 %v11207_v61, %v10737_v0  ;;  %v10742_v2 = vrot.slane %v10740_v62, 1  ;;  %v20274_v12 = vor.u32 %v12039_v16, %v11315_v3  ;;  %v21299_v49 = vshll.u32 %v20148_v24, 16  ;;  %v17522_v0 = vld [vmem:[#allocation2 + $0x20] sm:$0xff] }
 0x3cb   : > { %v21300_v47 = vshrl.u32 %v19842_v38, 16  ;;  %v10754_v5 = vrot.slane %v10752_v7, 1  ;;  %v21301_v54 = vshrl.u32 %v20107_v45, 16  ;;  %v21302_v61 = vshrl.u32 %v20148_v24, 16  ;;  %v17523_v7 = vld [vmem:[#allocation2 + $0x38] sm:$0xff] }
 0x3cc   : > { %16962 = vmatmul.mubr.msk.bf16.gmra.mrb[8].mxu1 %vm697_vm0, %v11369_v55  ;;  %v12063_v60 = vrot.slane %v21299_v49, 1  ;;  %v11393_v3 = vsel %vm5372_vm9, %v11385_v31, %v20264_v51  ;;  %v10743_v38 = vsel %vm10719_vm11, %v20270_v13, %v10742_v2  ;;  %v21303_v48 = vshll.u32 %v19872_v52, 16  ;;  %v17524_v31 = vld [vmem:[#allocation2 + $0x50] sm:$0xff]  ;;  %v20329_v2 = vld [vmem:[#allocation2 + $0x38] sm:$0xff] }
 0x3cd   : > { %16965 = vmatprep.mubr.msk.bf16.mxu1 %vm697_vm0, %v11381_v43  ;;  %v20280_v17 = vor.u32 %v21300_v47, %v10749_v50  ;;  %v20284_v19 = vor.u32 %v12051_v9, %v21301_v54  ;;  %v10764_v21 = vshll.u32 %v10694_v56, 16  ;;  %v10776_v42 = vshll.u32 %v10696_v8, 16  ;;  %v17497_v50 = vld [vmem:[%s21228_s3 + $0x58] sm:$0xff]   ;;  %v20327_v9 = vld [vmem:[%s21228_s3 + $0x60] sm:$0xff]   ;;  %v20331_v49 = vld [vmem:[#allocation2 + $0x50] sm:$0xff] }
 0x3ce   : > { %16894 = vmatmul.mubr.msk.bf16.gmra.mrb[156].mxu0 %vm697_vm0, %v10251_v28  ;;  %v20288_v6 = vor.u32 %v12063_v60, %v21302_v61  ;;  %v10761_v18 = vrot.slane %v21303_v48, 1  ;;  %v5423_v46 = vsel %vm19037_vm10, 0, %v5422_v59  ;;  %v12111_v29 = vrot.slane %v11390_v53, 1  ;;  %v10698_v28 = vld [vmem:[#allocation2 + $0x88] sm:$0x1]  ;;  %v20352_v48 = vld [vmem:[#allocation2 + $0x98] sm:$0xff] }
 0x3cf   : > { %16901 = vmatprep.mubr.msk.bf16.mxu0 %vm697_vm0, %v10731_v34  ;;  %v10755_v41 = vsel %vm10719_vm11, %v20280_v17, %v10754_v5  ;;  %5424 = vst [vmem:[#allocation2 + $0x190] sm:$0x1] %v5423_v46  ;;  %v21304_v55 = vshrl.u32 %v19872_v52, 16  ;;  %v10766_v62 = vrot.slane %v10764_v21, 1  ;;  %v10778_v58 = vrot.slane %v10776_v42, 1  ;;  %v20336_v54 = vld [vmem:[#allocation2 + $0x68] sm:$0xff] }
 0x3d0   : > { %v20310_v43 = vor.u32 %v12111_v29, %v11387_v36  ;;  %v10788_v53 = vshll.u32 %v10698_v28, 16  ;;  %v10800_v16 = vshll.u32 %v10700_v63, 16  ;;  %v10702_v47 = vld [vmem:[#allocation2 + $0xb8] sm:$0x1]  ;;  %v12417_v5 = vshll.u32 %v20329_v2, 16  ;;  %v20362_v46 = vld [vmem:[#allocation2 + $0xc8] sm:$0xff] }
 0x3d1   : > { %v20306_v34 = vor.u32 %v21304_v55, %v10761_v18  ;;  %v10779_v36 = vsel %vm10719_vm11, %v20216_v23, %v10778_v58  ;;  %v12429_v56 = vshll.u32 %v20331_v49, 16  ;;  %v10812_v61 = vshll.u32 %v10702_v47, 16  ;;  %v20375_v63 = vld [vmem:[#allocation2 + $0xe0] sm:$0xff] }
 0x3d2   : > { %v10802_v60 = vrot.slane %v10800_v16, 1  ;;  %v13138_v18 = vrot.slane %v12417_v5, 1  ;;  %v12426_v21 = vshrl.u32 %v20331_v49, 16  ;;  %v12465_v55 = vshll.u32 %v20352_v48, 16 }
 0x3d3   : > { %v10767_v52 = vsel %vm10719_vm11, %v20306_v34, %v10766_v62  ;;  %v10814_v42 = vrot.slane %v10812_v61, 1  ;;  %v12438_v58 = vshrl.u32 %v20336_v54, 16  ;;  %v21247_v61 = vshrl.u32 %v20362_v46, 16 }
 0x3d4   : > { %16966 = vmatmul.mubr.msk.bf16.gmra.mrb[12].mxu1 %vm697_vm0, %v11393_v3  ;;  %v20342_v3 = vld [vmem:[#allocation2 + $0x80] sm:$0xff]  ;;  %v10803_v59 = vsel %vm10719_vm11, %v20230_v25, %v10802_v60 }
 0x3d5   : > { %16973 = vmatprep.mubr.msk.bf16.mxu1 %vm697_vm0, %v17522_v0  ;;  %v12453_v0 = vshll.u32 %v20342_v3, 16 }
 0x3d6   : > { %16902 = vmatmul.mubr.msk.bf16.vlgmr.msra.gmra.mrb[128].mxu0 %vm697_vm0, %v10743_v38  ;;  %v12414_v38 = vshrl.u32 %v20329_v2, 16 }
 0x3d7   : > { %16905 = vmatprep.mubr.msk.bf16.mxu0 %vm697_vm0, %v10755_v41  ;;  %v20358_v41 = vld [vmem:[#allocation2 + $0xb0] sm:$0xff] }
 0x3d8   : > { %v20366_v29 = vor.u32 %v13138_v18, %v12414_v38  ;;  %v21246_v28 = vshll.u32 %v20358_v41, 16  ;;  %v12474_v47 = vshrl.u32 %v20358_v41, 16 }
 0x3dc   : > { %16974 = vmatmul.mubr.msk.bf16.vlgmr.msra.gmra.mrb[16].mxu1 %vm697_vm0, %v17523_v7  ;;  %v12450_v7 = vshrl.u32 %v20342_v3, 16 }
 0x3dd   : > { %17006 = vmatpush3.bf16.msra.mxu1 %v20059_v4  ;;  %16977 = vmatprep.mubr.msk.bf16.mxu1 %vm697_vm0, %v17524_v31  ;;  %v10790_v4 = vrot.slane %v10788_v53, 1  ;;  %v13174_v53 = vrot.slane %v12453_v0, 1  ;;  %v12462_v31 = vshrl.u32 %v20352_v48, 16 }
 0x3de   : > { %16906 = vmatmul.mubr.msk.bf16.gmra.mrb[132].mxu0 %vm697_vm0, %v10767_v52  ;;  %17007 = vmatprep.subr.bf16.mxu1 %v17497_v50  ;;  %v21245_v52 = vshll.u32 %v20362_v46, 16 }
 0x3df   : > { %16909 = vmatprep.mubr.msk.bf16.mxu0 %vm697_vm0, %v10779_v36  ;;  %v10791_v8 = vsel %vm10719_vm11, %v20220_v37, %v10790_v4  ;;  %v10815_v36 = vsel %vm10719_vm11, %v20244_v15, %v10814_v42  ;;  %v21243_v4 = vshll.u32 %v20375_v63, 16  ;;  %v20398_v60 = vor.u32 %v13174_v53, %v12450_v7 }
 0x3e1   : > { %17008 = vmatpush3.bf16.msra.mxu1 %v17497_v50 }
 0x3e2   : > { %17041 = vmatprep.subr.bf16.mxu1 %v20327_v9 }
 0x3e4   : > { %16978 = vmatmul.mubr.msk.bf16.gmra.mrb[20].mxu1 %vm697_vm0, %v19986_v1  ;;  %v12441_v1 = vshll.u32 %v20336_v54, 16 }
 0x3e5   : > { %16981 = vmatprep.mubr.msk.bf16.mxu1 %vm697_vm0, %v19993_v39  ;;  %v13150_v39 = vrot.slane %v12429_v56, 1 }
 0x3e6   : > { %16910 = vmatmul.mubr.msk.bf16.gmra.mrb[136].mxu0 %vm697_vm0, %v10791_v8  ;;  %v13162_v50 = vrot.slane %v12441_v1, 1  ;;  %v13198_v8 = vrot.slane %v21246_v28, 1 }
 0x3e7   : > { %16913 = vmatprep.mubr.msk.bf16.mxu0 %vm697_vm0, %v10803_v59  ;;  %v20371_v62 = vor.u32 %v13150_v39, %v12426_v21  ;;  %v13210_v59 = vrot.slane %v21245_v52, 1  ;;  %v21244_v39 = vshrl.u32 %v20375_v63, 16 }
 0x3e8   : > { %v20389_v16 = vor.u32 %v13162_v50, %v12438_v58  ;;  %v20414_v18 = vor.u32 %v13198_v8, %v12474_v47  ;;  %v13222_v50 = vrot.slane %v21243_v4, 1  ;;  %v17526_v8 = vld [vmem:[#allocation2 + $0x158] sm:$0xff] }
 0x3e9   : > { %v20419_v42 = vor.u32 %v13210_v59, %v21247_v61  ;;  %v17527_v59 = vld [vmem:[#allocation2 + $0x170] sm:$0xff] }
 0x3ea   : > { %v20425_v53 = vor.u32 %v13222_v50, %v21244_v39  ;;  %v11897_v50 = vld [vmem:[#allocation2 + $0x40] sm:$0x1]  ;;  %v5368_v39 = vld [vmem:[#allocation2 + $0x198] sm:$0x80] }
 0x3eb   : > { %v11946_v4 = vshll.u32 %v11897_v50, 16  ;;  %v5369_v52 = vsel %vm19835_vm14, 0, %v5368_v39  ;;  %v17499_v50 = vld [vmem:[%s21228_s3 + $0x68] sm:$0xff]  }
 0x3ec   : > { %16982 = vmatmul.mubr.msk.bf16.gmra.mrb[24].mxu1 %vm697_vm0, %v20029_v26  ;;  %v13186_v26 = vrot.slane %v12465_v55, 1  ;;  %5370 = vst [vmem:[#allocation2 + $0x198] sm:$0x80] %v5369_v52  ;;  %v20460_v52 = vld [vmem:[%s21228_s3 + $0x70] sm:$0xff]  }
 0x3ed   : > { %16985 = vmatprep.mubr.msk.bf16.mxu1 %vm697_vm0, %v20041_v35 }
 0x3ee   : > { %16914 = vmatmul.mubr.msk.bf16.gmra.mrb[140].mxu0 %vm697_vm0, %v10815_v36  ;;  %v20408_v35 = vor.u32 %v13186_v26, %v12462_v31  ;;  %v17525_v36 = vld [vmem:[#allocation2 + $0x140] sm:$0xff]  ;;  %v11895_v26 = vld [vmem:[#allocation2 + $0x28] sm:$0x1] }
 0x3f4   : > { %16986 = vmatmul.mubr.msk.bf16.gmra.mrb[28].mxu1 %vm697_vm0, %v20066_v20  ;;  %v11934_v20 = vshll.u32 %v11895_v26, 16  ;;  %v11948_v26 = vrot.slane %v11946_v4, 1 }
 0x3f5   : > { %16989 = vmatprep.mubr.msk.bf16.mxu1 %vm697_vm0, %v20079_v22 }
 0x3f6   : > { %v11936_v22 = vrot.slane %v11934_v20, 1  ;;  %v11901_v20 = vld [vmem:[#allocation2 + $0x70] sm:$0x1]  ;;  %v11949_v28 = vsel %vm10719_vm11, %v20280_v17, %v11948_v26  ;;  %v11905_v17 = vld [vmem:[#allocation2 + $0xa0] sm:$0x1] }
 0x3f7   : > { %v11970_v61 = vshll.u32 %v11901_v20, 16  ;;  %v11911_v26 = vld [vmem:[#allocation2 + $0xe8] sm:$0x1] }
 0x3f9   : > { %v11972_v4 = vrot.slane %v11970_v61, 1 }
 0x3fc   : > { %16990 = vmatmul.mubr.msk.bf16.gmra.mrb[0].mxu1 %vm697_vm0, %v20100_v44  ;;  %v11899_v44 = vld [vmem:[#allocation2 + $0x58] sm:$0x1] }
 0x3fd   : > { %16993 = vmatprep.mubr.msk.bf16.mxu1 %vm697_vm0, %v20107_v45  ;;  %v11937_v45 = vsel %vm10719_vm11, %v20270_v13, %v11936_v22  ;;  %v11907_v22 = vld [vmem:[#allocation2 + $0xb8] sm:$0x1] }
 0x404   : > { %16994 = vmatmul.mubr.msk.bf16.gmra.mrb[4].mxu1 %vm697_vm0, %v20148_v24 }
 0x405   : > { %16997 = vmatprep.mubr.msk.bf16.mxu1 %vm697_vm0, %v17525_v36  ;;  %v11958_v36 = vshll.u32 %v11899_v44, 16  ;;  %v12006_v44 = vshll.u32 %v11907_v22, 16 }
 0x407   : > { %v12008_v61 = vrot.slane %v12006_v44, 1  ;;  %v11919_v44 = vld [vmem:[#allocation2 + $0x148] sm:$0x1] }
 0x40c   : > { %16998 = vmatmul.mubr.msk.bf16.gmra.mrb[8].mxu1 %vm697_vm0, %v17526_v8  ;;  %v11960_v8 = vrot.slane %v11958_v36, 1  ;;  %v11909_v36 = vld [vmem:[#allocation2 + $0xd0] sm:$0x1] }
 0x40d   : > { %17001 = vmatprep.mubr.msk.bf16.mxu1 %vm697_vm0, %v17527_v59  ;;  %v11903_v59 = vld [vmem:[#allocation2 + $0x88] sm:$0x1]  ;;  %v12018_v20 = vshll.u32 %v11909_v36, 16  ;;  %v12078_v36 = vshll.u32 %v11919_v44, 16 }
 0x40e   : > { %v11961_v57 = vsel %vm10719_vm11, %v20306_v34, %v11960_v8  ;;  %v11982_v13 = vshll.u32 %v11903_v59, 16  ;;  %v11973_v34 = vsel %vm10719_vm11, %v20216_v23, %v11972_v4  ;;  %v12009_v23 = vsel %vm10719_vm11, %v20244_v15, %v12008_v61  ;;  %v20481_v15 = vld [vmem:[#allocation2 + $0x140] sm:$0xff] }
 0x40f   : > { %v12030_v59 = vshll.u32 %v11911_v26, 16  ;;  %v20491_v26 = vld [vmem:[#allocation2 + $0x158] sm:$0xff] }
 0x410   : > { %v11984_v39 = vrot.slane %v11982_v13, 1  ;;  %v11915_v13 = vld [vmem:[#allocation2 + $0x118] sm:$0x1] }
 0x414   : > { %17002 = vmatmul.mubr.msk.bf16.gmra.mrb[12].mxu1 %vm697_vm0, %v20195_v10 }
 0x415   : > { %17009 = vmatprep.mubr.msk.bf16.mxu1 %vm697_vm0, %v11937_v45 }
 0x41c   : > { %17010 = vmatmul.mubr.msk.bf16.vlgmr.msra.gmra.mrb[16].mxu1 %vm697_vm0, %v11949_v28  ;;  %v11994_v28 = vshll.u32 %v11905_v17, 16  ;;  %v12054_v17 = vshll.u32 %v11915_v13, 16 }
 0x41d   : > { %17042 = vmatpush3.bf16.msra.mxu1 %v20327_v9  ;;  %17013 = vmatprep.mubr.msk.bf16.mxu1 %vm697_vm0, %v11961_v57  ;;  %v11985_v9 = vsel %vm10719_vm11, %v20220_v37, %v11984_v39  ;;  %v12020_v37 = vrot.slane %v12018_v20, 1  ;;  %v11913_v57 = vld [vmem:[#allocation2 + $0x100] sm:$0x1]  ;;  %v12071_v20 = vshrl.u32 %v20481_v15, 16 }
 0x41e   : > { %17043 = vmatprep.subr.bf16.mxu1 %v17499_v50  ;;  %v11996_v45 = vrot.slane %v11994_v28, 1  ;;  %v12042_v39 = vshll.u32 %v11913_v57, 16  ;;  %v11917_v28 = vld [vmem:[#allocation2 + $0x130] sm:$0x1]  ;;  %v11923_v57 = vld [vmem:[#allocation2 + $0x178] sm:$0x1] }
 0x41f   : > { %v12021_v4 = vsel %vm10719_vm11, %v20255_v11, %v12020_v37  ;;  %v11921_v37 = vld [vmem:[#allocation2 + $0x160] sm:$0x1] }
 0x420   : > { %v11997_v8 = vsel %vm10719_vm11, %v20230_v25, %v11996_v45  ;;  %v12044_v22 = vrot.slane %v12042_v39, 1  ;;  %v12066_v45 = vshll.u32 %v11917_v28, 16  ;;  %v12090_v39 = vshll.u32 %v11921_v37, 16 }
 0x421   : > { %17044 = vmatpush3.bf16.msra.mxu1 %v17499_v50  ;;  %v12032_v50 = vrot.slane %v12030_v59, 1 }
 0x422   : > { %17077 = vmatprep.subr.bf16.mxu1 %v20460_v52  ;;  %v12045_v11 = vsel %vm10719_vm11, %v20274_v12, %v12044_v22  ;;  %v12085_v12 = vshll.u32 %v20491_v26, 16  ;;  %v12102_v22 = vshll.u32 %v11923_v57, 16  ;;  %v12092_v44 = vrot.slane %v12090_v39, 1 }
 0x423   : > { %v12033_v25 = vsel %vm10719_vm11, %v20260_v27, %v12032_v50  ;;  %v12416_v57 = vrot.slane %v12414_v38, 7 }
 0x424   : > { %17014 = vmatmul.mubr.msk.bf16.gmra.mrb[20].mxu1 %vm697_vm0, %v11973_v34  ;;  %v12056_v34 = vrot.slane %v12054_v17, 1 }
 0x425   : > { %17017 = vmatprep.mubr.msk.bf16.mxu1 %vm697_vm0, %v11985_v9  ;;  %v12073_v9 = vshll.u32 %v20481_v15, 16  ;;  %v12419_v39 = vor.u32 %v12417_v5, %v12416_v57 }
 0x426   : > { %v12057_v27 = vsel %vm10719_vm11, %v20284_v19, %v12056_v34  ;;  %v12080_v19 = vrot.slane %v12078_v36, 1  ;;  %v12083_v34 = vshrl.u32 %v20491_v26, 16 }
 0x427   : > { %v12075_v61 = vrot.slane %v12073_v9, 1 }
 0x429   : > { %v20500_v59 = vor.u32 %v12075_v61, %v12071_v20  ;;  %v12377_v61 = vld [vmem:[#allocation2 + $0x30] sm:$0x80] }
 0x42a   : > { %v12410_v37 = vshrl.u32 %v12377_v61, 16  ;;  %v12440_v61 = vrot.slane %v12438_v58, 7  ;;  %v12452_v58 = vrot.slane %v12450_v7, 7 }
 0x42c   : > { %17018 = vmatmul.mubr.msk.bf16.gmra.mrb[24].mxu1 %vm697_vm0, %v11997_v8  ;;  %v20494_v8 = vld [vmem:[#allocation2 + $0x170] sm:$0xff]  ;;  %v12455_v7 = vor.u32 %v12453_v0, %v12452_v58  ;;  %v21308_v58 = vshrl.u32 %v20375_v63, 16 }
 0x42d   : > { %17021 = vmatprep.mubr.msk.bf16.mxu1 %vm697_vm0, %v12009_v23  ;;  %v12068_v23 = vrot.slane %v12066_v45, 1  ;;  %v12097_v50 = vshll.u32 %v20494_v8, 16  ;;  %v12095_v28 = vshrl.u32 %v20494_v8, 16  ;;  %v12104_v45 = vrot.slane %v12102_v22, 1 }
 0x42f   : > { %v12069_v13 = vsel %vm10719_vm11, %v20288_v6, %v12068_v23  ;;  %v12099_v17 = vrot.slane %v12097_v50, 1 }
 0x434   : > { %17022 = vmatmul.mubr.msk.bf16.gmra.mrb[28].mxu1 %vm697_vm0, %v12021_v4  ;;  %v12087_v4 = vrot.slane %v12085_v12, 1 }
 0x435   : > { %17025 = vmatprep.mubr.msk.bf16.mxu1 %vm697_vm0, %v12033_v25  ;;  %v12081_v25 = vsel %vm10719_vm11, %v20500_v59, %v12080_v19 }
 0x436   : > { %v20517_v6 = vor.u32 %v12087_v4, %v12083_v34  ;;  %v12412_v4 = vrot.slane %v12410_v37, 7  ;;  %v17501_v37 = vld [vmem:[%s21228_s3 + $0x78] sm:$0xff]  }
 0x438   : > { %v12093_v36 = vsel %vm10719_vm11, %v20517_v6, %v12092_v44  ;;  %v12420_v38 = vsel %vm5372_vm9, %v12412_v4, %v12419_v39  ;;  %v20561_v39 = vld [vmem:[%s21228_s3 + $0x80] sm:$0xff]  }
 0x43c   : > { %17026 = vmatmul.mubr.msk.bf16.gmra.mrb[0].mxu1 %vm697_vm0, %v12045_v11  ;;  %v20521_v11 = vor.u32 %v12099_v17, %v12095_v28  ;;  %v12381_v17 = vld [vmem:[#allocation2 + $0x60] sm:$0x80] }
 0x43d   : > { %17029 = vmatprep.mubr.msk.bf16.mxu1 %vm697_vm0, %v12057_v27  ;;  %v11925_v27 = vld [vmem:[#allocation2 + $0x190] sm:$0x1] }
 0x43e   : > { %v12114_v23 = vshll.u32 %v11925_v27, 16  ;;  %v12105_v19 = vsel %vm10719_vm11, %v20521_v11, %v12104_v45  ;;  %v12428_v45 = vrot.slane %v12426_v21, 7  ;;  %v12434_v27 = vshrl.u32 %v12381_v17, 16  ;;  %v12385_v21 = vld [vmem:[#allocation2 + $0x90] sm:$0x80] }
 0x43f   : > { %v12458_v4 = vshrl.u32 %v12385_v21, 16 }
 0x441   : > { %v12460_v17 = vrot.slane %v12458_v4, 7 }
 0x444   : > { %17030 = vmatmul.mubr.msk.bf16.gmra.mrb[4].mxu1 %vm697_vm0, %v12069_v13  ;;  %v12116_v13 = vrot.slane %v12114_v23, 1  ;;  %v12436_v23 = vrot.slane %v12434_v27, 7 }
 0x445   : > { %17033 = vmatprep.mubr.msk.bf16.mxu1 %vm697_vm0, %v12081_v25  ;;  %v12379_v25 = vld [vmem:[#allocation2 + $0x48] sm:$0x80] }
 0x446   : > { %v12117_v22 = vsel %vm10719_vm11, %v20310_v43, %v12116_v13  ;;  %v12422_v44 = vshrl.u32 %v12379_v25, 16  ;;  %v12443_v43 = vor.u32 %v12441_v1, %v12440_v61  ;;  %v12464_v1 = vrot.slane %v12462_v31, 7  ;;  %v12389_v31 = vld [vmem:[#allocation2 + $0xc0] sm:$0x80] }
 0x447   : > { %v12482_v0 = vshrl.u32 %v12389_v31, 16  ;;  %v21305_v61 = vshrl.u32 %v20362_v46, 16  ;;  %v12397_v31 = vld [vmem:[#allocation2 + $0x120] sm:$0x80] }
 0x448   : > { %v12424_v5 = vrot.slane %v12422_v44, 7  ;;  %v12387_v44 = vld [vmem:[#allocation2 + $0xa8] sm:$0x80] }
 0x44c   : > { %17034 = vmatmul.mubr.msk.bf16.gmra.mrb[8].mxu1 %vm697_vm0, %v12093_v36  ;;  %v12431_v36 = vor.u32 %v12429_v56, %v12428_v45  ;;  %v12444_v56 = vsel %vm5372_vm9, %v12436_v23, %v12443_v43  ;;  %v12470_v45 = vshrl.u32 %v12387_v44, 16  ;;  %v12484_v43 = vrot.slane %v12482_v0, 7  ;;  %v12395_v44 = vld [vmem:[#allocation2 + $0x108] sm:$0x80] }
 0x44d   : > { %17037 = vmatprep.mubr.msk.bf16.mxu1 %vm697_vm0, %v12105_v19  ;;  %v12383_v19 = vld [vmem:[#allocation2 + $0x78] sm:$0x80] }
 0x44e   : > { %v12432_v57 = vsel %vm5372_vm9, %v12424_v5, %v12431_v36  ;;  %v12446_v13 = vshrl.u32 %v12383_v19, 16  ;;  %v12488_v5 = vrot.slane %v21305_v61, 7  ;;  %v21306_v36 = vshll.u32 %v20358_v41, 16 }
 0x44f   : > { %v21307_v19 = vshll.u32 %v20362_v46, 16 }
 0x450   : > { %v12448_v25 = vrot.slane %v12446_v13, 7 }
 0x451   : > { %v12491_v21 = vor.u32 %v21307_v19, %v12488_v5  ;;  %v12399_v5 = vld [vmem:[#allocation2 + $0x138] sm:$0x80] }
 0x453   : > { %v12492_v4 = vsel %vm5372_vm9, %v12484_v43, %v12491_v21  ;;  %v12548_v43 = vrot.slane %v12071_v20, 7  ;;  %v12560_v21 = vrot.slane %v12083_v34, 7  ;;  %v12403_v20 = vld [vmem:[#allocation2 + $0x168] sm:$0x80]  ;;  %v12572_v34 = vrot.slane %v12095_v28, 7 }
 0x454   : > { %17038 = vmatmul.mubr.msk.bf16.gmra.mrb[12].mxu1 %vm697_vm0, %v12117_v22  ;;  %v12467_v22 = vor.u32 %v12465_v55, %v12464_v1  ;;  %v12472_v55 = vrot.slane %v12470_v45, 7  ;;  %v12518_v45 = vshrl.u32 %v12395_v44, 16 }
 0x455   : > { %17045 = vmatprep.mubr.msk.bf16.mxu1 %vm697_vm0, %v12420_v38  ;;  %v12476_v38 = vrot.slane %v12474_v47, 7  ;;  %v12393_v47 = vld [vmem:[#allocation2 + $0xf0] sm:$0x80] }
 0x456   : > { %v12468_v27 = vsel %vm5372_vm9, %v12460_v17, %v12467_v22  ;;  %v12506_v1 = vshrl.u32 %v12393_v47, 16  ;;  %v12520_v0 = vrot.slane %v12518_v45, 7  ;;  %v12551_v47 = vor.u32 %v12548_v43, %v12073_v9 }
 0x457   : > { %v12479_v23 = vor.u32 %v21306_v36, %v12476_v38 }
 0x458   : > { %v12508_v22 = vrot.slane %v12506_v1, 7  ;;  %v12528_v36 = vsel %vm5372_vm9, %v12520_v0, %v20168_v14 }
 0x45a   : > { %v12516_v38 = vsel %vm5372_vm9, %v12508_v22, %v20161_v40 }
 0x45c   : > { %17046 = vmatmul.mubr.msk.bf16.vlgmr.msra.gmra.mrb[16].mxu1 %vm697_vm0, %v12432_v57  ;;  %v12480_v57 = vsel %vm5372_vm9, %v12472_v55, %v12479_v23  ;;  %v12401_v55 = vld [vmem:[#allocation2 + $0x150] sm:$0x80]  ;;  %v12542_v23 = vshrl.u32 %v12399_v5, 16  ;;  %v5425_v5 = vld [vmem:[#allocation2 + $0x1a8] sm:$0x1] }
 0x45d   : > { %17078 = vmatpush3.bf16.msra.mxu1 %v20460_v52  ;;  %17049 = vmatprep.mubr.msk.bf16.mxu1 %vm697_vm0, %v12444_v56  ;;  %v12456_v52 = vsel %vm5372_vm9, %v12448_v25, %v12455_v7  ;;  %v12500_v56 = vrot.slane %v21308_v58, 7  ;;  %v21309_v7 = vshll.u32 %v20375_v63, 16  ;;  %v12554_v40 = vshrl.u32 %v12401_v55, 16  ;;  %v20607_v58 = vld [vmem:[#allocation2 + $0x1a0] sm:$0xff] }
 0x45e   : > { %17079 = vmatprep.subr.bf16.mxu1 %v17501_v37  ;;  %v12594_v9 = vshrl.u32 %v20607_v58, 16  ;;  %v5426_v55 = vsel %vm19037_vm10, 0, %v5425_v5 }
 0x45f   : > { %v12503_v17 = vor.u32 %v21309_v7, %v12500_v56  ;;  %v12556_v14 = vrot.slane %v12554_v40, 7  ;;  %v12566_v56 = vshrl.u32 %v12403_v20, 16  ;;  %v12575_v7 = vor.u32 %v12572_v34, %v12097_v50  ;;  %5427 = vst [vmem:[#allocation2 + $0x1a8] sm:$0x1] %v5426_v55  ;;  %v17528_v34 = vld [vmem:[#allocation2 + $0xf8] sm:$0xff] }
 0x460   : > { %v13110_v55 = vld [vmem:[#allocation2 + $0xa0] sm:$0x1] }
 0x461   : > { %17080 = vmatpush3.bf16.msra.mxu1 %v17501_v37  ;;  %v12391_v37 = vld [vmem:[#allocation2 + $0xd8] sm:$0x80] }
 0x462   : > { %17113 = vmatprep.subr.bf16.mxu1 %v20561_v39  ;;  %v12494_v13 = vshrl.u32 %v12391_v37, 16  ;;  %v12544_v37 = vrot.slane %v12542_v23, 7 }
 0x464   : > { %17050 = vmatmul.mubr.msk.bf16.gmra.mrb[20].mxu1 %vm697_vm0, %v12456_v52  ;;  %v12496_v25 = vrot.slane %v12494_v13, 7  ;;  %v12405_v13 = vld [vmem:[#allocation2 + $0x180] sm:$0x80] }
 0x465   : > { %17053 = vmatprep.mubr.msk.bf16.mxu1 %vm697_vm0, %v12468_v27  ;;  %v12530_v27 = vshrl.u32 %v12397_v31, 16  ;;  %v12578_v1 = vshrl.u32 %v12405_v13, 16  ;;  %v12596_v31 = vrot.slane %v12594_v9, 7 }
 0x466   : > { %v12504_v52 = vsel %vm5372_vm9, %v12496_v25, %v12503_v17  ;;  %v12568_v25 = vrot.slane %v12566_v56, 7 }
 0x467   : > { %v12532_v61 = vrot.slane %v12530_v27, 7  ;;  %v12580_v22 = vrot.slane %v12578_v1, 7 }
 0x468   : > { %v12576_v27 = vsel %vm5372_vm9, %v12568_v25, %v12575_v7 }
 0x469   : > { %v12540_v19 = vsel %vm5372_vm9, %v12532_v61, %v20187_v30  ;;  %v12552_v30 = vsel %vm5372_vm9, %v12544_v37, %v12551_v47  ;;  %v12588_v50 = vsel %vm5372_vm9, %v12580_v22, %v20264_v51  ;;  %v17503_v37 = vld [vmem:[%s21228_s3 + $0x88] sm:$0xff]  }
 0x46c   : > { %17054 = vmatmul.mubr.msk.bf16.gmra.mrb[24].mxu1 %vm697_vm0, %v12480_v57  ;;  %v12563_v57 = vor.u32 %v12560_v21, %v12085_v12  ;;  %v12407_v12 = vld [vmem:[#allocation2 + $0x198] sm:$0x80] }
 0x46d   : > { %17057 = vmatprep.mubr.msk.bf16.mxu1 %vm697_vm0, %v12492_v4  ;;  %v12590_v28 = vshrl.u32 %v12407_v12, 16  ;;  %v17529_v12 = vld [vmem:[#allocation2 + $0x110] sm:$0xff] }
 0x46e   : > { %v12564_v4 = vsel %vm5372_vm9, %v12556_v14, %v12563_v57 }
 0x46f   : > { %v12592_v0 = vrot.slane %v12590_v28, 7  ;;  %v13102_v28 = vld [vmem:[#allocation2 + $0x40] sm:$0x1] }
 0x474   : > { %17058 = vmatmul.mubr.msk.bf16.gmra.mrb[28].mxu1 %vm697_vm0, %v12504_v52  ;;  %v12597_v52 = vshll.u32 %v20607_v58, 16 }
 0x475   : > { %17061 = vmatprep.mubr.msk.bf16.mxu1 %vm697_vm0, %v12516_v38 }
 0x476   : > { %v12599_v61 = vor.u32 %v12597_v52, %v12596_v31  ;;  %v13141_v31 = vshll.u32 %v13102_v28, 16  ;;  %v13112_v28 = vld [vmem:[#allocation2 + $0xb8] sm:$0x1] }
 0x478   : > { %v12600_v43 = vsel %vm5372_vm9, %v12592_v0, %v12599_v61 }
 0x47c   : > { %17062 = vmatmul.mubr.msk.bf16.gmra.mrb[0].mxu1 %vm697_vm0, %v12528_v36 }
 0x47d   : > { %17065 = vmatprep.mubr.msk.bf16.mxu1 %vm697_vm0, %v12540_v19 }
 0x484   : > { %17066 = vmatmul.mubr.msk.bf16.gmra.mrb[4].mxu1 %vm697_vm0, %v12552_v30 }
 0x485   : > { %17069 = vmatprep.mubr.msk.bf16.mxu1 %vm697_vm0, %v12564_v4 }
 0x489   : > { %v20618_v17 = vpop.f32.mrb[144].mxu0 }
 0x48a   : > { %v20620_v44 = vpop.f32.mrb[145].mxu0 }
 0x48b   : > { %v20625_v45 = vpop.f32.mrb[146].mxu0 }
 0x48c   : > { %v20627_v38 = vpop.f32.mrb[147].mxu0  ;;  %17070 = vmatmul.mubr.msk.bf16.gmra.mrb[8].mxu1 %vm697_vm0, %v12576_v27  ;;  %v13104_v27 = vld [vmem:[#allocation2 + $0x58] sm:$0x1] }
 0x48d   : > { %17073 = vmatprep.mubr.msk.bf16.mxu1 %vm697_vm0, %v12588_v50  ;;  %v13106_v50 = vld [vmem:[#allocation2 + $0x70] sm:$0x1]  ;;  %v13153_v0 = vshll.u32 %v13104_v27, 16  ;;  %v13201_v27 = vshll.u32 %v13112_v28, 16 }
 0x48e   : > { %v13165_v61 = vshll.u32 %v13106_v50, 16 }
 0x490   : > { %v13167_v5 = vrot.slane %v13165_v61, 1  ;;  %v13116_v61 = vld [vmem:[#allocation2 + $0xe8] sm:$0x1] }
 0x491   : > { %v20638_v36 = vpop.f32.mrb[148].mxu0 }
 0x492   : > { %v20640_v23 = vpop.f32.mrb[149].mxu0 }
 0x493   : > { %v20643_v19 = vpop.f32.mrb[150].mxu0 }
 0x494   : > { %v20645_v51 = vpop.f32.mrb[151].mxu0  ;;  %17074 = vmatmul.mubr.msk.bf16.gmra.mrb[12].mxu1 %vm697_vm0, %v12600_v43 }
 0x495   : > { %17081 = vmatprep.mubr.msk.bf16.mxu1 %vm697_vm0, %v20329_v2 }
 0x499   : > { %v20650_v40 = vpop.f32.mrb[152].mxu0 }
 0x49a   : > { %v20652_v32 = vpop.f32.mrb[153].mxu0 }
 0x49b   : > { %v20654_v21 = vpop.f32.mrb[154].mxu0 }
 0x49c   : > { %v20659_v47 = vpop.f32.mrb[155].mxu0  ;;  %17082 = vmatmul.mubr.msk.bf16.vlgmr.msra.gmra.mrb[16].mxu1 %vm697_vm0, %v20331_v49 }
 0x49d   : > { %17114 = vmatpush3.bf16.msra.mxu1 %v20561_v39  ;;  %17085 = vmatprep.mubr.msk.bf16.mxu1 %vm697_vm0, %v20336_v54 }
 0x49e   : > { %17115 = vmatprep.subr.bf16.mxu1 %v17503_v37 }
 0x4a1   : > { %v20666_v2 = vpop.f32.mrb[156].mxu0  ;;  %17116 = vmatpush3.bf16.msra.mxu1 %v17503_v37  ;;  %v13168_v37 = vsel %vm10719_vm11, %v20389_v16, %v13167_v5  ;;  %v13117_v16 = vld [vmem:[#allocation2 + $0xf8] sm:$0xff]  ;;  %v13118_v5 = vld [vmem:[#allocation2 + $0x100] sm:$0x1] }
 0x4a2   : > { %v20668_v14 = vpop.f32.mrb[157].mxu0 }
 0x4a3   : > { %v20670_v57 = vpop.f32.mrb[158].mxu0 }
 0x4a4   : > { %21310 = vst [vmem:[#allocation5_spill] sm:$0xff] %v20670_v57  ;;  %v20672_v20 = vpop.f32.mrb[159].mxu0  ;;  %17086 = vmatmul.mubr.msk.bf16.gmra.mrb[20].mxu1 %vm697_vm0, %v20342_v3 }
 0x4a5   : > { %21311 = vst [vmem:[#allocation4_spill] sm:$0xff] %v20672_v20  ;;  %17089 = vmatprep.mubr.msk.bf16.mxu1 %vm697_vm0, %v20352_v48 }
 0x4a9   : > { %v20678_v49 = vpop.f32.mrb[128].mxu0 }
 0x4aa   : > { %v20680_v39 = vpop.f32.mrb[129].mxu0 }
 0x4ab   : > { %v20682_v54 = vpop.f32.mrb[130].mxu0 }
 0x4ac   : > { %v20684_v13 = vpop.f32.mrb[131].mxu0  ;;  %17090 = vmatmul.mubr.msk.bf16.gmra.mrb[24].mxu1 %vm697_vm0, %v20358_v41 }
 0x4ad   : > { %17093 = vmatprep.mubr.msk.bf16.mxu1 %vm697_vm0, %v20362_v46 }
 0x4b1   : > { %v20690_v30 = vpop.f32.mrb[132].mxu0 }
 0x4b2   : > { %v20692_v3 = vpop.f32.mrb[133].mxu0 }
 0x4b3   : > { %v20694_v56 = vpop.f32.mrb[134].mxu0 }
 0x4b4   : > { %v20696_v48 = vpop.f32.mrb[135].mxu0  ;;  %17094 = vmatmul.mubr.msk.bf16.gmra.mrb[28].mxu1 %vm697_vm0, %v20375_v63 }
 0x4b5   : > { %17097 = vmatprep.mubr.msk.bf16.mxu1 %vm697_vm0, %v17528_v34  ;;  %v13189_v34 = vshll.u32 %v13110_v55, 16  ;;  %v13225_v55 = vshll.u32 %v13116_v61, 16 }
 0x4b9   : > { %v20701_v4 = vpop.f32.mrb[136].mxu0 }
 0x4ba   : > { %v20703_v41 = vpop.f32.mrb[137].mxu0 }
 0x4bb   : > { %v20705_v1 = vpop.f32.mrb[138].mxu0 }
 0x4bc   : > { %v20707_v46 = vpop.f32.mrb[139].mxu0  ;;  %17098 = vmatmul.mubr.msk.bf16.gmra.mrb[0].mxu1 %vm697_vm0, %v17529_v12  ;;  %v13191_v12 = vrot.slane %v13189_v34, 1  ;;  %v13230_v34 = vshrl.u32 %v13117_v16, 16 }
 0x4bd   : > { %17101 = vmatprep.mubr.msk.bf16.mxu1 %vm697_vm0, %v20148_v24  ;;  %v13143_v24 = vrot.slane %v13141_v31, 1  ;;  %v13114_v31 = vld [vmem:[#allocation2 + $0xd0] sm:$0x1] }
 0x4be   : > { %v13213_v50 = vshll.u32 %v13114_v31, 16 }
 0x4c1   : > { %v20712_v25 = vpop.f32.mrb[140].mxu0 }
 0x4c2   : > { %v20714_v63 = vpop.f32.mrb[141].mxu0 }
 0x4c3   : > { %v20716_v7 = vpop.f32.mrb[142].mxu0 }
 0x4c4   : > { %v20718_v22 = vpop.f32.mrb[143].mxu0  ;;  %17102 = vmatmul.mubr.msk.bf16.gmra.mrb[4].mxu1 %vm697_vm0, %v20481_v15  ;;  %v13144_v15 = vsel %vm10719_vm11, %v20366_v29, %v13143_v24 }
 0x4c5   : > { %17105 = vmatprep.mubr.msk.bf16.mxu1 %vm697_vm0, %v20491_v26  ;;  %v13155_v26 = vrot.slane %v13153_v0, 1  ;;  %v13203_v0 = vrot.slane %v13201_v27, 1 }
 0x4cc   : > { %17106 = vmatmul.mubr.msk.bf16.gmra.mrb[8].mxu1 %vm697_vm0, %v20494_v8  ;;  %v13108_v8 = vld [vmem:[#allocation2 + $0x88] sm:$0x1] }
 0x4cd   : > { %17109 = vmatprep.mubr.msk.bf16.mxu1 %vm697_vm0, %v20195_v10  ;;  %v13156_v10 = vsel %vm10719_vm11, %v20371_v62, %v13155_v26  ;;  %v13177_v43 = vshll.u32 %v13108_v8, 16  ;;  %v13192_v62 = vsel %vm10719_vm11, %v20408_v35, %v13191_v12  ;;  %v13232_v26 = vshll.u32 %v13117_v16, 16 }
 0x4ce   : > { %v13204_v8 = vsel %vm10719_vm11, %v20414_v18, %v13203_v0  ;;  %v13237_v35 = vshll.u32 %v13118_v5, 16  ;;  %v13122_v18 = vld [vmem:[#allocation2 + $0x130] sm:$0x1] }
 0x4cf   : > { %v13179_v29 = vrot.slane %v13177_v43, 1  ;;  %v13119_v43 = vld [vmem:[#allocation2 + $0x110] sm:$0xff]  ;;  %v13261_v61 = vshll.u32 %v13122_v18, 16 }
 0x4d0   : > { %v13244_v12 = vshll.u32 %v13119_v43, 16  ;;  %v13239_v31 = vrot.slane %v13237_v35, 1  ;;  %v13242_v16 = vshrl.u32 %v13119_v43, 16  ;;  %v13126_v35 = vld [vmem:[#allocation2 + $0x160] sm:$0x1] }
 0x4d1   : > { %v13180_v24 = vsel %vm10719_vm11, %v20398_v60, %v13179_v29  ;;  %v13227_v29 = vrot.slane %v13225_v55, 1 }
 0x4d4   : > { %17110 = vmatmul.mubr.msk.bf16.gmra.mrb[12].mxu1 %vm697_vm0, %v20607_v58 }
 0x4d5   : > { %17117 = vmatprep.mubr.msk.bf16.mxu1 %vm697_vm0, %v13144_v15  ;;  %v13215_v15 = vrot.slane %v13213_v50, 1  ;;  %v13246_v50 = vrot.slane %v13244_v12, 1  ;;  %v13285_v12 = vshll.u32 %v13126_v35, 16 }
 0x4d7   : > { %v13216_v60 = vsel %vm10719_vm11, %v20419_v42, %v13215_v15  ;;  %v13247_v5 = vor.u32 %v13246_v50, %v13242_v16  ;;  %v13287_v43 = vrot.slane %v13285_v12, 1 }
 0x4d9   : > { %v13288_v50 = vsel %vm10719_vm11, %v20517_v6, %v13287_v43 }
 0x4dc   : > { %17118 = vmatmul.mubr.msk.bf16.vlgmr.msra.gmra.mrb[16].mxu1 %vm697_vm0, %v13156_v10  ;;  %v13234_v10 = vrot.slane %v13232_v26, 1 }
 0x4dd   : > { %17121 = vmatprep.mubr.msk.bf16.mxu1 %vm697_vm0, %v13168_v37  ;;  %v13121_v37 = vld [vmem:[#allocation2 + $0x128] sm:$0xff] }
 0x4de   : > { %v13235_v28 = vor.u32 %v13234_v10, %v13230_v34  ;;  %v13256_v27 = vshll.u32 %v13121_v37, 16  ;;  %v13254_v26 = vshrl.u32 %v13121_v37, 16  ;;  %v13124_v10 = vld [vmem:[#allocation2 + $0x148] sm:$0x1]  ;;  %v13128_v37 = vld [vmem:[#allocation2 + $0x178] sm:$0x1] }
 0x4df   : > { %v13273_v34 = vshll.u32 %v13124_v10, 16 }
 0x4e0   : > { %v13240_v42 = vsel %vm10719_vm11, %v13235_v28, %v13239_v31  ;;  %v13258_v15 = vrot.slane %v13256_v27, 1  ;;  %v13129_v28 = vld [vmem:[#allocation2 + $0x188] sm:$0xff]  ;;  %v13130_v27 = vld [vmem:[#allocation2 + $0x190] sm:$0x1] }
 0x4e1   : > { %v13275_v31 = vrot.slane %v13273_v34, 1 }
 0x4e2   : > { %v13259_v55 = vor.u32 %v13258_v15, %v13254_v26  ;;  %v13309_v15 = vshll.u32 %v13130_v27, 16 }
 0x4e3   : > { %v13276_v18 = vsel %vm10719_vm11, %v20500_v59, %v13275_v31 }
 0x4e4   : > { %17122 = vmatmul.mubr.msk.bf16.gmra.mrb[20].mxu1 %vm697_vm0, %v13180_v24  ;;  %v13120_v24 = vld [vmem:[#allocation2 + $0x118] sm:$0x1] }
 0x4e5   : > { %17125 = vmatprep.mubr.msk.bf16.mxu1 %vm697_vm0, %v13192_v62  ;;  %v13228_v62 = vsel %vm10719_vm11, %v20425_v53, %v13227_v29  ;;  %v13249_v0 = vshll.u32 %v13120_v24, 16  ;;  %v13304_v24 = vshll.u32 %v13129_v28, 16 }
 0x4ec   : > { %17126 = vmatmul.mubr.msk.bf16.gmra.mrb[24].mxu1 %vm697_vm0, %v13204_v8  ;;  %v13251_v8 = vrot.slane %v13249_v0, 1  ;;  %v13302_v0 = vshrl.u32 %v13129_v28, 16 }
 0x4ed   : > { %17129 = vmatprep.mubr.msk.bf16.mxu1 %vm697_vm0, %v13216_v60  ;;  %v13263_v60 = vrot.slane %v13261_v61, 1  ;;  %v13132_v61 = vld [vmem:[#allocation2 + $0x1a8] sm:$0x1] }
 0x4ee   : > { %v13252_v53 = vsel %vm10719_vm11, %v13247_v5, %v13251_v8  ;;  %v13311_v5 = vrot.slane %v13309_v15, 1  ;;  %v13318_v8 = vrot.slane %v12597_v52, 1  ;;  %v20780_v52 = vld [vmem:[%s21229_s4] ss:$0 sm:$0xff] }
 0x4ef   : > { %v13264_v29 = vsel %vm10719_vm11, %v13259_v55, %v13263_v60  ;;  %v13321_v55 = vshll.u32 %v13132_v61, 16 }
 0x4f0   : > { %v13319_v60 = vor.u32 %v13318_v8, %v12594_v9 }
 0x4f1   : > { %v13323_v10 = vrot.slane %v13321_v55, 1 }
 0x4f3   : > { %v13324_v35 = vsel %vm10719_vm11, %v13319_v60, %v13323_v10 }
 0x4f4   : > { %17130 = vmatmul.mubr.msk.bf16.gmra.mrb[28].mxu1 %vm697_vm0, %v13228_v62  ;;  %v13297_v62 = vshll.u32 %v13128_v37, 16 }
 0x4f5   : > { %17133 = vmatprep.mubr.msk.bf16.mxu1 %vm697_vm0, %v13240_v42  ;;  %v13306_v42 = vrot.slane %v13304_v24, 1 }
 0x4f6   : > { %v13299_v16 = vrot.slane %v13297_v62, 1 }
 0x4f7   : > { %v13307_v26 = vor.u32 %v13306_v42, %v13302_v0  ;;  %v17541_v0 = vmov 1935823168  }
 0x4f8   : > { %v13300_v59 = vsel %vm10719_vm11, %v20521_v11, %v13299_v16  ;;  %v14655_v42 = vunpack.c.l.s4 %v17541_v0 }
 0x4f9   : > { %v13312_v6 = vsel %vm10719_vm11, %v13307_v26, %v13311_v5 }
 0x4fc   : > { %17134 = vmatmul.mubr.msk.bf16.gmra.mrb[0].mxu1 %vm697_vm0, %v13252_v53 }
 0x4fd   : > { %17137 = vmatprep.mubr.msk.bf16.mxu1 %vm697_vm0, %v13264_v29 }
 0x504   : > { %17138 = vmatmul.mubr.msk.bf16.gmra.mrb[4].mxu1 %vm697_vm0, %v13276_v18 }
 0x505   : > { %17141 = vmatprep.mubr.msk.bf16.mxu1 %vm697_vm0, %v13288_v50 }
 0x50c   : > { %17142 = vmatmul.mubr.msk.bf16.gmra.mrb[8].mxu1 %vm697_vm0, %v13300_v59 }
 0x50d   : > { %17145 = vmatprep.mubr.msk.bf16.mxu1 %vm697_vm0, %v13312_v6  ;;  %v14656_v6 = vunpack.c.0.s8 %v14655_v42 }
 0x514   : > { %17146 = vmatmul.mubr.msk.bf16.gmra.mrb[12].mxu1 %vm697_vm0, %v13324_v35 }
 0x5af   : > { %v17119_v53 = vpop.f32.mrb[16].mxu1 }
 0x5b0   : > { %v17153_v11 = vadd.f32 %v17119_v53, %v20678_v49  ;;  %v13424_v34 = vpop.f32.mrb[17].mxu1 }
 0x5b1   : > { %v17154_v29 = vadd.f32 %v13424_v34, %v20680_v39  ;;  %v17120_v12 = vpop.f32.mrb[18].mxu1 }
 0x5b2   : > { %v13592_v58 = vadd.f32 %v17153_v11, %v20780_v52  ;;  %v17155_v9 = vadd.f32 %v17120_v12, %v20682_v54  ;;  %v13427_v28 = vpop.f32.mrb[19].mxu1 }
 0x5b3   : > { %v13590_v31 = vadd.f32 %v17154_v29, %v20780_v52  ;;  %v17156_v43 = vadd.f32 %v13427_v28, %v20684_v13 }
 0x5b4   : > { %v13593_v37 = vadd.f32 %v17155_v9, %v20780_v52  ;;  %v13624_v27 = vmax.f32 %v13592_v58, 0.0 }
 0x5b5   : > { %v13591_v24 = vadd.f32 %v17156_v43, %v20780_v52  ;;  %v13622_v49 = vmax.f32 %v13590_v31, 0.0 }
 0x5b6   : > { %v13625_v18 = vmax.f32 %v13593_v37, 0.0 }
 0x5b7   : > { %v13623_v62 = vmax.f32 %v13591_v24, 0.0  ;;  %v17123_v50 = vpop.f32.mrb[20].mxu1 }
 0x5b8   : > { %v13655_v39 = vpack.c.bf16 %v13625_v18, %v13624_v27  ;;  %v17157_v15 = vadd.f32 %v17123_v50, %v20690_v30  ;;  %v13440_v54 = vpop.f32.mrb[21].mxu1 }
 0x5b9   : > { %v13654_v61 = vpack.c.bf16 %v13623_v62, %v13622_v49  ;;  %v17158_v16 = vadd.f32 %v13440_v54, %v20692_v3  ;;  %v17124_v26 = vpop.f32.mrb[22].mxu1 }
 0x5ba   : > { %v13596_v13 = vadd.f32 %v17157_v15, %v20780_v52  ;;  %v17159_v5 = vadd.f32 %v17124_v26, %v20694_v56  ;;  %v13443_v8 = vpop.f32.mrb[23].mxu1 }
 0x5bb   : > { %v13670_v55 = vmax.bf16 %v13655_v39, %v13654_v61  ;;  %v17160_v59 = vadd.f32 %v13443_v8, %v20696_v48  ;;  %v13594_v60 = vadd.f32 %v17158_v16, %v20780_v52  ;;  %v21312_v48 = vld [vmem:[#allocation3_spill] sm:$0xff] }
 0x5bc   : > { %v13597_v10 = vadd.f32 %v17159_v5, %v20780_v52  ;;  %v13628_v3 = vmax.f32 %v13596_v13, 0.0  ;;  %v20802_v9 = vsub.s32 %v14656_v6, %v21312_v48 }
 0x5bd   : > { %v13686_v35 = vcombine.high %v13670_v55, %v13670_v55  ;;  %v13693_v30 = vrot.slane %v13670_v55, %v17740_v33  ;;  %v13595_v53 = vadd.f32 %v17160_v59, %v20780_v52  ;;  %v13626_v28 = vmax.f32 %v13594_v60, 0.0 }
 0x5be   : > { %v13629_v11 = vmax.f32 %v13597_v10, 0.0 }
 0x5bf   : > { %v13700_v34 = vrot.slane %v13686_v35, %v17740_v33  ;;  %v13701_v29 = vcombine.high %v13693_v30, %v13693_v30  ;;  %v13709_v56 = vrot.slane %v13693_v30, %v17740_v33  ;;  %v13627_v12 = vmax.f32 %v13595_v53, 0.0  ;;  %v17127_v58 = vpop.f32.mrb[24].mxu1 }
 0x5c0   : > { %v13657_v31 = vpack.c.bf16 %v13629_v11, %v13628_v3  ;;  %v17161_v43 = vadd.f32 %v17127_v58, %v20701_v4  ;;  %v13456_v37 = vpop.f32.mrb[25].mxu1 }
 0x5c1   : > { %v13702_v24 = vcombine.high %v13700_v34, %v13700_v34  ;;  %v13716_v27 = vrot.slane %v13700_v34, %v17740_v33  ;;  %v13723_v18 = vrot.slane %v13701_v29, %v17740_v33  ;;  %v13731_v49 = vcombine.high %v13709_v56, %v13709_v56  ;;  %v20807_v62 = vpop.f32.mrb[26].mxu1 }
 0x5c2   : > { %v14143_v50 = vshrl.u32 %v13709_v56, 16  ;;  %v13656_v39 = vpack.c.bf16 %v13627_v12, %v13626_v28  ;;  %v20810_v0 = vadd.f32 %v17161_v43, %v20780_v52  ;;  %v20813_v42 = vadd.f32 %v13456_v37, %v20703_v41  ;;  %v20815_v15 = vpop.f32.mrb[27].mxu1 }
 0x5c3   : > { %v13730_v4 = vrot.slane %v13702_v24, %v17740_v33  ;;  %v13732_v54 = vcombine.high %v13716_v27, %v13716_v27  ;;  %v13733_v61 = vcombine.high %v13723_v18, %v13723_v18  ;;  %v14148_v16 = vshrl.u32 %v13723_v18, 16 }
 0x5c4   : > { %v14153_v26 = vshrl.u32 %v13731_v49, 16  ;;  %v14163_v13 = vshrl.u32 %v13716_v27, 16  ;;  %v14526_v5 = vmax.bf16 %v14143_v50, %v13709_v56  ;;  %v13671_v8 = vmax.bf16 %v13657_v31, %v13656_v39 }
 0x5c5   : > { %v13734_v55 = vcombine.high %v13730_v4, %v13730_v4  ;;  %v14158_v59 = vshrl.u32 %v13733_v61, 16  ;;  %v14168_v6 = vshrl.u32 %v13730_v4, 16  ;;  %v14173_v60 = vshrl.u32 %v13732_v54, 16 }
 0x5c6   : > { %v14527_v10 = vmax.bf16 %v14148_v16, %v13723_v18  ;;  %v14528_v35 = vmax.bf16 %v14153_v26, %v13731_v49  ;;  %v14530_v30 = vmax.bf16 %v14163_v13, %v13716_v27  ;;  %v14660_v41 = vrot.slane %v14526_v5, %v20802_v9 }
 0x5c7   : > { %v14178_v53 = vshrl.u32 %v13734_v55, 16  ;;  %v14529_v3 = vmax.bf16 %v14158_v59, %v13733_v61  ;;  %v14531_v11 = vmax.bf16 %v14168_v6, %v13730_v4  ;;  %v14532_v34 = vmax.bf16 %v14173_v60, %v13732_v54  ;;  %v20819_v29 = vpop.f32.mrb[28].mxu1 }
 0x5c8   : > { %v14667_v12 = vrot.slane %v14660_v41, %v20802_v9  ;;  %v14674_v56 = vrot.slane %v14527_v10, %v20802_v9  ;;  %v14688_v58 = vrot.slane %v14528_v35, %v20802_v9  ;;  %v14716_v48 = vrot.slane %v14530_v30, %v20802_v9  ;;  %v20825_v28 = vpop.f32.mrb[29].mxu1 }
 0x5c9   : > { %v14533_v31 = vmax.bf16 %v14178_v53, %v13734_v55  ;;  %v14702_v43 = vrot.slane %v14529_v3, %v20802_v9  ;;  %v14730_v37 = vrot.slane %v14531_v11, %v20802_v9  ;;  %v14744_v24 = vrot.slane %v14532_v34, %v20802_v9  ;;  %v20830_v27 = vpop.f32.mrb[30].mxu1 }
 0x5ca   : > { %v14681_v18 = vrot.slane %v14674_v56, %v20802_v9  ;;  %v14695_v49 = vrot.slane %v14688_v58, %v20802_v9  ;;  %v14723_v50 = vrot.slane %v14716_v48, %v20802_v9  ;;  %v15550_v39 = vunpack.c.l.b16 %v14667_v12  ;;  %v20835_v4 = vpop.f32.mrb[31].mxu1 }
 0x5cb   : > { %v14709_v54 = vrot.slane %v14702_v43, %v20802_v9  ;;  %v14737_v61 = vrot.slane %v14730_v37, %v20802_v9  ;;  %v14751_v16 = vrot.slane %v14744_v24, %v20802_v9  ;;  %v14758_v26 = vrot.slane %v14533_v31, %v20802_v9 }
 0x5cc   : > { %v15551_v13 = vunpack.c.l.b16 %v14681_v18  ;;  %v15552_v5 = vunpack.c.l.b16 %v14695_v49  ;;  %v15554_v55 = vunpack.c.l.b16 %v14723_v50  ;;  %v13735_v59 = vcombine.high %v13671_v8, %v13671_v8 }
 0x5cd   : > { %v14765_v6 = vrot.slane %v14758_v26, %v20802_v9  ;;  %v15553_v60 = vunpack.c.l.b16 %v14709_v54  ;;  %v15555_v10 = vunpack.c.l.b16 %v14737_v61  ;;  %v15556_v35 = vunpack.c.l.b16 %v14751_v16 }
 0x5ce   : > { %v15614_v30 = vrot.slane %v15551_v13, 7  ;;  %v15616_v41 = vrot.slane %v15552_v5, 6  ;;  %v15620_v53 = vrot.slane %v15554_v55, 4  ;;  %v13742_v3 = vrot.slane %v13671_v8, %v17740_v33 }
 0x5cf   : > { %v15557_v11 = vunpack.c.l.b16 %v14765_v6  ;;  %v15618_v34 = vrot.slane %v15553_v60, 5  ;;  %v15622_v12 = vrot.slane %v15555_v10, 3  ;;  %v15624_v56 = vrot.slane %v15556_v35, 2  ;;  %v20843_v58 = vpop.f32.mrb[0].mxu1 }
 0x5d0   : > { %v15615_v48 = vsel %vm9525_vm1, %v15614_v30, %v15550_v39  ;;  %v13749_v31 = vrot.slane %v13735_v59, %v17740_v33  ;;  %v13750_v43 = vcombine.high %v13742_v3, %v13742_v3  ;;  %v13758_v37 = vrot.slane %v13742_v3, %v17740_v33  ;;  %v20848_v24 = vpop.f32.mrb[1].mxu1 }
 0x5d1   : > { %v15617_v18 = vsel %vm9528_vm2, %v15616_v41, %v15615_v48  ;;  %v15626_v49 = vrot.slane %v15557_v11, 1  ;;  %v20854_v50 = vadd.f32 %v20813_v42, %v20780_v52  ;;  %v20856_v54 = vpop.f32.mrb[2].mxu1 }
 0x5d2   : > { %v15619_v39 = vsel %vm9531_vm3, %v15618_v34, %v15617_v18  ;;  %v13751_v61 = vcombine.high %v13749_v31, %v13749_v31  ;;  %v13765_v16 = vrot.slane %v13749_v31, %v17740_v33  ;;  %v13772_v26 = vrot.slane %v13750_v43, %v17740_v33  ;;  %v20861_v13 = vpop.f32.mrb[3].mxu1 }
 0x5d3   : > { %v15621_v5 = vsel %vm9534_vm4, %v15620_v53, %v15619_v39  ;;  %v13780_v55 = vcombine.high %v13758_v37, %v13758_v37  ;;  %v14183_v59 = vshrl.u32 %v13758_v37, 16 }
 0x5d4   : > { %v15623_v42 = vsel %vm9537_vm5, %v15622_v12, %v15621_v5  ;;  %v13779_v60 = vrot.slane %v13751_v61, %v17740_v33  ;;  %v13781_v10 = vcombine.high %v13765_v16, %v13765_v16  ;;  %v13782_v35 = vcombine.high %v13772_v26, %v13772_v26 }
 0x5d5   : > { %v15625_v30 = vsel %vm9540_vm6, %v15624_v56, %v15623_v42  ;;  %v14188_v41 = vshrl.u32 %v13772_v26, 16  ;;  %v14193_v3 = vshrl.u32 %v13780_v55, 16  ;;  %v14203_v11 = vshrl.u32 %v13765_v16, 16 }
 0x5d6   : > { %v15627_v53 = vsel %vm9543_vm7, %v15626_v49, %v15625_v30  ;;  %v13783_v34 = vcombine.high %v13779_v60, %v13779_v60  ;;  %v14198_v48 = vshrl.u32 %v13782_v35, 16  ;;  %v14208_v12 = vshrl.u32 %v13779_v60, 16 }
 0x5d7   : > { %v15726_v31 = vpack.c.b16 %v15627_v53, %v15627_v53  ;;  %v14213_v43 = vshrl.u32 %v13781_v10, 16  ;;  %v14534_v18 = vmax.bf16 %v14183_v59, %v13758_v37  ;;  %v14535_v39 = vmax.bf16 %v14188_v41, %v13772_v26  ;;  %v20875_v61 = vpop.f32.mrb[4].mxu1 }
 0x5d8   : > { %v14218_v56 = vshrl.u32 %v13783_v34, 16  ;;  %v14536_v5 = vmax.bf16 %v14193_v3, %v13780_v55  ;;  %v14537_v42 = vmax.bf16 %v14198_v48, %v13782_v35  ;;  %v14538_v6 = vmax.bf16 %v14203_v11, %v13765_v16  ;;  %v20877_v8 = vpop.f32.mrb[5].mxu1 }
 0x5d9   : > { %15743 = vst.msk [vmem:[%s20872_s19] sm:$0xf] %vm15742_vm15, %v15726_v31  ;;  %v14539_v20 = vmax.bf16 %v14208_v12, %v13779_v60  ;;  %v14540_v57 = vmax.bf16 %v14213_v43, %v13781_v10  ;;  %v14772_v49 = vrot.slane %v14534_v18, %v20802_v9  ;;  %v14786_v30 = vrot.slane %v14535_v39, %v20802_v9  ;;  %v20883_v53 = vpop.f32.mrb[6].mxu1 }
 0x5da   : > { %v14541_v37 = vmax.bf16 %v14218_v56, %v13783_v34  ;;  %v14800_v26 = vrot.slane %v14536_v5, %v20802_v9  ;;  %v14814_v59 = vrot.slane %v14537_v42, %v20802_v9  ;;  %v14828_v55 = vrot.slane %v14538_v6, %v20802_v9  ;;  %v20888_v16 = vpop.f32.mrb[7].mxu1 }
 0x5db   : > { %v14779_v35 = vrot.slane %v14772_v49, %v20802_v9  ;;  %v14793_v60 = vrot.slane %v14786_v30, %v20802_v9  ;;  %v14842_v10 = vrot.slane %v14539_v20, %v20802_v9  ;;  %v14856_v41 = vrot.slane %v14540_v57, %v20802_v9 }
 0x5dc   : > { %v14807_v3 = vrot.slane %v14800_v26, %v20802_v9  ;;  %v14821_v11 = vrot.slane %v14814_v59, %v20802_v9  ;;  %v14835_v34 = vrot.slane %v14828_v55, %v20802_v9  ;;  %v14870_v48 = vrot.slane %v14541_v37, %v20802_v9 }
 0x5dd   : > { %v14849_v6 = vrot.slane %v14842_v10, %v20802_v9  ;;  %v14863_v12 = vrot.slane %v14856_v41, %v20802_v9  ;;  %v15558_v31 = vunpack.c.l.b16 %v14779_v35  ;;  %v15559_v43 = vunpack.c.l.b16 %v14793_v60 }
 0x5de   : > { %v14877_v18 = vrot.slane %v14870_v48, %v20802_v9  ;;  %v15560_v39 = vunpack.c.l.b16 %v14807_v3  ;;  %v15561_v20 = vunpack.c.l.b16 %v14821_v11  ;;  %v15562_v56 = vunpack.c.l.b16 %v14835_v34 }
 0x5df   : > { %v15563_v57 = vunpack.c.l.b16 %v14849_v6  ;;  %v15564_v5 = vunpack.c.l.b16 %v14863_v12  ;;  %v15628_v42 = vrot.slane %v15559_v43, 7  ;;  %v17163_v49 = vadd.f32 %v20807_v62, %v20705_v1  ;;  %v20903_v30 = vpop.f32.mrb[8].mxu1 }
 0x5e0   : > { %v15565_v37 = vunpack.c.l.b16 %v14877_v18  ;;  %v15630_v26 = vrot.slane %v15560_v39, 6  ;;  %v15632_v59 = vrot.slane %v15561_v20, 5  ;;  %v15634_v55 = vrot.slane %v15562_v56, 4  ;;  %v20905_v10 = vpop.f32.mrb[9].mxu1 }
 0x5e1   : > { %v15629_v35 = vsel %vm9525_vm1, %v15628_v42, %v15558_v31  ;;  %v15636_v60 = vrot.slane %v15563_v57, 3  ;;  %v15638_v41 = vrot.slane %v15564_v5, 2  ;;  %v13601_v3 = vadd.f32 %v17163_v49, %v20780_v52  ;;  %v20909_v11 = vpop.f32.mrb[10].mxu1 }
 0x5e2   : > { %v15631_v34 = vsel %vm9528_vm2, %v15630_v26, %v15629_v35  ;;  %v15640_v48 = vrot.slane %v15565_v37, 1  ;;  %v17164_v1 = vadd.f32 %v20815_v15, %v20707_v46  ;;  %v17165_v62 = vadd.f32 %v20819_v29, %v20712_v25  ;;  %v20916_v6 = vpop.f32.mrb[11].mxu1 }
 0x5e3   : > { %v15633_v12 = vsel %vm9531_vm3, %v15632_v59, %v15631_v34  ;;  %v13633_v31 = vmax.f32 %v13601_v3, 0.0  ;;  %v17166_v43 = vadd.f32 %v20825_v28, %v20714_v63  ;;  %v17167_v18 = vadd.f32 %v20830_v27, %v20716_v7 }
 0x5e4   : > { %v15635_v39 = vsel %vm9534_vm4, %v15634_v55, %v15633_v12  ;;  %v13599_v20 = vadd.f32 %v17164_v1, %v20780_v52  ;;  %v13604_v46 = vadd.f32 %v17165_v62, %v20780_v52  ;;  %v17168_v25 = vadd.f32 %v20835_v4, %v20718_v22 }
 0x5e5   : > { %v15637_v15 = vsel %vm9537_vm5, %v15636_v60, %v15635_v39  ;;  %v21313_v29 = vmax.f32 %v20810_v0, 0.0  ;;  %v13602_v57 = vadd.f32 %v17166_v43, %v20780_v52  ;;  %v13605_v63 = vadd.f32 %v17167_v18, %v20780_v52 }
 0x5e6   : > { %v15639_v7 = vsel %vm9540_vm6, %v15638_v41, %v15637_v15  ;;  %v13631_v28 = vmax.f32 %v13599_v20, 0.0  ;;  %v13636_v27 = vmax.f32 %v13604_v46, 0.0  ;;  %v13603_v5 = vadd.f32 %v17168_v25, %v20780_v52 }
 0x5e7   : > { %v13659_v56 = vpack.c.bf16 %v13633_v31, %v21313_v29  ;;  %v15641_v42 = vsel %vm9543_vm7, %v15640_v48, %v15639_v7  ;;  %v13634_v49 = vmax.f32 %v13602_v57, 0.0  ;;  %v13637_v22 = vmax.f32 %v13605_v63, 0.0  ;;  %v20938_v0 = vpop.f32.mrb[12].mxu1 }
 0x5e8   : > { %v17169_v4 = vadd.f32 %v20843_v58, %v20618_v17  ;;  %v15727_v37 = vpack.c.b16 %v15641_v42, %v15641_v42  ;;  %v21314_v26 = vmax.f32 %v20854_v50, 0.0  ;;  %v13635_v55 = vmax.f32 %v13603_v5, 0.0  ;;  %v20944_v60 = vpop.f32.mrb[13].mxu1 }
 0x5e9   : > { %v17170_v35 = vadd.f32 %v20848_v24, %v20620_v44  ;;  %v13661_v41 = vpack.c.bf16 %v13637_v22, %v13636_v27  ;;  %v17171_v34 = vadd.f32 %v20856_v54, %v20625_v45  ;;  %v17172_v17 = vadd.f32 %v20861_v13, %v20627_v38  ;;  %v20951_v58 = vpop.f32.mrb[14].mxu1 }
 0x5ea   : > { %v13658_v59 = vpack.c.bf16 %v13631_v28, %v21314_v26  ;;  %v13608_v3 = vadd.f32 %v17169_v4, %v20780_v52  ;;  %15744 = vst.msk [vmem:[%s20872_s19 + $0x4] sm:$0xf] %vm15742_vm15, %v15727_v37  ;;  %v13660_v48 = vpack.c.bf16 %v13635_v55, %v13634_v49  ;;  %v17173_v44 = vadd.f32 %v20875_v61, %v20638_v36  ;;  %v20958_v24 = vpop.f32.mrb[15].mxu1 }
 0x5eb   : > { %v13606_v1 = vadd.f32 %v17170_v35, %v20780_v52  ;;  %v13609_v62 = vadd.f32 %v17171_v34, %v20780_v52  ;;  %v13607_v45 = vadd.f32 %v17172_v17, %v20780_v52  ;;  %v17174_v38 = vadd.f32 %v20877_v8, %v20640_v23 }
 0x5ec   : > { %v13672_v50 = vmax.bf16 %v13659_v56, %v13658_v59  ;;  %v13673_v12 = vmax.bf16 %v13661_v41, %v13660_v48  ;;  %v13640_v31 = vmax.f32 %v13608_v3, 0.0  ;;  %v20966_v20 = vadd.f32 %v17173_v44, %v20780_v52 }
 0x5ed   : > { %v13638_v43 = vmax.f32 %v13606_v1, 0.0  ;;  %v13641_v18 = vmax.f32 %v13609_v62, 0.0  ;;  %v13639_v39 = vmax.f32 %v13607_v45, 0.0  ;;  %v20976_v29 = vadd.f32 %v17174_v38, %v20780_v52 }
 0x5ee   : > { %v13784_v54 = vcombine.high %v13672_v50, %v13672_v50  ;;  %v13791_v13 = vrot.slane %v13672_v50, %v17740_v33  ;;  %v13833_v25 = vcombine.high %v13673_v12, %v13673_v12  ;;  %v13840_v15 = vrot.slane %v13673_v12, %v17740_v33 }
 0x5ef   : > { %v20971_v23 = vpack.c.bf16 %v13641_v18, %v13640_v31  ;;  %v20973_v8 = vpack.c.bf16 %v13639_v39, %v13638_v43 }
 0x5f0   : > { %v13798_v36 = vrot.slane %v13784_v54, %v17740_v33  ;;  %v13799_v61 = vcombine.high %v13791_v13, %v13791_v13  ;;  %v13807_v46 = vrot.slane %v13791_v13, %v17740_v33  ;;  %v13847_v27 = vrot.slane %v13833_v25, %v17740_v33 }
 0x5f1   : > { %v13848_v5 = vcombine.high %v13840_v15, %v13840_v15  ;;  %v20982_v42 = vrot.slane %v13840_v15, %v17740_v33 }
 0x5f2   : > { %v13800_v56 = vcombine.high %v13798_v36, %v13798_v36  ;;  %v13814_v57 = vrot.slane %v13798_v36, %v17740_v33  ;;  %v13821_v63 = vrot.slane %v13799_v61, %v17740_v33  ;;  %v13829_v7 = vcombine.high %v13807_v46, %v13807_v46 }
 0x5f3   : > { %v14223_v28 = vshrl.u32 %v13807_v46, 16  ;;  %v13849_v35 = vcombine.high %v13847_v27, %v13847_v27 }
 0x5f4   : > { %v13828_v49 = vrot.slane %v13800_v56, %v17740_v33  ;;  %v13830_v22 = vcombine.high %v13814_v57, %v13814_v57  ;;  %v13831_v4 = vcombine.high %v13821_v63, %v13821_v63  ;;  %v14228_v37 = vshrl.u32 %v13821_v63, 16 }
 0x5f5   : > { %v14233_v26 = vshrl.u32 %v13829_v7, 16  ;;  %v14243_v59 = vshrl.u32 %v13814_v57, 16  ;;  %v14542_v55 = vmax.bf16 %v14223_v28, %v13807_v46 }
 0x5f6   : > { %v13832_v41 = vcombine.high %v13828_v49, %v13828_v49  ;;  %v14238_v3 = vshrl.u32 %v13831_v4, 16  ;;  %v14248_v34 = vshrl.u32 %v13828_v49, 16  ;;  %v14253_v17 = vshrl.u32 %v13830_v22, 16 }
 0x5f7   : > { %v14543_v50 = vmax.bf16 %v14228_v37, %v13821_v63  ;;  %v14544_v48 = vmax.bf16 %v14233_v26, %v13829_v7  ;;  %v14546_v1 = vmax.bf16 %v14243_v59, %v13814_v57  ;;  %v14884_v44 = vrot.slane %v14542_v55, %v20802_v9 }
 0x5f8   : > { %v14258_v62 = vshrl.u32 %v13832_v41, 16  ;;  %v14545_v45 = vmax.bf16 %v14238_v3, %v13831_v4  ;;  %v14547_v38 = vmax.bf16 %v14248_v34, %v13828_v49  ;;  %v14548_v54 = vmax.bf16 %v14253_v17, %v13830_v22 }
 0x5f9   : > { %v14891_v13 = vrot.slane %v14884_v44, %v20802_v9  ;;  %v14898_v12 = vrot.slane %v14543_v50, %v20802_v9  ;;  %v14912_v31 = vrot.slane %v14544_v48, %v20802_v9  ;;  %v14940_v43 = vrot.slane %v14546_v1, %v20802_v9 }
 0x5fa   : > { %v14549_v18 = vmax.bf16 %v14258_v62, %v13832_v41  ;;  %v14926_v39 = vrot.slane %v14545_v45, %v20802_v9  ;;  %v14954_v36 = vrot.slane %v14547_v38, %v20802_v9  ;;  %v14968_v61 = vrot.slane %v14548_v54, %v20802_v9 }
 0x5fb   : > { %v14905_v46 = vrot.slane %v14898_v12, %v20802_v9  ;;  %v14919_v25 = vrot.slane %v14912_v31, %v20802_v9  ;;  %v14947_v15 = vrot.slane %v14940_v43, %v20802_v9  ;;  %v15566_v56 = vunpack.c.l.b16 %v14891_v13 }
 0x5fc   : > { %v14933_v57 = vrot.slane %v14926_v39, %v20802_v9  ;;  %v14961_v63 = vrot.slane %v14954_v36, %v20802_v9  ;;  %v14975_v7 = vrot.slane %v14968_v61, %v20802_v9  ;;  %v14982_v28 = vrot.slane %v14549_v18, %v20802_v9 }
 0x5fd   : > { %v15567_v49 = vunpack.c.l.b16 %v14905_v46  ;;  %v15568_v22 = vunpack.c.l.b16 %v14919_v25  ;;  %v15570_v4 = vunpack.c.l.b16 %v14947_v15  ;;  %v13863_v37 = vrot.slane %v13847_v27, %v17740_v33 }
 0x5fe   : > { %v14989_v26 = vrot.slane %v14982_v28, %v20802_v9  ;;  %v15569_v59 = vunpack.c.l.b16 %v14933_v57  ;;  %v15571_v55 = vunpack.c.l.b16 %v14961_v63  ;;  %v15572_v41 = vunpack.c.l.b16 %v14975_v7 }
 0x5ff   : > { %v15642_v3 = vrot.slane %v15567_v49, 7  ;;  %v15644_v34 = vrot.slane %v15568_v22, 6  ;;  %v15648_v17 = vrot.slane %v15570_v4, 4  ;;  %v13870_v50 = vrot.slane %v13848_v5, %v17740_v33 }
 0x600   : > { %v15573_v48 = vunpack.c.l.b16 %v14989_v26  ;;  %v15646_v1 = vrot.slane %v15569_v59, 5  ;;  %v15650_v44 = vrot.slane %v15571_v55, 3  ;;  %v15652_v62 = vrot.slane %v15572_v41, 2 }
 0x601   : > { %v15643_v45 = vsel %vm9525_vm1, %v15642_v3, %v15566_v56  ;;  %v13877_v38 = vrot.slane %v13849_v35, %v17740_v33  ;;  %v13878_v27 = vcombine.high %v20982_v42, %v20982_v42  ;;  %v13879_v54 = vcombine.high %v13863_v37, %v13863_v37 }
 0x602   : > { %v15645_v13 = vsel %vm9528_vm2, %v15644_v34, %v15643_v45  ;;  %v15654_v12 = vrot.slane %v15573_v48, 1  ;;  %v13880_v31 = vcombine.high %v13870_v50, %v13870_v50  ;;  %v14263_v43 = vshrl.u32 %v20982_v42, 16 }
 0x603   : > { %v15647_v5 = vsel %vm9531_vm3, %v15646_v1, %v15645_v13  ;;  %v13881_v18 = vcombine.high %v13877_v38, %v13877_v38  ;;  %v14268_v39 = vshrl.u32 %v13870_v50, 16  ;;  %v14273_v36 = vshrl.u32 %v13878_v27, 16 }
 0x604   : > { %v15649_v61 = vsel %vm9534_vm4, %v15648_v17, %v15647_v5  ;;  %v14278_v46 = vshrl.u32 %v13880_v31, 16  ;;  %v14283_v25 = vshrl.u32 %v13863_v37, 16  ;;  %v14288_v35 = vshrl.u32 %v13877_v38, 16 }
 0x605   : > { %v15651_v15 = vsel %vm9537_vm5, %v15650_v44, %v15649_v61  ;;  %v14293_v56 = vshrl.u32 %v13879_v54, 16  ;;  %v14298_v57 = vshrl.u32 %v13881_v18, 16  ;;  %v14550_v63 = vmax.bf16 %v14263_v43, %v20982_v42 }
 0x606   : > { %v15653_v7 = vsel %vm9540_vm6, %v15652_v62, %v15651_v15  ;;  %v14551_v28 = vmax.bf16 %v14268_v39, %v13870_v50  ;;  %v14552_v49 = vmax.bf16 %v14273_v36, %v13878_v27  ;;  %v14553_v22 = vmax.bf16 %v14278_v46, %v13880_v31 }
 0x607   : > { %v15655_v4 = vsel %vm9543_vm7, %v15654_v12, %v15653_v7  ;;  %v14554_v26 = vmax.bf16 %v14283_v25, %v13863_v37  ;;  %v14555_v59 = vmax.bf16 %v14288_v35, %v13877_v38  ;;  %v14556_v55 = vmax.bf16 %v14293_v56, %v13879_v54 }
 0x608   : > { %v15728_v41 = vpack.c.b16 %v15655_v4, %v15655_v4  ;;  %v14557_v3 = vmax.bf16 %v14298_v57, %v13881_v18  ;;  %v14996_v34 = vrot.slane %v14550_v63, %v20802_v9  ;;  %v15010_v17 = vrot.slane %v14551_v28, %v20802_v9 }
 0x609   : > { %v15024_v48 = vrot.slane %v14552_v49, %v20802_v9  ;;  %v15038_v42 = vrot.slane %v14553_v22, %v20802_v9  ;;  %v15052_v1 = vrot.slane %v14554_v26, %v20802_v9  ;;  %v15066_v50 = vrot.slane %v14555_v59, %v20802_v9 }
 0x60a   : > { %15745 = vst.msk [vmem:[%s20872_s19 + $0x8] sm:$0xf] %vm15742_vm15, %v15728_v41  ;;  %v15003_v37 = vrot.slane %v14996_v34, %v20802_v9  ;;  %v15017_v44 = vrot.slane %v15010_v17, %v20802_v9  ;;  %v15080_v62 = vrot.slane %v14556_v55, %v20802_v9  ;;  %v15094_v45 = vrot.slane %v14557_v3, %v20802_v9 }
 0x60b   : > { %v15031_v38 = vrot.slane %v15024_v48, %v20802_v9  ;;  %v15045_v27 = vrot.slane %v15038_v42, %v20802_v9  ;;  %v15059_v54 = vrot.slane %v15052_v1, %v20802_v9  ;;  %v15073_v13 = vrot.slane %v15066_v50, %v20802_v9 }
 0x60c   : > { %v15087_v12 = vrot.slane %v15080_v62, %v20802_v9  ;;  %v15101_v31 = vrot.slane %v15094_v45, %v20802_v9  ;;  %v15574_v43 = vunpack.c.l.b16 %v15003_v37  ;;  %v15575_v5 = vunpack.c.l.b16 %v15017_v44 }
 0x60d   : > { %v15576_v18 = vunpack.c.l.b16 %v15031_v38  ;;  %v15577_v39 = vunpack.c.l.b16 %v15045_v27  ;;  %v15578_v36 = vunpack.c.l.b16 %v15059_v54  ;;  %v15579_v61 = vunpack.c.l.b16 %v15073_v13 }
 0x60e   : > { %v15580_v46 = vunpack.c.l.b16 %v15087_v12  ;;  %v15581_v25 = vunpack.c.l.b16 %v15101_v31  ;;  %v15656_v35 = vrot.slane %v15575_v5, 7  ;;  %v13674_v15 = vmax.bf16 %v20971_v23, %v20973_v8 }
 0x60f   : > { %v15658_v56 = vrot.slane %v15576_v18, 6  ;;  %v15660_v57 = vrot.slane %v15577_v39, 5  ;;  %v15662_v63 = vrot.slane %v15578_v36, 4  ;;  %v13644_v7 = vmax.f32 %v20966_v20, 0.0 }
 0x610   : > { %v15657_v28 = vsel %vm9525_vm1, %v15656_v35, %v15574_v43  ;;  %v15664_v49 = vrot.slane %v15579_v61, 3  ;;  %v15666_v22 = vrot.slane %v15580_v46, 2  ;;  %v13882_v4 = vcombine.high %v13674_v15, %v13674_v15 }
 0x611   : > { %v15659_v26 = vsel %vm9528_vm2, %v15658_v56, %v15657_v28  ;;  %v15668_v59 = vrot.slane %v15581_v25, 1  ;;  %v13889_v55 = vrot.slane %v13674_v15, %v17740_v33  ;;  %v17175_v41 = vadd.f32 %v20883_v53, %v20643_v19 }
 0x612   : > { %v15661_v23 = vsel %vm9531_vm3, %v15660_v57, %v15659_v26  ;;  %v13896_v8 = vrot.slane %v13882_v4, %v17740_v33  ;;  %v17176_v3 = vadd.f32 %v20888_v16, %v20645_v51  ;;  %v21047_v34 = vadd.f32 %v20903_v30, %v20650_v40 }
 0x613   : > { %v15663_v17 = vsel %vm9534_vm4, %v15662_v63, %v15661_v23  ;;  %v13897_v48 = vcombine.high %v13889_v55, %v13889_v55  ;;  %v13905_v42 = vrot.slane %v13889_v55, %v17740_v33  ;;  %v13642_v1 = vmax.f32 %v20976_v29, 0.0 }
 0x614   : > { %v15665_v19 = vsel %vm9537_vm5, %v15664_v49, %v15663_v17  ;;  %v13898_v53 = vcombine.high %v13896_v8, %v13896_v8  ;;  %v13912_v50 = vrot.slane %v13896_v8, %v17740_v33  ;;  %v13613_v37 = vadd.f32 %v17175_v41, %v20780_v52 }
 0x615   : > { %v15667_v51 = vsel %vm9540_vm6, %v15666_v22, %v15665_v19  ;;  %v13919_v40 = vrot.slane %v13897_v48, %v17740_v33  ;;  %v13927_v16 = vcombine.high %v13905_v42, %v13905_v42  ;;  %v14303_v30 = vshrl.u32 %v13905_v42, 16 }
 0x616   : > { %v15669_v44 = vsel %vm9543_vm7, %v15668_v59, %v15667_v51  ;;  %v13926_v62 = vrot.slane %v13898_v53, %v17740_v33  ;;  %v13928_v45 = vcombine.high %v13912_v50, %v13912_v50  ;;  %v14323_v38 = vshrl.u32 %v13912_v50, 16 }
 0x617   : > { %v15729_v27 = vpack.c.b16 %v15669_v44, %v15669_v44  ;;  %v13929_v54 = vcombine.high %v13919_v40, %v13919_v40  ;;  %v14308_v13 = vshrl.u32 %v13919_v40, 16  ;;  %v14313_v12 = vshrl.u32 %v13927_v16, 16 }
 0x618   : > { %v13930_v31 = vcombine.high %v13926_v62, %v13926_v62  ;;  %v14328_v43 = vshrl.u32 %v13926_v62, 16  ;;  %v14333_v5 = vshrl.u32 %v13928_v45, 16  ;;  %v14558_v18 = vmax.bf16 %v14303_v30, %v13905_v42 }
 0x619   : > { %15746 = vst.msk [vmem:[%s20872_s19 + $0xc] sm:$0xf] %vm15742_vm15, %v15729_v27  ;;  %v14318_v39 = vshrl.u32 %v13929_v54, 16  ;;  %v14559_v36 = vmax.bf16 %v14308_v13, %v13919_v40  ;;  %v14560_v61 = vmax.bf16 %v14313_v12, %v13927_v16  ;;  %v14562_v46 = vmax.bf16 %v14323_v38, %v13912_v50 }
 0x61a   : > { %v14338_v25 = vshrl.u32 %v13930_v31, 16  ;;  %v14563_v35 = vmax.bf16 %v14328_v43, %v13926_v62  ;;  %v14564_v15 = vmax.bf16 %v14333_v5, %v13928_v45  ;;  %v15108_v56 = vrot.slane %v14558_v18, %v20802_v9 }
 0x61b   : > { %v14561_v57 = vmax.bf16 %v14318_v39, %v13929_v54  ;;  %v15122_v63 = vrot.slane %v14559_v36, %v20802_v9  ;;  %v15136_v28 = vrot.slane %v14560_v61, %v20802_v9  ;;  %v15164_v49 = vrot.slane %v14562_v46, %v20802_v9 }
 0x61c   : > { %v14565_v22 = vmax.bf16 %v14338_v25, %v13930_v31  ;;  %v15115_v4 = vrot.slane %v15108_v56, %v20802_v9  ;;  %v15178_v26 = vrot.slane %v14563_v35, %v20802_v9  ;;  %v15192_v59 = vrot.slane %v14564_v15, %v20802_v9 }
 0x61d   : > { %v15129_v55 = vrot.slane %v15122_v63, %v20802_v9  ;;  %v15143_v41 = vrot.slane %v15136_v28, %v20802_v9  ;;  %v15150_v23 = vrot.slane %v14561_v57, %v20802_v9  ;;  %v15171_v8 = vrot.slane %v15164_v49, %v20802_v9 }
 0x61e   : > { %v15185_v17 = vrot.slane %v15178_v26, %v20802_v9  ;;  %v15199_v48 = vrot.slane %v15192_v59, %v20802_v9  ;;  %v15206_v42 = vrot.slane %v14565_v22, %v20802_v9  ;;  %v13611_v19 = vadd.f32 %v17176_v3, %v20780_v52 }
 0x61f   : > { %v15157_v53 = vrot.slane %v15150_v23, %v20802_v9  ;;  %v15583_v50 = vunpack.c.l.b16 %v15129_v55  ;;  %v15584_v51 = vunpack.c.l.b16 %v15143_v41  ;;  %v15586_v40 = vunpack.c.l.b16 %v15171_v8  ;;  %v21315_v55 = vld [vmem:[#allocation5_spill] sm:$0xff]  ;;  %v21316_v23 = vld [vmem:[#allocation4_spill] sm:$0xff] }
 0x620   : > { %v15213_v16 = vrot.slane %v15206_v42, %v20802_v9  ;;  %v15587_v30 = vunpack.c.l.b16 %v15185_v17  ;;  %v15588_v44 = vunpack.c.l.b16 %v15199_v48  ;;  %v13645_v62 = vmax.f32 %v13613_v37, 0.0 }
 0x621   : > { %v15582_v45 = vunpack.c.l.b16 %v15115_v4  ;;  %v15585_v38 = vunpack.c.l.b16 %v15157_v53  ;;  %v15670_v27 = vrot.slane %v15583_v50, 7  ;;  %v15672_v54 = vrot.slane %v15584_v51, 6 }
 0x622   : > { %v15589_v13 = vunpack.c.l.b16 %v15213_v16  ;;  %v15676_v12 = vrot.slane %v15586_v40, 4  ;;  %v15678_v31 = vrot.slane %v15587_v30, 3  ;;  %v13665_v3 = vpack.c.bf16 %v13645_v62, %v13644_v7 }
 0x623   : > { %v15671_v43 = vsel %vm9525_vm1, %v15670_v27, %v15582_v45  ;;  %v15674_v5 = vrot.slane %v15585_v38, 5  ;;  %v15680_v18 = vrot.slane %v15588_v44, 2  ;;  %v13643_v39 = vmax.f32 %v13611_v19, 0.0 }
 0x624   : > { %v15673_v36 = vsel %vm9528_vm2, %v15672_v54, %v15671_v43  ;;  %v13616_v37 = vadd.f32 %v21047_v34, %v20780_v52  ;;  %v17178_v61 = vadd.f32 %v20905_v10, %v20652_v32  ;;  %v17179_v46 = vadd.f32 %v20909_v11, %v20654_v21 }
 0x625   : > { %v15675_v25 = vsel %vm9531_vm3, %v15674_v5, %v15673_v36  ;;  %v15682_v20 = vrot.slane %v15589_v13, 1  ;;  %v13664_v7 = vpack.c.bf16 %v13643_v39, %v13642_v1  ;;  %v17180_v35 = vadd.f32 %v20916_v6, %v20659_v47 }
 0x626   : > { %v15677_v15 = vsel %vm9534_vm4, %v15676_v12, %v15675_v25  ;;  %v13614_v56 = vadd.f32 %v17178_v61, %v20780_v52  ;;  %v13617_v34 = vadd.f32 %v17179_v46, %v20780_v52  ;;  %v17181_v32 = vadd.f32 %v20938_v0, %v20666_v2 }
 0x627   : > { %v15679_v21 = vsel %vm9537_vm5, %v15678_v31, %v15677_v15  ;;  %v13675_v10 = vmax.bf16 %v13665_v3, %v13664_v7  ;;  %v13615_v11 = vadd.f32 %v17180_v35, %v20780_v52  ;;  %v21102_v29 = vadd.f32 %v20944_v60, %v20668_v14 }
 0x628   : > { %v15681_v47 = vsel %vm9540_vm6, %v15680_v18, %v15679_v21  ;;  %v13648_v6 = vmax.f32 %v13616_v37, 0.0  ;;  %v13646_v1 = vmax.f32 %v13614_v56, 0.0  ;;  %v13649_v57 = vmax.f32 %v13617_v34, 0.0 }
 0x629   : > { %v15683_v63 = vsel %vm9543_vm7, %v15682_v20, %v15681_v47  ;;  %v13931_v28 = vcombine.high %v13675_v10, %v13675_v10  ;;  %v13938_v2 = vrot.slane %v13675_v10, %v17740_v33  ;;  %v13647_v0 = vmax.f32 %v13615_v11, 0.0 }
 0x62a   : > { %v15730_v49 = vpack.c.b16 %v15683_v63, %v15683_v63  ;;  %v13667_v22 = vpack.c.bf16 %v13649_v57, %v13648_v6  ;;  %v21108_v4 = vadd.f32 %v17181_v32, %v20780_v52  ;;  %v17183_v41 = vadd.f32 %v20951_v58, %v21315_v55 }
 0x62b   : > { %v13945_v14 = vrot.slane %v13931_v28, %v17740_v33  ;;  %v13946_v60 = vcombine.high %v13938_v2, %v13938_v2  ;;  %v13954_v26 = vrot.slane %v13938_v2, %v17740_v33  ;;  %v13666_v59 = vpack.c.bf16 %v13647_v0, %v13646_v1 }
 0x62c   : > { %15747 = vst.msk [vmem:[%s20872_s19 + $0x10] sm:$0xf] %vm15742_vm15, %v15730_v49  ;;  %v21118_v8 = vadd.f32 %v20958_v24, %v21316_v23  ;;  %v13652_v51 = vmax.f32 %v21108_v4, 0.0  ;;  %v21124_v40 = vadd.f32 %v17183_v41, %v20780_v52 }
 0x62d   : > { %v13947_v17 = vcombine.high %v13945_v14, %v13945_v14  ;;  %v13961_v48 = vrot.slane %v13945_v14, %v17740_v33  ;;  %v13968_v42 = vrot.slane %v13946_v60, %v17740_v33  ;;  %v13976_v19 = vcombine.high %v13954_v26, %v13954_v26 }
 0x62e   : > { %v14343_v53 = vshrl.u32 %v13954_v26, 16  ;;  %v13676_v50 = vmax.bf16 %v13667_v22, %v13666_v59 }
 0x62f   : > { %v13975_v16 = vrot.slane %v13947_v17, %v17740_v33  ;;  %v13977_v58 = vcombine.high %v13961_v48, %v13961_v48  ;;  %v13978_v30 = vcombine.high %v13968_v42, %v13968_v42  ;;  %v14348_v44 = vshrl.u32 %v13968_v42, 16 }
 0x630   : > { %v14353_v24 = vshrl.u32 %v13976_v19, 16  ;;  %v14363_v62 = vshrl.u32 %v13961_v48, 16  ;;  %v14566_v45 = vmax.bf16 %v14343_v53, %v13954_v26  ;;  %v13980_v38 = vcombine.high %v13676_v50, %v13676_v50 }
 0x631   : > { %v13979_v27 = vcombine.high %v13975_v16, %v13975_v16  ;;  %v14358_v54 = vshrl.u32 %v13978_v30, 16  ;;  %v14368_v13 = vshrl.u32 %v13975_v16, 16  ;;  %v14373_v12 = vshrl.u32 %v13977_v58, 16 }
 0x632   : > { %v14567_v31 = vmax.bf16 %v14348_v44, %v13968_v42  ;;  %v14568_v3 = vmax.bf16 %v14353_v24, %v13976_v19  ;;  %v14570_v43 = vmax.bf16 %v14363_v62, %v13961_v48  ;;  %v15220_v5 = vrot.slane %v14566_v45, %v20802_v9 }
 0x633   : > { %v14378_v52 = vshrl.u32 %v13979_v27, 16  ;;  %v14569_v18 = vmax.bf16 %v14358_v54, %v13978_v30  ;;  %v14571_v39 = vmax.bf16 %v14368_v13, %v13975_v16  ;;  %v14572_v36 = vmax.bf16 %v14373_v12, %v13977_v58 }
 0x634   : > { %v15227_v37 = vrot.slane %v15220_v5, %v20802_v9  ;;  %v15234_v61 = vrot.slane %v14567_v31, %v20802_v9  ;;  %v15248_v46 = vrot.slane %v14568_v3, %v20802_v9  ;;  %v15276_v25 = vrot.slane %v14570_v43, %v20802_v9 }
 0x635   : > { %v14573_v20 = vmax.bf16 %v14378_v52, %v13979_v27  ;;  %v15262_v7 = vrot.slane %v14569_v18, %v20802_v9  ;;  %v15290_v35 = vrot.slane %v14571_v39, %v20802_v9  ;;  %v15304_v15 = vrot.slane %v14572_v36, %v20802_v9 }
 0x636   : > { %v15241_v56 = vrot.slane %v15234_v61, %v20802_v9  ;;  %v15255_v34 = vrot.slane %v15248_v46, %v20802_v9  ;;  %v15283_v32 = vrot.slane %v15276_v25, %v20802_v9  ;;  %v15590_v21 = vunpack.c.l.b16 %v15227_v37 }
 0x637   : > { %v15269_v10 = vrot.slane %v15262_v7, %v20802_v9  ;;  %v15297_v11 = vrot.slane %v15290_v35, %v20802_v9  ;;  %v15311_v47 = vrot.slane %v15304_v15, %v20802_v9  ;;  %v15318_v6 = vrot.slane %v14573_v20, %v20802_v9 }
 0x638   : > { %v15591_v1 = vunpack.c.l.b16 %v15241_v56  ;;  %v15592_v57 = vunpack.c.l.b16 %v15255_v34  ;;  %v15594_v63 = vunpack.c.l.b16 %v15283_v32  ;;  %v13987_v28 = vrot.slane %v13676_v50, %v17740_v33 }
 0x639   : > { %v15325_v2 = vrot.slane %v15318_v6, %v20802_v9  ;;  %v15593_v0 = vunpack.c.l.b16 %v15269_v10  ;;  %v15595_v49 = vunpack.c.l.b16 %v15297_v11  ;;  %v15596_v22 = vunpack.c.l.b16 %v15311_v47 }
 0x63a   : > { %v15684_v14 = vrot.slane %v15591_v1, 7  ;;  %v15686_v60 = vrot.slane %v15592_v57, 6  ;;  %v15690_v26 = vrot.slane %v15594_v63, 4  ;;  %v13994_v59 = vrot.slane %v13980_v38, %v17740_v33 }
 0x63b   : > { %v15597_v55 = vunpack.c.l.b16 %v15325_v2  ;;  %v15688_v41 = vrot.slane %v15593_v0, 5  ;;  %v15692_v23 = vrot.slane %v15595_v49, 3  ;;  %v15694_v17 = vrot.slane %v15596_v22, 2 }
 0x63c   : > { %v15685_v48 = vsel %vm9525_vm1, %v15684_v14, %v15590_v21  ;;  %v13995_v42 = vcombine.high %v13987_v28, %v13987_v28  ;;  %v13996_v19 = vcombine.high %v13994_v59, %v13994_v59  ;;  %v14003_v53 = vrot.slane %v13987_v28, %v17740_v33 }
 0x63d   : > { %v15687_v50 = vsel %vm9528_vm2, %v15686_v60, %v15685_v48  ;;  %v15696_v16 = vrot.slane %v15597_v55, 1  ;;  %v14010_v58 = vrot.slane %v13994_v59, %v17740_v33  ;;  %v13653_v30 = vmax.f32 %v21124_v40, 0.0  ;;  %v17530_v60 = vld [vmem:[%s21229_s4] ss:$0 sm:$0xff] }
 0x63e   : > { %v15689_v44 = vsel %vm9531_vm3, %v15688_v41, %v15687_v50  ;;  %v14017_v24 = vrot.slane %v13995_v42, %v17740_v33  ;;  %v14024_v62 = vrot.slane %v13996_v19, %v17740_v33  ;;  %v14025_v45 = vcombine.high %v14003_v53, %v14003_v53 }
 0x63f   : > { %v15691_v38 = vsel %vm9534_vm4, %v15690_v26, %v15689_v44  ;;  %v14026_v27 = vcombine.high %v14010_v58, %v14010_v58  ;;  %v14383_v54 = vshrl.u32 %v14003_v53, 16  ;;  %v14403_v13 = vshrl.u32 %v14010_v58, 16 }
 0x640   : > { %v15693_v12 = vsel %vm9537_vm5, %v15692_v23, %v15691_v38  ;;  %v14027_v31 = vcombine.high %v14017_v24, %v14017_v24  ;;  %v14028_v3 = vcombine.high %v14024_v62, %v14024_v62  ;;  %v14388_v43 = vshrl.u32 %v14017_v24, 16 }
 0x641   : > { %v15695_v5 = vsel %vm9540_vm6, %v15694_v17, %v15693_v12  ;;  %v14393_v40 = vshrl.u32 %v14025_v45, 16  ;;  %v14408_v52 = vshrl.u32 %v14024_v62, 16  ;;  %v14413_v18 = vshrl.u32 %v14026_v27, 16 }
 0x642   : > { %v15697_v39 = vsel %vm9543_vm7, %v15696_v16, %v15695_v5  ;;  %v14398_v36 = vshrl.u32 %v14027_v31, 16  ;;  %v14418_v37 = vshrl.u32 %v14028_v3, 16  ;;  %v14574_v61 = vmax.bf16 %v14383_v54, %v14003_v53 }
 0x643   : > { %v15731_v46 = vpack.c.b16 %v15697_v39, %v15697_v39  ;;  %v14575_v25 = vmax.bf16 %v14388_v43, %v14017_v24  ;;  %v14576_v20 = vmax.bf16 %v14393_v40, %v14025_v45  ;;  %v14578_v7 = vmax.bf16 %v14403_v13, %v14010_v58 }
 0x644   : > { %v14577_v35 = vmax.bf16 %v14398_v36, %v14027_v31  ;;  %v14579_v15 = vmax.bf16 %v14408_v52, %v14024_v62  ;;  %v14580_v56 = vmax.bf16 %v14413_v18, %v14026_v27  ;;  %v14581_v34 = vmax.bf16 %v14418_v37, %v14028_v3 }
 0x645   : > { %15748 = vst.msk [vmem:[%s20872_s19 + $0x14] sm:$0xf] %vm15742_vm15, %v15731_v46  ;;  %v15332_v32 = vrot.slane %v14574_v61, %v20802_v9  ;;  %v15346_v21 = vrot.slane %v14575_v25, %v20802_v9  ;;  %v15360_v10 = vrot.slane %v14576_v20, %v20802_v9  ;;  %v15388_v11 = vrot.slane %v14578_v7, %v20802_v9 }
 0x646   : > { %v15374_v47 = vrot.slane %v14577_v35, %v20802_v9  ;;  %v15402_v6 = vrot.slane %v14579_v15, %v20802_v9  ;;  %v15416_v1 = vrot.slane %v14580_v56, %v20802_v9  ;;  %v15430_v57 = vrot.slane %v14581_v34, %v20802_v9 }
 0x647   : > { %v15339_v63 = vrot.slane %v15332_v32, %v20802_v9  ;;  %v15353_v28 = vrot.slane %v15346_v21, %v20802_v9  ;;  %v15367_v2 = vrot.slane %v15360_v10, %v20802_v9  ;;  %v15395_v0 = vrot.slane %v15388_v11, %v20802_v9 }
 0x648   : > { %v15381_v49 = vrot.slane %v15374_v47, %v20802_v9  ;;  %v15409_v22 = vrot.slane %v15402_v6, %v20802_v9  ;;  %v15423_v14 = vrot.slane %v15416_v1, %v20802_v9  ;;  %v13618_v26 = vadd.f32 %v17530_v60, %v21102_v29 }
 0x649   : > { %v15437_v59 = vrot.slane %v15430_v57, %v20802_v9  ;;  %v15599_v55 = vunpack.c.l.b16 %v15353_v28  ;;  %v15600_v41 = vunpack.c.l.b16 %v15367_v2  ;;  %v13619_v23 = vadd.f32 %v17530_v60, %v21118_v8 }
 0x64a   : > { %v15598_v17 = vunpack.c.l.b16 %v15339_v63  ;;  %v15601_v48 = vunpack.c.l.b16 %v15381_v49  ;;  %v15602_v42 = vunpack.c.l.b16 %v15395_v0  ;;  %v15603_v19 = vunpack.c.l.b16 %v15409_v22 }
 0x64b   : > { %v15698_v53 = vrot.slane %v15599_v55, 7  ;;  %v15700_v50 = vrot.slane %v15600_v41, 6  ;;  %v13669_v16 = vpack.c.bf16 %v13653_v30, %v13652_v51  ;;  %v15604_v58 = vunpack.c.l.b16 %v15423_v14 }
 0x64c   : > { %v15702_v44 = vrot.slane %v15601_v48, 5  ;;  %v15605_v24 = vunpack.c.l.b16 %v15437_v59  ;;  %v13650_v62 = vmax.f32 %v13618_v26, 0.0  ;;  %v13651_v45 = vmax.f32 %v13619_v23, 0.0 }
 0x64d   : > { %v15699_v29 = vsel %vm9525_vm1, %v15698_v53, %v15598_v17  ;;  %v15704_v27 = vrot.slane %v15602_v42, 4  ;;  %v15706_v54 = vrot.slane %v15603_v19, 3  ;;  %v15708_v31 = vrot.slane %v15604_v58, 2 }
 0x64e   : > { %v15701_v38 = vsel %vm9528_vm2, %v15700_v50, %v15699_v29  ;;  %v13668_v13 = vpack.c.bf16 %v13651_v45, %v13650_v62  ;;  %v15710_v51 = vrot.slane %v15605_v24, 1 }
 0x64f   : > { %v15703_v8 = vsel %vm9531_vm3, %v15702_v44, %v15701_v38 }
 0x650   : > { %v15705_v12 = vsel %vm9534_vm4, %v15704_v27, %v15703_v8  ;;  %v13677_v30 = vmax.bf16 %v13669_v16, %v13668_v13 }
 0x651   : > { %v15707_v4 = vsel %vm9537_vm5, %v15706_v54, %v15705_v12 }
 0x652   : > { %v15709_v3 = vsel %vm9540_vm6, %v15708_v31, %v15707_v4  ;;  %v14029_v5 = vcombine.high %v13677_v30, %v13677_v30  ;;  %v14036_v40 = vrot.slane %v13677_v30, %v17740_v33 }
 0x653   : > { %v15711_v43 = vsel %vm9543_vm7, %v15710_v51, %v15709_v3 }
 0x654   : > { %v15732_v52 = vpack.c.b16 %v15711_v43, %v15711_v43  ;;  %v14043_v18 = vrot.slane %v14029_v5, %v17740_v33  ;;  %v14044_v39 = vcombine.high %v14036_v40, %v14036_v40  ;;  %v14052_v36 = vrot.slane %v14036_v40, %v17740_v33 }
 0x656   : > { %15749 = vst.msk [vmem:[%s20872_s19 + $0x18] sm:$0xf] %vm15742_vm15, %v15732_v52  ;;  %v14045_v37 = vcombine.high %v14043_v18, %v14043_v18  ;;  %v14059_v61 = vrot.slane %v14043_v18, %v17740_v33  ;;  %v14066_v46 = vrot.slane %v14044_v39, %v17740_v33  ;;  %v14074_v25 = vcombine.high %v14052_v36, %v14052_v36 }
 0x657   : > { %v14423_v20 = vshrl.u32 %v14052_v36, 16 }
 0x658   : > { %v14073_v7 = vrot.slane %v14045_v37, %v17740_v33  ;;  %v14075_v35 = vcombine.high %v14059_v61, %v14059_v61  ;;  %v14076_v15 = vcombine.high %v14066_v46, %v14066_v46  ;;  %v14428_v56 = vshrl.u32 %v14066_v46, 16 }
 0x659   : > { %v14433_v34 = vshrl.u32 %v14074_v25, 16  ;;  %v14443_v32 = vshrl.u32 %v14059_v61, 16  ;;  %v14582_v21 = vmax.bf16 %v14423_v20, %v14052_v36 }
 0x65a   : > { %v14077_v10 = vcombine.high %v14073_v7, %v14073_v7  ;;  %v14438_v11 = vshrl.u32 %v14076_v15, 16  ;;  %v14448_v47 = vshrl.u32 %v14073_v7, 16  ;;  %v14453_v6 = vshrl.u32 %v14075_v35, 16 }
 0x65b   : > { %v14583_v1 = vmax.bf16 %v14428_v56, %v14066_v46  ;;  %v14584_v57 = vmax.bf16 %v14433_v34, %v14074_v25  ;;  %v14586_v63 = vmax.bf16 %v14443_v32, %v14059_v61  ;;  %v15444_v28 = vrot.slane %v14582_v21, %v20802_v9 }
 0x65c   : > { %v14458_v2 = vshrl.u32 %v14077_v10, 16  ;;  %v14585_v0 = vmax.bf16 %v14438_v11, %v14076_v15  ;;  %v14587_v49 = vmax.bf16 %v14448_v47, %v14073_v7  ;;  %v14588_v22 = vmax.bf16 %v14453_v6, %v14075_v35 }
 0x65d   : > { %v15458_v33 = vrot.slane %v14583_v1, %v20802_v9  ;;  %v15472_v14 = vrot.slane %v14584_v57, %v20802_v9  ;;  %v15500_v60 = vrot.slane %v14586_v63, %v20802_v9  ;;  %v15451_v23 = vrot.slane %v15444_v28, %v20802_v9 }
 0x65e   : > { %v14589_v26 = vmax.bf16 %v14458_v2, %v14077_v10  ;;  %v15486_v59 = vrot.slane %v14585_v0, %v20802_v9  ;;  %v15514_v55 = vrot.slane %v14587_v49, %v20802_v9  ;;  %v15528_v41 = vrot.slane %v14588_v22, %v20802_v9 }
 0x65f   : > { %v15465_v17 = vrot.slane %v15458_v33, %v20802_v9  ;;  %v15479_v48 = vrot.slane %v15472_v14, %v20802_v9  ;;  %v15507_v42 = vrot.slane %v15500_v60, %v20802_v9  ;;  %v15606_v45 = vunpack.c.l.b16 %v15451_v23 }
 0x660   : > { %v15493_v19 = vrot.slane %v15486_v59, %v20802_v9  ;;  %v15521_v53 = vrot.slane %v15514_v55, %v20802_v9  ;;  %v15535_v50 = vrot.slane %v15528_v41, %v20802_v9  ;;  %v15542_v16 = vrot.slane %v14589_v26, %v20802_v9 }
 0x661   : > { %v15607_v58 = vunpack.c.l.b16 %v15465_v17  ;;  %v15608_v44 = vunpack.c.l.b16 %v15479_v48  ;;  %v15610_v62 = vunpack.c.l.b16 %v15507_v42 }
 0x662   : > { %v15549_v24 = vrot.slane %v15542_v16, %v20802_v9  ;;  %v15609_v29 = vunpack.c.l.b16 %v15493_v19  ;;  %v15611_v38 = vunpack.c.l.b16 %v15521_v53  ;;  %v15612_v54 = vunpack.c.l.b16 %v15535_v50 }
 0x663   : > { %v15712_v27 = vrot.slane %v15607_v58, 7  ;;  %v15714_v8 = vrot.slane %v15608_v44, 6  ;;  %v15718_v51 = vrot.slane %v15610_v62, 4 }
 0x664   : > { %v15716_v13 = vrot.slane %v15609_v29, 5  ;;  %v15613_v12 = vunpack.c.l.b16 %v15549_v24  ;;  %v15720_v3 = vrot.slane %v15611_v38, 3  ;;  %v15722_v43 = vrot.slane %v15612_v54, 2 }
 0x665   : > { %v15713_v31 = vsel %vm9525_vm1, %v15712_v27, %v15606_v45 }
 0x666   : > { %v15715_v4 = vsel %vm9528_vm2, %v15714_v8, %v15713_v31  ;;  %v15724_v40 = vrot.slane %v15613_v12, 1 }
 0x667   : > { %v15717_v30 = vsel %vm9531_vm3, %v15716_v13, %v15715_v4 }
 0x668   : > { %v15719_v9 = vsel %vm9534_vm4, %v15718_v51, %v15717_v30 }
 0x669   : > { %v15721_v5 = vsel %vm9537_vm5, %v15720_v3, %v15719_v9 }
 0x66a   : > { %v15723_v52 = vsel %vm9540_vm6, %v15722_v43, %v15721_v5 }
 0x66b   : > { %v15725_v18 = vsel %vm9543_vm7, %v15724_v40, %v15723_v52 }
 0x66c   : > { %v15733_v39 = vpack.c.b16 %v15725_v18, %v15725_v18 }
 0x66e   : > { %15750 = vst.msk [vmem:[%s20872_s19 + $0x1c] sm:$0xf] %vm15742_vm15, %v15733_v39 }
 0x66f PF: > { %s15_s18 = sadd.s32 1, %s17537_s18  }
 0x670   : > { %p12_p4 = scmp.ge.s32.totalorder %s15_s18, 4  }
 0x672   :  { %14 = sbr.rel (!%p12_p4) target bundleno = 1 (0x1), region = 81 }

</bundles_post_ra>
